<compile_context>
chip_gen: v7x
topology: tpu7x:2x2x1
jax: 0.10.0
libtpu: 0.0.40
codegen_flags: <defaults>
</compile_context>

<pallas_src>
import functools
import jax
import jax.numpy as jnp
from jax import lax
from jax.experimental import pallas as pl
from jax.experimental.pallas import tpu as pltpu


def _pick_tile(dim, cap):
    """Largest 128-friendly tile <= cap that evenly divides dim (or the full dim if small)."""
    if dim <= cap:
        return dim
    for t in (1024, 768, 512, 384, 256, 128):
        if t <= cap and dim % t == 0:
            return t
    raise ValueError(f"no 128-friendly tile divides dim={dim} (cap={cap}); pad the input")


def _layernorm(z, g, bt, eps):
    mean = jnp.mean(z, axis=-1, keepdims=True)
    zc = z - mean
    var = jnp.mean(zc * zc, axis=-1, keepdims=True)
    inv = lax.rsqrt(var + eps)
    return (zc * inv) * g + bt


# --------------------- fused attention sublayer (1 call) ---------------------

def _attn_block_kernel(valid_ref, x_ref, wqkv_ref, bqkv_ref, wo_ref, bo_ref, g_ref, bt_ref,
                       o_ref, qkv_s, *, num_heads, head_dim, hidden, seq_len, eps):
    b = pl.program_id(0)
    vl = valid_ref[b]                                           # scalar valid length (SMEM)
    xb = x_ref[...]                                             # (S, D) bf16
    # Fused Q|K|V projection; 1/sqrt(head_dim) is folded into Wq/bq at param build time.
    qkv = jnp.dot(xb, wqkv_ref[...], preferred_element_type=jnp.float32) + bqkv_ref[...]
    qkv_s[...] = qkv.astype(jnp.bfloat16)                       # park in VMEM scratch (bf16)

    # d2l masked_softmax: keys at positions >= valid_len are masked out.
    col = lax.broadcasted_iota(jnp.int32, (seq_len, seq_len), 1)
    keep = col < vl

    heads = []
    # TODO(synk): head_dim=64 slices are 64-lane (half-vreg) extracts; pairing heads into
    # 128-lane slabs with a batched dot_general would remove the XLU lane shifts.
    for h in range(num_heads):
        lo = h * head_dim
        q = qkv_s[:, lo:lo + head_dim]                          # (S, Dh) bf16 ref-view loads
        k = qkv_s[:, hidden + lo:hidden + lo + head_dim]
        v = qkv_s[:, 2 * hidden + lo:2 * hidden + lo + head_dim]
        s = lax.dot_general(q, k, (((1,), (1,)), ((), ())),     # q @ k.T without a transpose op
                            preferred_element_type=jnp.float32)
        s = jnp.where(keep, s, -1e6)
        m = jnp.max(s, axis=-1, keepdims=True)
        p = jnp.exp(s - m)
        p = p * pl.reciprocal(jnp.sum(p, axis=-1, keepdims=True), approx=True)
        heads.append(jnp.dot(p.astype(jnp.bfloat16), v, preferred_element_type=jnp.float32))

    att = jnp.concatenate(heads, axis=-1).astype(jnp.bfloat16)  # (S, D) lane-dense
    y = jnp.dot(att, wo_ref[...], preferred_element_type=jnp.float32) + bo_ref[...]
    z = xb.astype(jnp.float32) + y                              # residual add (dropout = id)
    o_ref[...] = _layernorm(z, g_ref[...], bt_ref[...], eps).astype(o_ref.dtype)  # one store


def attn_block(x, valid_lens, p, num_heads, batch, seq_len, eps=1e-5):
    """x: (B*S, D) bf16 -> LayerNorm(x + MHA(x) @ Wo + bo), (B*S, D) bf16."""
    M, hidden = x.shape
    head_dim = hidden // num_heads
    h3 = 3 * hidden
    const = lambda shape: pl.BlockSpec(shape, lambda b, vl: (0, 0))
    return pl.pallas_call(
        functools.partial(_attn_block_kernel, num_heads=num_heads, head_dim=head_dim,
                          hidden=hidden, seq_len=seq_len, eps=eps),
        out_shape=jax.ShapeDtypeStruct((M, hidden), jnp.bfloat16),
        grid_spec=pltpu.PrefetchScalarGridSpec(
            num_scalar_prefetch=1,
            grid=(batch,),
            in_specs=[
                pl.BlockSpec((seq_len, hidden), lambda b, vl: (b, 0)),
                const((hidden, h3)),        # w_qkv  (resident across batch steps)
                const((1, h3)),             # b_qkv
                const((hidden, hidden)),    # wo
                const((1, hidden)),         # bo
                const((1, hidden)),         # ln gamma
                const((1, hidden)),         # ln beta
            ],
            out_specs=pl.BlockSpec((seq_len, hidden), lambda b, vl: (b, 0)),
            scratch_shapes=[pltpu.VMEM((seq_len, h3), jnp.bfloat16)],
        ),
        compiler_params=pltpu.CompilerParams(dimension_semantics=("parallel",)),
    )(valid_lens, x, p["w_qkv"], p["b_qkv"], p["wo"], p["bo"], p["ln1_g"], p["ln1_b"])


# ------------------------ fused FFN sublayer (1 call) ------------------------

def _ffn_block_kernel(y_ref, w1_ref, b1_ref, w2_ref, b2_ref, g_ref, bt_ref, o_ref, *, eps):
    yb = y_ref[...]                                                       # (tm, D) bf16
    h = jnp.dot(yb, w1_ref[...], preferred_element_type=jnp.float32) + b1_ref[...]
    h = jnp.maximum(h, 0.0).astype(jnp.bfloat16)                          # ReLU -> bf16 MXU input
    u = jnp.dot(h, w2_ref[...], preferred_element_type=jnp.float32) + b2_ref[...]
    z = yb.astype(jnp.float32) + u                                        # residual (dropout = id)
    o_ref[...] = _layernorm(z, g_ref[...], bt_ref[...], eps).astype(o_ref.dtype)


def ffn_block(y, p, eps=1e-5):
    """y: (M, D) bf16 -> LayerNorm(y + relu(y @ W1 + b1) @ W2 + b2), (M, D) bf16."""
    M, hidden = y.shape
    ffn = p["w1"].shape[1]
    tm = _pick_tile(M, 256)
    const = lambda shape: pl.BlockSpec(shape, lambda i: (0, 0))
    return pl.pallas_call(
        functools.partial(_ffn_block_kernel, eps=eps),
        out_shape=jax.ShapeDtypeStruct((M, hidden), jnp.bfloat16),
        grid=(M // tm,),
        in_specs=[
            pl.BlockSpec((tm, hidden), lambda i: (i, 0)),
            const((hidden, ffn)),       # w1 (resident)
            const((1, ffn)),            # b1
            const((ffn, hidden)),       # w2 (resident)
            const((1, hidden)),         # b2
            const((1, hidden)),         # ln gamma
            const((1, hidden)),         # ln beta
        ],
        out_specs=pl.BlockSpec((tm, hidden), lambda i: (i, 0)),
        compiler_params=pltpu.CompilerParams(
            dimension_semantics=("parallel",),
            # 2 x double-buffered 4.5 MiB bf16 weights (~18.5 MiB total working set) exceed
            # v5e's 16 MiB default scoped VMEM; 28 MiB fits physical VMEM on v5e/v6e/v7x.
            vmem_limit_bytes=28 * 1024 * 1024),
    )(y, p["w1"], p["b1"], p["w2"], p["b2"], p["ln2_g"], p["ln2_b"])


# ------------------------ generic tiled linear (pooler) -----------------------

def _linear_kernel(x_ref, w_ref, b_ref, o_ref, *, activation):
    y = jnp.dot(x_ref[...], w_ref[...], preferred_element_type=jnp.float32) + b_ref[...]
    if activation == "relu":
        y = jnp.maximum(y, 0.0)
    elif activation == "tanh":
        y = jnp.tanh(y)
    o_ref[...] = y.astype(o_ref.dtype)


def linear(x, w, b, activation="none", out_dtype=jnp.bfloat16):
    """x: (M, K) bf16, w: (K, N) bf16, b: (1, N) f32 -> (M, N)."""
    M, K = x.shape
    K2, N = w.shape
    assert K == K2 and b.shape == (1, N)
    tm = _pick_tile(M, 256)
    tn = _pick_tile(N, 1024)
    return pl.pallas_call(
        functools.partial(_linear_kernel, activation=activation),
        out_shape=jax.ShapeDtypeStruct((M, N), out_dtype),
        grid=(M // tm, N // tn),
        in_specs=[
            pl.BlockSpec((tm, K), lambda i, j: (i, 0)),
            pl.BlockSpec((K, tn), lambda i, j: (0, j)),
            pl.BlockSpec((1, tn), lambda i, j: (0, j)),
        ],
        out_specs=pl.BlockSpec((tm, tn), lambda i, j: (i, j)),
        compiler_params=pltpu.CompilerParams(
            dimension_semantics=("parallel", "parallel")),
    )(x, w, b)


# ------------------------------- Model glue --------------------------------

def encoder_block(x2, valid_lens, p, num_heads, batch, seq_len):
    y = attn_block(x2, valid_lens, p, num_heads, batch, seq_len)   # MHA sublayer, one call
    return ffn_block(y, p)                                          # FFN sublayer, one call


def bert_classifier(params, tokens, segments, valid_lens):
    B, S = tokens.shape
    D = params["hidden"]
    assert S % 8 == 0, "seq_len must be a multiple of 8 (sublane tiling of per-batch blocks)"
    # embeddings: plain-JAX gather (glue), matches d2l BERTEncoder
    x = (params["tok_emb"][tokens]
         + params["seg_emb"][segments]
         + params["pos_emb"][:, :S, :])
    x2 = x.reshape(B * S, D).astype(jnp.bfloat16)                   # bf16 activation storage
    for blk in params["blocks"]:
        x2 = encoder_block(x2, valid_lens, blk, params["num_heads"], B, S)
    cls = x2.reshape(B, S, D)[:, 0, :]                              # <CLS> rows, (B, 768)
    h = linear(cls, params["hid_w"], params["hid_b"], activation="tanh",
               out_dtype=jnp.float32)                               # bert.hidden (Linear+Tanh)
    # 768 -> 3 head in plain JAX: a 3-lane output forces masked partial stores and
    # pallas_call overhead dwarfs the ~4.6 KFLOP matmul.
    return h @ params["out_w"] + params["out_b"]


# ----------------------------- Param construction --------------------------

def init_params(key, *, vocab=100, max_len=64, hidden=768, heads=12, layers=2, ffn=3072):
    def nrm(k, shape, std=0.02):
        return (std * jax.random.normal(k, shape)).astype(jnp.float32)

    head_dim = hidden // heads
    scale = 1.0 / (head_dim ** 0.5)
    keys = iter(jax.random.split(key, 8 + layers * 16))
    zeros_row = lambda n: jnp.zeros((1, n), jnp.float32)   # biases pre-shaped (1, N)
    ones_row = lambda n: jnp.ones((1, n), jnp.float32)
    params = {
        "num_heads": heads,
        "hidden": hidden,
        "tok_emb": nrm(next(keys), (vocab, hidden)),
        "seg_emb": nrm(next(keys), (2, hidden)),
        "pos_emb": nrm(next(keys), (1, max_len, hidden)),
        "hid_w": nrm(next(keys), (hidden, hidden)).astype(jnp.bfloat16),
        "hid_b": zeros_row(hidden),
        "out_w": nrm(next(keys), (hidden, 3)),
        "out_b": jnp.zeros((3,), jnp.float32),
        "blocks": [],
    }
    for _ in range(layers):
        wq = nrm(next(keys), (hidden, hidden))
        wk = nrm(next(keys), (hidden, hidden))
        wv = nrm(next(keys), (hidden, hidden))
        # Fuse Q|K|V into one (hidden, 3*hidden) matmul; fold 1/sqrt(head_dim) into Wq/bq.
        w_qkv = jnp.concatenate([wq * scale, wk, wv], axis=1).astype(jnp.bfloat16)
        blk = {
            "w_qkv": w_qkv, "b_qkv": zeros_row(3 * hidden),
            "wo": nrm(next(keys), (hidden, hidden)).astype(jnp.bfloat16),
            "bo": zeros_row(hidden),
            "ln1_g": ones_row(hidden), "ln1_b": zeros_row(hidden),
            "w1": nrm(next(keys), (hidden, ffn)).astype(jnp.bfloat16),
            "b1": zeros_row(ffn),
            "w2": nrm(next(keys), (ffn, hidden)).astype(jnp.bfloat16),
            "b2": zeros_row(hidden),
            "ln2_g": ones_row(hidden), "ln2_b": zeros_row(hidden),
        }
        params["blocks"].append(blk)
    return params


# ----------------------------------- Main -----------------------------------

if __name__ == "__main__":
    B, S = 2, 8
    key = jax.random.PRNGKey(0)
    kp, kt, ks, kv = jax.random.split(key, 4)

    params = init_params(kp, vocab=100, max_len=64, hidden=768, heads=12, layers=2, ffn=3072)

    tokens = jax.random.randint(kt, (B, S), 0, 100, dtype=jnp.int32)
    segments = jax.random.randint(ks, (B, S), 0, 2, dtype=jnp.int32)
    valid_lens = jax.random.randint(kv, (B,), 1, S + 1, dtype=jnp.int32)

    logits = bert_classifier(params, tokens, segments, valid_lens)   # (B, 3)
    jax.block_until_ready(logits)
    assert logits.shape == (B, 3) and logits.dtype == jnp.float32
    print("KERNEL_OK")
</pallas_src>

<mosaic_0001>
module attributes {stable_mosaic.version = 11 : i64} {
  func.func @_attn_block_kernel(%arg0: i32, %arg1: memref<2xi32, #tpu.memory_space<smem>>, %arg2: memref<8x768xbf16, #tpu.memory_space<vmem>>, %arg3: memref<768x2304xbf16, #tpu.memory_space<vmem>>, %arg4: memref<1x2304xf32, #tpu.memory_space<vmem>>, %arg5: memref<768x768xbf16, #tpu.memory_space<vmem>>, %arg6: memref<1x768xf32, #tpu.memory_space<vmem>>, %arg7: memref<1x768xf32, #tpu.memory_space<vmem>>, %arg8: memref<1x768xf32, #tpu.memory_space<vmem>>, %arg9: memref<8x768xbf16, #tpu.memory_space<vmem>>, %arg10: memref<8x2304xbf16, #tpu.memory_space<vmem>>) attributes {dimension_semantics = [#tpu.dimension_semantics<parallel>], iteration_bounds = array<i64: 2>, scalar_prefetch = 1 : i64, scratch_operands = 1 : i64, tpu.core_type = #tpu.core_type<tc>, window_params = [{transform_indices = @transform_0, window_bounds = array<i64: 8, 768>}, {pipeline_mode = #tpu.pipeline_mode<synchronous>, transform_indices = @transform_1, window_bounds = array<i64: 768, 2304>}, {pipeline_mode = #tpu.pipeline_mode<synchronous>, transform_indices = @transform_2, window_bounds = array<i64: 1, 2304>}, {pipeline_mode = #tpu.pipeline_mode<synchronous>, transform_indices = @transform_3, window_bounds = array<i64: 768, 768>}, {pipeline_mode = #tpu.pipeline_mode<synchronous>, transform_indices = @transform_4, window_bounds = array<i64: 1, 768>}, {pipeline_mode = #tpu.pipeline_mode<synchronous>, transform_indices = @transform_5, window_bounds = array<i64: 1, 768>}, {pipeline_mode = #tpu.pipeline_mode<synchronous>, transform_indices = @transform_6, window_bounds = array<i64: 1, 768>}, {transform_indices = @transform_7, window_bounds = array<i64: 8, 768>}]} {
    %0 = arith.index_cast %arg0 : i32 to index
    %1 = memref.load %arg1[%0] : memref<2xi32, #tpu.memory_space<smem>>
    %c0 = arith.constant 0 : index
    %c0_0 = arith.constant 0 : index
    %2 = vector.load %arg2[%c0, %c0_0] : memref<8x768xbf16, #tpu.memory_space<vmem>>, vector<8x768xbf16>
    %c0_1 = arith.constant 0 : index
    %c0_2 = arith.constant 0 : index
    %3 = vector.load %arg3[%c0_1, %c0_2] : memref<768x2304xbf16, #tpu.memory_space<vmem>>, vector<768x2304xbf16>
    %cst = arith.constant dense<0.000000e+00> : vector<8x2304xf32>
    %4 = tpu.matmul %2, %3, %cst {dimension_numbers = #tpu.dot_dimension_numbers<[1], [0], [0], [1], [0, 0, 1, 1], [], []>} : vector<8x768xbf16>, vector<768x2304xbf16>, vector<8x2304xf32> -> vector<8x2304xf32>
    %c0_3 = arith.constant 0 : index
    %c0_4 = arith.constant 0 : index
    %5 = vector.load %arg4[%c0_3, %c0_4] : memref<1x2304xf32, #tpu.memory_space<vmem>>, vector<1x2304xf32>
    %6 = vector.broadcast %5 : vector<1x2304xf32> to vector<8x2304xf32>
    %7 = arith.addf %4, %6 : vector<8x2304xf32>
    %8 = arith.truncf %7 : vector<8x2304xf32> to vector<8x2304xbf16>
    %c0_5 = arith.constant 0 : index
    %c0_6 = arith.constant 0 : index
    %9 = vector.load %arg10[%c0_5, %c0_6] : memref<8x2304xbf16, #tpu.memory_space<vmem>>, vector<8x2304xbf16>
    tpu.vector_store %arg10[%c0_5, %c0_6], %8 {strides = array<i32>} : memref<8x2304xbf16, #tpu.memory_space<vmem>>, vector<8x2304xbf16>,
    %10 = tpu.iota {dimensions = array<i32: 1>} : vector<8x8xi32>
    %11 = vector.broadcast %1 : i32 to vector<8x8xi32>
    %12 = arith.cmpi slt, %10, %11 : vector<8x8xi32>
    %c0_7 = arith.constant 0 : index
    %c0_8 = arith.constant 0 : index
    %13 = vector.load %arg10[%c0_7, %c0_8] : memref<8x2304xbf16, #tpu.memory_space<vmem>>, vector<8x64xbf16>
    %c0_9 = arith.constant 0 : index
    %c768 = arith.constant 768 : index
    %14 = vector.load %arg10[%c0_9, %c768] : memref<8x2304xbf16, #tpu.memory_space<vmem>>, vector<8x64xbf16>
    %c0_10 = arith.constant 0 : index
    %c1536 = arith.constant 1536 : index
    %15 = vector.load %arg10[%c0_10, %c1536] : memref<8x2304xbf16, #tpu.memory_space<vmem>>, vector<8x64xbf16>
    %cst_11 = arith.constant dense<0.000000e+00> : vector<8x8xf32>
    %16 = tpu.matmul %13, %14, %cst_11 {dimension_numbers = #tpu.dot_dimension_numbers<[1], [1], [0], [0], [0, 0, 1, 0], [], []>} : vector<8x64xbf16>, vector<8x64xbf16>, vector<8x8xf32> -> vector<8x8xf32>
    %cst_12 = arith.constant -1.000000e+06 : f32
    %17 = vector.broadcast %cst_12 : f32 to vector<8x8xf32>
    %18 = arith.select %12, %16, %17 : vector<8x8xi1>, vector<8x8xf32>
    %cst_13 = arith.constant dense<0xFF800000> : vector<8xf32>
    %19 = vector.multi_reduction <maximumf>, %18, %cst_13 [1] : vector<8x8xf32> to vector<8xf32>
    %20 = vector.shape_cast %19 : vector<8xf32> to vector<8x1xf32>
    %21 = vector.broadcast %20 : vector<8x1xf32> to vector<8x8xf32>
    %22 = arith.subf %18, %21 : vector<8x8xf32>
    %23 = math.exp %22 : vector<8x8xf32>
    %cst_14 = arith.constant dense<0.000000e+00> : vector<8xf32>
    %24 = vector.multi_reduction <add>, %23, %cst_14 [1] : vector<8x8xf32> to vector<8xf32>
    %25 = vector.shape_cast %24 : vector<8xf32> to vector<8x1xf32>
    %26 = tpu.reciprocal %25 {approx = true} : vector<8x1xf32> -> vector<8x1xf32>
    %27 = vector.broadcast %26 : vector<8x1xf32> to vector<8x8xf32>
    %28 = arith.mulf %23, %27 : vector<8x8xf32>
    %29 = arith.truncf %28 : vector<8x8xf32> to vector<8x8xbf16>
    %cst_15 = arith.constant dense<0.000000e+00> : vector<8x64xf32>
    %30 = tpu.matmul %29, %15, %cst_15 {dimension_numbers = #tpu.dot_dimension_numbers<[1], [0], [0], [1], [0, 0, 1, 1], [], []>} : vector<8x8xbf16>, vector<8x64xbf16>, vector<8x64xf32> -> vector<8x64xf32>
    %c0_16 = arith.constant 0 : index
    %c64 = arith.constant 64 : index
    %31 = vector.load %arg10[%c0_16, %c64] : memref<8x2304xbf16, #tpu.memory_space<vmem>>, vector<8x64xbf16>
    %c0_17 = arith.constant 0 : index
    %c832 = arith.constant 832 : index
    %32 = vector.load %arg10[%c0_17, %c832] : memref<8x2304xbf16, #tpu.memory_space<vmem>>, vector<8x64xbf16>
    %c0_18 = arith.constant 0 : index
    %c1600 = arith.constant 1600 : index
    %33 = vector.load %arg10[%c0_18, %c1600] : memref<8x2304xbf16, #tpu.memory_space<vmem>>, vector<8x64xbf16>
    %cst_19 = arith.constant dense<0.000000e+00> : vector<8x8xf32>
    %34 = tpu.matmul %31, %32, %cst_19 {dimension_numbers = #tpu.dot_dimension_numbers<[1], [1], [0], [0], [0, 0, 1, 0], [], []>} : vector<8x64xbf16>, vector<8x64xbf16>, vector<8x8xf32> -> vector<8x8xf32>
    %cst_20 = arith.constant -1.000000e+06 : f32
    %35 = vector.broadcast %cst_20 : f32 to vector<8x8xf32>
    %36 = arith.select %12, %34, %35 : vector<8x8xi1>, vector<8x8xf32>
    %cst_21 = arith.constant dense<0xFF800000> : vector<8xf32>
    %37 = vector.multi_reduction <maximumf>, %36, %cst_21 [1] : vector<8x8xf32> to vector<8xf32>
    %38 = vector.shape_cast %37 : vector<8xf32> to vector<8x1xf32>
    %39 = vector.broadcast %38 : vector<8x1xf32> to vector<8x8xf32>
    %40 = arith.subf %36, %39 : vector<8x8xf32>
    %41 = math.exp %40 : vector<8x8xf32>
    %cst_22 = arith.constant dense<0.000000e+00> : vector<8xf32>
    %42 = vector.multi_reduction <add>, %41, %cst_22 [1] : vector<8x8xf32> to vector<8xf32>
    %43 = vector.shape_cast %42 : vector<8xf32> to vector<8x1xf32>
    %44 = tpu.reciprocal %43 {approx = true} : vector<8x1xf32> -> vector<8x1xf32>
    %45 = vector.broadcast %44 : vector<8x1xf32> to vector<8x8xf32>
    %46 = arith.mulf %41, %45 : vector<8x8xf32>
    %47 = arith.truncf %46 : vector<8x8xf32> to vector<8x8xbf16>
    %cst_23 = arith.constant dense<0.000000e+00> : vector<8x64xf32>
    %48 = tpu.matmul %47, %33, %cst_23 {dimension_numbers = #tpu.dot_dimension_numbers<[1], [0], [0], [1], [0, 0, 1, 1], [], []>} : vector<8x8xbf16>, vector<8x64xbf16>, vector<8x64xf32> -> vector<8x64xf32>
    %c0_24 = arith.constant 0 : index
    %c128 = arith.constant 128 : index
    %49 = vector.load %arg10[%c0_24, %c128] : memref<8x2304xbf16, #tpu.memory_space<vmem>>, vector<8x64xbf16>
    %c0_25 = arith.constant 0 : index
    %c896 = arith.constant 896 : index
    %50 = vector.load %arg10[%c0_25, %c896] : memref<8x2304xbf16, #tpu.memory_space<vmem>>, vector<8x64xbf16>
    %c0_26 = arith.constant 0 : index
    %c1664 = arith.constant 1664 : index
    %51 = vector.load %arg10[%c0_26, %c1664] : memref<8x2304xbf16, #tpu.memory_space<vmem>>, vector<8x64xbf16>
    %cst_27 = arith.constant dense<0.000000e+00> : vector<8x8xf32>
    %52 = tpu.matmul %49, %50, %cst_27 {dimension_numbers = #tpu.dot_dimension_numbers<[1], [1], [0], [0], [0, 0, 1, 0], [], []>} : vector<8x64xbf16>, vector<8x64xbf16>, vector<8x8xf32> -> vector<8x8xf32>
    %cst_28 = arith.constant -1.000000e+06 : f32
    %53 = vector.broadcast %cst_28 : f32 to vector<8x8xf32>
    %54 = arith.select %12, %52, %53 : vector<8x8xi1>, vector<8x8xf32>
    %cst_29 = arith.constant dense<0xFF800000> : vector<8xf32>
    %55 = vector.multi_reduction <maximumf>, %54, %cst_29 [1] : vector<8x8xf32> to vector<8xf32>
    %56 = vector.shape_cast %55 : vector<8xf32> to vector<8x1xf32>
    %57 = vector.broadcast %56 : vector<8x1xf32> to vector<8x8xf32>
    %58 = arith.subf %54, %57 : vector<8x8xf32>
    %59 = math.exp %58 : vector<8x8xf32>
    %cst_30 = arith.constant dense<0.000000e+00> : vector<8xf32>
    %60 = vector.multi_reduction <add>, %59, %cst_30 [1] : vector<8x8xf32> to vector<8xf32>
    %61 = vector.shape_cast %60 : vector<8xf32> to vector<8x1xf32>
    %62 = tpu.reciprocal %61 {approx = true} : vector<8x1xf32> -> vector<8x1xf32>
    %63 = vector.broadcast %62 : vector<8x1xf32> to vector<8x8xf32>
    %64 = arith.mulf %59, %63 : vector<8x8xf32>
    %65 = arith.truncf %64 : vector<8x8xf32> to vector<8x8xbf16>
    %cst_31 = arith.constant dense<0.000000e+00> : vector<8x64xf32>
    %66 = tpu.matmul %65, %51, %cst_31 {dimension_numbers = #tpu.dot_dimension_numbers<[1], [0], [0], [1], [0, 0, 1, 1], [], []>} : vector<8x8xbf16>, vector<8x64xbf16>, vector<8x64xf32> -> vector<8x64xf32>
    %c0_32 = arith.constant 0 : index
    %c192 = arith.constant 192 : index
    %67 = vector.load %arg10[%c0_32, %c192] : memref<8x2304xbf16, #tpu.memory_space<vmem>>, vector<8x64xbf16>
    %c0_33 = arith.constant 0 : index
    %c960 = arith.constant 960 : index
    %68 = vector.load %arg10[%c0_33, %c960] : memref<8x2304xbf16, #tpu.memory_space<vmem>>, vector<8x64xbf16>
    %c0_34 = arith.constant 0 : index
    %c1728 = arith.constant 1728 : index
    %69 = vector.load %arg10[%c0_34, %c1728] : memref<8x2304xbf16, #tpu.memory_space<vmem>>, vector<8x64xbf16>
    %cst_35 = arith.constant dense<0.000000e+00> : vector<8x8xf32>
    %70 = tpu.matmul %67, %68, %cst_35 {dimension_numbers = #tpu.dot_dimension_numbers<[1], [1], [0], [0], [0, 0, 1, 0], [], []>} : vector<8x64xbf16>, vector<8x64xbf16>, vector<8x8xf32> -> vector<8x8xf32>
    %cst_36 = arith.constant -1.000000e+06 : f32
    %71 = vector.broadcast %cst_36 : f32 to vector<8x8xf32>
    %72 = arith.select %12, %70, %71 : vector<8x8xi1>, vector<8x8xf32>
    %cst_37 = arith.constant dense<0xFF800000> : vector<8xf32>
    %73 = vector.multi_reduction <maximumf>, %72, %cst_37 [1] : vector<8x8xf32> to vector<8xf32>
    %74 = vector.shape_cast %73 : vector<8xf32> to vector<8x1xf32>
    %75 = vector.broadcast %74 : vector<8x1xf32> to vector<8x8xf32>
    %76 = arith.subf %72, %75 : vector<8x8xf32>
    %77 = math.exp %76 : vector<8x8xf32>
    %cst_38 = arith.constant dense<0.000000e+00> : vector<8xf32>
    %78 = vector.multi_reduction <add>, %77, %cst_38 [1] : vector<8x8xf32> to vector<8xf32>
    %79 = vector.shape_cast %78 : vector<8xf32> to vector<8x1xf32>
    %80 = tpu.reciprocal %79 {approx = true} : vector<8x1xf32> -> vector<8x1xf32>
    %81 = vector.broadcast %80 : vector<8x1xf32> to vector<8x8xf32>
    %82 = arith.mulf %77, %81 : vector<8x8xf32>
    %83 = arith.truncf %82 : vector<8x8xf32> to vector<8x8xbf16>
    %cst_39 = arith.constant dense<0.000000e+00> : vector<8x64xf32>
    %84 = tpu.matmul %83, %69, %cst_39 {dimension_numbers = #tpu.dot_dimension_numbers<[1], [0], [0], [1], [0, 0, 1, 1], [], []>} : vector<8x8xbf16>, vector<8x64xbf16>, vector<8x64xf32> -> vector<8x64xf32>
    %c0_40 = arith.constant 0 : index
    %c256 = arith.constant 256 : index
    %85 = vector.load %arg10[%c0_40, %c256] : memref<8x2304xbf16, #tpu.memory_space<vmem>>, vector<8x64xbf16>
    %c0_41 = arith.constant 0 : index
    %c1024 = arith.constant 1024 : index
    %86 = vector.load %arg10[%c0_41, %c1024] : memref<8x2304xbf16, #tpu.memory_space<vmem>>, vector<8x64xbf16>
    %c0_42 = arith.constant 0 : index
    %c1792 = arith.constant 1792 : index
    %87 = vector.load %arg10[%c0_42, %c1792] : memref<8x2304xbf16, #tpu.memory_space<vmem>>, vector<8x64xbf16>
    %cst_43 = arith.constant dense<0.000000e+00> : vector<8x8xf32>
    %88 = tpu.matmul %85, %86, %cst_43 {dimension_numbers = #tpu.dot_dimension_numbers<[1], [1], [0], [0], [0, 0, 1, 0], [], []>} : vector<8x64xbf16>, vector<8x64xbf16>, vector<8x8xf32> -> vector<8x8xf32>
    %cst_44 = arith.constant -1.000000e+06 : f32
    %89 = vector.broadcast %cst_44 : f32 to vector<8x8xf32>
    %90 = arith.select %12, %88, %89 : vector<8x8xi1>, vector<8x8xf32>
    %cst_45 = arith.constant dense<0xFF800000> : vector<8xf32>
    %91 = vector.multi_reduction <maximumf>, %90, %cst_45 [1] : vector<8x8xf32> to vector<8xf32>
    %92 = vector.shape_cast %91 : vector<8xf32> to vector<8x1xf32>
    %93 = vector.broadcast %92 : vector<8x1xf32> to vector<8x8xf32>
    %94 = arith.subf %90, %93 : vector<8x8xf32>
    %95 = math.exp %94 : vector<8x8xf32>
    %cst_46 = arith.constant dense<0.000000e+00> : vector<8xf32>
    %96 = vector.multi_reduction <add>, %95, %cst_46 [1] : vector<8x8xf32> to vector<8xf32>
    %97 = vector.shape_cast %96 : vector<8xf32> to vector<8x1xf32>
    %98 = tpu.reciprocal %97 {approx = true} : vector<8x1xf32> -> vector<8x1xf32>
    %99 = vector.broadcast %98 : vector<8x1xf32> to vector<8x8xf32>
    %100 = arith.mulf %95, %99 : vector<8x8xf32>
    %101 = arith.truncf %100 : vector<8x8xf32> to vector<8x8xbf16>
    %cst_47 = arith.constant dense<0.000000e+00> : vector<8x64xf32>
    %102 = tpu.matmul %101, %87, %cst_47 {dimension_numbers = #tpu.dot_dimension_numbers<[1], [0], [0], [1], [0, 0, 1, 1], [], []>} : vector<8x8xbf16>, vector<8x64xbf16>, vector<8x64xf32> -> vector<8x64xf32>
    %c0_48 = arith.constant 0 : index
    %c320 = arith.constant 320 : index
    %103 = vector.load %arg10[%c0_48, %c320] : memref<8x2304xbf16, #tpu.memory_space<vmem>>, vector<8x64xbf16>
    %c0_49 = arith.constant 0 : index
    %c1088 = arith.constant 1088 : index
    %104 = vector.load %arg10[%c0_49, %c1088] : memref<8x2304xbf16, #tpu.memory_space<vmem>>, vector<8x64xbf16>
    %c0_50 = arith.constant 0 : index
    %c1856 = arith.constant 1856 : index
    %105 = vector.load %arg10[%c0_50, %c1856] : memref<8x2304xbf16, #tpu.memory_space<vmem>>, vector<8x64xbf16>
    %cst_51 = arith.constant dense<0.000000e+00> : vector<8x8xf32>
    %106 = tpu.matmul %103, %104, %cst_51 {dimension_numbers = #tpu.dot_dimension_numbers<[1], [1], [0], [0], [0, 0, 1, 0], [], []>} : vector<8x64xbf16>, vector<8x64xbf16>, vector<8x8xf32> -> vector<8x8xf32>
    %cst_52 = arith.constant -1.000000e+06 : f32
    %107 = vector.broadcast %cst_52 : f32 to vector<8x8xf32>
    %108 = arith.select %12, %106, %107 : vector<8x8xi1>, vector<8x8xf32>
    %cst_53 = arith.constant dense<0xFF800000> : vector<8xf32>
    %109 = vector.multi_reduction <maximumf>, %108, %cst_53 [1] : vector<8x8xf32> to vector<8xf32>
    %110 = vector.shape_cast %109 : vector<8xf32> to vector<8x1xf32>
    %111 = vector.broadcast %110 : vector<8x1xf32> to vector<8x8xf32>
    %112 = arith.subf %108, %111 : vector<8x8xf32>
    %113 = math.exp %112 : vector<8x8xf32>
    %cst_54 = arith.constant dense<0.000000e+00> : vector<8xf32>
    %114 = vector.multi_reduction <add>, %113, %cst_54 [1] : vector<8x8xf32> to vector<8xf32>
    %115 = vector.shape_cast %114 : vector<8xf32> to vector<8x1xf32>
    %116 = tpu.reciprocal %115 {approx = true} : vector<8x1xf32> -> vector<8x1xf32>
    %117 = vector.broadcast %116 : vector<8x1xf32> to vector<8x8xf32>
    %118 = arith.mulf %113, %117 : vector<8x8xf32>
    %119 = arith.truncf %118 : vector<8x8xf32> to vector<8x8xbf16>
    %cst_55 = arith.constant dense<0.000000e+00> : vector<8x64xf32>
    %120 = tpu.matmul %119, %105, %cst_55 {dimension_numbers = #tpu.dot_dimension_numbers<[1], [0], [0], [1], [0, 0, 1, 1], [], []>} : vector<8x8xbf16>, vector<8x64xbf16>, vector<8x64xf32> -> vector<8x64xf32>
    %c0_56 = arith.constant 0 : index
    %c384 = arith.constant 384 : index
    %121 = vector.load %arg10[%c0_56, %c384] : memref<8x2304xbf16, #tpu.memory_space<vmem>>, vector<8x64xbf16>
    %c0_57 = arith.constant 0 : index
    %c1152 = arith.constant 1152 : index
    %122 = vector.load %arg10[%c0_57, %c1152] : memref<8x2304xbf16, #tpu.memory_space<vmem>>, vector<8x64xbf16>
    %c0_58 = arith.constant 0 : index
    %c1920 = arith.constant 1920 : index
    %123 = vector.load %arg10[%c0_58, %c1920] : memref<8x2304xbf16, #tpu.memory_space<vmem>>, vector<8x64xbf16>
    %cst_59 = arith.constant dense<0.000000e+00> : vector<8x8xf32>
    %124 = tpu.matmul %121, %122, %cst_59 {dimension_numbers = #tpu.dot_dimension_numbers<[1], [1], [0], [0], [0, 0, 1, 0], [], []>} : vector<8x64xbf16>, vector<8x64xbf16>, vector<8x8xf32> -> vector<8x8xf32>
    %cst_60 = arith.constant -1.000000e+06 : f32
    %125 = vector.broadcast %cst_60 : f32 to vector<8x8xf32>
    %126 = arith.select %12, %124, %125 : vector<8x8xi1>, vector<8x8xf32>
    %cst_61 = arith.constant dense<0xFF800000> : vector<8xf32>
    %127 = vector.multi_reduction <maximumf>, %126, %cst_61 [1] : vector<8x8xf32> to vector<8xf32>
    %128 = vector.shape_cast %127 : vector<8xf32> to vector<8x1xf32>
    %129 = vector.broadcast %128 : vector<8x1xf32> to vector<8x8xf32>
    %130 = arith.subf %126, %129 : vector<8x8xf32>
    %131 = math.exp %130 : vector<8x8xf32>
    %cst_62 = arith.constant dense<0.000000e+00> : vector<8xf32>
    %132 = vector.multi_reduction <add>, %131, %cst_62 [1] : vector<8x8xf32> to vector<8xf32>
    %133 = vector.shape_cast %132 : vector<8xf32> to vector<8x1xf32>
    %134 = tpu.reciprocal %133 {approx = true} : vector<8x1xf32> -> vector<8x1xf32>
    %135 = vector.broadcast %134 : vector<8x1xf32> to vector<8x8xf32>
    %136 = arith.mulf %131, %135 : vector<8x8xf32>
    %137 = arith.truncf %136 : vector<8x8xf32> to vector<8x8xbf16>
    %cst_63 = arith.constant dense<0.000000e+00> : vector<8x64xf32>
    %138 = tpu.matmul %137, %123, %cst_63 {dimension_numbers = #tpu.dot_dimension_numbers<[1], [0], [0], [1], [0, 0, 1, 1], [], []>} : vector<8x8xbf16>, vector<8x64xbf16>, vector<8x64xf32> -> vector<8x64xf32>
    %c0_64 = arith.constant 0 : index
    %c448 = arith.constant 448 : index
    %139 = vector.load %arg10[%c0_64, %c448] : memref<8x2304xbf16, #tpu.memory_space<vmem>>, vector<8x64xbf16>
    %c0_65 = arith.constant 0 : index
    %c1216 = arith.constant 1216 : index
    %140 = vector.load %arg10[%c0_65, %c1216] : memref<8x2304xbf16, #tpu.memory_space<vmem>>, vector<8x64xbf16>
    %c0_66 = arith.constant 0 : index
    %c1984 = arith.constant 1984 : index
    %141 = vector.load %arg10[%c0_66, %c1984] : memref<8x2304xbf16, #tpu.memory_space<vmem>>, vector<8x64xbf16>
    %cst_67 = arith.constant dense<0.000000e+00> : vector<8x8xf32>
    %142 = tpu.matmul %139, %140, %cst_67 {dimension_numbers = #tpu.dot_dimension_numbers<[1], [1], [0], [0], [0, 0, 1, 0], [], []>} : vector<8x64xbf16>, vector<8x64xbf16>, vector<8x8xf32> -> vector<8x8xf32>
    %cst_68 = arith.constant -1.000000e+06 : f32
    %143 = vector.broadcast %cst_68 : f32 to vector<8x8xf32>
    %144 = arith.select %12, %142, %143 : vector<8x8xi1>, vector<8x8xf32>
    %cst_69 = arith.constant dense<0xFF800000> : vector<8xf32>
    %145 = vector.multi_reduction <maximumf>, %144, %cst_69 [1] : vector<8x8xf32> to vector<8xf32>
    %146 = vector.shape_cast %145 : vector<8xf32> to vector<8x1xf32>
    %147 = vector.broadcast %146 : vector<8x1xf32> to vector<8x8xf32>
    %148 = arith.subf %144, %147 : vector<8x8xf32>
    %149 = math.exp %148 : vector<8x8xf32>
    %cst_70 = arith.constant dense<0.000000e+00> : vector<8xf32>
    %150 = vector.multi_reduction <add>, %149, %cst_70 [1] : vector<8x8xf32> to vector<8xf32>
    %151 = vector.shape_cast %150 : vector<8xf32> to vector<8x1xf32>
    %152 = tpu.reciprocal %151 {approx = true} : vector<8x1xf32> -> vector<8x1xf32>
    %153 = vector.broadcast %152 : vector<8x1xf32> to vector<8x8xf32>
    %154 = arith.mulf %149, %153 : vector<8x8xf32>
    %155 = arith.truncf %154 : vector<8x8xf32> to vector<8x8xbf16>
    %cst_71 = arith.constant dense<0.000000e+00> : vector<8x64xf32>
    %156 = tpu.matmul %155, %141, %cst_71 {dimension_numbers = #tpu.dot_dimension_numbers<[1], [0], [0], [1], [0, 0, 1, 1], [], []>} : vector<8x8xbf16>, vector<8x64xbf16>, vector<8x64xf32> -> vector<8x64xf32>
    %c0_72 = arith.constant 0 : index
    %c512 = arith.constant 512 : index
    %157 = vector.load %arg10[%c0_72, %c512] : memref<8x2304xbf16, #tpu.memory_space<vmem>>, vector<8x64xbf16>
    %c0_73 = arith.constant 0 : index
    %c1280 = arith.constant 1280 : index
    %158 = vector.load %arg10[%c0_73, %c1280] : memref<8x2304xbf16, #tpu.memory_space<vmem>>, vector<8x64xbf16>
    %c0_74 = arith.constant 0 : index
    %c2048 = arith.constant 2048 : index
    %159 = vector.load %arg10[%c0_74, %c2048] : memref<8x2304xbf16, #tpu.memory_space<vmem>>, vector<8x64xbf16>
    %cst_75 = arith.constant dense<0.000000e+00> : vector<8x8xf32>
    %160 = tpu.matmul %157, %158, %cst_75 {dimension_numbers = #tpu.dot_dimension_numbers<[1], [1], [0], [0], [0, 0, 1, 0], [], []>} : vector<8x64xbf16>, vector<8x64xbf16>, vector<8x8xf32> -> vector<8x8xf32>
    %cst_76 = arith.constant -1.000000e+06 : f32
    %161 = vector.broadcast %cst_76 : f32 to vector<8x8xf32>
    %162 = arith.select %12, %160, %161 : vector<8x8xi1>, vector<8x8xf32>
    %cst_77 = arith.constant dense<0xFF800000> : vector<8xf32>
    %163 = vector.multi_reduction <maximumf>, %162, %cst_77 [1] : vector<8x8xf32> to vector<8xf32>
    %164 = vector.shape_cast %163 : vector<8xf32> to vector<8x1xf32>
    %165 = vector.broadcast %164 : vector<8x1xf32> to vector<8x8xf32>
    %166 = arith.subf %162, %165 : vector<8x8xf32>
    %167 = math.exp %166 : vector<8x8xf32>
    %cst_78 = arith.constant dense<0.000000e+00> : vector<8xf32>
    %168 = vector.multi_reduction <add>, %167, %cst_78 [1] : vector<8x8xf32> to vector<8xf32>
    %169 = vector.shape_cast %168 : vector<8xf32> to vector<8x1xf32>
    %170 = tpu.reciprocal %169 {approx = true} : vector<8x1xf32> -> vector<8x1xf32>
    %171 = vector.broadcast %170 : vector<8x1xf32> to vector<8x8xf32>
    %172 = arith.mulf %167, %171 : vector<8x8xf32>
    %173 = arith.truncf %172 : vector<8x8xf32> to vector<8x8xbf16>
    %cst_79 = arith.constant dense<0.000000e+00> : vector<8x64xf32>
    %174 = tpu.matmul %173, %159, %cst_79 {dimension_numbers = #tpu.dot_dimension_numbers<[1], [0], [0], [1], [0, 0, 1, 1], [], []>} : vector<8x8xbf16>, vector<8x64xbf16>, vector<8x64xf32> -> vector<8x64xf32>
    %c0_80 = arith.constant 0 : index
    %c576 = arith.constant 576 : index
    %175 = vector.load %arg10[%c0_80, %c576] : memref<8x2304xbf16, #tpu.memory_space<vmem>>, vector<8x64xbf16>
    %c0_81 = arith.constant 0 : index
    %c1344 = arith.constant 1344 : index
    %176 = vector.load %arg10[%c0_81, %c1344] : memref<8x2304xbf16, #tpu.memory_space<vmem>>, vector<8x64xbf16>
    %c0_82 = arith.constant 0 : index
    %c2112 = arith.constant 2112 : index
    %177 = vector.load %arg10[%c0_82, %c2112] : memref<8x2304xbf16, #tpu.memory_space<vmem>>, vector<8x64xbf16>
    %cst_83 = arith.constant dense<0.000000e+00> : vector<8x8xf32>
    %178 = tpu.matmul %175, %176, %cst_83 {dimension_numbers = #tpu.dot_dimension_numbers<[1], [1], [0], [0], [0, 0, 1, 0], [], []>} : vector<8x64xbf16>, vector<8x64xbf16>, vector<8x8xf32> -> vector<8x8xf32>
    %cst_84 = arith.constant -1.000000e+06 : f32
    %179 = vector.broadcast %cst_84 : f32 to vector<8x8xf32>
    %180 = arith.select %12, %178, %179 : vector<8x8xi1>, vector<8x8xf32>
    %cst_85 = arith.constant dense<0xFF800000> : vector<8xf32>
    %181 = vector.multi_reduction <maximumf>, %180, %cst_85 [1] : vector<8x8xf32> to vector<8xf32>
    %182 = vector.shape_cast %181 : vector<8xf32> to vector<8x1xf32>
    %183 = vector.broadcast %182 : vector<8x1xf32> to vector<8x8xf32>
    %184 = arith.subf %180, %183 : vector<8x8xf32>
    %185 = math.exp %184 : vector<8x8xf32>
    %cst_86 = arith.constant dense<0.000000e+00> : vector<8xf32>
    %186 = vector.multi_reduction <add>, %185, %cst_86 [1] : vector<8x8xf32> to vector<8xf32>
    %187 = vector.shape_cast %186 : vector<8xf32> to vector<8x1xf32>
    %188 = tpu.reciprocal %187 {approx = true} : vector<8x1xf32> -> vector<8x1xf32>
    %189 = vector.broadcast %188 : vector<8x1xf32> to vector<8x8xf32>
    %190 = arith.mulf %185, %189 : vector<8x8xf32>
    %191 = arith.truncf %190 : vector<8x8xf32> to vector<8x8xbf16>
    %cst_87 = arith.constant dense<0.000000e+00> : vector<8x64xf32>
    %192 = tpu.matmul %191, %177, %cst_87 {dimension_numbers = #tpu.dot_dimension_numbers<[1], [0], [0], [1], [0, 0, 1, 1], [], []>} : vector<8x8xbf16>, vector<8x64xbf16>, vector<8x64xf32> -> vector<8x64xf32>
    %c0_88 = arith.constant 0 : index
    %c640 = arith.constant 640 : index
    %193 = vector.load %arg10[%c0_88, %c640] : memref<8x2304xbf16, #tpu.memory_space<vmem>>, vector<8x64xbf16>
    %c0_89 = arith.constant 0 : index
    %c1408 = arith.constant 1408 : index
    %194 = vector.load %arg10[%c0_89, %c1408] : memref<8x2304xbf16, #tpu.memory_space<vmem>>, vector<8x64xbf16>
    %c0_90 = arith.constant 0 : index
    %c2176 = arith.constant 2176 : index
    %195 = vector.load %arg10[%c0_90, %c2176] : memref<8x2304xbf16, #tpu.memory_space<vmem>>, vector<8x64xbf16>
    %cst_91 = arith.constant dense<0.000000e+00> : vector<8x8xf32>
    %196 = tpu.matmul %193, %194, %cst_91 {dimension_numbers = #tpu.dot_dimension_numbers<[1], [1], [0], [0], [0, 0, 1, 0], [], []>} : vector<8x64xbf16>, vector<8x64xbf16>, vector<8x8xf32> -> vector<8x8xf32>
    %cst_92 = arith.constant -1.000000e+06 : f32
    %197 = vector.broadcast %cst_92 : f32 to vector<8x8xf32>
    %198 = arith.select %12, %196, %197 : vector<8x8xi1>, vector<8x8xf32>
    %cst_93 = arith.constant dense<0xFF800000> : vector<8xf32>
    %199 = vector.multi_reduction <maximumf>, %198, %cst_93 [1] : vector<8x8xf32> to vector<8xf32>
    %200 = vector.shape_cast %199 : vector<8xf32> to vector<8x1xf32>
    %201 = vector.broadcast %200 : vector<8x1xf32> to vector<8x8xf32>
    %202 = arith.subf %198, %201 : vector<8x8xf32>
    %203 = math.exp %202 : vector<8x8xf32>
    %cst_94 = arith.constant dense<0.000000e+00> : vector<8xf32>
    %204 = vector.multi_reduction <add>, %203, %cst_94 [1] : vector<8x8xf32> to vector<8xf32>
    %205 = vector.shape_cast %204 : vector<8xf32> to vector<8x1xf32>
    %206 = tpu.reciprocal %205 {approx = true} : vector<8x1xf32> -> vector<8x1xf32>
    %207 = vector.broadcast %206 : vector<8x1xf32> to vector<8x8xf32>
    %208 = arith.mulf %203, %207 : vector<8x8xf32>
    %209 = arith.truncf %208 : vector<8x8xf32> to vector<8x8xbf16>
    %cst_95 = arith.constant dense<0.000000e+00> : vector<8x64xf32>
    %210 = tpu.matmul %209, %195, %cst_95 {dimension_numbers = #tpu.dot_dimension_numbers<[1], [0], [0], [1], [0, 0, 1, 1], [], []>} : vector<8x8xbf16>, vector<8x64xbf16>, vector<8x64xf32> -> vector<8x64xf32>
    %c0_96 = arith.constant 0 : index
    %c704 = arith.constant 704 : index
    %211 = vector.load %arg10[%c0_96, %c704] : memref<8x2304xbf16, #tpu.memory_space<vmem>>, vector<8x64xbf16>
    %c0_97 = arith.constant 0 : index
    %c1472 = arith.constant 1472 : index
    %212 = vector.load %arg10[%c0_97, %c1472] : memref<8x2304xbf16, #tpu.memory_space<vmem>>, vector<8x64xbf16>
    %c0_98 = arith.constant 0 : index
    %c2240 = arith.constant 2240 : index
    %213 = vector.load %arg10[%c0_98, %c2240] : memref<8x2304xbf16, #tpu.memory_space<vmem>>, vector<8x64xbf16>
    %cst_99 = arith.constant dense<0.000000e+00> : vector<8x8xf32>
    %214 = tpu.matmul %211, %212, %cst_99 {dimension_numbers = #tpu.dot_dimension_numbers<[1], [1], [0], [0], [0, 0, 1, 0], [], []>} : vector<8x64xbf16>, vector<8x64xbf16>, vector<8x8xf32> -> vector<8x8xf32>
    %cst_100 = arith.constant -1.000000e+06 : f32
    %215 = vector.broadcast %cst_100 : f32 to vector<8x8xf32>
    %216 = arith.select %12, %214, %215 : vector<8x8xi1>, vector<8x8xf32>
    %cst_101 = arith.constant dense<0xFF800000> : vector<8xf32>
    %217 = vector.multi_reduction <maximumf>, %216, %cst_101 [1] : vector<8x8xf32> to vector<8xf32>
    %218 = vector.shape_cast %217 : vector<8xf32> to vector<8x1xf32>
    %219 = vector.broadcast %218 : vector<8x1xf32> to vector<8x8xf32>
    %220 = arith.subf %216, %219 : vector<8x8xf32>
    %221 = math.exp %220 : vector<8x8xf32>
    %cst_102 = arith.constant dense<0.000000e+00> : vector<8xf32>
    %222 = vector.multi_reduction <add>, %221, %cst_102 [1] : vector<8x8xf32> to vector<8xf32>
    %223 = vector.shape_cast %222 : vector<8xf32> to vector<8x1xf32>
    %224 = tpu.reciprocal %223 {approx = true} : vector<8x1xf32> -> vector<8x1xf32>
    %225 = vector.broadcast %224 : vector<8x1xf32> to vector<8x8xf32>
    %226 = arith.mulf %221, %225 : vector<8x8xf32>
    %227 = arith.truncf %226 : vector<8x8xf32> to vector<8x8xbf16>
    %cst_103 = arith.constant dense<0.000000e+00> : vector<8x64xf32>
    %228 = tpu.matmul %227, %213, %cst_103 {dimension_numbers = #tpu.dot_dimension_numbers<[1], [0], [0], [1], [0, 0, 1, 1], [], []>} : vector<8x8xbf16>, vector<8x64xbf16>, vector<8x64xf32> -> vector<8x64xf32>
    %229 = tpu.concatenate %30, %48, %66, %84, %102, %120, %138, %156, %174, %192, %210, %228 in 1 : vector<8x64xf32>, vector<8x64xf32>, vector<8x64xf32>, vector<8x64xf32>, vector<8x64xf32>, vector<8x64xf32>, vector<8x64xf32>, vector<8x64xf32>, vector<8x64xf32>, vector<8x64xf32>, vector<8x64xf32>, vector<8x64xf32> -> vector<8x768xf32>
    %230 = arith.truncf %229 : vector<8x768xf32> to vector<8x768xbf16>
    %c0_104 = arith.constant 0 : index
    %c0_105 = arith.constant 0 : index
    %231 = vector.load %arg5[%c0_104, %c0_105] : memref<768x768xbf16, #tpu.memory_space<vmem>>, vector<768x768xbf16>
    %cst_106 = arith.constant dense<0.000000e+00> : vector<8x768xf32>
    %232 = tpu.matmul %230, %231, %cst_106 {dimension_numbers = #tpu.dot_dimension_numbers<[1], [0], [0], [1], [0, 0, 1, 1], [], []>} : vector<8x768xbf16>, vector<768x768xbf16>, vector<8x768xf32> -> vector<8x768xf32>
    %c0_107 = arith.constant 0 : index
    %c0_108 = arith.constant 0 : index
    %233 = vector.load %arg6[%c0_107, %c0_108] : memref<1x768xf32, #tpu.memory_space<vmem>>, vector<1x768xf32>
    %234 = vector.broadcast %233 : vector<1x768xf32> to vector<8x768xf32>
    %235 = arith.addf %232, %234 : vector<8x768xf32>
    %236 = arith.extf %2 : vector<8x768xbf16> to vector<8x768xf32>
    %237 = arith.addf %236, %235 : vector<8x768xf32>
    %c0_109 = arith.constant 0 : index
    %c0_110 = arith.constant 0 : index
    %238 = vector.load %arg7[%c0_109, %c0_110] : memref<1x768xf32, #tpu.memory_space<vmem>>, vector<1x768xf32>
    %c0_111 = arith.constant 0 : index
    %c0_112 = arith.constant 0 : index
    %239 = vector.load %arg8[%c0_111, %c0_112] : memref<1x768xf32, #tpu.memory_space<vmem>>, vector<1x768xf32>
    %cst_113 = arith.constant dense<0.000000e+00> : vector<8xf32>
    %240 = vector.multi_reduction <add>, %237, %cst_113 [1] : vector<8x768xf32> to vector<8xf32>
    %241 = vector.shape_cast %240 : vector<8xf32> to vector<8x1xf32>
    %cst_114 = arith.constant 7.680000e+02 : f32
    %242 = vector.broadcast %cst_114 : f32 to vector<8x1xf32>
    %243 = arith.divf %241, %242 : vector<8x1xf32>
    %244 = vector.broadcast %243 : vector<8x1xf32> to vector<8x768xf32>
    %245 = arith.subf %237, %244 : vector<8x768xf32>
    %246 = arith.mulf %245, %245 : vector<8x768xf32>
    %cst_115 = arith.constant dense<0.000000e+00> : vector<8xf32>
    %247 = vector.multi_reduction <add>, %246, %cst_115 [1] : vector<8x768xf32> to vector<8xf32>
    %248 = vector.shape_cast %247 : vector<8xf32> to vector<8x1xf32>
    %cst_116 = arith.constant 7.680000e+02 : f32
    %249 = vector.broadcast %cst_116 : f32 to vector<8x1xf32>
    %250 = arith.divf %248, %249 : vector<8x1xf32>
    %cst_117 = arith.constant 9.99999974E-6 : f32
    %251 = vector.broadcast %cst_117 : f32 to vector<8x1xf32>
    %252 = arith.addf %250, %251 : vector<8x1xf32>
    %253 = math.rsqrt %252 : vector<8x1xf32>
    %254 = vector.broadcast %253 : vector<8x1xf32> to vector<8x768xf32>
    %255 = arith.mulf %245, %254 : vector<8x768xf32>
    %256 = vector.broadcast %238 : vector<1x768xf32> to vector<8x768xf32>
    %257 = arith.mulf %255, %256 : vector<8x768xf32>
    %258 = vector.broadcast %239 : vector<1x768xf32> to vector<8x768xf32>
    %259 = arith.addf %257, %258 : vector<8x768xf32>
    %260 = arith.truncf %259 : vector<8x768xf32> to vector<8x768xbf16>
    %c0_118 = arith.constant 0 : index
    %c0_119 = arith.constant 0 : index
    %261 = vector.load %arg9[%c0_118, %c0_119] : memref<8x768xbf16, #tpu.memory_space<vmem>>, vector<8x768xbf16>
    tpu.vector_store %arg9[%c0_118, %c0_119], %260 {strides = array<i32>} : memref<8x768xbf16, #tpu.memory_space<vmem>>, vector<8x768xbf16>,
    return
  }
  func.func @transform_0(%arg0: i32, %arg1: memref<2xi32, #tpu.memory_space<smem>>) -> (i32, i32) {
    %c0_i32 = arith.constant 0 : i32
    %c0_i32_0 = arith.constant 0 : i32
    return %arg0, %c0_i32 : i32, i32
  }
  func.func @transform_1(%arg0: i32, %arg1: memref<2xi32, #tpu.memory_space<smem>>) -> (i32, i32) {
    %c0_i32 = arith.constant 0 : i32
    %c0_i32_0 = arith.constant 0 : i32
    %c0_i32_1 = arith.constant 0 : i32
    return %c0_i32, %c0_i32_0 : i32, i32
  }
  func.func @transform_2(%arg0: i32, %arg1: memref<2xi32, #tpu.memory_space<smem>>) -> (i32, i32) {
    %c0_i32 = arith.constant 0 : i32
    %c0_i32_0 = arith.constant 0 : i32
    %c0_i32_1 = arith.constant 0 : i32
    return %c0_i32, %c0_i32_0 : i32, i32
  }
  func.func @transform_3(%arg0: i32, %arg1: memref<2xi32, #tpu.memory_space<smem>>) -> (i32, i32) {
    %c0_i32 = arith.constant 0 : i32
    %c0_i32_0 = arith.constant 0 : i32
    %c0_i32_1 = arith.constant 0 : i32
    return %c0_i32, %c0_i32_0 : i32, i32
  }
  func.func @transform_4(%arg0: i32, %arg1: memref<2xi32, #tpu.memory_space<smem>>) -> (i32, i32) {
    %c0_i32 = arith.constant 0 : i32
    %c0_i32_0 = arith.constant 0 : i32
    %c0_i32_1 = arith.constant 0 : i32
    return %c0_i32, %c0_i32_0 : i32, i32
  }
  func.func @transform_5(%arg0: i32, %arg1: memref<2xi32, #tpu.memory_space<smem>>) -> (i32, i32) {
    %c0_i32 = arith.constant 0 : i32
    %c0_i32_0 = arith.constant 0 : i32
    %c0_i32_1 = arith.constant 0 : i32
    return %c0_i32, %c0_i32_0 : i32, i32
  }
  func.func @transform_6(%arg0: i32, %arg1: memref<2xi32, #tpu.memory_space<smem>>) -> (i32, i32) {
    %c0_i32 = arith.constant 0 : i32
    %c0_i32_0 = arith.constant 0 : i32
    %c0_i32_1 = arith.constant 0 : i32
    return %c0_i32, %c0_i32_0 : i32, i32
  }
  func.func @transform_7(%arg0: i32, %arg1: memref<2xi32, #tpu.memory_space<smem>>) -> (i32, i32) {
    %c0_i32 = arith.constant 0 : i32
    %c0_i32_0 = arith.constant 0 : i32
    return %arg0, %c0_i32 : i32, i32
  }
}

</mosaic_0001>

<bundles_post_ra>
// kernel: tpu_custom_call.1
= control target key start
LH: loop header
LB: loop body
LE: loop exit
PB: predicated region body
PF: predicated region fallthrough
CT: control target
= control target key end

     0   :  { %s15353_s0 = inlined_call_operand.hbm [shape: s32[2], index: 0, kind: input, shape index: {}]   ;;  %s15354_s1 = inlined_call_operand.hbm [shape: bf16[16,768], index: 1, kind: input, shape index: {}]   ;;  %s15355_s2 = inlined_call_operand.hbm [shape: bf16[768,2304], index: 2, kind: input, shape index: {}]   ;;  %s15356_s3 = inlined_call_operand.hbm [shape: f32[1,2304], index: 3, kind: input, shape index: {}]   ;;  %s15357_s4 = inlined_call_operand.hbm [shape: bf16[768,768], index: 4, kind: input, shape index: {}]   ;;  %s15358_s5 = inlined_call_operand.hbm [shape: f32[1,768], index: 5, kind: input, shape index: {}]   ;;  %s15359_s6 = inlined_call_operand.hbm [shape: f32[1,768], index: 6, kind: input, shape index: {}]   ;;  %s15360_s7 = inlined_call_operand.hbm [shape: f32[1,768], index: 7, kind: input, shape index: {}]   ;;  %s15361_s8 = inlined_call_operand.hbm [shape: bf16[16,768], index: 8, kind: output, shape index: {}]  }
   0x1   :  { %15365 = sst [smem:[#allocation24_spill]] %s15355_s2  ;;  %s14173_s29 = scalar_lea.hbm %s15353_s0, 16 }
   0x2   :  { %p14174_p0 = scmp.ne.s32.totalorder %s15353_s0, %s14173_s29  ;;  %p14177_p1 = scmp.lt.u32.totalorder %s14173_s29, %s15353_s0 }
   0x4   :  { %p14179_p2 = pnand %p14177_p1, %p14174_p0 }
   0x6   :  { %14182 = shalt.err (!%p14179_p2)  }
   0x7   :  { %s14463_s12 = smov [#allocation4]  }
   0x8   :  { %14 = dma.hbm_to_smem %s15353_s0, 16, %s14463_s12, [#allocation3] }
   0x9   :  { %14425 = dma.done.wait [#allocation3], 16 }
   0xa   :  { %14426 = vsyncadd [#allocation3], 4294967280 }
   0xb   :  { %16 = sfence }
   0xc   :  { %17 = vsyncpa [#allocation6], 0 }
   0xd   :  { %19 = vsyncpa [#allocation6 + $0x1], 0 }
   0xe   :  { %20 = vsyncpa [#allocation9], 0 }
   0xf   :  { %21 = vsyncpa [#allocation12], 0 }
  0x10   :  { %22 = vsyncpa [#allocation15], 0 }
  0x11   :  { %23 = vsyncpa [#allocation7], 0 }
  0x12   :  { %25 = vsyncpa [#allocation7 + $0x1], 0  ;;  %s14536_s15 = smov 0   ;;  %s14538_s16 = smov 0  }
  0x13   :  { %s14540_s17 = smov 0   ;;  %s14542_s18 = smov 0  }
  0x14 LB: > { %s14464_s0 = smov [#allocation8]   ;;  %s14557_s20 = sadd.s32 4294967295, %s14461_s18   ;;  %s14461_s18 = sphi %s14542_s18, %s15390_s18   ;;  %s14457_s17 = sphi %s14540_s17, %s15389_s17   ;;  %s14453_s16 = sphi %s14538_s16, %s15388_s16   ;;  %s14449_s15 = sphi %s14536_s15, %s15387_s15  }
  0x15   : > { %s226_s19 = sshll.u32 %s14464_s0, 4  ;;  %p10708_p3 = scmp.ge.s32.totalorder %s14461_s18, 1  ;;  %s14562_s19 = int_to_ptr.vmem [resolvable:$true] %s226_s19 }
  0x16   : > { %p15362_p4 = scmp.eq.s32.totalorder %s14557_s20, 0  ;;  %p214_p5 = scmp.lt.s32.totalorder %s14461_s18, 3 }
  0x17   : > { %s14465_s22 = smov [#allocation11]   ;;  %s14466_s25 = smov [#allocation14]  }
  0x18   : > { %p14564_p6 = pnand %p10708_p3, %p214_p5  ;;  %s250_s23 = sshll.u32 %s14465_s22, 4  ;;  %s14577_s23 = int_to_ptr.vmem [resolvable:$true] %s250_s23 }
  0x19   : > { %s14579_s26 = sshll.u32 %s14466_s25, 4  ;;  %s15368_s2 = sld [smem:[#allocation24_spill]]  ;;  %s276_s26 = int_to_ptr.vmem [resolvable:$true] %s14579_s26 }
  0x1a   : > { %s15366_s21 = scalar_select %p14564_p6, 1, 0 }
  0x1b   : > { %p12265_p8 = pneg %p14564_p6 }
  0x1d   : > { %p14573_p9 = pnand %p12265_p8, %p15362_p4 }
  0x1f   : > { %s14183_s29 = scalar_lea.hbm %s15368_s2, 110592  ;;  %p14589_p11 = pneg %p14573_p9 }
  0x20   : > { %p14184_p10 = scmp.ne.s32.totalorder %s15368_s2, %s14183_s29  ;;  %p14190_p0 = scmp.lt.u32.totalorder %s14183_s29, %s15368_s2 }
  0x22   : > { %p14186_p12 = pnand %p14589_p11, %p14184_p10 }
  0x24   : > { %p14187_p13 = pneg %p14186_p12 }
  0x26   : > { %p14192_p1 = pnand %p14190_p0, %p14187_p13 }
  0x28   : > { %14195 = shalt.err (!%p14192_p1)
}
  0x29   : > { %s14196_s13 = scalar_lea.vmem %s14562_s19, 110592  ;;  %p14204_p8 = scmp.lt.s32.totalorder %s14562_s19, %s14562_s19 }
  0x2a   : > { %p14197_p2 = scmp.ne.s32.totalorder %s14562_s19, %s14196_s13  ;;  %p14205_p7 = scmp.lt.s32.totalorder %s14196_s13, %s14196_s13 }
  0x2c   : > { %p14199_p3 = pnand %p14197_p2, %p14589_p11  ;;  %p14206_p10 = por %p14205_p7, %p14204_p8 }
  0x2e   : > { %p14200_p5 = pneg %p14199_p3 }
  0x30   : > { %p14207_p12 = pnand %p14206_p10, %p14200_p5 }
  0x32   : > { %14210 = shalt.err (!%p14207_p12)
}
  0x33   : > { %s14467_s14 = smov 1152   ;;  %s14468_s0 = smov 72  }
  0x34   : > { %12268 = dma.hbm_to_vmem [thread:$0]  (!%p14573_p9), %s15368_s2, 110592, %s14562_s19, [#allocation9], %s14467_s14, %s14467_s14, %s14468_s0  }
  0x35   : > { %s14211_s29 = scalar_lea.hbm %s15357_s4, 36864 }
  0x36   : > { %p14212_p7 = scmp.ne.s32.totalorder %s15357_s4, %s14211_s29  ;;  %p14218_p1 = scmp.lt.u32.totalorder %s14211_s29, %s15357_s4 }
  0x38   : > { %p14214_p13 = pnand %p14212_p7, %p14589_p11 }
  0x3a   : > { %p14215_p0 = pneg %p14214_p13 }
  0x3c   : > { %p14220_p2 = pnand %p14218_p1, %p14215_p0 }
  0x3e   : > { %14223 = shalt.err (!%p14220_p2)
}
  0x3f   : > { %s14224_s19 = scalar_lea.vmem %s14577_s23, 36864  ;;  %p14232_p10 = scmp.lt.s32.totalorder %s14577_s23, %s14577_s23 }
  0x40   : > { %p14225_p3 = scmp.ne.s32.totalorder %s14577_s23, %s14224_s19  ;;  %p14233_p12 = scmp.lt.s32.totalorder %s14224_s19, %s14224_s19 }
  0x42   : > { %p14227_p5 = pnand %p14225_p3, %p14589_p11  ;;  %p14234_p7 = por %p14233_p12, %p14232_p10 }
  0x44   : > { %p14228_p8 = pneg %p14227_p5 }
  0x46   : > { %p14235_p13 = pnand %p14234_p7, %p14228_p8 }
  0x48   : > { %14238 = shalt.err (!%p14235_p13)
}
  0x49   : > { %s14469_s13 = smov 384   ;;  %s14470_s14 = smov 24  }
  0x4a   : > { %12274 = dma.hbm_to_vmem [thread:$0]  (!%p14573_p9), %s15357_s4, 36864, %s14577_s23, [#allocation12], %s14469_s13, %s14469_s13, %s14470_s14  }
  0x4b   : > { %s14239_s28 = scalar_lea.hbm %s15359_s6, 96 }
  0x4c   : > { %p14240_p0 = scmp.ne.s32.totalorder %s15359_s6, %s14239_s28  ;;  %p14246_p3 = scmp.lt.u32.totalorder %s14239_s28, %s15359_s6 }
  0x4e   : > { %p14242_p1 = pnand %p14240_p0, %p14589_p11 }
  0x50   : > { %p14243_p2 = pneg %p14242_p1 }
  0x52   : > { %p14248_p5 = pnand %p14246_p3, %p14243_p2 }
  0x54   : > { %14251 = shalt.err (!%p14248_p5)
}
  0x55   : > { %s14252_s12 = scalar_lea.vmem %s276_s26, 96  ;;  %p14260_p7 = scmp.lt.s32.totalorder %s276_s26, %s276_s26 }
  0x56   : > { %p14253_p8 = scmp.ne.s32.totalorder %s276_s26, %s14252_s12  ;;  %p14261_p13 = scmp.lt.s32.totalorder %s14252_s12, %s14252_s12 }
  0x58   : > { %p14255_p10 = pnand %p14253_p8, %p14589_p11  ;;  %p14262_p4 = por %p14261_p13, %p14260_p7 }
  0x5a   : > { %p14256_p12 = pneg %p14255_p10 }
  0x5c   : > { %p14263_p6 = pnand %p14262_p4, %p14256_p12 }
  0x5e   : > { %14266 = shalt.err (!%p14263_p6)
}
  0x5f   : > { %12280 = dma.hbm_to_vmem [thread:$0]  (!%p14573_p9), %s15359_s6, 96, %s276_s26, [#allocation15]  }
  0x60   : > { %s14471_s13 = smov [#allocation10]   ;;  %s14472_s0 = smov [#allocation13]  }
  0x61   : > { %s240_s14 = sshll.u32 %s14471_s13, 4  ;;  %s264_s22 = sshll.u32 %s14472_s0, 4  ;;  %s241_s14 = int_to_ptr.vmem [resolvable:$true] %s240_s14  ;;  %s265_s22 = int_to_ptr.vmem [resolvable:$true] %s264_s22 }
  0x62   : > { %s14267_s28 = scalar_lea.hbm %s15356_s3, 288 }
  0x63   : > { %p14268_p4 = scmp.ne.s32.totalorder %s15356_s3, %s14267_s28  ;;  %p14274_p1 = scmp.lt.u32.totalorder %s14267_s28, %s15356_s3 }
  0x65   : > { %p14270_p6 = pnand %p14268_p4, %p14589_p11 }
  0x67   : > { %p14271_p0 = pneg %p14270_p6 }
  0x69   : > { %p14276_p2 = pnand %p14274_p1, %p14271_p0 }
  0x6b   : > { %14279 = shalt.err (!%p14276_p2)
}
  0x6c   : > { %s14280_s26 = scalar_lea.vmem %s241_s14, 288  ;;  %p14288_p10 = scmp.lt.s32.totalorder %s241_s14, %s241_s14 }
  0x6d   : > { %p14281_p3 = scmp.ne.s32.totalorder %s241_s14, %s14280_s26  ;;  %p14289_p12 = scmp.lt.s32.totalorder %s14280_s26, %s14280_s26 }
  0x6f   : > { %p14283_p5 = pnand %p14281_p3, %p14589_p11  ;;  %p14290_p7 = por %p14289_p12, %p14288_p10 }
  0x71   : > { %p14284_p8 = pneg %p14283_p5 }
  0x73   : > { %p14291_p13 = pnand %p14290_p7, %p14284_p8 }
  0x75   : > { %14294 = shalt.err (!%p14291_p13)
}
  0x76   : > { %12271 = dma.hbm_to_vmem [thread:$0]  (!%p14573_p9), %s15356_s3, 288, %s241_s14, [#allocation9]  }
  0x77   : > { %s14295_s0 = scalar_lea.hbm %s15358_s5, 96 }
  0x78   : > { %p14296_p4 = scmp.ne.s32.totalorder %s15358_s5, %s14295_s0  ;;  %p14302_p1 = scmp.lt.u32.totalorder %s14295_s0, %s15358_s5 }
  0x7a   : > { %p14298_p6 = pnand %p14296_p4, %p14589_p11 }
  0x7c   : > { %p14299_p0 = pneg %p14298_p6 }
  0x7e   : > { %p14304_p2 = pnand %p14302_p1, %p14299_p0 }
  0x80   : > { %14307 = shalt.err (!%p14304_p2)
}
  0x81   : > { %s14308_s30 = scalar_lea.vmem %s265_s22, 96  ;;  %p14316_p10 = scmp.lt.s32.totalorder %s265_s22, %s265_s22 }
  0x82   : > { %p14309_p3 = scmp.ne.s32.totalorder %s265_s22, %s14308_s30  ;;  %p14317_p12 = scmp.lt.s32.totalorder %s14308_s30, %s14308_s30 }
  0x84   : > { %p14311_p5 = pnand %p14309_p3, %p14589_p11  ;;  %p14318_p7 = por %p14317_p12, %p14316_p10 }
  0x86   : > { %p14312_p8 = pneg %p14311_p5 }
  0x88   : > { %p14319_p13 = pnand %p14318_p7, %p14312_p8 }
  0x8a   : > { %14322 = shalt.err (!%p14319_p13)
}
  0x8b   : > { %12277 = dma.hbm_to_vmem [thread:$0]  (!%p14573_p9), %s15358_s5, 96, %s265_s22, [#allocation12]  }
  0x8c   : > { %s14473_s11 = smov [#allocation16]   ;;  %s14323_s19 = scalar_lea.hbm %s15360_s7, 96 }
  0x8d   : > { %s286_s26 = sshll.u32 %s14473_s11, 4  ;;  %p14324_p4 = scmp.ne.s32.totalorder %s15360_s7, %s14323_s19  ;;  %s287_s26 = int_to_ptr.vmem [resolvable:$true] %s286_s26 }
  0x8e   : > { %p14330_p1 = scmp.lt.u32.totalorder %s14323_s19, %s15360_s7 }
  0x8f   : > { %p14326_p6 = pnand %p14324_p4, %p14589_p11 }
  0x91   : > { %p14327_p0 = pneg %p14326_p6 }
  0x93   : > { %p14332_p2 = pnand %p14330_p1, %p14327_p0 }
  0x95   : > { %14335 = shalt.err (!%p14332_p2)
}
  0x96   : > { %s14336_s22 = scalar_lea.vmem %s287_s26, 96  ;;  %p14344_p10 = scmp.lt.s32.totalorder %s287_s26, %s287_s26 }
  0x97   : > { %p14337_p3 = scmp.ne.s32.totalorder %s287_s26, %s14336_s22  ;;  %p14345_p12 = scmp.lt.s32.totalorder %s14336_s22, %s14336_s22 }
  0x99   : > { %p14339_p5 = pnand %p14337_p3, %p14589_p11  ;;  %p14346_p7 = por %p14345_p12, %p14344_p10 }
  0x9b   : > { %p14340_p8 = pneg %p14339_p5 }
  0x9d   : > { %p14347_p13 = pnand %p14346_p7, %p14340_p8 }
  0x9f   : > { %14350 = shalt.err (!%p14347_p13)
}
  0xa0   : > { %12283 = dma.hbm_to_vmem [thread:$0]  (!%p14573_p9), %s15360_s7, 96, %s287_s26, [#allocation15]  }
  0xa1   : > { %s10707_s10 = sadd.s32 4294967294, %s14461_s18   ;;  %s14708_s24 = sadd.s32 1, %s14461_s18  }
  0xa2   : > { %s35_s30 = ssub.s32 %s14461_s18, %s14708_s24  ;;  %s38_s14 = sadd.s32 1, %s14457_s17 }
  0xa3   : > { %p36_p11 = scmp.eq.s32.totalorder %s35_s30, 0  ;;  %p45_p4 = scmp.ne.s32.totalorder %s14457_s17, %s14453_s16 }
  0xa4   : > { %p46_p6 = scmp.eq.s32.totalorder %s14461_s18, 0  ;;  %p51_p0 = scmp.ne.s32.totalorder %s14453_s16, %s14449_s15 }
  0xa5   : > { %s14719_s9 = scalar_select %p36_p11, %s14457_s17, %s38_s14  }
  0xa6   : > { %p47_p1 = por %p46_p6, %p45_p4  ;;  %p15370_p2 = scmp.eq.s32.totalorder %s14557_s20, 0 }
  0xa7   : > { %p201_p9 = scmp.eq.s32.totalorder %s14557_s20, 1  ;;  %p207_p5 = scmp.eq.s32.totalorder %s10707_s10, 1 }
  0xa8   : > { %p14723_p3 = por %p15370_p2, %p51_p0  ;;  %p12298_p8 = scmp.lt.s32.totalorder %s14461_s18, 2 }
  0xa9   : > { %s297_s26 = sand.u32 1, %s14457_s17   ;;  %p14730_p10 = por %p201_p9, %p45_p4 }
  0xaa   : > { %p14734_p12 = por %p207_p5, %p51_p0  ;;  %s12233_s19 = smul.u32 24, %s297_s26 }
  0xab   : > { %s15372_s12 = scalar_select %p14730_p10, 1, 0 }
  0xac   : > { %s15373_s23 = scalar_select %p14734_p12, 1, 0 }
  0xad   : > { %s12234_s13 = smul.u32 384, %s14461_s18  ;;  %p14739_p7 = pnand %p12298_p8, %p47_p1 }
  0xae   : > { %s301_s28 = scalar_lea.vmem [#allocation5], %s12233_s19  ;;  %s298_s10 = scalar_lea.sflag [#allocation6], %s297_s26 }
  0xaf   : > { %s14746_s22 = scalar_lea.hbm %s15354_s1, %s12234_s13  ;;  %s309_s29 = sshll.u32 %s301_s28, 4  ;;  %s14748_s29 = int_to_ptr.vmem [resolvable:$true] %s309_s29 }
  0xb0   : > { %s14351_s30 = scalar_lea.hbm %s14746_s22, 384  ;;  %p14353_p11 = pneg %p14739_p7 }
  0xb1   : > { %p14352_p13 = scmp.ne.s32.totalorder %s14746_s22, %s14351_s30  ;;  %s14356_s25 = scalar_lea.hbm %s15354_s1, 768 }
  0xb2   : > { %p14357_p0 = scmp.lt.u32.totalorder %s14746_s22, %s15354_s1  ;;  %p14358_p1 = scmp.lt.u32.totalorder %s14356_s25, %s14351_s30 }
  0xb3   : > { %p14354_p4 = pnand %p14353_p11, %p14352_p13  ;;  %p14360_p9 = scmp.lt.u32.totalorder %s14351_s30, %s14746_s22 }
  0xb4   : > { %p14359_p2 = por %p14358_p1, %p14357_p0 }
  0xb5   : > { %p14355_p6 = pneg %p14354_p4 }
  0xb6   : > { %p14361_p5 = por %p14360_p9, %p14359_p2 }
  0xb8   : > { %p14362_p8 = pnand %p14361_p5, %p14355_p6 }
  0xba   : > { %14365 = shalt.err (!%p14362_p8)
}
  0xbb   : > { %s14366_s26 = scalar_lea.vmem %s14748_s29, 384  ;;  %s14474_s19 = smov [#allocation5]  }
  0xbc   : > { %p14367_p13 = scmp.ne.s32.totalorder %s14748_s29, %s14366_s26  ;;  %s14371_s28 = sshll.u32 %s14474_s19, 4  ;;  %s14372_s28 = int_to_ptr.vmem [resolvable:$false] %s14371_s28 }
  0xbd   : > { %s14373_s2 = scalar_lea.vmem %s14372_s28, 768  ;;  %p14374_p10 = scmp.lt.s32.totalorder %s14748_s29, %s14372_s28 }
  0xbe   : > { %p14369_p4 = pnand %p14367_p13, %p14353_p11  ;;  %p14375_p0 = scmp.lt.s32.totalorder %s14373_s2, %s14366_s26 }
  0xc0   : > { %p14370_p12 = pneg %p14369_p4  ;;  %p14376_p1 = por %p14375_p0, %p14374_p10 }
  0xc2   : > { %p14377_p2 = pnand %p14376_p1, %p14370_p12 }
  0xc4   : > { %14380 = shalt.err (!%p14377_p2)
}
  0xc5   : > { %12287 = dma.hbm_to_vmem [thread:$0]  (!%p14739_p7), %s14746_s22, 384, %s14748_s29, %s298_s10  }
  0xc6   : > { %p15375_p6 = scmp.ne.s32.totalorder %s15366_s21, 0 }
  0xc7   : > { %s14778_s30 = sand.u32 (!%p15375_p6), 1, %s14453_s16  }
  0xc8   : > { %318 = sbr.rel (%p15375_p6) target bundleno = 8520 (0x2148), region = 48  ;;  %s321_s13 = scalar_lea.sflag (!%p15375_p6), [#allocation6], %s14778_s30 }
  0xc9   : > { %s12235_s14 = smul.u32 (!%p15375_p6), 24, %s14778_s30 }
  0xcb   : > { %s14784_s25 = scalar_lea.vmem (!%p15375_p6), [#allocation5], %s12235_s14 }
  0xcf   : > { %14428 = dma.done.wait (%p14723_p3), %s321_s13, 384  }
  0xd0   : > { %14430 = vsyncadd (%p14723_p3), %s321_s13, 4294966912  ;;  %p15376_p10 = scmp.eq.s32.totalorder %s14557_s20, 0 }
  0xd2   : > { %14432 = dma.done.wait (%p15376_p10), [#allocation9], 110880   ;;  %p15377_p12 = pmov %p15376_p10 }
  0xd3   : > { %p15378_p7 = pmov %p15376_p10 }
  0xd4   : > { %14434 = vsyncadd (%p15377_p12), [#allocation9], 4294856416 }
  0xd5   : > { %14436 = dma.done.wait (%p15378_p7), [#allocation12], 36960   ;;  %p15379_p11 = pmov %p15378_p7 }
  0xd6   : > { %p15380_p9 = pmov %p15378_p7 }
  0xd7   : > { %14438 = vsyncadd (%p15379_p11), [#allocation12], 4294930336 }
  0xd8   : > { %14440 = dma.done.wait (%p15380_p9), [#allocation15], 192   ;;  %p15381_p5 = pmov %p15378_p7 }
  0xd9   : > { %v12367_v0 = vld [vmem:[#allocation8 + $0xc] ss:$72 sps:$4 sm:$0xff]   ;;  %v12369_v1 = vld [vmem:[#allocation8 + $0x8] ss:$72 sps:$4 sm:$0xff]   ;;  %v12370_v2 = vld [vmem:[#allocation8 + $0x9c] ss:$72 sps:$4 sm:$0xff]  }
  0xda   : > { %14442 = vsyncadd (%p15381_p5), [#allocation15], 4294967104  ;;  %5808 = vmatprep.subr.bf16.mxu1 %v12367_v0  ;;  %v12372_v3 = vld [vmem:[#allocation8 + $0x98] ss:$72 sps:$4 sm:$0xff]   ;;  %v12373_v4 = vld [vmem:[#allocation8 + $0x12c] ss:$72 sps:$4 sm:$0xff]  }
  0xdb   : > { %5809 = vmatpush1.bf16.msra.mxu1 %v12369_v1  ;;  %v12375_v5 = vld [vmem:[#allocation8 + $0x128] ss:$72 sps:$4 sm:$0xff]   ;;  %v12376_v6 = vld [vmem:[#allocation8 + $0x1bc] ss:$72 sps:$4 sm:$0xff]   ;;  %v12378_v7 = vld [vmem:[#allocation8 + $0x1b8] ss:$72 sps:$4 sm:$0xff]  }
  0xdc   : > { %5810 = vmatprep.subr.bf16.mxu1 %v12370_v2  ;;  %v12379_v8 = vld [vmem:[#allocation8 + $0x24c] ss:$72 sps:$4 sm:$0xff]   ;;  %v12381_v9 = vld [vmem:[#allocation8 + $0x248] ss:$72 sps:$4 sm:$0xff]   ;;  %v12382_v10 = vld [vmem:[#allocation8 + $0x2dc] ss:$72 sps:$4 sm:$0xff]  }
  0xdd   : > { %v12384_v11 = vld [vmem:[#allocation8 + $0x2d8] ss:$72 sps:$4 sm:$0xff]   ;;  %v12385_v12 = vld [vmem:[#allocation8 + $0x36c] ss:$72 sps:$4 sm:$0xff]   ;;  %v12387_v15 = vld [vmem:[#allocation8 + $0x368] ss:$72 sps:$4 sm:$0xff]  }
  0xde   : > { %v381_v13 = vld [vmem:[%s14784_s25] sm:$0xff]  ;;  %v12388_v16 = vld [vmem:[#allocation8 + $0x3fc] ss:$72 sps:$4 sm:$0xff]   ;;  %v12390_v17 = vld [vmem:[#allocation8 + $0x3f8] ss:$72 sps:$4 sm:$0xff]   ;;  %s14475_s21 = smov 64  }
  0xdf   : > { %5811 = vmatpush1.bf16.msra.mxu1 %v12372_v3  ;;  %v14803_v14 = vcombine.high %v381_v13, %v381_v13  ;;  %v12391_v18 = vld [vmem:[#allocation8 + $0x48c] ss:$72 sps:$4 sm:$0xff]   ;;  %v12393_v19 = vld [vmem:[#allocation8 + $0x488] ss:$72 sps:$4 sm:$0xff]   ;;  %v12394_v20 = vld [vmem:[#allocation8 + $0x51c] ss:$72 sps:$4 sm:$0xff]   ;;  %v14810_v39 = vcombine.low %v381_v13, %v381_v13 }
  0xe0   : > { %5812 = vmatprep.subr.bf16.mxu1 %v12373_v4  ;;  %v12396_v21 = vld [vmem:[#allocation8 + $0x518] ss:$72 sps:$4 sm:$0xff]   ;;  %v12397_v22 = vld [vmem:[#allocation8 + $0x5ac] ss:$72 sps:$4 sm:$0xff]   ;;  %v12399_v23 = vld [vmem:[#allocation8 + $0x5a8] ss:$72 sps:$4 sm:$0xff]  }
  0xe1   : > { %5840 = vmatprep.mubr.bf16.mxu1 %v14803_v14  ;;  %5717 = vmatprep.mubr.bf16.mxu0 %v14803_v14  ;;  %v12400_v24 = vld [vmem:[#allocation8 + $0x63c] ss:$72 sps:$4 sm:$0xff]   ;;  %v12402_v25 = vld [vmem:[#allocation8 + $0x638] ss:$72 sps:$4 sm:$0xff]   ;;  %v12403_v26 = vld [vmem:[#allocation8 + $0x6cc] ss:$72 sps:$4 sm:$0xff]  }
  0xe2   : > { %v12405_v27 = vld [vmem:[#allocation8 + $0x6c8] ss:$72 sps:$4 sm:$0xff]   ;;  %v12406_v28 = vld [vmem:[#allocation8 + $0x75c] ss:$72 sps:$4 sm:$0xff]   ;;  %v12408_v29 = vld [vmem:[#allocation8 + $0x758] ss:$72 sps:$4 sm:$0xff]  }
  0xe3   : > { %5813 = vmatpush1.bf16.msra.mxu1 %v12375_v5  ;;  %v12409_v30 = vld [vmem:[#allocation8 + $0x7ec] ss:$72 sps:$4 sm:$0xff]   ;;  %v12411_v31 = vld [vmem:[#allocation8 + $0x7e8] ss:$72 sps:$4 sm:$0xff]   ;;  %v12412_v32 = vld [vmem:[#allocation8 + $0x87c] ss:$72 sps:$4 sm:$0xff]  }
  0xe4   : > { %5814 = vmatprep.subr.bf16.mxu1 %v12376_v6  ;;  %v12414_v33 = vld [vmem:[#allocation8 + $0x878] ss:$72 sps:$4 sm:$0xff]   ;;  %v12418_v34 = vld [vmem:[#allocation8 + $0x90c] ss:$72 sps:$4 sm:$0xff]   ;;  %v12416_v38 = vld [vmem:[#allocation8 + $0x908] ss:$72 sps:$4 sm:$0xff]  }
  0xe5   : > { %v14808_v35 = vld [vmem:[%s14784_s25 + $0x8] sm:$0xff]  ;;  %v12506_v36 = vld [vmem:[#allocation8 + $0x4] ss:$72 sps:$4 sm:$0xff]   ;;  %v12508_v37 = vld [vmem:[#allocation8] ss:$72 sps:$4 sm:$0xff]   ;;  %vm14477_vm0 = vmmov 0  }
  0xe6   : > { %v12422_v40 = vld [vmem:[#allocation8 + $0x99c] ss:$72 sps:$4 sm:$0xff]   ;;  %v14814_v41 = vcombine.high %v14808_v35, %v14808_v35  ;;  %5685 = vmatprep.subr.bf16.mxu0 %v12506_v36  ;;  %v12514_v43 = vld [vmem:[#allocation8 + $0x90] ss:$72 sps:$4 sm:$0xff]   ;;  %v12425_v46 = vld [vmem:[#allocation8 + $0xa2c] ss:$72 sps:$4 sm:$0xff]  }
  0xe7   : > { %5815 = vmatpush1.bf16.msra.mxu1 %v12378_v7  ;;  %5686 = vmatpush1.bf16.msra.mxu0 %v12508_v37  ;;  %v12512_v42 = vld [vmem:[#allocation8 + $0x94] ss:$72 sps:$4 sm:$0xff]   ;;  %v12518_v44 = vld [vmem:[#allocation8 + $0x124] ss:$72 sps:$4 sm:$0xff]   ;;  %v12420_v45 = vld [vmem:[#allocation8 + $0x998] ss:$72 sps:$4 sm:$0xff]  }
  0xe8   : > { %5816 = vmatprep.subr.bf16.mxu1 %v12379_v8  ;;  %5687 = vmatprep.subr.bf16.mxu0 %v12512_v42  ;;  %v12520_v47 = vld [vmem:[#allocation8 + $0x120] ss:$72 sps:$4 sm:$0xff]   ;;  %v12524_v48 = vld [vmem:[#allocation8 + $0x1b4] ss:$72 sps:$4 sm:$0xff]   ;;  %v12526_v51 = vld [vmem:[#allocation8 + $0x1b0] ss:$72 sps:$4 sm:$0xff]  }
  0xe9   : > { %v12423_v49 = vld [vmem:[#allocation8 + $0xa28] ss:$72 sps:$4 sm:$0xff]   ;;  %v12428_v50 = vld [vmem:[#allocation8 + $0xabc] ss:$72 sps:$4 sm:$0xff]   ;;  %v12426_v53 = vld [vmem:[#allocation8 + $0xab8] ss:$72 sps:$4 sm:$0xff]  }
  0xea   : > { %v12532_v52 = vld [vmem:[#allocation8 + $0x244] ss:$72 sps:$4 sm:$0xff]   ;;  %v12534_v55 = vld [vmem:[#allocation8 + $0x240] ss:$72 sps:$4 sm:$0xff]   ;;  %v12538_v56 = vld [vmem:[#allocation8 + $0x2d4] ss:$72 sps:$4 sm:$0xff]  }
  0xeb   : > { %5817 = vmatpush1.bf16.msra.mxu1 %v12381_v9  ;;  %5688 = vmatpush1.bf16.msra.mxu0 %v12514_v43  ;;  %v12431_v54 = vld [vmem:[#allocation8 + $0xb4c] ss:$72 sps:$4 sm:$0xff]   ;;  %v12429_v57 = vld [vmem:[#allocation8 + $0xb48] ss:$72 sps:$4 sm:$0xff]   ;;  %v12434_v58 = vld [vmem:[#allocation8 + $0xbdc] ss:$72 sps:$4 sm:$0xff]  }
  0xec   : > { %5818 = vmatprep.subr.bf16.mxu1 %v12382_v10  ;;  %5689 = vmatprep.subr.bf16.mxu0 %v12518_v44  ;;  %v12540_v59 = vld [vmem:[#allocation8 + $0x2d0] ss:$72 sps:$4 sm:$0xff]   ;;  %v12544_v60 = vld [vmem:[#allocation8 + $0x364] ss:$72 sps:$4 sm:$0xff]   ;;  %v12546_v63 = vld [vmem:[#allocation8 + $0x360] ss:$72 sps:$4 sm:$0xff]  }
  0xed   : > { %v12432_v61 = vld [vmem:[#allocation8 + $0xbd8] ss:$72 sps:$4 sm:$0xff]   ;;  %v12437_v62 = vld [vmem:[#allocation8 + $0xc6c] ss:$72 sps:$4 sm:$0xff]   ;;  %v12435_v1 = vld [vmem:[#allocation8 + $0xc68] ss:$72 sps:$4 sm:$0xff]  }
  0xee   : > { %v12550_v0 = vld [vmem:[#allocation8 + $0x3f4] ss:$72 sps:$4 sm:$0xff]   ;;  %v12552_v3 = vld [vmem:[#allocation8 + $0x3f0] ss:$72 sps:$4 sm:$0xff]   ;;  %v12556_v4 = vld [vmem:[#allocation8 + $0x484] ss:$72 sps:$4 sm:$0xff]  }
  0xef   : > { %5819 = vmatpush1.bf16.msra.mxu1 %v12384_v11  ;;  %5690 = vmatpush1.bf16.msra.mxu0 %v12520_v47  ;;  %v12440_v2 = vld [vmem:[#allocation8 + $0xcfc] ss:$72 sps:$4 sm:$0xff]   ;;  %v12438_v5 = vld [vmem:[#allocation8 + $0xcf8] ss:$72 sps:$4 sm:$0xff]   ;;  %v12443_v6 = vld [vmem:[#allocation8 + $0xd8c] ss:$72 sps:$4 sm:$0xff]   ;;  %v14823_v47 = vcombine.low %v14808_v35, %v14808_v35 }
  0xf0   : > { %5820 = vmatprep.subr.bf16.mxu1 %v12385_v12  ;;  %5691 = vmatprep.subr.bf16.mxu0 %v12524_v48  ;;  %v12558_v7 = vld [vmem:[#allocation8 + $0x480] ss:$72 sps:$4 sm:$0xff]   ;;  %v12562_v8 = vld [vmem:[#allocation8 + $0x514] ss:$72 sps:$4 sm:$0xff]   ;;  %v12564_v11 = vld [vmem:[#allocation8 + $0x510] ss:$72 sps:$4 sm:$0xff]  }
  0xf1   : > { %v12441_v9 = vld [vmem:[#allocation8 + $0xd88] ss:$72 sps:$4 sm:$0xff]   ;;  %v12446_v10 = vld [vmem:[#allocation8 + $0xe1c] ss:$72 sps:$4 sm:$0xff]   ;;  %v12444_v13 = vld [vmem:[#allocation8 + $0xe18] ss:$72 sps:$4 sm:$0xff]  }
  0xf2   : > { %v12568_v12 = vld [vmem:[#allocation8 + $0x5a4] ss:$72 sps:$4 sm:$0xff]   ;;  %v12600_v37 = vld [vmem:[#allocation8 + $0x870] ss:$72 sps:$4 sm:$0xff]   ;;  %v12604_v44 = vld [vmem:[#allocation8 + $0x900] ss:$72 sps:$4 sm:$0xff]  }
  0xf3   : > { %5821 = vmatpush1.bf16.msra.mxu1 %v12387_v15  ;;  %5692 = vmatpush1.bf16.msra.mxu0 %v12526_v51  ;;  %v12449_v15 = vld [vmem:[#allocation8 + $0xeac] ss:$72 sps:$4 sm:$0xff]   ;;  %v12464_v36 = vld [vmem:[#allocation8 + $0x117c] ss:$72 sps:$4 sm:$0xff]   ;;  %vm6880_vm1 = vcmask 523264   ;;  %s380_s11 = sld [smem:[#allocation4 + %s14557_s20]] }
  0xf4   : > { %5822 = vmatprep.subr.bf16.mxu1 %v12388_v16  ;;  %5693 = vmatprep.subr.bf16.mxu0 %v12532_v52  ;;  %v12570_v16 = vld [vmem:[#allocation8 + $0x5a0] ss:$72 sps:$4 sm:$0xff]   ;;  %v12468_v42 = vld [vmem:[#allocation8 + $0x120c] ss:$72 sps:$4 sm:$0xff]   ;;  %v12472_v48 = vld [vmem:[#allocation8 + $0x129c] ss:$72 sps:$4 sm:$0xff]  }
  0xf5   : > { %v14819_v43 = vld [vmem:[%s14784_s25 + $0x10] sm:$0xff]  ;;  %v12475_v35 = vld [vmem:[#allocation8 + $0x132c] ss:$72 sps:$4 sm:$0xff]   ;;  %vm6928_vm3 = vcmask 64512   ;;  %vm6944_vm4 = vcmask 1043456   ;;  %s12236_s0 = smul.u32 384, %s14557_s20 }
  0xf6   : > { %v12618_v51 = vld [vmem:[#allocation8 + $0xa24] ss:$72 sps:$4 sm:$0xff]   ;;  %v12470_v52 = vld [vmem:[#allocation8 + $0x1298] ss:$72 sps:$4 sm:$0xff]   ;;  %s378_s22 = scalar_lea.vmem [#allocation17], %s12235_s14  ;;  %s10566_s20 = scalar_lea.sflag [#allocation7], %s14778_s30 }
  0xf7   : > { %5823 = vmatpush1.bf16.msra.mxu1 %v12390_v17  ;;  %5694 = vmatpush1.bf16.msra.mxu0 %v12534_v55  ;;  %v12574_v17 = vld [vmem:[#allocation8 + $0x634] ss:$72 sps:$4 sm:$0xff]   ;;  %v12473_v55 = vld [vmem:[#allocation8 + $0x1328] ss:$72 sps:$4 sm:$0xff]   ;;  %s10580_s29 = sshll.u32 %s378_s22, 4  ;;  %s15309_s26 = scalar_lea.hbm %s15361_s8, %s12236_s0  ;;  %s15311_s29 = int_to_ptr.vmem [resolvable:$true] %s10580_s29 }
  0xf8   : > { %5824 = vmatprep.subr.bf16.mxu1 %v12391_v18  ;;  %5695 = vmatprep.subr.bf16.mxu0 %v12538_v56  ;;  %v12447_v18 = vld [vmem:[#allocation8 + $0xea8] ss:$72 sps:$4 sm:$0xff]   ;;  %v12478_v56 = vld [vmem:[#allocation8 + $0x13bc] ss:$72 sps:$4 sm:$0xff]   ;;  %s14381_s19 = scalar_lea.vmem %s15311_s29, 384  ;;  %p15384_p8 = scmp.ne.s32.totalorder %s15372_s12, 0 }
  0xf9   : > { %p14382_p3 = scmp.ne.s32.totalorder %s15311_s29, %s14381_s19  ;;  %s14478_s28 = smov [#allocation17]  }
  0xfa   : > { %s14385_s2 = sshll.u32 %s14478_s28, 4  ;;  %s14386_s2 = int_to_ptr.vmem [resolvable:$false] %s14385_s2 }
  0xfb   : > { %5825 = vmatpush1.bf16.msra.mxu1 %v12393_v19  ;;  %5696 = vmatpush1.bf16.msra.mxu0 %v12540_v59  ;;  %v12452_v19 = vld [vmem:[#allocation8 + $0xf3c] ss:$72 sps:$4 sm:$0xff]   ;;  %v12476_v59 = vld [vmem:[#allocation8 + $0x13b8] ss:$72 sps:$4 sm:$0xff]   ;;  %p14383_p13 = pnand %p14382_p3, %p15384_p8  ;;  %s14387_s14 = scalar_lea.vmem %s14386_s2, 768 }
  0xfc   : > { %5826 = vmatprep.subr.bf16.mxu1 %v12394_v20  ;;  %5697 = vmatprep.subr.bf16.mxu0 %v12544_v60  ;;  %v12576_v20 = vld [vmem:[#allocation8 + $0x630] ss:$72 sps:$4 sm:$0xff]   ;;  %v12481_v60 = vld [vmem:[#allocation8 + $0x144c] ss:$72 sps:$4 sm:$0xff]   ;;  %p14388_p0 = scmp.lt.s32.totalorder %s15311_s29, %s14386_s2  ;;  %p14389_p1 = scmp.lt.s32.totalorder %s14387_s14, %s14381_s19 }
  0xfd   : > { %p14384_p4 = pneg %p14383_p13 }
  0xfe   : > { %p14390_p2 = por %p14389_p1, %p14388_p0 }
  0xff   : > { %5827 = vmatpush1.bf16.msra.mxu1 %v12396_v21  ;;  %5698 = vmatpush1.bf16.msra.mxu0 %v12546_v63  ;;  %v12580_v21 = vld [vmem:[#allocation8 + $0x6c4] ss:$72 sps:$4 sm:$0xff]   ;;  %v12479_v63 = vld [vmem:[#allocation8 + $0x1448] ss:$72 sps:$4 sm:$0xff]  }
 0x100   : > { %5828 = vmatprep.subr.bf16.mxu1 %v12397_v22  ;;  %5699 = vmatprep.subr.bf16.mxu0 %v12550_v0  ;;  %v12450_v22 = vld [vmem:[#allocation8 + $0xf38] ss:$72 sps:$4 sm:$0xff]   ;;  %v12484_v0 = vld [vmem:[#allocation8 + $0x14dc] ss:$72 sps:$4 sm:$0xff]   ;;  %p14391_p6 = pnand %p14390_p2, %p14384_p4 }
 0x103   : > { %5829 = vmatpush1.bf16.msra.mxu1 %v12399_v23  ;;  %5700 = vmatpush1.bf16.msra.mxu0 %v12552_v3  ;;  %v12455_v23 = vld [vmem:[#allocation8 + $0xfcc] ss:$72 sps:$4 sm:$0xff]   ;;  %v12482_v3 = vld [vmem:[#allocation8 + $0x14d8] ss:$72 sps:$4 sm:$0xff]  }
 0x104   : > { %5830 = vmatprep.subr.bf16.mxu1 %v12400_v24  ;;  %5701 = vmatprep.subr.bf16.mxu0 %v12556_v4  ;;  %v12582_v24 = vld [vmem:[#allocation8 + $0x6c0] ss:$72 sps:$4 sm:$0xff]   ;;  %v12487_v4 = vld [vmem:[#allocation8 + $0x156c] ss:$72 sps:$4 sm:$0xff]  }
 0x107   : > { %5831 = vmatpush1.bf16.msra.mxu1 %v12402_v25  ;;  %5702 = vmatpush1.bf16.msra.mxu0 %v12558_v7  ;;  %v12586_v25 = vld [vmem:[#allocation8 + $0x754] ss:$72 sps:$4 sm:$0xff]   ;;  %v12485_v7 = vld [vmem:[#allocation8 + $0x1568] ss:$72 sps:$4 sm:$0xff]  }
 0x108   : > { %5832 = vmatprep.subr.bf16.mxu1 %v12403_v26  ;;  %5703 = vmatprep.subr.bf16.mxu0 %v12562_v8  ;;  %v12453_v26 = vld [vmem:[#allocation8 + $0xfc8] ss:$72 sps:$4 sm:$0xff]   ;;  %v12490_v8 = vld [vmem:[#allocation8 + $0x15fc] ss:$72 sps:$4 sm:$0xff]  }
 0x10b   : > { %5833 = vmatpush1.bf16.msra.mxu1 %v12405_v27  ;;  %5704 = vmatpush1.bf16.msra.mxu0 %v12564_v11  ;;  %v12458_v27 = vld [vmem:[#allocation8 + $0x105c] ss:$72 sps:$4 sm:$0xff]   ;;  %v12488_v11 = vld [vmem:[#allocation8 + $0x15f8] ss:$72 sps:$4 sm:$0xff]  }
 0x10c   : > { %5834 = vmatprep.subr.bf16.mxu1 %v12406_v28  ;;  %5705 = vmatprep.subr.bf16.mxu0 %v12568_v12  ;;  %v12588_v28 = vld [vmem:[#allocation8 + $0x750] ss:$72 sps:$4 sm:$0xff]   ;;  %v12493_v12 = vld [vmem:[#allocation8 + $0x168c] ss:$72 sps:$4 sm:$0xff]  }
 0x10f   : > { %5835 = vmatpush1.bf16.msra.mxu1 %v12408_v29  ;;  %5706 = vmatpush1.bf16.msra.mxu0 %v12570_v16  ;;  %v12592_v29 = vld [vmem:[#allocation8 + $0x7e4] ss:$72 sps:$4 sm:$0xff]   ;;  %v12491_v16 = vld [vmem:[#allocation8 + $0x1688] ss:$72 sps:$4 sm:$0xff]  }
 0x110   : > { %5836 = vmatprep.subr.bf16.mxu1 %v12409_v30  ;;  %5707 = vmatprep.subr.bf16.mxu0 %v12574_v17  ;;  %v12456_v30 = vld [vmem:[#allocation8 + $0x1058] ss:$72 sps:$4 sm:$0xff]   ;;  %v12496_v17 = vld [vmem:[#allocation8 + $0x171c] ss:$72 sps:$4 sm:$0xff]  }
 0x113   : > { %5837 = vmatpush1.bf16.msra.mxu1 %v12411_v31  ;;  %5708 = vmatpush1.bf16.msra.mxu0 %v12576_v20  ;;  %v12461_v31 = vld [vmem:[#allocation8 + $0x10ec] ss:$72 sps:$4 sm:$0xff]   ;;  %v12494_v20 = vld [vmem:[#allocation8 + $0x1718] ss:$72 sps:$4 sm:$0xff]  }
 0x114   : > { %5838 = vmatprep.subr.bf16.mxu1 %v12412_v32  ;;  %5709 = vmatprep.subr.bf16.mxu0 %v12580_v21  ;;  %v12594_v32 = vld [vmem:[#allocation8 + $0x7e0] ss:$72 sps:$4 sm:$0xff]   ;;  %v12499_v21 = vld [vmem:[#allocation8 + $0x17ac] ss:$72 sps:$4 sm:$0xff]  }
 0x117   : > { %5839 = vmatpush1.bf16.msra.mxu1 %v12414_v33  ;;  %5710 = vmatpush1.bf16.msra.mxu0 %v12582_v24  ;;  %v12598_v33 = vld [vmem:[#allocation8 + $0x874] ss:$72 sps:$4 sm:$0xff]   ;;  %v12497_v24 = vld [vmem:[#allocation8 + $0x17a8] ss:$72 sps:$4 sm:$0xff]  }
 0x118   : > { %5849 = vmatprep.subr.bf16.mxu1 %v12418_v34  ;;  %5711 = vmatprep.subr.bf16.mxu0 %v12586_v25  ;;  %v12459_v34 = vld [vmem:[#allocation8 + $0x10e8] ss:$72 sps:$4 sm:$0xff]   ;;  %v12502_v25 = vld [vmem:[#allocation8 + $0x183c] ss:$72 sps:$4 sm:$0xff]  }
 0x11a   : > { %5841 = vmatmul.mubr.bf16.vlgmr.msra.gmra.mrb[0].mxu1 %v14810_v39 }
 0x11b   : > { %5850 = vmatpush1.bf16.msra.mxu1 %v12416_v38  ;;  %5881 = vmatprep.mubr.bf16.mxu1 %v14814_v41  ;;  %v12606_v38 = vld [vmem:[#allocation8 + $0x904] ss:$72 sps:$4 sm:$0xff]  }
 0x11c   : > { %5851 = vmatprep.subr.bf16.mxu1 %v12422_v40  ;;  %5712 = vmatpush1.bf16.msra.mxu0 %v12588_v28  ;;  %v12462_v40 = vld [vmem:[#allocation8 + $0x1178] ss:$72 sps:$4 sm:$0xff]  }
 0x11d   : > { %5713 = vmatprep.subr.bf16.mxu0 %v12592_v29  ;;  %v12500_v28 = vld [vmem:[#allocation8 + $0x1838] ss:$72 sps:$4 sm:$0xff]   ;;  %v12505_v29 = vld [vmem:[#allocation8 + $0x18cc] ss:$72 sps:$4 sm:$0xff]  }
 0x11f   : > { %5852 = vmatpush1.bf16.msra.mxu1 %v12420_v45  ;;  %v12612_v45 = vld [vmem:[#allocation8 + $0x994] ss:$72 sps:$4 sm:$0xff]  }
 0x120   : > { %5853 = vmatprep.subr.bf16.mxu1 %v12425_v46  ;;  %5714 = vmatpush1.bf16.msra.mxu0 %v12594_v32  ;;  %v12466_v46 = vld [vmem:[#allocation8 + $0x1208] ss:$72 sps:$4 sm:$0xff]  }
 0x121   : > { %5715 = vmatprep.subr.bf16.mxu0 %v12598_v33  ;;  %v12503_v32 = vld [vmem:[#allocation8 + $0x18c8] ss:$72 sps:$4 sm:$0xff]   ;;  %v12511_v33 = vld [vmem:[#allocation8 + $0x195c] ss:$72 sps:$4 sm:$0xff]  }
 0x123   : > { %5854 = vmatpush1.bf16.msra.mxu1 %v12423_v49  ;;  %v14827_v49 = vcombine.high %v14819_v43, %v14819_v43 }
 0x124   : > { %5855 = vmatprep.subr.bf16.mxu1 %v12428_v50  ;;  %5716 = vmatpush1.bf16.msra.mxu0 %v12600_v37  ;;  %v12610_v50 = vld [vmem:[#allocation8 + $0x990] ss:$72 sps:$4 sm:$0xff]  }
 0x125   : > { %5726 = vmatprep.subr.bf16.mxu0 %v12606_v38  ;;  %v12509_v37 = vld [vmem:[#allocation8 + $0x1958] ss:$72 sps:$4 sm:$0xff]   ;;  %v12517_v38 = vld [vmem:[#allocation8 + $0x19ec] ss:$72 sps:$4 sm:$0xff]  }
 0x127   : > { %5856 = vmatpush1.bf16.msra.mxu1 %v12426_v53  ;;  %5718 = vmatmul.mubr.bf16.vlgmr.msra.gmra.mrb[0].mxu0 %v14810_v39  ;;  %v12616_v53 = vld [vmem:[#allocation8 + $0xa20] ss:$72 sps:$4 sm:$0xff]  }
 0x128   : > { %5857 = vmatprep.subr.bf16.mxu1 %v12431_v54  ;;  %5727 = vmatpush1.bf16.msra.mxu0 %v12604_v44  ;;  %v12624_v54 = vld [vmem:[#allocation8 + $0xab4] ss:$72 sps:$4 sm:$0xff]   ;;  %v12515_v44 = vld [vmem:[#allocation8 + $0x19e8] ss:$72 sps:$4 sm:$0xff]  }
 0x129   : > { %5728 = vmatprep.subr.bf16.mxu0 %v12612_v45  ;;  %5758 = vmatprep.mubr.bf16.mxu0 %v14814_v41  ;;  %v12523_v45 = vld [vmem:[#allocation8 + $0x1a7c] ss:$72 sps:$4 sm:$0xff]  }
 0x12b   : > { %5858 = vmatpush1.bf16.msra.mxu1 %v12429_v57  ;;  %v12622_v57 = vld [vmem:[#allocation8 + $0xab0] ss:$72 sps:$4 sm:$0xff]  }
 0x12c   : > { %5859 = vmatprep.subr.bf16.mxu1 %v12434_v58  ;;  %5729 = vmatpush1.bf16.msra.mxu0 %v12610_v50  ;;  %v12630_v58 = vld [vmem:[#allocation8 + $0xb44] ss:$72 sps:$4 sm:$0xff]   ;;  %v12521_v50 = vld [vmem:[#allocation8 + $0x1a78] ss:$72 sps:$4 sm:$0xff]  }
 0x12d   : > { %5730 = vmatprep.subr.bf16.mxu0 %v12618_v51  ;;  %v12531_v51 = vld [vmem:[#allocation8 + $0x1c] ss:$72 sps:$4 sm:$0xff]  }
 0x12f   : > { %5860 = vmatpush1.bf16.msra.mxu1 %v12432_v61  ;;  %v12628_v61 = vld [vmem:[#allocation8 + $0xb40] ss:$72 sps:$4 sm:$0xff]  }
 0x130   : > { %5861 = vmatprep.subr.bf16.mxu1 %v12437_v62  ;;  %5731 = vmatpush1.bf16.msra.mxu0 %v12616_v53  ;;  %v12636_v62 = vld [vmem:[#allocation8 + $0xbd4] ss:$72 sps:$4 sm:$0xff]   ;;  %v14835_v53 = vcombine.low %v14819_v43, %v14819_v43  ;;  %v12712_v43 = vld [vmem:[#allocation8 + $0x1320] ss:$72 sps:$4 sm:$0xff]  }
 0x131   : > { %5732 = vmatprep.subr.bf16.mxu0 %v12624_v54  ;;  %v12529_v54 = vld [vmem:[#allocation8 + $0x18] ss:$72 sps:$4 sm:$0xff]  }
 0x133   : > { %5862 = vmatpush1.bf16.msra.mxu1 %v12435_v1  ;;  %v12634_v1 = vld [vmem:[#allocation8 + $0xbd0] ss:$72 sps:$4 sm:$0xff]  }
 0x134   : > { %5863 = vmatprep.subr.bf16.mxu1 %v12440_v2  ;;  %5733 = vmatpush1.bf16.msra.mxu0 %v12622_v57  ;;  %v12642_v2 = vld [vmem:[#allocation8 + $0xc64] ss:$72 sps:$4 sm:$0xff]  }
 0x135   : > { %5734 = vmatprep.subr.bf16.mxu0 %v12630_v58  ;;  %v12714_v57 = vld [vmem:[#allocation8 + $0x1324] ss:$72 sps:$4 sm:$0xff]   ;;  %v12535_v58 = vld [vmem:[#allocation8 + $0xa8] ss:$72 sps:$4 sm:$0xff]  }
 0x137   : > { %5864 = vmatpush1.bf16.msra.mxu1 %v12438_v5  ;;  %v12640_v5 = vld [vmem:[#allocation8 + $0xc60] ss:$72 sps:$4 sm:$0xff]  }
 0x138   : > { %5865 = vmatprep.subr.bf16.mxu1 %v12443_v6  ;;  %5735 = vmatpush1.bf16.msra.mxu0 %v12628_v61  ;;  %v12648_v6 = vld [vmem:[#allocation8 + $0xcf4] ss:$72 sps:$4 sm:$0xff]   ;;  %v12541_v61 = vld [vmem:[#allocation8 + $0x138] ss:$72 sps:$4 sm:$0xff]  }
 0x139   : > { %5736 = vmatprep.subr.bf16.mxu0 %v12636_v62  ;;  %v12549_v62 = vld [vmem:[#allocation8 + $0x1cc] ss:$72 sps:$4 sm:$0xff]  }
 0x13b   : > { %5866 = vmatpush1.bf16.msra.mxu1 %v12441_v9  ;;  %v12646_v9 = vld [vmem:[#allocation8 + $0xcf0] ss:$72 sps:$4 sm:$0xff]  }
 0x13c   : > { %5867 = vmatprep.subr.bf16.mxu1 %v12446_v10  ;;  %5737 = vmatpush1.bf16.msra.mxu0 %v12634_v1  ;;  %v12654_v10 = vld [vmem:[#allocation8 + $0xd84] ss:$72 sps:$4 sm:$0xff]   ;;  %v12547_v1 = vld [vmem:[#allocation8 + $0x1c8] ss:$72 sps:$4 sm:$0xff]  }
 0x13d   : > { %5738 = vmatprep.subr.bf16.mxu0 %v12642_v2  ;;  %v12555_v2 = vld [vmem:[#allocation8 + $0x25c] ss:$72 sps:$4 sm:$0xff]  }
 0x13f   : > { %5868 = vmatpush1.bf16.msra.mxu1 %v12444_v13  ;;  %v12652_v13 = vld [vmem:[#allocation8 + $0xd80] ss:$72 sps:$4 sm:$0xff]  }
 0x140   : > { %5869 = vmatprep.subr.bf16.mxu1 %v12449_v15  ;;  %5739 = vmatpush1.bf16.msra.mxu0 %v12640_v5  ;;  %v12660_v15 = vld [vmem:[#allocation8 + $0xe14] ss:$72 sps:$4 sm:$0xff]   ;;  %v12553_v5 = vld [vmem:[#allocation8 + $0x258] ss:$72 sps:$4 sm:$0xff]  }
 0x141   : > { %5740 = vmatprep.subr.bf16.mxu0 %v12648_v6  ;;  %v12561_v6 = vld [vmem:[#allocation8 + $0x2ec] ss:$72 sps:$4 sm:$0xff]  }
 0x143   : > { %5870 = vmatpush1.bf16.msra.mxu1 %v12447_v18  ;;  %v12658_v18 = vld [vmem:[#allocation8 + $0xe10] ss:$72 sps:$4 sm:$0xff]  }
 0x144   : > { %5871 = vmatprep.subr.bf16.mxu1 %v12452_v19  ;;  %5741 = vmatpush1.bf16.msra.mxu0 %v12646_v9  ;;  %v12666_v19 = vld [vmem:[#allocation8 + $0xea4] ss:$72 sps:$4 sm:$0xff]   ;;  %v12559_v9 = vld [vmem:[#allocation8 + $0x2e8] ss:$72 sps:$4 sm:$0xff]  }
 0x145   : > { %5742 = vmatprep.subr.bf16.mxu0 %v12654_v10  ;;  %v12567_v10 = vld [vmem:[#allocation8 + $0x37c] ss:$72 sps:$4 sm:$0xff]  }
 0x147   : > { %5872 = vmatpush1.bf16.msra.mxu1 %v12450_v22  ;;  %v12664_v22 = vld [vmem:[#allocation8 + $0xea0] ss:$72 sps:$4 sm:$0xff]  }
 0x148   : > { %5873 = vmatprep.subr.bf16.mxu1 %v12455_v23  ;;  %5743 = vmatpush1.bf16.msra.mxu0 %v12652_v13  ;;  %v12672_v23 = vld [vmem:[#allocation8 + $0xf34] ss:$72 sps:$4 sm:$0xff]   ;;  %v12565_v13 = vld [vmem:[#allocation8 + $0x378] ss:$72 sps:$4 sm:$0xff]  }
 0x149   : > { %5744 = vmatprep.subr.bf16.mxu0 %v12660_v15  ;;  %v12573_v15 = vld [vmem:[#allocation8 + $0x40c] ss:$72 sps:$4 sm:$0xff]  }
 0x14b   : > { %5874 = vmatpush1.bf16.msra.mxu1 %v12453_v26  ;;  %v12670_v26 = vld [vmem:[#allocation8 + $0xf30] ss:$72 sps:$4 sm:$0xff]  }
 0x14c   : > { %5875 = vmatprep.subr.bf16.mxu1 %v12458_v27  ;;  %5745 = vmatpush1.bf16.msra.mxu0 %v12658_v18  ;;  %v12678_v27 = vld [vmem:[#allocation8 + $0xfc4] ss:$72 sps:$4 sm:$0xff]   ;;  %v12571_v18 = vld [vmem:[#allocation8 + $0x408] ss:$72 sps:$4 sm:$0xff]  }
 0x14d   : > { %5746 = vmatprep.subr.bf16.mxu0 %v12666_v19  ;;  %v12579_v19 = vld [vmem:[#allocation8 + $0x49c] ss:$72 sps:$4 sm:$0xff]  }
 0x14f   : > { %5876 = vmatpush1.bf16.msra.mxu1 %v12456_v30  ;;  %v12676_v30 = vld [vmem:[#allocation8 + $0xfc0] ss:$72 sps:$4 sm:$0xff]  }
 0x150   : > { %5877 = vmatprep.subr.bf16.mxu1 %v12461_v31  ;;  %5747 = vmatpush1.bf16.msra.mxu0 %v12664_v22  ;;  %v12684_v31 = vld [vmem:[#allocation8 + $0x1054] ss:$72 sps:$4 sm:$0xff]   ;;  %v12577_v22 = vld [vmem:[#allocation8 + $0x498] ss:$72 sps:$4 sm:$0xff]  }
 0x151   : > { %5748 = vmatprep.subr.bf16.mxu0 %v12672_v23  ;;  %v12585_v23 = vld [vmem:[#allocation8 + $0x52c] ss:$72 sps:$4 sm:$0xff]  }
 0x153   : > { %5878 = vmatpush1.bf16.msra.mxu1 %v12459_v34  ;;  %v12682_v34 = vld [vmem:[#allocation8 + $0x1050] ss:$72 sps:$4 sm:$0xff]  }
 0x154   : > { %5879 = vmatprep.subr.bf16.mxu1 %v12464_v36  ;;  %5749 = vmatpush1.bf16.msra.mxu0 %v12670_v26  ;;  %v12690_v36 = vld [vmem:[#allocation8 + $0x10e4] ss:$72 sps:$4 sm:$0xff]   ;;  %v12583_v26 = vld [vmem:[#allocation8 + $0x528] ss:$72 sps:$4 sm:$0xff]  }
 0x155   : > { %5750 = vmatprep.subr.bf16.mxu0 %v12678_v27  ;;  %v12591_v27 = vld [vmem:[#allocation8 + $0x5bc] ss:$72 sps:$4 sm:$0xff]  }
 0x157   : > { %5880 = vmatpush1.bf16.msra.mxu1 %v12462_v40  ;;  %v12688_v40 = vld [vmem:[#allocation8 + $0x10e0] ss:$72 sps:$4 sm:$0xff]  }
 0x158   : > { %5890 = vmatprep.subr.bf16.mxu1 %v12468_v42  ;;  %5751 = vmatpush1.bf16.msra.mxu0 %v12676_v30  ;;  %v12696_v42 = vld [vmem:[#allocation8 + $0x1174] ss:$72 sps:$4 sm:$0xff]   ;;  %v12589_v30 = vld [vmem:[#allocation8 + $0x5b8] ss:$72 sps:$4 sm:$0xff]  }
 0x159   : > { %5752 = vmatprep.subr.bf16.mxu0 %v12684_v31  ;;  %v12597_v31 = vld [vmem:[#allocation8 + $0x64c] ss:$72 sps:$4 sm:$0xff]  }
 0x15a   : > { %5882 = vmatmul.mubr.bf16.vlgmr.msra.gmra.mrb[0].mxu1 %v14823_v47 }
 0x15b   : > { %5891 = vmatpush1.bf16.msra.mxu1 %v12466_v46  ;;  %5922 = vmatprep.mubr.bf16.mxu1 %v14827_v49  ;;  %v12694_v46 = vld [vmem:[#allocation8 + $0x1170] ss:$72 sps:$4 sm:$0xff]  }
 0x15c   : > { %5892 = vmatprep.subr.bf16.mxu1 %v12472_v48  ;;  %5753 = vmatpush1.bf16.msra.mxu0 %v12682_v34  ;;  %v12702_v48 = vld [vmem:[#allocation8 + $0x1204] ss:$72 sps:$4 sm:$0xff]   ;;  %v12595_v34 = vld [vmem:[#allocation8 + $0x648] ss:$72 sps:$4 sm:$0xff]  }
 0x15d   : > { %5754 = vmatprep.subr.bf16.mxu0 %v12690_v36  ;;  %v12603_v36 = vld [vmem:[#allocation8 + $0x6dc] ss:$72 sps:$4 sm:$0xff]  }
 0x15f   : > { %5893 = vmatpush1.bf16.msra.mxu1 %v12470_v52  ;;  %v12700_v52 = vld [vmem:[#allocation8 + $0x1200] ss:$72 sps:$4 sm:$0xff]  }
 0x160   : > { %5894 = vmatprep.subr.bf16.mxu1 %v12475_v35  ;;  %5755 = vmatpush1.bf16.msra.mxu0 %v12688_v40  ;;  %v12708_v35 = vld [vmem:[#allocation8 + $0x1294] ss:$72 sps:$4 sm:$0xff]   ;;  %v12601_v40 = vld [vmem:[#allocation8 + $0x6d8] ss:$72 sps:$4 sm:$0xff]  }
 0x161   : > { %5756 = vmatprep.subr.bf16.mxu0 %v12696_v42  ;;  %v12609_v42 = vld [vmem:[#allocation8 + $0x76c] ss:$72 sps:$4 sm:$0xff]  }
 0x163   : > { %5895 = vmatpush1.bf16.msra.mxu1 %v12473_v55  ;;  %v12537_v55 = vld [vmem:[#allocation8 + $0xac] ss:$72 sps:$4 sm:$0xff]  }
 0x164   : > { %5896 = vmatprep.subr.bf16.mxu1 %v12478_v56  ;;  %5757 = vmatpush1.bf16.msra.mxu0 %v12694_v46  ;;  %v12706_v56 = vld [vmem:[#allocation8 + $0x1290] ss:$72 sps:$4 sm:$0xff]  }
 0x165   : > { %5767 = vmatprep.subr.bf16.mxu0 %v12702_v48  ;;  %v12607_v46 = vld [vmem:[#allocation8 + $0x768] ss:$72 sps:$4 sm:$0xff]   ;;  %v12615_v48 = vld [vmem:[#allocation8 + $0x7fc] ss:$72 sps:$4 sm:$0xff]  }
 0x167   : > { %5897 = vmatpush1.bf16.msra.mxu1 %v12476_v59  ;;  %5759 = vmatmul.mubr.bf16.vlgmr.msra.gmra.mrb[0].mxu0 %v14823_v47  ;;  %v12543_v59 = vld [vmem:[#allocation8 + $0x13c] ss:$72 sps:$4 sm:$0xff]  }
 0x168   : > { %5898 = vmatprep.subr.bf16.mxu1 %v12481_v60  ;;  %5768 = vmatpush1.bf16.msra.mxu0 %v12700_v52  ;;  %v12720_v60 = vld [vmem:[#allocation8 + $0x13b4] ss:$72 sps:$4 sm:$0xff]   ;;  %v12613_v52 = vld [vmem:[#allocation8 + $0x7f8] ss:$72 sps:$4 sm:$0xff]  }
 0x169   : > { %5769 = vmatprep.subr.bf16.mxu0 %v12708_v35  ;;  %5799 = vmatprep.mubr.bf16.mxu0 %v14827_v49  ;;  %v12621_v35 = vld [vmem:[#allocation8 + $0x88c] ss:$72 sps:$4 sm:$0xff]  }
 0x16b   : > { %5899 = vmatpush1.bf16.msra.mxu1 %v12479_v63  ;;  %v12718_v63 = vld [vmem:[#allocation8 + $0x13b0] ss:$72 sps:$4 sm:$0xff]  }
 0x16c   : > { %5900 = vmatprep.subr.bf16.mxu1 %v12484_v0  ;;  %5770 = vmatpush1.bf16.msra.mxu0 %v12706_v56  ;;  %v12726_v0 = vld [vmem:[#allocation8 + $0x1444] ss:$72 sps:$4 sm:$0xff]   ;;  %v12619_v56 = vld [vmem:[#allocation8 + $0x888] ss:$72 sps:$4 sm:$0xff]  }
 0x16d   : > { %5771 = vmatprep.subr.bf16.mxu0 %v12714_v57  ;;  %v12627_v57 = vld [vmem:[#allocation8 + $0x91c] ss:$72 sps:$4 sm:$0xff]  }
 0x16f   : > { %5901 = vmatpush1.bf16.msra.mxu1 %v12482_v3  ;;  %v12724_v3 = vld [vmem:[#allocation8 + $0x1440] ss:$72 sps:$4 sm:$0xff]  }
 0x170   : > { %5902 = vmatprep.subr.bf16.mxu1 %v12487_v4  ;;  %5772 = vmatpush1.bf16.msra.mxu0 %v12712_v43  ;;  %v12732_v4 = vld [vmem:[#allocation8 + $0x14d4] ss:$72 sps:$4 sm:$0xff]   ;;  %v12625_v43 = vld [vmem:[#allocation8 + $0x918] ss:$72 sps:$4 sm:$0xff]  }
 0x171   : > { %5773 = vmatprep.subr.bf16.mxu0 %v12720_v60  ;;  %v12633_v60 = vld [vmem:[#allocation8 + $0x9ac] ss:$72 sps:$4 sm:$0xff]  }
 0x173   : > { %5903 = vmatpush1.bf16.msra.mxu1 %v12485_v7  ;;  %v12730_v7 = vld [vmem:[#allocation8 + $0x14d0] ss:$72 sps:$4 sm:$0xff]  }
 0x174   : > { %5904 = vmatprep.subr.bf16.mxu1 %v12490_v8  ;;  %5774 = vmatpush1.bf16.msra.mxu0 %v12718_v63  ;;  %v12738_v8 = vld [vmem:[#allocation8 + $0x1564] ss:$72 sps:$4 sm:$0xff]   ;;  %v12631_v63 = vld [vmem:[#allocation8 + $0x9a8] ss:$72 sps:$4 sm:$0xff]  }
 0x175   : > { %5775 = vmatprep.subr.bf16.mxu0 %v12726_v0  ;;  %v12639_v0 = vld [vmem:[#allocation8 + $0xa3c] ss:$72 sps:$4 sm:$0xff]  }
 0x177   : > { %5905 = vmatpush1.bf16.msra.mxu1 %v12488_v11  ;;  %v12736_v11 = vld [vmem:[#allocation8 + $0x1560] ss:$72 sps:$4 sm:$0xff]  }
 0x178   : > { %5906 = vmatprep.subr.bf16.mxu1 %v12493_v12  ;;  %5776 = vmatpush1.bf16.msra.mxu0 %v12724_v3  ;;  %v12744_v12 = vld [vmem:[#allocation8 + $0x15f4] ss:$72 sps:$4 sm:$0xff]   ;;  %v12637_v3 = vld [vmem:[#allocation8 + $0xa38] ss:$72 sps:$4 sm:$0xff]  }
 0x179   : > { %5777 = vmatprep.subr.bf16.mxu0 %v12732_v4  ;;  %v12645_v4 = vld [vmem:[#allocation8 + $0xacc] ss:$72 sps:$4 sm:$0xff]  }
 0x17b   : > { %5907 = vmatpush1.bf16.msra.mxu1 %v12491_v16  ;;  %v12742_v16 = vld [vmem:[#allocation8 + $0x15f0] ss:$72 sps:$4 sm:$0xff]  }
 0x17c   : > { %5908 = vmatprep.subr.bf16.mxu1 %v12496_v17  ;;  %5778 = vmatpush1.bf16.msra.mxu0 %v12730_v7  ;;  %v12750_v17 = vld [vmem:[#allocation8 + $0x1684] ss:$72 sps:$4 sm:$0xff]   ;;  %v12643_v7 = vld [vmem:[#allocation8 + $0xac8] ss:$72 sps:$4 sm:$0xff]  }
 0x17d   : > { %5779 = vmatprep.subr.bf16.mxu0 %v12738_v8  ;;  %v12651_v8 = vld [vmem:[#allocation8 + $0xb5c] ss:$72 sps:$4 sm:$0xff]  }
 0x17f   : > { %5909 = vmatpush1.bf16.msra.mxu1 %v12494_v20  ;;  %v12748_v20 = vld [vmem:[#allocation8 + $0x1680] ss:$72 sps:$4 sm:$0xff]  }
 0x180   : > { %5910 = vmatprep.subr.bf16.mxu1 %v12499_v21  ;;  %5780 = vmatpush1.bf16.msra.mxu0 %v12736_v11  ;;  %v12756_v21 = vld [vmem:[#allocation8 + $0x1714] ss:$72 sps:$4 sm:$0xff]   ;;  %v12649_v11 = vld [vmem:[#allocation8 + $0xb58] ss:$72 sps:$4 sm:$0xff]  }
 0x181   : > { %5781 = vmatprep.subr.bf16.mxu0 %v12744_v12  ;;  %v12657_v12 = vld [vmem:[#allocation8 + $0xbec] ss:$72 sps:$4 sm:$0xff]  }
 0x183   : > { %5911 = vmatpush1.bf16.msra.mxu1 %v12497_v24  ;;  %v12754_v24 = vld [vmem:[#allocation8 + $0x1710] ss:$72 sps:$4 sm:$0xff]  }
 0x184   : > { %5912 = vmatprep.subr.bf16.mxu1 %v12502_v25  ;;  %5782 = vmatpush1.bf16.msra.mxu0 %v12742_v16  ;;  %v12762_v25 = vld [vmem:[#allocation8 + $0x17a4] ss:$72 sps:$4 sm:$0xff]   ;;  %v12655_v16 = vld [vmem:[#allocation8 + $0xbe8] ss:$72 sps:$4 sm:$0xff]  }
 0x185   : > { %5783 = vmatprep.subr.bf16.mxu0 %v12750_v17  ;;  %v12663_v17 = vld [vmem:[#allocation8 + $0xc7c] ss:$72 sps:$4 sm:$0xff]  }
 0x187   : > { %5913 = vmatpush1.bf16.msra.mxu1 %v12500_v28  ;;  %v12760_v28 = vld [vmem:[#allocation8 + $0x17a0] ss:$72 sps:$4 sm:$0xff]  }
 0x188   : > { %5914 = vmatprep.subr.bf16.mxu1 %v12505_v29  ;;  %5784 = vmatpush1.bf16.msra.mxu0 %v12748_v20  ;;  %v12768_v29 = vld [vmem:[#allocation8 + $0x1834] ss:$72 sps:$4 sm:$0xff]   ;;  %v12661_v20 = vld [vmem:[#allocation8 + $0xc78] ss:$72 sps:$4 sm:$0xff]  }
 0x189   : > { %5785 = vmatprep.subr.bf16.mxu0 %v12756_v21  ;;  %v12669_v21 = vld [vmem:[#allocation8 + $0xd0c] ss:$72 sps:$4 sm:$0xff]  }
 0x18b   : > { %5915 = vmatpush1.bf16.msra.mxu1 %v12503_v32  ;;  %v12766_v32 = vld [vmem:[#allocation8 + $0x1830] ss:$72 sps:$4 sm:$0xff]  }
 0x18c   : > { %5916 = vmatprep.subr.bf16.mxu1 %v12511_v33  ;;  %5786 = vmatpush1.bf16.msra.mxu0 %v12754_v24  ;;  %v12774_v33 = vld [vmem:[#allocation8 + $0x18c4] ss:$72 sps:$4 sm:$0xff]   ;;  %v12667_v24 = vld [vmem:[#allocation8 + $0xd08] ss:$72 sps:$4 sm:$0xff]  }
 0x18d   : > { %5787 = vmatprep.subr.bf16.mxu0 %v12762_v25  ;;  %v12675_v25 = vld [vmem:[#allocation8 + $0xd9c] ss:$72 sps:$4 sm:$0xff]  }
 0x18f   : > { %5917 = vmatpush1.bf16.msra.mxu1 %v12509_v37  ;;  %v12772_v37 = vld [vmem:[#allocation8 + $0x18c0] ss:$72 sps:$4 sm:$0xff]  }
 0x190   : > { %5918 = vmatprep.subr.bf16.mxu1 %v12517_v38  ;;  %5788 = vmatpush1.bf16.msra.mxu0 %v12760_v28  ;;  %v12780_v38 = vld [vmem:[#allocation8 + $0x1954] ss:$72 sps:$4 sm:$0xff]   ;;  %v12673_v28 = vld [vmem:[#allocation8 + $0xd98] ss:$72 sps:$4 sm:$0xff]  }
 0x191   : > { %5789 = vmatprep.subr.bf16.mxu0 %v12768_v29  ;;  %v12681_v29 = vld [vmem:[#allocation8 + $0xe2c] ss:$72 sps:$4 sm:$0xff]  }
 0x193   : > { %5919 = vmatpush1.bf16.msra.mxu1 %v12515_v44  ;;  %v12778_v44 = vld [vmem:[#allocation8 + $0x1950] ss:$72 sps:$4 sm:$0xff]  }
 0x194   : > { %5920 = vmatprep.subr.bf16.mxu1 %v12523_v45  ;;  %5790 = vmatpush1.bf16.msra.mxu0 %v12766_v32  ;;  %v12786_v45 = vld [vmem:[#allocation8 + $0x19e4] ss:$72 sps:$4 sm:$0xff]   ;;  %v12679_v32 = vld [vmem:[#allocation8 + $0xe28] ss:$72 sps:$4 sm:$0xff]  }
 0x195   : > { %5791 = vmatprep.subr.bf16.mxu0 %v12774_v33  ;;  %v12687_v33 = vld [vmem:[#allocation8 + $0xebc] ss:$72 sps:$4 sm:$0xff]  }
 0x197   : > { %5921 = vmatpush1.bf16.msra.mxu1 %v12521_v50  ;;  %v12784_v50 = vld [vmem:[#allocation8 + $0x19e0] ss:$72 sps:$4 sm:$0xff]  }
 0x198   : > { %6054 = vmatprep.subr.bf16.mxu1 %v12531_v51  ;;  %5792 = vmatpush1.bf16.msra.mxu0 %v12772_v37  ;;  %v12792_v51 = vld [vmem:[#allocation8 + $0x1a74] ss:$72 sps:$4 sm:$0xff]   ;;  %v12685_v37 = vld [vmem:[#allocation8 + $0xeb8] ss:$72 sps:$4 sm:$0xff]  }
 0x199   : > { %5793 = vmatprep.subr.bf16.mxu0 %v12780_v38  ;;  %v12693_v38 = vld [vmem:[#allocation8 + $0xf4c] ss:$72 sps:$4 sm:$0xff]  }
 0x19a   : > { %5923 = vmatmul.mubr.bf16.vlgmr.msra.gmra.mrb[0].mxu1 %v14835_v53 }
 0x19b   : > { %6055 = vmatpush1.bf16.msra.mxu1 %v12529_v54  ;;  %6086 = vmatprep.mubr.bf16.mxu1 %v14803_v14  ;;  %v12790_v54 = vld [vmem:[#allocation8 + $0x1a70] ss:$72 sps:$4 sm:$0xff]  }
 0x19c   : > { %6056 = vmatprep.subr.bf16.mxu1 %v12537_v55  ;;  %5794 = vmatpush1.bf16.msra.mxu0 %v12778_v44  ;;  %v12798_v55 = vld [vmem:[#allocation8 + $0x14] ss:$72 sps:$4 sm:$0xff]   ;;  %v12691_v44 = vld [vmem:[#allocation8 + $0xf48] ss:$72 sps:$4 sm:$0xff]  }
 0x19d   : > { %5795 = vmatprep.subr.bf16.mxu0 %v12786_v45  ;;  %v12699_v45 = vld [vmem:[#allocation8 + $0xfdc] ss:$72 sps:$4 sm:$0xff]  }
 0x19f   : > { %6057 = vmatpush1.bf16.msra.mxu1 %v12535_v58  ;;  %v12796_v58 = vld [vmem:[#allocation8 + $0x10] ss:$72 sps:$4 sm:$0xff]  }
 0x1a0   : > { %6058 = vmatprep.subr.bf16.mxu1 %v12543_v59  ;;  %5796 = vmatpush1.bf16.msra.mxu0 %v12784_v50  ;;  %v12804_v59 = vld [vmem:[#allocation8 + $0xa4] ss:$72 sps:$4 sm:$0xff]   ;;  %v12697_v50 = vld [vmem:[#allocation8 + $0xfd8] ss:$72 sps:$4 sm:$0xff]  }
 0x1a1   : > { %5797 = vmatprep.subr.bf16.mxu0 %v12792_v51  ;;  %v12705_v51 = vld [vmem:[#allocation8 + $0x106c] ss:$72 sps:$4 sm:$0xff]  }
 0x1a3   : > { %6059 = vmatpush1.bf16.msra.mxu1 %v12541_v61  ;;  %v12802_v61 = vld [vmem:[#allocation8 + $0xa0] ss:$72 sps:$4 sm:$0xff]  }
 0x1a4   : > { %6060 = vmatprep.subr.bf16.mxu1 %v12549_v62  ;;  %5798 = vmatpush1.bf16.msra.mxu0 %v12790_v54  ;;  %v12810_v62 = vld [vmem:[#allocation8 + $0x134] ss:$72 sps:$4 sm:$0xff]   ;;  %v12703_v54 = vld [vmem:[#allocation8 + $0x1068] ss:$72 sps:$4 sm:$0xff]  }
 0x1a5   : > { %5931 = vmatprep.subr.bf16.mxu0 %v12798_v55  ;;  %v12711_v55 = vld [vmem:[#allocation8 + $0x10fc] ss:$72 sps:$4 sm:$0xff]  }
 0x1a7   : > { %6061 = vmatpush1.bf16.msra.mxu1 %v12547_v1  ;;  %5800 = vmatmul.mubr.bf16.vlgmr.msra.gmra.mrb[0].mxu0 %v14835_v53  ;;  %v12808_v1 = vld [vmem:[#allocation8 + $0x130] ss:$72 sps:$4 sm:$0xff]  }
 0x1a8   : > { %6062 = vmatprep.subr.bf16.mxu1 %v12555_v2  ;;  %5932 = vmatpush1.bf16.msra.mxu0 %v12796_v58  ;;  %v12816_v2 = vld [vmem:[#allocation8 + $0x1c4] ss:$72 sps:$4 sm:$0xff]   ;;  %v12709_v58 = vld [vmem:[#allocation8 + $0x10f8] ss:$72 sps:$4 sm:$0xff]  }
 0x1a9   : > { %5933 = vmatprep.subr.bf16.mxu0 %v12804_v59  ;;  %5963 = vmatprep.mubr.bf16.mxu0 %v14803_v14  ;;  %v12717_v59 = vld [vmem:[#allocation8 + $0x118c] ss:$72 sps:$4 sm:$0xff]  }
 0x1ab   : > { %6063 = vmatpush1.bf16.msra.mxu1 %v12553_v5  ;;  %v12814_v5 = vld [vmem:[#allocation8 + $0x1c0] ss:$72 sps:$4 sm:$0xff]  }
 0x1ac   : > { %6064 = vmatprep.subr.bf16.mxu1 %v12561_v6  ;;  %5934 = vmatpush1.bf16.msra.mxu0 %v12802_v61  ;;  %v12822_v6 = vld [vmem:[#allocation8 + $0x254] ss:$72 sps:$4 sm:$0xff]   ;;  %v12715_v61 = vld [vmem:[#allocation8 + $0x1188] ss:$72 sps:$4 sm:$0xff]  }
 0x1ad   : > { %5935 = vmatprep.subr.bf16.mxu0 %v12810_v62  ;;  %v12723_v62 = vld [vmem:[#allocation8 + $0x121c] ss:$72 sps:$4 sm:$0xff]  }
 0x1af   : > { %6065 = vmatpush1.bf16.msra.mxu1 %v12559_v9  ;;  %v12820_v9 = vld [vmem:[#allocation8 + $0x250] ss:$72 sps:$4 sm:$0xff]  }
 0x1b0   : > { %6066 = vmatprep.subr.bf16.mxu1 %v12567_v10  ;;  %5936 = vmatpush1.bf16.msra.mxu0 %v12808_v1  ;;  %v12828_v10 = vld [vmem:[#allocation8 + $0x2e4] ss:$72 sps:$4 sm:$0xff]   ;;  %v12721_v1 = vld [vmem:[#allocation8 + $0x1218] ss:$72 sps:$4 sm:$0xff]  }
 0x1b1   : > { %5937 = vmatprep.subr.bf16.mxu0 %v12816_v2  ;;  %v12729_v2 = vld [vmem:[#allocation8 + $0x12ac] ss:$72 sps:$4 sm:$0xff]  }
 0x1b3   : > { %6067 = vmatpush1.bf16.msra.mxu1 %v12565_v13  ;;  %v12826_v13 = vld [vmem:[#allocation8 + $0x2e0] ss:$72 sps:$4 sm:$0xff]  }
 0x1b4   : > { %6068 = vmatprep.subr.bf16.mxu1 %v12573_v15  ;;  %5938 = vmatpush1.bf16.msra.mxu0 %v12814_v5  ;;  %v12834_v15 = vld [vmem:[#allocation8 + $0x374] ss:$72 sps:$4 sm:$0xff]   ;;  %v12727_v5 = vld [vmem:[#allocation8 + $0x12a8] ss:$72 sps:$4 sm:$0xff]  }
 0x1b5   : > { %5939 = vmatprep.subr.bf16.mxu0 %v12822_v6  ;;  %v12735_v6 = vld [vmem:[#allocation8 + $0x133c] ss:$72 sps:$4 sm:$0xff]  }
 0x1b7   : > { %6069 = vmatpush1.bf16.msra.mxu1 %v12571_v18  ;;  %v12832_v18 = vld [vmem:[#allocation8 + $0x370] ss:$72 sps:$4 sm:$0xff]  }
 0x1b8   : > { %6070 = vmatprep.subr.bf16.mxu1 %v12579_v19  ;;  %5940 = vmatpush1.bf16.msra.mxu0 %v12820_v9  ;;  %v12840_v19 = vld [vmem:[#allocation8 + $0x404] ss:$72 sps:$4 sm:$0xff]   ;;  %v12733_v9 = vld [vmem:[#allocation8 + $0x1338] ss:$72 sps:$4 sm:$0xff]  }
 0x1b9   : > { %5941 = vmatprep.subr.bf16.mxu0 %v12828_v10  ;;  %v12741_v10 = vld [vmem:[#allocation8 + $0x13cc] ss:$72 sps:$4 sm:$0xff]  }
 0x1bb   : > { %6071 = vmatpush1.bf16.msra.mxu1 %v12577_v22  ;;  %v12838_v22 = vld [vmem:[#allocation8 + $0x400] ss:$72 sps:$4 sm:$0xff]  }
 0x1bc   : > { %6072 = vmatprep.subr.bf16.mxu1 %v12585_v23  ;;  %5942 = vmatpush1.bf16.msra.mxu0 %v12826_v13  ;;  %v12846_v23 = vld [vmem:[#allocation8 + $0x494] ss:$72 sps:$4 sm:$0xff]   ;;  %v12739_v13 = vld [vmem:[#allocation8 + $0x13c8] ss:$72 sps:$4 sm:$0xff]  }
 0x1bd   : > { %5943 = vmatprep.subr.bf16.mxu0 %v12834_v15  ;;  %v12747_v15 = vld [vmem:[#allocation8 + $0x145c] ss:$72 sps:$4 sm:$0xff]  }
 0x1bf   : > { %6073 = vmatpush1.bf16.msra.mxu1 %v12583_v26  ;;  %v12844_v26 = vld [vmem:[#allocation8 + $0x490] ss:$72 sps:$4 sm:$0xff]  }
 0x1c0   : > { %6074 = vmatprep.subr.bf16.mxu1 %v12591_v27  ;;  %5944 = vmatpush1.bf16.msra.mxu0 %v12832_v18  ;;  %v12852_v27 = vld [vmem:[#allocation8 + $0x524] ss:$72 sps:$4 sm:$0xff]   ;;  %v12745_v18 = vld [vmem:[#allocation8 + $0x1458] ss:$72 sps:$4 sm:$0xff]  }
 0x1c1   : > { %5945 = vmatprep.subr.bf16.mxu0 %v12840_v19  ;;  %v12753_v19 = vld [vmem:[#allocation8 + $0x14ec] ss:$72 sps:$4 sm:$0xff]  }
 0x1c3   : > { %6075 = vmatpush1.bf16.msra.mxu1 %v12589_v30  ;;  %v12850_v30 = vld [vmem:[#allocation8 + $0x520] ss:$72 sps:$4 sm:$0xff]  }
 0x1c4   : > { %6076 = vmatprep.subr.bf16.mxu1 %v12597_v31  ;;  %5946 = vmatpush1.bf16.msra.mxu0 %v12838_v22  ;;  %v12858_v31 = vld [vmem:[#allocation8 + $0x5b4] ss:$72 sps:$4 sm:$0xff]   ;;  %v12751_v22 = vld [vmem:[#allocation8 + $0x14e8] ss:$72 sps:$4 sm:$0xff]  }
 0x1c5   : > { %5947 = vmatprep.subr.bf16.mxu0 %v12846_v23  ;;  %v12759_v23 = vld [vmem:[#allocation8 + $0x157c] ss:$72 sps:$4 sm:$0xff]  }
 0x1c7   : > { %6077 = vmatpush1.bf16.msra.mxu1 %v12595_v34  ;;  %v12856_v34 = vld [vmem:[#allocation8 + $0x5b0] ss:$72 sps:$4 sm:$0xff]  }
 0x1c8   : > { %6078 = vmatprep.subr.bf16.mxu1 %v12603_v36  ;;  %5948 = vmatpush1.bf16.msra.mxu0 %v12844_v26  ;;  %v12864_v36 = vld [vmem:[#allocation8 + $0x644] ss:$72 sps:$4 sm:$0xff]   ;;  %v12757_v26 = vld [vmem:[#allocation8 + $0x1578] ss:$72 sps:$4 sm:$0xff]  }
 0x1c9   : > { %5949 = vmatprep.subr.bf16.mxu0 %v12852_v27  ;;  %v12765_v27 = vld [vmem:[#allocation8 + $0x160c] ss:$72 sps:$4 sm:$0xff]  }
 0x1cb   : > { %6079 = vmatpush1.bf16.msra.mxu1 %v12601_v40  ;;  %v12862_v40 = vld [vmem:[#allocation8 + $0x640] ss:$72 sps:$4 sm:$0xff]  }
 0x1cc   : > { %6080 = vmatprep.subr.bf16.mxu1 %v12609_v42  ;;  %5950 = vmatpush1.bf16.msra.mxu0 %v12850_v30  ;;  %v12870_v42 = vld [vmem:[#allocation8 + $0x6d4] ss:$72 sps:$4 sm:$0xff]   ;;  %v12763_v30 = vld [vmem:[#allocation8 + $0x1608] ss:$72 sps:$4 sm:$0xff]  }
 0x1cd   : > { %5951 = vmatprep.subr.bf16.mxu0 %v12858_v31  ;;  %v12771_v31 = vld [vmem:[#allocation8 + $0x169c] ss:$72 sps:$4 sm:$0xff]  }
 0x1cf   : > { %6081 = vmatpush1.bf16.msra.mxu1 %v12607_v46  ;;  %v12868_v46 = vld [vmem:[#allocation8 + $0x6d0] ss:$72 sps:$4 sm:$0xff]  }
 0x1d0   : > { %6082 = vmatprep.subr.bf16.mxu1 %v12615_v48  ;;  %5952 = vmatpush1.bf16.msra.mxu0 %v12856_v34  ;;  %v12876_v48 = vld [vmem:[#allocation8 + $0x764] ss:$72 sps:$4 sm:$0xff]   ;;  %v12769_v34 = vld [vmem:[#allocation8 + $0x1698] ss:$72 sps:$4 sm:$0xff]  }
 0x1d1   : > { %5953 = vmatprep.subr.bf16.mxu0 %v12864_v36  ;;  %v12777_v36 = vld [vmem:[#allocation8 + $0x172c] ss:$72 sps:$4 sm:$0xff]  }
 0x1d3   : > { %6083 = vmatpush1.bf16.msra.mxu1 %v12613_v52  ;;  %v12874_v52 = vld [vmem:[#allocation8 + $0x760] ss:$72 sps:$4 sm:$0xff]  }
 0x1d4   : > { %6084 = vmatprep.subr.bf16.mxu1 %v12621_v35  ;;  %5954 = vmatpush1.bf16.msra.mxu0 %v12862_v40  ;;  %v12882_v35 = vld [vmem:[#allocation8 + $0x7f4] ss:$72 sps:$4 sm:$0xff]   ;;  %v12775_v40 = vld [vmem:[#allocation8 + $0x1728] ss:$72 sps:$4 sm:$0xff]  }
 0x1d5   : > { %5955 = vmatprep.subr.bf16.mxu0 %v12870_v42  ;;  %v12783_v42 = vld [vmem:[#allocation8 + $0x17bc] ss:$72 sps:$4 sm:$0xff]  }
 0x1d7   : > { %6085 = vmatpush1.bf16.msra.mxu1 %v12619_v56  ;;  %v12880_v56 = vld [vmem:[#allocation8 + $0x7f0] ss:$72 sps:$4 sm:$0xff]  }
 0x1d8   : > { %6095 = vmatprep.subr.bf16.mxu1 %v12627_v57  ;;  %5956 = vmatpush1.bf16.msra.mxu0 %v12868_v46  ;;  %v12888_v57 = vld [vmem:[#allocation8 + $0x884] ss:$72 sps:$4 sm:$0xff]   ;;  %v12781_v46 = vld [vmem:[#allocation8 + $0x17b8] ss:$72 sps:$4 sm:$0xff]  }
 0x1d9   : > { %5957 = vmatprep.subr.bf16.mxu0 %v12876_v48  ;;  %v12789_v48 = vld [vmem:[#allocation8 + $0x184c] ss:$72 sps:$4 sm:$0xff]  }
 0x1da   : > { %6087 = vmatmul.mubr.bf16.vlgmr.msra.gmra.mrb[4].mxu1 %v14810_v39 }
 0x1db   : > { %6096 = vmatpush1.bf16.msra.mxu1 %v12625_v43  ;;  %6127 = vmatprep.mubr.bf16.mxu1 %v14814_v41  ;;  %v12886_v43 = vld [vmem:[#allocation8 + $0x880] ss:$72 sps:$4 sm:$0xff]  }
 0x1dc   : > { %6097 = vmatprep.subr.bf16.mxu1 %v12633_v60  ;;  %5958 = vmatpush1.bf16.msra.mxu0 %v12874_v52  ;;  %v12894_v60 = vld [vmem:[#allocation8 + $0x914] ss:$72 sps:$4 sm:$0xff]   ;;  %v12787_v52 = vld [vmem:[#allocation8 + $0x1848] ss:$72 sps:$4 sm:$0xff]  }
 0x1dd   : > { %5959 = vmatprep.subr.bf16.mxu0 %v12882_v35  ;;  %v12795_v35 = vld [vmem:[#allocation8 + $0x18dc] ss:$72 sps:$4 sm:$0xff]  }
 0x1df   : > { %6098 = vmatpush1.bf16.msra.mxu1 %v12631_v63  ;;  %v12892_v63 = vld [vmem:[#allocation8 + $0x910] ss:$72 sps:$4 sm:$0xff]  }
 0x1e0   : > { %6099 = vmatprep.subr.bf16.mxu1 %v12639_v0  ;;  %5960 = vmatpush1.bf16.msra.mxu0 %v12880_v56  ;;  %v12900_v0 = vld [vmem:[#allocation8 + $0x9a4] ss:$72 sps:$4 sm:$0xff]   ;;  %v12793_v56 = vld [vmem:[#allocation8 + $0x18d8] ss:$72 sps:$4 sm:$0xff]  }
 0x1e1   : > { %5961 = vmatprep.subr.bf16.mxu0 %v12888_v57  ;;  %v12801_v57 = vld [vmem:[#allocation8 + $0x196c] ss:$72 sps:$4 sm:$0xff]  }
 0x1e3   : > { %6100 = vmatpush1.bf16.msra.mxu1 %v12637_v3  ;;  %v12898_v3 = vld [vmem:[#allocation8 + $0x9a0] ss:$72 sps:$4 sm:$0xff]  }
 0x1e4   : > { %6101 = vmatprep.subr.bf16.mxu1 %v12645_v4  ;;  %5962 = vmatpush1.bf16.msra.mxu0 %v12886_v43  ;;  %v12906_v4 = vld [vmem:[#allocation8 + $0xa34] ss:$72 sps:$4 sm:$0xff]   ;;  %v12799_v43 = vld [vmem:[#allocation8 + $0x1968] ss:$72 sps:$4 sm:$0xff]  }
 0x1e5   : > { %5972 = vmatprep.subr.bf16.mxu0 %v12894_v60  ;;  %v12807_v60 = vld [vmem:[#allocation8 + $0x19fc] ss:$72 sps:$4 sm:$0xff]  }
 0x1e7   : > { %6102 = vmatpush1.bf16.msra.mxu1 %v12643_v7  ;;  %5964 = vmatmul.mubr.bf16.vlgmr.msra.gmra.mrb[4].mxu0 %v14810_v39  ;;  %v12904_v7 = vld [vmem:[#allocation8 + $0xa30] ss:$72 sps:$4 sm:$0xff]  }
 0x1e8   : > { %6103 = vmatprep.subr.bf16.mxu1 %v12651_v8  ;;  %5973 = vmatpush1.bf16.msra.mxu0 %v12892_v63  ;;  %v12912_v8 = vld [vmem:[#allocation8 + $0xac4] ss:$72 sps:$4 sm:$0xff]   ;;  %v12805_v63 = vld [vmem:[#allocation8 + $0x19f8] ss:$72 sps:$4 sm:$0xff]  }
 0x1e9   : > { %5974 = vmatprep.subr.bf16.mxu0 %v12900_v0  ;;  %6004 = vmatprep.mubr.bf16.mxu0 %v14814_v41  ;;  %v12813_v0 = vld [vmem:[#allocation8 + $0x1a8c] ss:$72 sps:$4 sm:$0xff]  }
 0x1eb   : > { %6104 = vmatpush1.bf16.msra.mxu1 %v12649_v11  ;;  %v12910_v11 = vld [vmem:[#allocation8 + $0xac0] ss:$72 sps:$4 sm:$0xff]  }
 0x1ec   : > { %6105 = vmatprep.subr.bf16.mxu1 %v12657_v12  ;;  %5975 = vmatpush1.bf16.msra.mxu0 %v12898_v3  ;;  %v12918_v12 = vld [vmem:[#allocation8 + $0xb54] ss:$72 sps:$4 sm:$0xff]   ;;  %v12811_v3 = vld [vmem:[#allocation8 + $0x1a88] ss:$72 sps:$4 sm:$0xff]  }
 0x1ed   : > { %5976 = vmatprep.subr.bf16.mxu0 %v12906_v4  ;;  %v12819_v4 = vld [vmem:[#allocation8 + $0x2c] ss:$72 sps:$4 sm:$0xff]  }
 0x1ef   : > { %6106 = vmatpush1.bf16.msra.mxu1 %v12655_v16  ;;  %v12916_v16 = vld [vmem:[#allocation8 + $0xb50] ss:$72 sps:$4 sm:$0xff]  }
 0x1f0   : > { %6107 = vmatprep.subr.bf16.mxu1 %v12663_v17  ;;  %5977 = vmatpush1.bf16.msra.mxu0 %v12904_v7  ;;  %v12924_v17 = vld [vmem:[#allocation8 + $0xbe4] ss:$72 sps:$4 sm:$0xff]   ;;  %v12817_v7 = vld [vmem:[#allocation8 + $0x28] ss:$72 sps:$4 sm:$0xff]  }
 0x1f1   : > { %5978 = vmatprep.subr.bf16.mxu0 %v12912_v8  ;;  %v12825_v8 = vld [vmem:[#allocation8 + $0xbc] ss:$72 sps:$4 sm:$0xff]  }
 0x1f3   : > { %6108 = vmatpush1.bf16.msra.mxu1 %v12661_v20  ;;  %v12922_v20 = vld [vmem:[#allocation8 + $0xbe0] ss:$72 sps:$4 sm:$0xff]  }
 0x1f4   : > { %6109 = vmatprep.subr.bf16.mxu1 %v12669_v21  ;;  %5979 = vmatpush1.bf16.msra.mxu0 %v12910_v11  ;;  %v12930_v21 = vld [vmem:[#allocation8 + $0xc74] ss:$72 sps:$4 sm:$0xff]   ;;  %v12823_v11 = vld [vmem:[#allocation8 + $0xb8] ss:$72 sps:$4 sm:$0xff]  }
 0x1f5   : > { %5980 = vmatprep.subr.bf16.mxu0 %v12918_v12  ;;  %v12831_v12 = vld [vmem:[#allocation8 + $0x14c] ss:$72 sps:$4 sm:$0xff]  }
 0x1f7   : > { %6110 = vmatpush1.bf16.msra.mxu1 %v12667_v24  ;;  %v12928_v24 = vld [vmem:[#allocation8 + $0xc70] ss:$72 sps:$4 sm:$0xff]  }
 0x1f8   : > { %6111 = vmatprep.subr.bf16.mxu1 %v12675_v25  ;;  %5981 = vmatpush1.bf16.msra.mxu0 %v12916_v16  ;;  %v12936_v25 = vld [vmem:[#allocation8 + $0xd04] ss:$72 sps:$4 sm:$0xff]   ;;  %v12829_v16 = vld [vmem:[#allocation8 + $0x148] ss:$72 sps:$4 sm:$0xff]  }
 0x1f9   : > { %5982 = vmatprep.subr.bf16.mxu0 %v12924_v17  ;;  %v1254_v17 = vlaneseq }
 0x1fb   : > { %6112 = vmatpush1.bf16.msra.mxu1 %v12673_v28  ;;  %v12934_v28 = vld [vmem:[#allocation8 + $0xd00] ss:$72 sps:$4 sm:$0xff]  }
 0x1fc   : > { %6113 = vmatprep.subr.bf16.mxu1 %v12681_v29  ;;  %5983 = vmatpush1.bf16.msra.mxu0 %v12922_v20  ;;  %v12942_v29 = vld [vmem:[#allocation8 + $0xd94] ss:$72 sps:$4 sm:$0xff]  }
 0x1fd   : > { %5984 = vmatprep.subr.bf16.mxu0 %v12930_v21  ;;  %v13014_v20 = vld [vmem:[#allocation8 + $0x1454] ss:$72 sps:$4 sm:$0xff]   ;;  %v12835_v21 = vld [vmem:[#allocation8 + $0x1d8] ss:$72 sps:$4 sm:$0xff]  }
 0x1ff   : > { %6114 = vmatpush1.bf16.msra.mxu1 %v12679_v32  ;;  %v12940_v32 = vld [vmem:[#allocation8 + $0xd90] ss:$72 sps:$4 sm:$0xff]  }
 0x200   : > { %6115 = vmatprep.subr.bf16.mxu1 %v12687_v33  ;;  %5985 = vmatpush1.bf16.msra.mxu0 %v12928_v24  ;;  %v12948_v33 = vld [vmem:[#allocation8 + $0xe24] ss:$72 sps:$4 sm:$0xff]   ;;  %v13012_v24 = vld [vmem:[#allocation8 + $0x1450] ss:$72 sps:$4 sm:$0xff]  }
 0x201   : > { %5986 = vmatprep.subr.bf16.mxu0 %v12936_v25  ;;  %v13020_v25 = vld [vmem:[#allocation8 + $0x14e4] ss:$72 sps:$4 sm:$0xff]  }
 0x203   : > { %6116 = vmatpush1.bf16.msra.mxu1 %v12685_v37  ;;  %v12946_v37 = vld [vmem:[#allocation8 + $0xe20] ss:$72 sps:$4 sm:$0xff]  }
 0x204   : > { %6117 = vmatprep.subr.bf16.mxu1 %v12693_v38  ;;  %5987 = vmatpush1.bf16.msra.mxu0 %v12934_v28  ;;  %v12954_v38 = vld [vmem:[#allocation8 + $0xeb4] ss:$72 sps:$4 sm:$0xff]  }
 0x205   : > { %5988 = vmatprep.subr.bf16.mxu0 %v12942_v29 }
 0x207   : > { %6118 = vmatpush1.bf16.msra.mxu1 %v12691_v44  ;;  %v12952_v44 = vld [vmem:[#allocation8 + $0xeb0] ss:$72 sps:$4 sm:$0xff]  }
 0x208   : > { %6119 = vmatprep.subr.bf16.mxu1 %v12699_v45  ;;  %5989 = vmatpush1.bf16.msra.mxu0 %v12940_v32  ;;  %v12960_v45 = vld [vmem:[#allocation8 + $0xf44] ss:$72 sps:$4 sm:$0xff]   ;;  %v13026_v32 = vld [vmem:[#allocation8 + $0x1574] ss:$72 sps:$4 sm:$0xff]  }
 0x209   : > { %5990 = vmatprep.subr.bf16.mxu0 %v12948_v33 }
 0x20b   : > { %6120 = vmatpush1.bf16.msra.mxu1 %v12697_v50  ;;  %v12958_v50 = vld [vmem:[#allocation8 + $0xf40] ss:$72 sps:$4 sm:$0xff]  }
 0x20c   : > { %6121 = vmatprep.subr.bf16.mxu1 %v12705_v51  ;;  %5991 = vmatpush1.bf16.msra.mxu0 %v12946_v37  ;;  %v12966_v51 = vld [vmem:[#allocation8 + $0xfd4] ss:$72 sps:$4 sm:$0xff]  }
 0x20d   : > { %5992 = vmatprep.subr.bf16.mxu0 %v12954_v38  ;;  %v12855_v37 = vld [vmem:[#allocation8 + $0x38c] ss:$72 sps:$4 sm:$0xff]   ;;  %v13024_v38 = vld [vmem:[#allocation8 + $0x1570] ss:$72 sps:$4 sm:$0xff]  }
 0x20f   : > { %6122 = vmatpush1.bf16.msra.mxu1 %v12703_v54  ;;  %v12964_v54 = vld [vmem:[#allocation8 + $0xfd0] ss:$72 sps:$4 sm:$0xff]  }
 0x210   : > { %6123 = vmatprep.subr.bf16.mxu1 %v12711_v55  ;;  %5993 = vmatpush1.bf16.msra.mxu0 %v12952_v44  ;;  %v12972_v55 = vld [vmem:[#allocation8 + $0x1064] ss:$72 sps:$4 sm:$0xff]  }
 0x211   : > { %5994 = vmatprep.subr.bf16.mxu0 %v12960_v45 }
 0x213   : > { %6124 = vmatpush1.bf16.msra.mxu1 %v12709_v58  ;;  %v12970_v58 = vld [vmem:[#allocation8 + $0x1060] ss:$72 sps:$4 sm:$0xff]  }
 0x214   : > { %6125 = vmatprep.subr.bf16.mxu1 %v12717_v59  ;;  %5995 = vmatpush1.bf16.msra.mxu0 %v12958_v50  ;;  %v12978_v59 = vld [vmem:[#allocation8 + $0x10f4] ss:$72 sps:$4 sm:$0xff]  }
 0x215   : > { %5996 = vmatprep.subr.bf16.mxu0 %v12966_v51  ;;  %v12861_v51 = vld [vmem:[#allocation8 + $0x41c] ss:$72 sps:$4 sm:$0xff]  }
 0x217   : > { %6126 = vmatpush1.bf16.msra.mxu1 %v12715_v61  ;;  %v12976_v61 = vld [vmem:[#allocation8 + $0x10f0] ss:$72 sps:$4 sm:$0xff]  }
 0x218   : > { %6136 = vmatprep.subr.bf16.mxu1 %v12723_v62  ;;  %5997 = vmatpush1.bf16.msra.mxu0 %v12964_v54  ;;  %v12984_v62 = vld [vmem:[#allocation8 + $0x1184] ss:$72 sps:$4 sm:$0xff]   ;;  %v13038_v54 = vld [vmem:[#allocation8 + $0x1694] ss:$72 sps:$4 sm:$0xff]  }
 0x219   : > { %5998 = vmatprep.subr.bf16.mxu0 %v12972_v55 }
 0x21a   : > { %6128 = vmatmul.mubr.bf16.vlgmr.msra.gmra.mrb[4].mxu1 %v14823_v47 }
 0x21b   : > { %6137 = vmatpush1.bf16.msra.mxu1 %v12721_v1  ;;  %6168 = vmatprep.mubr.bf16.mxu1 %v14827_v49  ;;  %v12982_v1 = vld [vmem:[#allocation8 + $0x1180] ss:$72 sps:$4 sm:$0xff]  }
 0x21c   : > { %6138 = vmatprep.subr.bf16.mxu1 %v12729_v2  ;;  %5999 = vmatpush1.bf16.msra.mxu0 %v12970_v58  ;;  %v12990_v2 = vld [vmem:[#allocation8 + $0x1214] ss:$72 sps:$4 sm:$0xff]   ;;  %v13036_v58 = vld [vmem:[#allocation8 + $0x1690] ss:$72 sps:$4 sm:$0xff]  }
 0x21d   : > { %6000 = vmatprep.subr.bf16.mxu0 %v12978_v59  ;;  %v13044_v59 = vld [vmem:[#allocation8 + $0x1724] ss:$72 sps:$4 sm:$0xff]  }
 0x21f   : > { %6139 = vmatpush1.bf16.msra.mxu1 %v12727_v5  ;;  %v12988_v5 = vld [vmem:[#allocation8 + $0x1210] ss:$72 sps:$4 sm:$0xff]  }
 0x220   : > { %6140 = vmatprep.subr.bf16.mxu1 %v12735_v6  ;;  %6001 = vmatpush1.bf16.msra.mxu0 %v12976_v61  ;;  %v12996_v6 = vld [vmem:[#allocation8 + $0x12a4] ss:$72 sps:$4 sm:$0xff]   ;;  %v13042_v61 = vld [vmem:[#allocation8 + $0x1720] ss:$72 sps:$4 sm:$0xff]  }
 0x221   : > { %6002 = vmatprep.subr.bf16.mxu0 %v12984_v62  ;;  %v13050_v62 = vld [vmem:[#allocation8 + $0x17b4] ss:$72 sps:$4 sm:$0xff]  }
 0x223   : > { %6141 = vmatpush1.bf16.msra.mxu1 %v12733_v9  ;;  %v12994_v9 = vld [vmem:[#allocation8 + $0x12a0] ss:$72 sps:$4 sm:$0xff]  }
 0x224   : > { %6142 = vmatprep.subr.bf16.mxu1 %v12741_v10  ;;  %6003 = vmatpush1.bf16.msra.mxu0 %v12982_v1  ;;  %v13002_v10 = vld [vmem:[#allocation8 + $0x1334] ss:$72 sps:$4 sm:$0xff]   ;;  %v13048_v1 = vld [vmem:[#allocation8 + $0x17b0] ss:$72 sps:$4 sm:$0xff]  }
 0x225   : > { %6013 = vmatprep.subr.bf16.mxu0 %v12990_v2  ;;  %v13056_v2 = vld [vmem:[#allocation8 + $0x1844] ss:$72 sps:$4 sm:$0xff]  }
 0x227   : > { %6143 = vmatpush1.bf16.msra.mxu1 %v12739_v13  ;;  %6005 = vmatmul.mubr.bf16.vlgmr.msra.gmra.mrb[4].mxu0 %v14823_v47  ;;  %v13000_v13 = vld [vmem:[#allocation8 + $0x1330] ss:$72 sps:$4 sm:$0xff]  }
 0x228   : > { %6144 = vmatprep.subr.bf16.mxu1 %v12747_v15  ;;  %6014 = vmatpush1.bf16.msra.mxu0 %v12988_v5  ;;  %v13008_v15 = vld [vmem:[#allocation8 + $0x13c4] ss:$72 sps:$4 sm:$0xff]   ;;  %v13054_v5 = vld [vmem:[#allocation8 + $0x1840] ss:$72 sps:$4 sm:$0xff]  }
 0x229   : > { %6015 = vmatprep.subr.bf16.mxu0 %v12996_v6  ;;  %6045 = vmatprep.mubr.bf16.mxu0 %v14827_v49  ;;  %v13062_v6 = vld [vmem:[#allocation8 + $0x18d4] ss:$72 sps:$4 sm:$0xff]  }
 0x22b   : > { %6145 = vmatpush1.bf16.msra.mxu1 %v12745_v18  ;;  %v12837_v18 = vld [vmem:[#allocation8 + $0x1dc] ss:$72 sps:$4 sm:$0xff]  }
 0x22c   : > { %6146 = vmatprep.subr.bf16.mxu1 %v12753_v19  ;;  %6016 = vmatpush1.bf16.msra.mxu0 %v12994_v9  ;;  %v13006_v19 = vld [vmem:[#allocation8 + $0x13c0] ss:$72 sps:$4 sm:$0xff]   ;;  %v13060_v9 = vld [vmem:[#allocation8 + $0x18d0] ss:$72 sps:$4 sm:$0xff]  }
 0x22d   : > { %6017 = vmatprep.subr.bf16.mxu0 %v13002_v10  ;;  %v13068_v10 = vld [vmem:[#allocation8 + $0x1964] ss:$72 sps:$4 sm:$0xff]  }
 0x22f   : > { %6147 = vmatpush1.bf16.msra.mxu1 %v12751_v22  ;;  %v14854_v22 = vshrl.u32 %v1254_v17, 7 }
 0x230   : > { %6148 = vmatprep.subr.bf16.mxu1 %v12759_v23  ;;  %6018 = vmatpush1.bf16.msra.mxu0 %v13000_v13  ;;  %v12843_v23 = vld [vmem:[#allocation8 + $0x26c] ss:$72 sps:$4 sm:$0xff]   ;;  %v13066_v13 = vld [vmem:[#allocation8 + $0x1960] ss:$72 sps:$4 sm:$0xff]  }
 0x231   : > { %6019 = vmatprep.subr.bf16.mxu0 %v13008_v15  ;;  %v14859_v28 = vsub.s32 2, %v14854_v22  ;;  %v14862_v29 = vsub.s32 3, %v14854_v22  ;;  %v13074_v15 = vld [vmem:[#allocation8 + $0x19f4] ss:$72 sps:$4 sm:$0xff]  }
 0x233   : > { %6149 = vmatpush1.bf16.msra.mxu1 %v12757_v26  ;;  %v12841_v26 = vld [vmem:[#allocation8 + $0x268] ss:$72 sps:$4 sm:$0xff]  }
 0x234   : > { %6150 = vmatprep.subr.bf16.mxu1 %v12765_v27  ;;  %6020 = vmatpush1.bf16.msra.mxu0 %v13006_v19  ;;  %v14856_v27 = vld [vmem:[#allocation10] sm:$0xff]  ;;  %v13072_v19 = vld [vmem:[#allocation8 + $0x19f0] ss:$72 sps:$4 sm:$0xff]  }
 0x235   : > { %6021 = vmatprep.subr.bf16.mxu0 %v13014_v20  ;;  %v1265_v33 = vrot.slane %v14856_v27, %v14859_v28  ;;  %v13080_v20 = vld [vmem:[#allocation8 + $0x1a84] ss:$72 sps:$4 sm:$0xff]  }
 0x237   : > { %6151 = vmatpush1.bf16.msra.mxu1 %v12763_v30  ;;  %v12849_v30 = vld [vmem:[#allocation8 + $0x2fc] ss:$72 sps:$4 sm:$0xff]  }
 0x238   : > { %6152 = vmatprep.subr.bf16.mxu1 %v12771_v31  ;;  %v13018_v31 = vld [vmem:[#allocation8 + $0x14e0] ss:$72 sps:$4 sm:$0xff]   ;;  %6022 = vmatpush1.bf16.msra.mxu0 %v13012_v24 }
 0x239   : > { %6023 = vmatprep.subr.bf16.mxu0 %v13020_v25  ;;  %v13078_v24 = vld [vmem:[#allocation8 + $0x1a80] ss:$72 sps:$4 sm:$0xff]   ;;  %v13086_v25 = vld [vmem:[#allocation8 + $0x24] ss:$72 sps:$4 sm:$0xff]  }
 0x23b   : > { %6153 = vmatpush1.bf16.msra.mxu1 %v12769_v34  ;;  %v12847_v34 = vld [vmem:[#allocation8 + $0x2f8] ss:$72 sps:$4 sm:$0xff]  }
 0x23c   : > { %6154 = vmatprep.subr.bf16.mxu1 %v12777_v36  ;;  %v1269_v36 = vrot.slane %v14856_v27, %v14862_v29  ;;  %6024 = vmatpush1.bf16.msra.mxu0 %v13018_v31  ;;  %v13084_v31 = vld [vmem:[#allocation8 + $0x20] ss:$72 sps:$4 sm:$0xff]  }
 0x23d   : > { %6025 = vmatprep.subr.bf16.mxu0 %v13026_v32  ;;  %v13092_v32 = vld [vmem:[#allocation8 + $0xb4] ss:$72 sps:$4 sm:$0xff]  }
 0x23f   : > { %6155 = vmatpush1.bf16.msra.mxu1 %v12775_v40  ;;  %v13032_v40 = vld [vmem:[#allocation8 + $0x1604] ss:$72 sps:$4 sm:$0xff]  }
 0x240   : > { %6156 = vmatprep.subr.bf16.mxu1 %v12783_v42  ;;  %6026 = vmatpush1.bf16.msra.mxu0 %v13024_v38  ;;  %v12919_v38 = vld [vmem:[#allocation8 + $0x9b8] ss:$72 sps:$4 sm:$0xff]  }
 0x241   : > { %6027 = vmatprep.subr.bf16.mxu0 %v13032_v40  ;;  %v12927_v40 = vld [vmem:[#allocation8 + $0xa4c] ss:$72 sps:$4 sm:$0xff]  }
 0x243   : > { %6157 = vmatpush1.bf16.msra.mxu1 %v12781_v46  ;;  %v12853_v46 = vld [vmem:[#allocation8 + $0x388] ss:$72 sps:$4 sm:$0xff]  }
 0x244   : > { %6158 = vmatprep.subr.bf16.mxu1 %v12789_v48 }
 0x247   : > { %6159 = vmatpush1.bf16.msra.mxu1 %v12787_v52  ;;  %v13030_v52 = vld [vmem:[#allocation8 + $0x1600] ss:$72 sps:$4 sm:$0xff]  }
 0x248   : > { %6160 = vmatprep.subr.bf16.mxu1 %v12795_v35  ;;  %6028 = vmatpush1.bf16.msra.mxu0 %v13030_v52  ;;  %v12939_v52 = vld [vmem:[#allocation8 + $0xb6c] ss:$72 sps:$4 sm:$0xff]  }
 0x249   : > { %6029 = vmatprep.subr.bf16.mxu0 %v13038_v54  ;;  %v14873_v54 = vsub.s32 0, %v14854_v22 }
 0x24b   : > { %6161 = vmatpush1.bf16.msra.mxu1 %v12793_v56  ;;  %v12859_v56 = vld [vmem:[#allocation8 + $0x418] ss:$72 sps:$4 sm:$0xff]  }
 0x24c   : > { %6162 = vmatprep.subr.bf16.mxu1 %v12801_v57  ;;  %v12867_v57 = vld [vmem:[#allocation8 + $0x4ac] ss:$72 sps:$4 sm:$0xff]   ;;  %6030 = vmatpush1.bf16.msra.mxu0 %v13036_v58  ;;  %v12945_v58 = vld [vmem:[#allocation8 + $0xbfc] ss:$72 sps:$4 sm:$0xff]  }
 0x24d   : > { %6031 = vmatprep.subr.bf16.mxu0 %v13044_v59  ;;  %v1257_v59 = vrot.slane %v14856_v27, %v14873_v54 }
 0x24f   : > { %6163 = vmatpush1.bf16.msra.mxu1 %v12799_v43  ;;  %v12865_v43 = vld [vmem:[#allocation8 + $0x4a8] ss:$72 sps:$4 sm:$0xff]  }
 0x250   : > { %6164 = vmatprep.subr.bf16.mxu1 %v12807_v60  ;;  %v12873_v60 = vld [vmem:[#allocation8 + $0x53c] ss:$72 sps:$4 sm:$0xff]   ;;  %6032 = vmatpush1.bf16.msra.mxu0 %v13042_v61 }
 0x251   : > { %6033 = vmatprep.subr.bf16.mxu0 %v13050_v62  ;;  %v12943_v62 = vld [vmem:[#allocation8 + $0xbf8] ss:$72 sps:$4 sm:$0xff]  }
 0x253   : > { %6165 = vmatpush1.bf16.msra.mxu1 %v12805_v63  ;;  %v12871_v63 = vld [vmem:[#allocation8 + $0x538] ss:$72 sps:$4 sm:$0xff]  }
 0x254   : > { %6166 = vmatprep.subr.bf16.mxu1 %v12813_v0  ;;  %v12879_v0 = vld [vmem:[#allocation8 + $0x5cc] ss:$72 sps:$4 sm:$0xff]   ;;  %6034 = vmatpush1.bf16.msra.mxu0 %v13048_v1 }
 0x255   : > { %6035 = vmatprep.subr.bf16.mxu0 %v13056_v2 }
 0x257   : > { %6167 = vmatpush1.bf16.msra.mxu1 %v12811_v3  ;;  %v12877_v3 = vld [vmem:[#allocation8 + $0x5c8] ss:$72 sps:$4 sm:$0xff]  }
 0x258   : > { %6300 = vmatprep.subr.bf16.mxu1 %v12819_v4  ;;  %v12885_v4 = vld [vmem:[#allocation8 + $0x65c] ss:$72 sps:$4 sm:$0xff]   ;;  %6036 = vmatpush1.bf16.msra.mxu0 %v13054_v5  ;;  %v13120_v5 = vld [vmem:[#allocation8 + $0x380] ss:$72 sps:$4 sm:$0xff]  }
 0x259   : > { %6037 = vmatprep.subr.bf16.mxu0 %v13062_v6 }
 0x25a   : > { %6169 = vmatmul.mubr.bf16.vlgmr.msra.gmra.mrb[4].mxu1 %v14835_v53 }
 0x25b   : > { %6301 = vmatpush1.bf16.msra.mxu1 %v12817_v7  ;;  %6332 = vmatprep.mubr.bf16.mxu1 %v14803_v14  ;;  %v12883_v7 = vld [vmem:[#allocation8 + $0x658] ss:$72 sps:$4 sm:$0xff]  }
 0x25c   : > { %6302 = vmatprep.subr.bf16.mxu1 %v12825_v8  ;;  %v12891_v8 = vld [vmem:[#allocation8 + $0x6ec] ss:$72 sps:$4 sm:$0xff]   ;;  %6038 = vmatpush1.bf16.msra.mxu0 %v13060_v9 }
 0x25d   : > { %6039 = vmatprep.subr.bf16.mxu0 %v13068_v10  ;;  %v12957_v10 = vld [vmem:[#allocation8 + $0xd1c] ss:$72 sps:$4 sm:$0xff]  }
 0x25f   : > { %6303 = vmatpush1.bf16.msra.mxu1 %v12823_v11  ;;  %v12889_v11 = vld [vmem:[#allocation8 + $0x6e8] ss:$72 sps:$4 sm:$0xff]  }
 0x260   : > { %6304 = vmatprep.subr.bf16.mxu1 %v12831_v12  ;;  %v12897_v12 = vld [vmem:[#allocation8 + $0x77c] ss:$72 sps:$4 sm:$0xff]   ;;  %6040 = vmatpush1.bf16.msra.mxu0 %v13066_v13  ;;  %v12963_v13 = vld [vmem:[#allocation8 + $0xdac] ss:$72 sps:$4 sm:$0xff]  }
 0x261   : > { %6041 = vmatprep.subr.bf16.mxu0 %v13074_v15  ;;  %v13132_v15 = vld [vmem:[#allocation8 + $0x4a0] ss:$72 sps:$4 sm:$0xff]  }
 0x263   : > { %6305 = vmatpush1.bf16.msra.mxu1 %v12829_v16  ;;  %v12895_v16 = vld [vmem:[#allocation8 + $0x778] ss:$72 sps:$4 sm:$0xff]  }
 0x264   : > { %6306 = vmatprep.subr.bf16.mxu1 %v12837_v18  ;;  %v12903_v18 = vld [vmem:[#allocation8 + $0x80c] ss:$72 sps:$4 sm:$0xff]   ;;  %6042 = vmatpush1.bf16.msra.mxu0 %v13072_v19  ;;  %v12969_v19 = vld [vmem:[#allocation8 + $0xe3c] ss:$72 sps:$4 sm:$0xff]  }
 0x265   : > { %6043 = vmatprep.subr.bf16.mxu0 %v13080_v20  ;;  %v13138_v20 = vld [vmem:[#allocation8 + $0x530] ss:$72 sps:$4 sm:$0xff]  }
 0x267   : > { %6307 = vmatpush1.bf16.msra.mxu1 %v12835_v21  ;;  %v12901_v21 = vld [vmem:[#allocation8 + $0x808] ss:$72 sps:$4 sm:$0xff]  }
 0x268   : > { %6308 = vmatprep.subr.bf16.mxu1 %v12843_v23  ;;  %v12909_v23 = vld [vmem:[#allocation8 + $0x89c] ss:$72 sps:$4 sm:$0xff]   ;;  %6044 = vmatpush1.bf16.msra.mxu0 %v13078_v24  ;;  %v12975_v24 = vld [vmem:[#allocation8 + $0xecc] ss:$72 sps:$4 sm:$0xff]  }
 0x269   : > { %6177 = vmatprep.subr.bf16.mxu0 %v13086_v25  ;;  %v13144_v25 = vld [vmem:[#allocation8 + $0x5c0] ss:$72 sps:$4 sm:$0xff]  }
 0x26b   : > { %6309 = vmatpush1.bf16.msra.mxu1 %v12841_v26  ;;  %v12907_v26 = vld [vmem:[#allocation8 + $0x898] ss:$72 sps:$4 sm:$0xff]   ;;  %6046 = vmatmul.mubr.bf16.vlgmr.msra.gmra.mrb[4].mxu0 %v14835_v53 }
 0x26c   : > { %6310 = vmatprep.subr.bf16.mxu1 %v12849_v30  ;;  %v12915_v30 = vld [vmem:[#allocation8 + $0x92c] ss:$72 sps:$4 sm:$0xff]   ;;  %6178 = vmatpush1.bf16.msra.mxu0 %v13084_v31  ;;  %v12981_v31 = vld [vmem:[#allocation8 + $0xf5c] ss:$72 sps:$4 sm:$0xff]  }
 0x26d   : > { %v5924_v42 = vpop.f32.mrb[0].mxu1  ;;  %6179 = vmatprep.subr.bf16.mxu0 %v13092_v32  ;;  %6209 = vmatprep.mubr.bf16.mxu0 %v14803_v14  ;;  %v13150_v32 = vld [vmem:[#allocation8 + $0x650] ss:$72 sps:$4 sm:$0xff]  }
 0x26e   : > { %v12145_v44 = vadd.f32 %v5924_v42, %v1265_v33  ;;  %v5926_v45 = vpop.f32.mrb[1].mxu1  ;;  %v12913_v33 = vld [vmem:[#allocation8 + $0x928] ss:$72 sps:$4 sm:$0xff]  }
 0x26f   : > { %v12146_v48 = vadd.f32 %v5926_v45, %v1269_v36  ;;  %v5928_v50 = vpop.f32.mrb[2].mxu1  ;;  %6311 = vmatpush1.bf16.msra.mxu1 %v12847_v34  ;;  %v12921_v34 = vld [vmem:[#allocation8 + $0x9bc] ss:$72 sps:$4 sm:$0xff]   ;;  %v13090_v36 = vld [vmem:[#allocation8 + $0xb0] ss:$72 sps:$4 sm:$0xff]  }
 0x270   : > { %v5929_v35 = vpop.f32.mrb[3].mxu1  ;;  %6312 = vmatprep.subr.bf16.mxu1 %v12855_v37  ;;  %v13098_v37 = vld [vmem:[#allocation8 + $0x144] ss:$72 sps:$4 sm:$0xff]   ;;  %v13096_v42 = vld [vmem:[#allocation8 + $0x140] ss:$72 sps:$4 sm:$0xff]   ;;  %6180 = vmatpush1.bf16.msra.mxu0 %v13090_v36 }
 0x271   : > { %v11940_v55 = vpack.c.bf16 %v12146_v48, %v12145_v44  ;;  %v13104_v44 = vld [vmem:[#allocation8 + $0x1d4] ss:$72 sps:$4 sm:$0xff]   ;;  %6181 = vmatprep.subr.bf16.mxu0 %v13098_v37  ;;  %v12925_v45 = vld [vmem:[#allocation8 + $0xa48] ss:$72 sps:$4 sm:$0xff]   ;;  %v13110_v50 = vld [vmem:[#allocation8 + $0x264] ss:$72 sps:$4 sm:$0xff]  }
 0x272   : > { %v13102_v48 = vld [vmem:[#allocation8 + $0x1d0] ss:$72 sps:$4 sm:$0xff]   ;;  %v13108_v35 = vld [vmem:[#allocation8 + $0x260] ss:$72 sps:$4 sm:$0xff]   ;;  %v12987_v36 = vld [vmem:[#allocation8 + $0xfec] ss:$72 sps:$4 sm:$0xff]  }
 0x273   : > { %6865 = vst [vmem:[#allocation2 + $0x8] sm:$0xff] %v11940_v55  ;;  %6313 = vmatpush1.bf16.msra.mxu1 %v12853_v46  ;;  %v12933_v46 = vld [vmem:[#allocation8 + $0xadc] ss:$72 sps:$4 sm:$0xff]   ;;  %v13156_v37 = vld [vmem:[#allocation8 + $0x6e0] ss:$72 sps:$4 sm:$0xff]  }
 0x274   : > { %6314 = vmatprep.subr.bf16.mxu1 %v12861_v51  ;;  %6182 = vmatpush1.bf16.msra.mxu0 %v13096_v42  ;;  %v12931_v51 = vld [vmem:[#allocation8 + $0xad8] ss:$72 sps:$4 sm:$0xff]   ;;  %v13116_v55 = vld [vmem:[#allocation8 + $0x2f4] ss:$72 sps:$4 sm:$0xff]  }
 0x275   : > { %6183 = vmatprep.subr.bf16.mxu0 %v13104_v44  ;;  %v12993_v42 = vld [vmem:[#allocation8 + $0x107c] ss:$72 sps:$4 sm:$0xff]   ;;  %v13163_v44 = vld [vmem:[#allocation8 + $0x770] ss:$72 sps:$4 sm:$0xff]  }
 0x277   : > { %6315 = vmatpush1.bf16.msra.mxu1 %v12859_v56  ;;  %v14876_v56 = vsub.s32 1, %v14854_v22 }
 0x278   : > { %6316 = vmatprep.subr.bf16.mxu1 %v12867_v57  ;;  %6184 = vmatpush1.bf16.msra.mxu0 %v13102_v48  ;;  %v12937_v57 = vld [vmem:[#allocation8 + $0xb68] ss:$72 sps:$4 sm:$0xff]   ;;  %v12999_v48 = vld [vmem:[#allocation8 + $0x110c] ss:$72 sps:$4 sm:$0xff]  }
 0x279   : > { %6185 = vmatprep.subr.bf16.mxu0 %v13110_v50  ;;  %v1261_v61 = vrot.slane %v14856_v27, %v14876_v56  ;;  %v13126_v27 = vld [vmem:[#allocation8 + $0x410] ss:$72 sps:$4 sm:$0xff]   ;;  %v13170_v50 = vld [vmem:[#allocation8 + $0x800] ss:$72 sps:$4 sm:$0xff]  }
 0x27b   : > { %6317 = vmatpush1.bf16.msra.mxu1 %v12865_v43  ;;  %v13114_v43 = vld [vmem:[#allocation8 + $0x2f0] ss:$72 sps:$4 sm:$0xff]  }
 0x27c   : > { %6318 = vmatprep.subr.bf16.mxu1 %v12873_v60  ;;  %v13122_v60 = vld [vmem:[#allocation8 + $0x384] ss:$72 sps:$4 sm:$0xff]   ;;  %6186 = vmatpush1.bf16.msra.mxu0 %v13108_v35 }
 0x27d   : > { %6187 = vmatprep.subr.bf16.mxu0 %v13116_v55  ;;  %v13005_v35 = vld [vmem:[#allocation8 + $0x119c] ss:$72 sps:$4 sm:$0xff]   ;;  %v13176_v55 = vld [vmem:[#allocation8 + $0x890] ss:$72 sps:$4 sm:$0xff]  }
 0x27f   : > { %6319 = vmatpush1.bf16.msra.mxu1 %v12871_v63  ;;  %v5801_v63 = vpop.f32.mrb[0].mxu0 }
 0x280   : > { %6320 = vmatprep.subr.bf16.mxu1 %v12879_v0  ;;  %v12951_v0 = vld [vmem:[#allocation8 + $0xc8c] ss:$72 sps:$4 sm:$0xff]   ;;  %v12143_v1 = vadd.f32 %v5801_v63, %v1257_v59  ;;  %v5803_v2 = vpop.f32.mrb[1].mxu0  ;;  %6188 = vmatpush1.bf16.msra.mxu0 %v13114_v43  ;;  %v13182_v43 = vld [vmem:[#allocation8 + $0x920] ss:$72 sps:$4 sm:$0xff]  }
 0x281   : > { %6189 = vmatprep.subr.bf16.mxu0 %v13122_v60  ;;  %v13011_v59 = vld [vmem:[#allocation8 + $0x122c] ss:$72 sps:$4 sm:$0xff]   ;;  %v13188_v63 = vld [vmem:[#allocation8 + $0x9b0] ss:$72 sps:$4 sm:$0xff]  }
 0x282   : > { %v13190_v60 = vld [vmem:[#allocation8 + $0x9b4] ss:$72 sps:$4 sm:$0xff]  }
 0x283   : > { %6321 = vmatpush1.bf16.msra.mxu1 %v12877_v3  ;;  %v12144_v3 = vadd.f32 %v5803_v2, %v1261_v61  ;;  %v13009_v61 = vld [vmem:[#allocation8 + $0x1228] ss:$72 sps:$4 sm:$0xff]   ;;  %v13023_v2 = vld [vmem:[#allocation8 + $0x134c] ss:$72 sps:$4 sm:$0xff]  }
 0x284   : > { %6322 = vmatprep.subr.bf16.mxu1 %v12885_v4  ;;  %v5805_v4 = vpop.f32.mrb[2].mxu0  ;;  %6190 = vmatpush1.bf16.msra.mxu0 %v13120_v5  ;;  %v13021_v5 = vld [vmem:[#allocation8 + $0x1348] ss:$72 sps:$4 sm:$0xff]  }
 0x285   : > { %v5806_v6 = vpop.f32.mrb[3].mxu0  ;;  %v11939_v9 = vpack.c.bf16 %v12144_v3, %v12143_v1  ;;  %v13015_v1 = vld [vmem:[#allocation8 + $0x12b8] ss:$72 sps:$4 sm:$0xff]   ;;  %v13202_v4 = vld [vmem:[#allocation8 + $0xad4] ss:$72 sps:$4 sm:$0xff]  }
 0x286   : > { %v13194_v3 = vld [vmem:[#allocation8 + $0xa40] ss:$72 sps:$4 sm:$0xff]   ;;  %v13029_v6 = vld [vmem:[#allocation8 + $0x13dc] ss:$72 sps:$4 sm:$0xff]  }
 0x287   : > { %6323 = vmatpush1.bf16.msra.mxu1 %v12883_v7  ;;  %v13128_v7 = vld [vmem:[#allocation8 + $0x414] ss:$72 sps:$4 sm:$0xff]   ;;  %6864 = vst [vmem:[#allocation2] sm:$0xff] %v11939_v9  ;;  %v13027_v9 = vld [vmem:[#allocation8 + $0x13d8] ss:$72 sps:$4 sm:$0xff]  }
 0x288   : > { %6324 = vmatprep.subr.bf16.mxu1 %v12891_v8  ;;  %v12949_v8 = vld [vmem:[#allocation8 + $0xc88] ss:$72 sps:$4 sm:$0xff]   ;;  %6191 = vmatprep.subr.bf16.mxu0 %v13128_v7 }
 0x289   : > { %6192 = vmatpush1.bf16.msra.mxu0 %v13126_v27  ;;  %v13200_v7 = vld [vmem:[#allocation8 + $0xad0] ss:$72 sps:$4 sm:$0xff]   ;;  %v13206_v27 = vld [vmem:[#allocation8 + $0xb60] ss:$72 sps:$4 sm:$0xff]  }
 0x28b   : > { %6325 = vmatpush1.bf16.msra.mxu1 %v12889_v11  ;;  %v13134_v11 = vld [vmem:[#allocation8 + $0x4a4] ss:$72 sps:$4 sm:$0xff]  }
 0x28c   : > { %6326 = vmatprep.subr.bf16.mxu1 %v12897_v12  ;;  %v12955_v12 = vld [vmem:[#allocation8 + $0xd18] ss:$72 sps:$4 sm:$0xff]   ;;  %6193 = vmatprep.subr.bf16.mxu0 %v13134_v11  ;;  %v13214_v11 = vld [vmem:[#allocation8 + $0xbf4] ss:$72 sps:$4 sm:$0xff]  }
 0x28d   : > { %6194 = vmatpush1.bf16.msra.mxu0 %v13132_v15  ;;  %v13212_v15 = vld [vmem:[#allocation8 + $0xbf0] ss:$72 sps:$4 sm:$0xff]  }
 0x28f   : > { %6327 = vmatpush1.bf16.msra.mxu1 %v12895_v16  ;;  %v13140_v16 = vld [vmem:[#allocation8 + $0x534] ss:$72 sps:$4 sm:$0xff]  }
 0x290   : > { %6328 = vmatprep.subr.bf16.mxu1 %v12903_v18  ;;  %v12961_v18 = vld [vmem:[#allocation8 + $0xda8] ss:$72 sps:$4 sm:$0xff]   ;;  %6195 = vmatprep.subr.bf16.mxu0 %v13140_v16  ;;  %v13220_v16 = vld [vmem:[#allocation8 + $0xc84] ss:$72 sps:$4 sm:$0xff]  }
 0x291   : > { %6196 = vmatpush1.bf16.msra.mxu0 %v13138_v20  ;;  %v13218_v20 = vld [vmem:[#allocation8 + $0xc80] ss:$72 sps:$4 sm:$0xff]  }
 0x293   : > { %6329 = vmatpush1.bf16.msra.mxu1 %v12901_v21  ;;  %v13146_v21 = vld [vmem:[#allocation8 + $0x5c4] ss:$72 sps:$4 sm:$0xff]  }
 0x294   : > { %6330 = vmatprep.subr.bf16.mxu1 %v12909_v23  ;;  %v12967_v23 = vld [vmem:[#allocation8 + $0xe38] ss:$72 sps:$4 sm:$0xff]   ;;  %6197 = vmatprep.subr.bf16.mxu0 %v13146_v21  ;;  %v13226_v21 = vld [vmem:[#allocation8 + $0xd14] ss:$72 sps:$4 sm:$0xff]  }
 0x295   : > { %6198 = vmatpush1.bf16.msra.mxu0 %v13144_v25  ;;  %v13224_v25 = vld [vmem:[#allocation8 + $0xd10] ss:$72 sps:$4 sm:$0xff]  }
 0x297   : > { %6331 = vmatpush1.bf16.msra.mxu1 %v12907_v26  ;;  %v13152_v26 = vld [vmem:[#allocation8 + $0x654] ss:$72 sps:$4 sm:$0xff]  }
 0x298   : > { %6341 = vmatprep.subr.bf16.mxu1 %v12915_v30  ;;  %v12973_v30 = vld [vmem:[#allocation8 + $0xec8] ss:$72 sps:$4 sm:$0xff]   ;;  %6199 = vmatprep.subr.bf16.mxu0 %v13152_v26  ;;  %v13232_v26 = vld [vmem:[#allocation8 + $0xda4] ss:$72 sps:$4 sm:$0xff]  }
 0x299   : > { %6200 = vmatpush1.bf16.msra.mxu0 %v13150_v32  ;;  %v13230_v32 = vld [vmem:[#allocation8 + $0xda0] ss:$72 sps:$4 sm:$0xff]  }
 0x29a   : > { %6333 = vmatmul.mubr.bf16.vlgmr.msra.gmra.mrb[8].mxu1 %v14810_v39 }
 0x29b   : > { %6342 = vmatpush1.bf16.msra.mxu1 %v12913_v33  ;;  %6373 = vmatprep.mubr.bf16.mxu1 %v14814_v41  ;;  %v13158_v33 = vld [vmem:[#allocation8 + $0x6e4] ss:$72 sps:$4 sm:$0xff]  }
 0x29c   : > { %6343 = vmatprep.subr.bf16.mxu1 %v12921_v34  ;;  %v12979_v34 = vld [vmem:[#allocation8 + $0xf58] ss:$72 sps:$4 sm:$0xff]   ;;  %6201 = vmatprep.subr.bf16.mxu0 %v13158_v33  ;;  %v13238_v33 = vld [vmem:[#allocation8 + $0xe34] ss:$72 sps:$4 sm:$0xff]  }
 0x29d   : > { %6202 = vmatpush1.bf16.msra.mxu0 %v13156_v37  ;;  %v13236_v37 = vld [vmem:[#allocation8 + $0xe30] ss:$72 sps:$4 sm:$0xff]  }
 0x29f   : > { %6344 = vmatpush1.bf16.msra.mxu1 %v12919_v38  ;;  %v13165_v38 = vld [vmem:[#allocation8 + $0x774] ss:$72 sps:$4 sm:$0xff]  }
 0x2a0   : > { %6345 = vmatprep.subr.bf16.mxu1 %v12927_v40  ;;  %v12985_v40 = vld [vmem:[#allocation8 + $0xfe8] ss:$72 sps:$4 sm:$0xff]   ;;  %6203 = vmatprep.subr.bf16.mxu0 %v13165_v38  ;;  %v13244_v38 = vld [vmem:[#allocation8 + $0xec4] ss:$72 sps:$4 sm:$0xff]  }
 0x2a1   : > { %6204 = vmatpush1.bf16.msra.mxu0 %v13163_v44  ;;  %v13242_v44 = vld [vmem:[#allocation8 + $0xec0] ss:$72 sps:$4 sm:$0xff]  }
 0x2a3   : > { %6346 = vmatpush1.bf16.msra.mxu1 %v12925_v45  ;;  %v13172_v45 = vld [vmem:[#allocation8 + $0x804] ss:$72 sps:$4 sm:$0xff]  }
 0x2a4   : > { %6347 = vmatprep.subr.bf16.mxu1 %v12933_v46  ;;  %v12991_v46 = vld [vmem:[#allocation8 + $0x1078] ss:$72 sps:$4 sm:$0xff]   ;;  %6205 = vmatprep.subr.bf16.mxu0 %v13172_v45  ;;  %v13250_v45 = vld [vmem:[#allocation8 + $0xf54] ss:$72 sps:$4 sm:$0xff]  }
 0x2a5   : > { %6206 = vmatpush1.bf16.msra.mxu0 %v13170_v50  ;;  %v13248_v50 = vld [vmem:[#allocation8 + $0xf50] ss:$72 sps:$4 sm:$0xff]  }
 0x2a7   : > { %6348 = vmatpush1.bf16.msra.mxu1 %v12931_v51  ;;  %v13178_v51 = vld [vmem:[#allocation8 + $0x894] ss:$72 sps:$4 sm:$0xff]  }
 0x2a8   : > { %6349 = vmatprep.subr.bf16.mxu1 %v12939_v52  ;;  %v12997_v52 = vld [vmem:[#allocation8 + $0x1108] ss:$72 sps:$4 sm:$0xff]   ;;  %6207 = vmatprep.subr.bf16.mxu0 %v13178_v51  ;;  %v13256_v51 = vld [vmem:[#allocation8 + $0xfe4] ss:$72 sps:$4 sm:$0xff]  }
 0x2a9   : > { %6208 = vmatpush1.bf16.msra.mxu0 %v13176_v55  ;;  %v13254_v55 = vld [vmem:[#allocation8 + $0xfe0] ss:$72 sps:$4 sm:$0xff]  }
 0x2ab   : > { %6350 = vmatpush1.bf16.msra.mxu1 %v12937_v57  ;;  %v13184_v57 = vld [vmem:[#allocation8 + $0x924] ss:$72 sps:$4 sm:$0xff]  }
 0x2ac   : > { %6351 = vmatprep.subr.bf16.mxu1 %v12945_v58  ;;  %v13003_v58 = vld [vmem:[#allocation8 + $0x1198] ss:$72 sps:$4 sm:$0xff]   ;;  %6218 = vmatprep.subr.bf16.mxu0 %v13184_v57  ;;  %v13262_v57 = vld [vmem:[#allocation8 + $0x1074] ss:$72 sps:$4 sm:$0xff]  }
 0x2ad   : > { %6210 = vmatmul.mubr.bf16.vlgmr.msra.gmra.mrb[8].mxu0 %v14810_v39 }
 0x2ae   : > { %6219 = vmatpush1.bf16.msra.mxu0 %v13182_v43  ;;  %6250 = vmatprep.mubr.bf16.mxu0 %v14814_v41  ;;  %v13260_v43 = vld [vmem:[#allocation8 + $0x1070] ss:$72 sps:$4 sm:$0xff]  }
 0x2af   : > { %6352 = vmatpush1.bf16.msra.mxu1 %v12943_v62  ;;  %v13017_v62 = vld [vmem:[#allocation8 + $0x12bc] ss:$72 sps:$4 sm:$0xff]   ;;  %6220 = vmatprep.subr.bf16.mxu0 %v13190_v60 }
 0x2b0   : > { %6353 = vmatprep.subr.bf16.mxu1 %v12951_v0  ;;  %v13196_v0 = vld [vmem:[#allocation8 + $0xa44] ss:$72 sps:$4 sm:$0xff]  }
 0x2b1   : > { %v13268_v60 = vld [vmem:[#allocation8 + $0x1104] ss:$72 sps:$4 sm:$0xff]  }
 0x2b2   : > { %6221 = vmatpush1.bf16.msra.mxu0 %v13188_v63  ;;  %v13266_v63 = vld [vmem:[#allocation8 + $0x1100] ss:$72 sps:$4 sm:$0xff]  }
 0x2b3   : > { %6354 = vmatpush1.bf16.msra.mxu1 %v12949_v8  ;;  %6222 = vmatprep.subr.bf16.mxu0 %v13196_v0  ;;  %v13208_v8 = vld [vmem:[#allocation8 + $0xb64] ss:$72 sps:$4 sm:$0xff]   ;;  %v13274_v0 = vld [vmem:[#allocation8 + $0x1194] ss:$72 sps:$4 sm:$0xff]  }
 0x2b4   : > { %6355 = vmatprep.subr.bf16.mxu1 %v12957_v10  ;;  %v13035_v10 = vld [vmem:[#allocation8 + $0x146c] ss:$72 sps:$4 sm:$0xff]  }
 0x2b6   : > { %6223 = vmatpush1.bf16.msra.mxu0 %v13194_v3  ;;  %v13272_v3 = vld [vmem:[#allocation8 + $0x1190] ss:$72 sps:$4 sm:$0xff]  }
 0x2b7   : > { %6356 = vmatpush1.bf16.msra.mxu1 %v12955_v12  ;;  %6224 = vmatprep.subr.bf16.mxu0 %v13202_v4  ;;  %v13033_v12 = vld [vmem:[#allocation8 + $0x1468] ss:$72 sps:$4 sm:$0xff]   ;;  %v13280_v4 = vld [vmem:[#allocation8 + $0x1224] ss:$72 sps:$4 sm:$0xff]  }
 0x2b8   : > { %6357 = vmatprep.subr.bf16.mxu1 %v12963_v13  ;;  %v13041_v13 = vld [vmem:[#allocation8 + $0x14fc] ss:$72 sps:$4 sm:$0xff]  }
 0x2ba   : > { %6225 = vmatpush1.bf16.msra.mxu0 %v13200_v7  ;;  %v13278_v7 = vld [vmem:[#allocation8 + $0x1220] ss:$72 sps:$4 sm:$0xff]  }
 0x2bb   : > { %6358 = vmatpush1.bf16.msra.mxu1 %v12961_v18  ;;  %6226 = vmatprep.subr.bf16.mxu0 %v13208_v8  ;;  %v13039_v18 = vld [vmem:[#allocation8 + $0x14f8] ss:$72 sps:$4 sm:$0xff]   ;;  %v13286_v8 = vld [vmem:[#allocation8 + $0x12b4] ss:$72 sps:$4 sm:$0xff]  }
 0x2bc   : > { %6359 = vmatprep.subr.bf16.mxu1 %v12969_v19  ;;  %v13047_v19 = vld [vmem:[#allocation8 + $0x158c] ss:$72 sps:$4 sm:$0xff]  }
 0x2be   : > { %6227 = vmatpush1.bf16.msra.mxu0 %v13206_v27  ;;  %v13284_v27 = vld [vmem:[#allocation8 + $0x12b0] ss:$72 sps:$4 sm:$0xff]  }
 0x2bf   : > { %6360 = vmatpush1.bf16.msra.mxu1 %v12967_v23  ;;  %6228 = vmatprep.subr.bf16.mxu0 %v13214_v11  ;;  %v13045_v23 = vld [vmem:[#allocation8 + $0x1588] ss:$72 sps:$4 sm:$0xff]   ;;  %v13292_v11 = vld [vmem:[#allocation8 + $0x1344] ss:$72 sps:$4 sm:$0xff]  }
 0x2c0   : > { %6361 = vmatprep.subr.bf16.mxu1 %v12975_v24  ;;  %v13053_v24 = vld [vmem:[#allocation8 + $0x161c] ss:$72 sps:$4 sm:$0xff]  }
 0x2c2   : > { %6229 = vmatpush1.bf16.msra.mxu0 %v13212_v15  ;;  %v13290_v15 = vld [vmem:[#allocation8 + $0x1340] ss:$72 sps:$4 sm:$0xff]  }
 0x2c3   : > { %6362 = vmatpush1.bf16.msra.mxu1 %v12973_v30  ;;  %6230 = vmatprep.subr.bf16.mxu0 %v13220_v16  ;;  %v13051_v30 = vld [vmem:[#allocation8 + $0x1618] ss:$72 sps:$4 sm:$0xff]   ;;  %v13298_v16 = vld [vmem:[#allocation8 + $0x13d4] ss:$72 sps:$4 sm:$0xff]  }
 0x2c4   : > { %6363 = vmatprep.subr.bf16.mxu1 %v12981_v31  ;;  %v13059_v31 = vld [vmem:[#allocation8 + $0x16ac] ss:$72 sps:$4 sm:$0xff]  }
 0x2c6   : > { %6231 = vmatpush1.bf16.msra.mxu0 %v13218_v20  ;;  %v13296_v20 = vld [vmem:[#allocation8 + $0x13d0] ss:$72 sps:$4 sm:$0xff]  }
 0x2c7   : > { %6364 = vmatpush1.bf16.msra.mxu1 %v12979_v34  ;;  %6232 = vmatprep.subr.bf16.mxu0 %v13226_v21  ;;  %v13057_v34 = vld [vmem:[#allocation8 + $0x16a8] ss:$72 sps:$4 sm:$0xff]   ;;  %v13304_v21 = vld [vmem:[#allocation8 + $0x1464] ss:$72 sps:$4 sm:$0xff]  }
 0x2c8   : > { %6365 = vmatprep.subr.bf16.mxu1 %v12987_v36  ;;  %v13065_v36 = vld [vmem:[#allocation8 + $0x173c] ss:$72 sps:$4 sm:$0xff]  }
 0x2ca   : > { %6233 = vmatpush1.bf16.msra.mxu0 %v13224_v25  ;;  %v13302_v25 = vld [vmem:[#allocation8 + $0x1460] ss:$72 sps:$4 sm:$0xff]  }
 0x2cb   : > { %6366 = vmatpush1.bf16.msra.mxu1 %v12985_v40  ;;  %6234 = vmatprep.subr.bf16.mxu0 %v13232_v26  ;;  %v13063_v40 = vld [vmem:[#allocation8 + $0x1738] ss:$72 sps:$4 sm:$0xff]   ;;  %v13310_v26 = vld [vmem:[#allocation8 + $0x14f4] ss:$72 sps:$4 sm:$0xff]  }
 0x2cc   : > { %6367 = vmatprep.subr.bf16.mxu1 %v12993_v42  ;;  %v13071_v42 = vld [vmem:[#allocation8 + $0x17cc] ss:$72 sps:$4 sm:$0xff]  }
 0x2ce   : > { %6235 = vmatpush1.bf16.msra.mxu0 %v13230_v32  ;;  %v1284_v32 = vsub.s32 7, %v14854_v22 }
 0x2cf   : > { %6368 = vmatpush1.bf16.msra.mxu1 %v12991_v46  ;;  %6236 = vmatprep.subr.bf16.mxu0 %v13238_v33  ;;  %v13069_v46 = vld [vmem:[#allocation8 + $0x17c8] ss:$72 sps:$4 sm:$0xff]   ;;  %v13137_v33 = vld [vmem:[#allocation8 + $0x30c] ss:$72 sps:$4 sm:$0xff]  }
 0x2d0   : > { %6369 = vmatprep.subr.bf16.mxu1 %v12999_v48  ;;  %v13077_v48 = vld [vmem:[#allocation8 + $0x185c] ss:$72 sps:$4 sm:$0xff]  }
 0x2d2   : > { %6237 = vmatpush1.bf16.msra.mxu0 %v13236_v37  ;;  %v14892_v37 = vld [vmem:[#allocation10] sm:$0xff] }
 0x2d3   : > { %6370 = vmatpush1.bf16.msra.mxu1 %v12997_v52  ;;  %6238 = vmatprep.subr.bf16.mxu0 %v13244_v38  ;;  %v13075_v52 = vld [vmem:[#allocation8 + $0x1858] ss:$72 sps:$4 sm:$0xff]  }
 0x2d4   : > { %6371 = vmatprep.subr.bf16.mxu1 %v13005_v35  ;;  %v13083_v35 = vld [vmem:[#allocation8 + $0x18ec] ss:$72 sps:$4 sm:$0xff]  }
 0x2d6   : > { %6239 = vmatpush1.bf16.msra.mxu0 %v13242_v44  ;;  %v13143_v44 = vld [vmem:[#allocation8 + $0x39c] ss:$72 sps:$4 sm:$0xff]  }
 0x2d7   : > { %6372 = vmatpush1.bf16.msra.mxu1 %v13003_v58  ;;  %6240 = vmatprep.subr.bf16.mxu0 %v13250_v45  ;;  %v13081_v58 = vld [vmem:[#allocation8 + $0x18e8] ss:$72 sps:$4 sm:$0xff]  }
 0x2d8   : > { %6382 = vmatprep.subr.bf16.mxu1 %v13011_v59  ;;  %v13089_v59 = vld [vmem:[#allocation8 + $0x197c] ss:$72 sps:$4 sm:$0xff]   ;;  %v13314_v45 = vld [vmem:[#allocation8 + $0x1580] ss:$72 sps:$4 sm:$0xff]  }
 0x2da   : > { %6374 = vmatmul.mubr.bf16.vlgmr.msra.gmra.mrb[8].mxu1 %v14823_v47  ;;  %6241 = vmatpush1.bf16.msra.mxu0 %v13248_v50 }
 0x2db   : > { %6383 = vmatpush1.bf16.msra.mxu1 %v13009_v61  ;;  %6414 = vmatprep.mubr.bf16.mxu1 %v14827_v49  ;;  %v13087_v61 = vld [vmem:[#allocation8 + $0x1978] ss:$72 sps:$4 sm:$0xff]  }
 0x2dc   : > { %6384 = vmatprep.subr.bf16.mxu1 %v13017_v62  ;;  %6242 = vmatprep.subr.bf16.mxu0 %v13256_v51  ;;  %v13095_v62 = vld [vmem:[#allocation8 + $0x1a0c] ss:$72 sps:$4 sm:$0xff]  }
 0x2de   : > { %6243 = vmatpush1.bf16.msra.mxu0 %v13254_v55  ;;  %v13141_v55 = vld [vmem:[#allocation8 + $0x398] ss:$72 sps:$4 sm:$0xff]  }
 0x2df   : > { %6385 = vmatpush1.bf16.msra.mxu1 %v13015_v1  ;;  %6244 = vmatprep.subr.bf16.mxu0 %v13262_v57  ;;  %v13093_v1 = vld [vmem:[#allocation8 + $0x1a08] ss:$72 sps:$4 sm:$0xff]  }
 0x2e0   : > { %6386 = vmatprep.subr.bf16.mxu1 %v13023_v2  ;;  %v13101_v2 = vld [vmem:[#allocation8 + $0x1a9c] ss:$72 sps:$4 sm:$0xff]  }
 0x2e2   : > { %6245 = vmatpush1.bf16.msra.mxu0 %v13260_v43 }
 0x2e3   : > { %6387 = vmatpush1.bf16.msra.mxu1 %v13021_v5  ;;  %6246 = vmatprep.subr.bf16.mxu0 %v13268_v60  ;;  %v13099_v5 = vld [vmem:[#allocation8 + $0x1a98] ss:$72 sps:$4 sm:$0xff]   ;;  %v13328_v60 = vld [vmem:[#allocation8 + $0x16a4] ss:$72 sps:$4 sm:$0xff]  }
 0x2e4   : > { %6388 = vmatprep.subr.bf16.mxu1 %v13029_v6  ;;  %v13107_v6 = vld [vmem:[#allocation8 + $0x3c] ss:$72 sps:$4 sm:$0xff]  }
 0x2e6   : > { %6247 = vmatpush1.bf16.msra.mxu0 %v13266_v63  ;;  %v13326_v63 = vld [vmem:[#allocation8 + $0x16a0] ss:$72 sps:$4 sm:$0xff]  }
 0x2e7   : > { %6389 = vmatpush1.bf16.msra.mxu1 %v13027_v9  ;;  %6248 = vmatprep.subr.bf16.mxu0 %v13274_v0  ;;  %v13105_v9 = vld [vmem:[#allocation8 + $0x38] ss:$72 sps:$4 sm:$0xff]   ;;  %v13334_v0 = vld [vmem:[#allocation8 + $0x1734] ss:$72 sps:$4 sm:$0xff]  }
 0x2e8   : > { %6390 = vmatprep.subr.bf16.mxu1 %v13035_v10  ;;  %v13113_v10 = vld [vmem:[#allocation8 + $0xcc] ss:$72 sps:$4 sm:$0xff]  }
 0x2ea   : > { %6249 = vmatpush1.bf16.msra.mxu0 %v13272_v3  ;;  %v13332_v3 = vld [vmem:[#allocation8 + $0x1730] ss:$72 sps:$4 sm:$0xff]  }
 0x2eb   : > { %6391 = vmatpush1.bf16.msra.mxu1 %v13033_v12  ;;  %6259 = vmatprep.subr.bf16.mxu0 %v13280_v4  ;;  %v13111_v12 = vld [vmem:[#allocation8 + $0xc8] ss:$72 sps:$4 sm:$0xff]   ;;  %v13340_v4 = vld [vmem:[#allocation8 + $0x17c4] ss:$72 sps:$4 sm:$0xff]  }
 0x2ec   : > { %6392 = vmatprep.subr.bf16.mxu1 %v13041_v13  ;;  %v13119_v13 = vld [vmem:[#allocation8 + $0x15c] ss:$72 sps:$4 sm:$0xff]  }
 0x2ed   : > { %6251 = vmatmul.mubr.bf16.vlgmr.msra.gmra.mrb[8].mxu0 %v14823_v47 }
 0x2ee   : > { %6260 = vmatpush1.bf16.msra.mxu0 %v13278_v7  ;;  %6291 = vmatprep.mubr.bf16.mxu0 %v14827_v49  ;;  %v13160_v7 = vld [vmem:[#allocation8 + $0x548] ss:$72 sps:$4 sm:$0xff]  }
 0x2ef   : > { %6393 = vmatpush1.bf16.msra.mxu1 %v13039_v18  ;;  %6261 = vmatprep.subr.bf16.mxu0 %v13286_v8  ;;  %v13117_v18 = vld [vmem:[#allocation8 + $0x158] ss:$72 sps:$4 sm:$0xff]   ;;  %v14904_v8 = vld [vmem:[#allocation2] sm:$0xf] }
 0x2f0   : > { %6394 = vmatprep.subr.bf16.mxu1 %v13047_v19  ;;  %v13125_v19 = vld [vmem:[#allocation8 + $0x1ec] ss:$72 sps:$4 sm:$0xff]  }
 0x2f2   : > { %6262 = vmatpush1.bf16.msra.mxu0 %v13284_v27  ;;  %v13346_v27 = vld [vmem:[#allocation8 + $0x1854] ss:$72 sps:$4 sm:$0xff]  }
 0x2f3   : > { %6395 = vmatpush1.bf16.msra.mxu1 %v13045_v23  ;;  %6263 = vmatprep.subr.bf16.mxu0 %v13292_v11  ;;  %v13123_v23 = vld [vmem:[#allocation8 + $0x1e8] ss:$72 sps:$4 sm:$0xff]   ;;  %v11605_v11 = vcombine.low %v14904_v8, %v14904_v8 }
 0x2f4   : > { %6396 = vmatprep.subr.bf16.mxu1 %v13053_v24  ;;  %v13131_v24 = vld [vmem:[#allocation8 + $0x27c] ss:$72 sps:$4 sm:$0xff]  }
 0x2f6   : > { %6264 = vmatpush1.bf16.msra.mxu0 %v13290_v15  ;;  %v13344_v15 = vld [vmem:[#allocation8 + $0x1850] ss:$72 sps:$4 sm:$0xff]  }
 0x2f7   : > { %6397 = vmatpush1.bf16.msra.mxu1 %v13051_v30  ;;  %6265 = vmatprep.subr.bf16.mxu0 %v13298_v16  ;;  %v13129_v30 = vld [vmem:[#allocation8 + $0x278] ss:$72 sps:$4 sm:$0xff]   ;;  %v13352_v16 = vld [vmem:[#allocation8 + $0x18e4] ss:$72 sps:$4 sm:$0xff]  }
 0x2f8   : > { %6398 = vmatprep.subr.bf16.mxu1 %v13059_v31  ;;  %v1280_v31 = vsub.s32 6, %v14854_v22 }
 0x2fa   : > { %6266 = vmatpush1.bf16.msra.mxu0 %v13296_v20  ;;  %v1281_v38 = vrot.slane %v14892_v37, %v1280_v31  ;;  %v13350_v20 = vld [vmem:[#allocation8 + $0x18e0] ss:$72 sps:$4 sm:$0xff]  }
 0x2fb   : > { %6399 = vmatpush1.bf16.msra.mxu1 %v13057_v34  ;;  %6267 = vmatprep.subr.bf16.mxu0 %v13304_v21  ;;  %v13308_v34 = vld [vmem:[#allocation8 + $0x14f0] ss:$72 sps:$4 sm:$0xff]   ;;  %v13358_v21 = vld [vmem:[#allocation8 + $0x1974] ss:$72 sps:$4 sm:$0xff]  }
 0x2fc   : > { %6400 = vmatprep.subr.bf16.mxu1 %v13065_v36  ;;  %v13316_v36 = vld [vmem:[#allocation8 + $0x1584] ss:$72 sps:$4 sm:$0xff]  }
 0x2fe   : > { %6268 = vmatpush1.bf16.msra.mxu0 %v13302_v25  ;;  %v13356_v25 = vld [vmem:[#allocation8 + $0x1970] ss:$72 sps:$4 sm:$0xff]  }
 0x2ff   : > { %6401 = vmatpush1.bf16.msra.mxu1 %v13063_v40  ;;  %6269 = vmatprep.subr.bf16.mxu0 %v13310_v26  ;;  %v13135_v40 = vld [vmem:[#allocation8 + $0x308] ss:$72 sps:$4 sm:$0xff]   ;;  %v13364_v26 = vld [vmem:[#allocation8 + $0x1a04] ss:$72 sps:$4 sm:$0xff]  }
 0x300   : > { %6402 = vmatprep.subr.bf16.mxu1 %v13071_v42  ;;  %v1285_v42 = vrot.slane %v14892_v37, %v1284_v32 }
 0x302   : > { %6270 = vmatpush1.bf16.msra.mxu0 %v13308_v34  ;;  %v13362_v34 = vld [vmem:[#allocation8 + $0x1a00] ss:$72 sps:$4 sm:$0xff]  }
 0x303   : > { %6403 = vmatpush1.bf16.msra.mxu1 %v13069_v46  ;;  %v13322_v46 = vld [vmem:[#allocation8 + $0x1614] ss:$72 sps:$4 sm:$0xff]   ;;  %6271 = vmatprep.subr.bf16.mxu0 %v13316_v36 }
 0x304   : > { %6404 = vmatprep.subr.bf16.mxu1 %v13077_v48  ;;  %v13370_v36 = vld [vmem:[#allocation8 + $0x1a94] ss:$72 sps:$4 sm:$0xff]  }
 0x306   : > { %6272 = vmatpush1.bf16.msra.mxu0 %v13314_v45  ;;  %v13197_v45 = vld [vmem:[#allocation8 + $0x8a8] ss:$72 sps:$4 sm:$0xff]  }
 0x307   : > { %6405 = vmatpush1.bf16.msra.mxu1 %v13075_v52  ;;  %6273 = vmatprep.subr.bf16.mxu0 %v13322_v46  ;;  %v13205_v46 = vld [vmem:[#allocation8 + $0x93c] ss:$72 sps:$4 sm:$0xff]  }
 0x308   : > { %6406 = vmatprep.subr.bf16.mxu1 %v13083_v35 }
 0x30b   : > { %6407 = vmatpush1.bf16.msra.mxu1 %v13081_v58  ;;  %v13149_v58 = vld [vmem:[#allocation8 + $0x42c] ss:$72 sps:$4 sm:$0xff]  }
 0x30c   : > { %6408 = vmatprep.subr.bf16.mxu1 %v13089_v59  ;;  %v13320_v59 = vld [vmem:[#allocation8 + $0x1610] ss:$72 sps:$4 sm:$0xff]  }
 0x30d   : > { %6274 = vmatpush1.bf16.msra.mxu0 %v13320_v59  ;;  %v13386_v59 = vld [vmem:[#allocation8 + $0x150] ss:$72 sps:$4 sm:$0xff]  }
 0x30e   : > { %6275 = vmatprep.subr.bf16.mxu0 %v13328_v60  ;;  %v13215_v60 = vld [vmem:[#allocation8 + $0xa58] ss:$72 sps:$4 sm:$0xff]  }
 0x30f   : > { %6409 = vmatpush1.bf16.msra.mxu1 %v13087_v61  ;;  %v13147_v61 = vld [vmem:[#allocation8 + $0x428] ss:$72 sps:$4 sm:$0xff]  }
 0x310   : > { %6410 = vmatprep.subr.bf16.mxu1 %v13095_v62  ;;  %v13155_v62 = vld [vmem:[#allocation8 + $0x4bc] ss:$72 sps:$4 sm:$0xff]  }
 0x311   : > { %6276 = vmatpush1.bf16.msra.mxu0 %v13326_v63  ;;  %v13397_v63 = vld [vmem:[#allocation8 + $0x274] ss:$72 sps:$4 sm:$0xff]  }
 0x312   : > { %6277 = vmatprep.subr.bf16.mxu0 %v13334_v0  ;;  %v13221_v0 = vld [vmem:[#allocation8 + $0xae8] ss:$72 sps:$4 sm:$0xff]  }
 0x313   : > { %6411 = vmatpush1.bf16.msra.mxu1 %v13093_v1  ;;  %v13153_v1 = vld [vmem:[#allocation8 + $0x4b8] ss:$72 sps:$4 sm:$0xff]  }
 0x314   : > { %6412 = vmatprep.subr.bf16.mxu1 %v13101_v2  ;;  %v13162_v2 = vld [vmem:[#allocation8 + $0x54c] ss:$72 sps:$4 sm:$0xff]  }
 0x315   : > { %6278 = vmatpush1.bf16.msra.mxu0 %v13332_v3  ;;  %v13395_v3 = vld [vmem:[#allocation8 + $0x270] ss:$72 sps:$4 sm:$0xff]  }
 0x316   : > { %6279 = vmatprep.subr.bf16.mxu0 %v13340_v4  ;;  %v14918_v4 = vsub.s32 5, %v14854_v22 }
 0x317   : > { %6413 = vmatpush1.bf16.msra.mxu1 %v13099_v5 }
 0x318   : > { %6546 = vmatprep.subr.bf16.mxu1 %v13107_v6 }
 0x31a   : > { %6415 = vmatmul.mubr.bf16.vlgmr.msra.gmra.mrb[8].mxu1 %v14835_v53 }
 0x31b   : > { %6547 = vmatpush1.bf16.msra.mxu1 %v13105_v9  ;;  %6578 = vmatprep.mubr.bf16.mxu1 %v14803_v14  ;;  %v13169_v9 = vld [vmem:[#allocation8 + $0x5dc] ss:$72 sps:$4 sm:$0xff]  }
 0x31c   : > { %6548 = vmatprep.subr.bf16.mxu1 %v13113_v10  ;;  %v13338_v10 = vld [vmem:[#allocation8 + $0x17c0] ss:$72 sps:$4 sm:$0xff]  }
 0x31d   : > { %6280 = vmatpush1.bf16.msra.mxu0 %v13338_v10  ;;  %v13235_v10 = vld [vmem:[#allocation8 + $0xc0c] ss:$72 sps:$4 sm:$0xff]  }
 0x31e   : > { %6281 = vmatprep.subr.bf16.mxu0 %v13346_v27  ;;  %v1277_v27 = vrot.slane %v14892_v37, %v14918_v4 }
 0x31f   : > { %6549 = vmatpush1.bf16.msra.mxu1 %v13111_v12  ;;  %v13167_v12 = vld [vmem:[#allocation8 + $0x5d8] ss:$72 sps:$4 sm:$0xff]  }
 0x320   : > { %6550 = vmatprep.subr.bf16.mxu1 %v13119_v13  ;;  %v13175_v13 = vld [vmem:[#allocation8 + $0x66c] ss:$72 sps:$4 sm:$0xff]  }
 0x321   : > { %6282 = vmatpush1.bf16.msra.mxu0 %v13344_v15  ;;  %v13233_v15 = vld [vmem:[#allocation8 + $0xc08] ss:$72 sps:$4 sm:$0xff]  }
 0x322   : > { %6283 = vmatprep.subr.bf16.mxu0 %v13352_v16 }
 0x323   : > { %6551 = vmatpush1.bf16.msra.mxu1 %v13117_v18  ;;  %v13173_v18 = vld [vmem:[#allocation8 + $0x668] ss:$72 sps:$4 sm:$0xff]  }
 0x324   : > { %6552 = vmatprep.subr.bf16.mxu1 %v13125_v19  ;;  %v13181_v19 = vld [vmem:[#allocation8 + $0x6fc] ss:$72 sps:$4 sm:$0xff]  }
 0x325   : > { %6284 = vmatpush1.bf16.msra.mxu0 %v13350_v20 }
 0x326   : > { %6285 = vmatprep.subr.bf16.mxu0 %v13358_v21 }
 0x327   : > { %6553 = vmatpush1.bf16.msra.mxu1 %v13123_v23  ;;  %v13179_v23 = vld [vmem:[#allocation8 + $0x6f8] ss:$72 sps:$4 sm:$0xff]  }
 0x328   : > { %6554 = vmatprep.subr.bf16.mxu1 %v13131_v24  ;;  %v13187_v24 = vld [vmem:[#allocation8 + $0x78c] ss:$72 sps:$4 sm:$0xff]  }
 0x329   : > { %6286 = vmatpush1.bf16.msra.mxu0 %v13356_v25  ;;  %v13406_v25 = vld [vmem:[#allocation8 + $0x424] ss:$72 sps:$4 sm:$0xff]  }
 0x32a   : > { %6287 = vmatprep.subr.bf16.mxu0 %v13364_v26 }
 0x32b   : > { %6555 = vmatpush1.bf16.msra.mxu1 %v13129_v30  ;;  %v13185_v30 = vld [vmem:[#allocation8 + $0x788] ss:$72 sps:$4 sm:$0xff]  }
 0x32c   : > { %6556 = vmatprep.subr.bf16.mxu1 %v13137_v33  ;;  %v13193_v33 = vld [vmem:[#allocation8 + $0x81c] ss:$72 sps:$4 sm:$0xff]  }
 0x32d   : > { %v6170_v48 = vpop.f32.mrb[4].mxu1  ;;  %6288 = vmatpush1.bf16.msra.mxu0 %v13362_v34  ;;  %v13409_v34 = vld [vmem:[#allocation8 + $0x4b4] ss:$72 sps:$4 sm:$0xff]  }
 0x32e   : > { %v12149_v50 = vadd.f32 %v6170_v48, %v1281_v38  ;;  %v6172_v51 = vpop.f32.mrb[5].mxu1  ;;  %v13191_v38 = vld [vmem:[#allocation8 + $0x818] ss:$72 sps:$4 sm:$0xff]   ;;  %6289 = vmatprep.subr.bf16.mxu0 %v13370_v36  ;;  %v13245_v36 = vld [vmem:[#allocation8 + $0xd28] ss:$72 sps:$4 sm:$0xff]  }
 0x32f   : > { %v12150_v52 = vadd.f32 %v6172_v51, %v1285_v42  ;;  %v6174_v35 = vpop.f32.mrb[6].mxu1  ;;  %6557 = vmatpush1.bf16.msra.mxu1 %v13135_v40  ;;  %v13199_v40 = vld [vmem:[#allocation8 + $0x8ac] ss:$72 sps:$4 sm:$0xff]   ;;  %v13368_v42 = vld [vmem:[#allocation8 + $0x1a90] ss:$72 sps:$4 sm:$0xff]  }
 0x330   : > { %v6175_v57 = vpop.f32.mrb[7].mxu1  ;;  %6558 = vmatprep.subr.bf16.mxu1 %v13143_v44  ;;  %v13376_v44 = vld [vmem:[#allocation8 + $0x34] ss:$72 sps:$4 sm:$0xff]   ;;  %v13374_v48 = vld [vmem:[#allocation8 + $0x30] ss:$72 sps:$4 sm:$0xff]  }
 0x331   : > { %v11942_v43 = vpack.c.bf16 %v12150_v52, %v12149_v50  ;;  %6290 = vmatpush1.bf16.msra.mxu0 %v13368_v42  ;;  %v13382_v50 = vld [vmem:[#allocation8 + $0xc4] ss:$72 sps:$4 sm:$0xff]   ;;  %v13203_v51 = vld [vmem:[#allocation8 + $0x938] ss:$72 sps:$4 sm:$0xff]   ;;  %v13209_v57 = vld [vmem:[#allocation8 + $0x9c8] ss:$72 sps:$4 sm:$0xff]  }
 0x332   : > { %6423 = vmatprep.subr.bf16.mxu0 %v13376_v44  ;;  %v13211_v52 = vld [vmem:[#allocation8 + $0x9cc] ss:$72 sps:$4 sm:$0xff]   ;;  %v13380_v35 = vld [vmem:[#allocation8 + $0xc0] ss:$72 sps:$4 sm:$0xff]  }
 0x333   : > { %6867 = vst [vmem:[#allocation2 + $0x18] sm:$0xff] %v11942_v43  ;;  %6559 = vmatpush1.bf16.msra.mxu1 %v13141_v55  ;;  %v13388_v55 = vld [vmem:[#allocation8 + $0x154] ss:$72 sps:$4 sm:$0xff]   ;;  %v13394_v43 = vld [vmem:[#allocation8 + $0x1e4] ss:$72 sps:$4 sm:$0xff]  }
 0x334   : > { %6560 = vmatprep.subr.bf16.mxu1 %v13149_v58  ;;  %6292 = vmatmul.mubr.bf16.vlgmr.msra.gmra.mrb[8].mxu0 %v14835_v53  ;;  %v13217_v58 = vld [vmem:[#allocation8 + $0xa5c] ss:$72 sps:$4 sm:$0xff]   ;;  %v13251_v44 = vld [vmem:[#allocation8 + $0xdb8] ss:$72 sps:$4 sm:$0xff]  }
 0x335   : > { %6424 = vmatpush1.bf16.msra.mxu0 %v13374_v48  ;;  %6455 = vmatprep.mubr.bf16.mxu0 %v14803_v14  ;;  %v13412_v42 = vld [vmem:[#allocation8 + $0x544] ss:$72 sps:$4 sm:$0xff]   ;;  %v13415_v48 = vld [vmem:[#allocation8 + $0x5d4] ss:$72 sps:$4 sm:$0xff]  }
 0x336   : > { %6425 = vmatprep.subr.bf16.mxu0 %v13382_v50  ;;  %v13257_v50 = vld [vmem:[#allocation8 + $0xe48] ss:$72 sps:$4 sm:$0xff]  }
 0x337   : > { %6561 = vmatpush1.bf16.msra.mxu1 %v13147_v61  ;;  %v13223_v61 = vld [vmem:[#allocation8 + $0xaec] ss:$72 sps:$4 sm:$0xff]  }
 0x338   : > { %6562 = vmatprep.subr.bf16.mxu1 %v13155_v62  ;;  %v13392_v62 = vld [vmem:[#allocation8 + $0x1e0] ss:$72 sps:$4 sm:$0xff]  }
 0x339   : > { %6426 = vmatpush1.bf16.msra.mxu0 %v13380_v35  ;;  %v13418_v35 = vld [vmem:[#allocation8 + $0x664] ss:$72 sps:$4 sm:$0xff]  }
 0x33a   : > { %v14900_v5 = vld [vmem:[#allocation2 + $0x18] sm:$0xf]  ;;  %6427 = vmatprep.subr.bf16.mxu0 %v13388_v55 }
 0x33b   : > { %6563 = vmatpush1.bf16.msra.mxu1 %v13153_v1  ;;  %v11606_v6 = vcombine.low %v14900_v5, %v14900_v5  ;;  %v14915_v1 = vsub.s32 4, %v14854_v22  ;;  %v13263_v55 = vld [vmem:[#allocation8 + $0xed8] ss:$72 sps:$4 sm:$0xff]  }
 0x33c   : > { %6564 = vmatprep.subr.bf16.mxu1 %v13162_v2  ;;  %v13229_v2 = vld [vmem:[#allocation8 + $0xb7c] ss:$72 sps:$4 sm:$0xff]  }
 0x33d   : > { %6996 = vrot.lane.b32.xlu1 %v11606_v6, %s14475_s21  ;;  %6428 = vmatpush1.bf16.msra.mxu0 %v13386_v59  ;;  %v13400_v6 = vld [vmem:[#allocation8 + $0x304] ss:$72 sps:$4 sm:$0xff]   ;;  %v13421_v59 = vld [vmem:[#allocation8 + $0x6f4] ss:$72 sps:$4 sm:$0xff]  }
 0x33e   : > { %6429 = vmatprep.subr.bf16.mxu0 %v13394_v43  ;;  %v13269_v43 = vld [vmem:[#allocation8 + $0xf68] ss:$72 sps:$4 sm:$0xff]  }
 0x33f   : > { %6565 = vmatpush1.bf16.msra.mxu1 %v13160_v7  ;;  %v13227_v7 = vld [vmem:[#allocation8 + $0xb78] ss:$72 sps:$4 sm:$0xff]  }
 0x340   : > { %6566 = vmatprep.subr.bf16.mxu1 %v13169_v9  ;;  %v1273_v9 = vrot.slane %v14892_v37, %v14915_v1  ;;  %v13239_v37 = vld [vmem:[#allocation8 + $0xc98] ss:$72 sps:$4 sm:$0xff]  }
 0x341   : > { %6991 = vrot.lane.b32.xlu1 %v11605_v11, %s14475_s21  ;;  %6430 = vmatpush1.bf16.msra.mxu0 %v13392_v62  ;;  %v13398_v11 = vld [vmem:[#allocation8 + $0x300] ss:$72 sps:$4 sm:$0xff]   ;;  %v13424_v62 = vld [vmem:[#allocation8 + $0x784] ss:$72 sps:$4 sm:$0xff]  }
 0x342   : > { %6431 = vmatprep.subr.bf16.mxu0 %v13397_v63  ;;  %v13275_v63 = vld [vmem:[#allocation8 + $0xff8] ss:$72 sps:$4 sm:$0xff]  }
 0x343   : > { %6567 = vmatpush1.bf16.msra.mxu1 %v13167_v12  ;;  %v13403_v12 = vld [vmem:[#allocation8 + $0x394] ss:$72 sps:$4 sm:$0xff]  }
 0x344   : > { %6568 = vmatprep.subr.bf16.mxu1 %v13175_v13  ;;  %v6047_v13 = vpop.f32.mrb[4].mxu0 }
 0x345   : > { %6432 = vmatpush1.bf16.msra.mxu0 %v13395_v3  ;;  %v12147_v16 = vadd.f32 %v6047_v13, %v1273_v9  ;;  %v13427_v3 = vld [vmem:[#allocation8 + $0x814] ss:$72 sps:$4 sm:$0xff]   ;;  %v13425_v9 = vld [vmem:[#allocation8 + $0x810] ss:$72 sps:$4 sm:$0xff]  }
 0x346   : > { %6433 = vmatprep.subr.bf16.mxu0 %v13400_v6  ;;  %v13281_v6 = vld [vmem:[#allocation8 + $0x1088] ss:$72 sps:$4 sm:$0xff]   ;;  %v13433_v13 = vld [vmem:[#allocation8 + $0x934] ss:$72 sps:$4 sm:$0xff]  }
 0x347   : > { %6569 = vmatpush1.bf16.msra.mxu1 %v13173_v18  ;;  %v6049_v18 = vpop.f32.mrb[5].mxu0 }
 0x348   : > { %6570 = vmatprep.subr.bf16.mxu1 %v13181_v19  ;;  %v13241_v19 = vld [vmem:[#allocation8 + $0xc9c] ss:$72 sps:$4 sm:$0xff]   ;;  %v12148_v20 = vadd.f32 %v6049_v18, %v1277_v27  ;;  %v6051_v21 = vpop.f32.mrb[6].mxu0  ;;  %v13287_v27 = vld [vmem:[#allocation8 + $0x1118] ss:$72 sps:$4 sm:$0xff]  }
 0x349   : > { %6434 = vmatpush1.bf16.msra.mxu0 %v13398_v11  ;;  %v13295_v11 = vld [vmem:[#allocation8 + $0x11ac] ss:$72 sps:$4 sm:$0xff]   ;;  %v13431_v18 = vld [vmem:[#allocation8 + $0x930] ss:$72 sps:$4 sm:$0xff]  }
 0x34a   : > { %6435 = vmatprep.subr.bf16.mxu0 %v13403_v12  ;;  %v11941_v26 = vpack.c.bf16 %v12148_v20, %v12147_v16  ;;  %v13428_v12 = vld [vmem:[#allocation8 + $0x8a0] ss:$72 sps:$4 sm:$0xff]   ;;  %v13301_v16 = vld [vmem:[#allocation8 + $0x123c] ss:$72 sps:$4 sm:$0xff]   ;;  %v13307_v21 = vld [vmem:[#allocation8 + $0x12cc] ss:$72 sps:$4 sm:$0xff]  }
 0x34b   : > { %6571 = vmatpush1.bf16.msra.mxu1 %v13179_v23  ;;  %v13401_v23 = vld [vmem:[#allocation8 + $0x390] ss:$72 sps:$4 sm:$0xff]  }
 0x34c   : > { %6572 = vmatprep.subr.bf16.mxu1 %v13187_v24  ;;  %v6052_v24 = vpop.f32.mrb[7].mxu0  ;;  %6866 = vst [vmem:[#allocation2 + $0x10] sm:$0xff] %v11941_v26  ;;  %v13299_v20 = vld [vmem:[#allocation8 + $0x1238] ss:$72 sps:$4 sm:$0xff]   ;;  %v13313_v26 = vld [vmem:[#allocation8 + $0x135c] ss:$72 sps:$4 sm:$0xff]  }
 0x34d   : > { %6436 = vmatpush1.bf16.msra.mxu0 %v13401_v23  ;;  %v13434_v23 = vld [vmem:[#allocation8 + $0x9c0] ss:$72 sps:$4 sm:$0xff]   ;;  %v13439_v24 = vld [vmem:[#allocation8 + $0xa54] ss:$72 sps:$4 sm:$0xff]  }
 0x34e   : > { %6437 = vmatprep.subr.bf16.mxu0 %v13406_v25  ;;  %v13305_v25 = vld [vmem:[#allocation8 + $0x12c8] ss:$72 sps:$4 sm:$0xff]  }
 0x34f   : > { %6573 = vmatpush1.bf16.msra.mxu1 %v13185_v30  ;;  %v13247_v30 = vld [vmem:[#allocation8 + $0xd2c] ss:$72 sps:$4 sm:$0xff]  }
 0x350   : > { %6574 = vmatprep.subr.bf16.mxu1 %v13193_v33  ;;  %v13404_v33 = vld [vmem:[#allocation8 + $0x420] ss:$72 sps:$4 sm:$0xff]  }
 0x351   : > { %6438 = vmatpush1.bf16.msra.mxu0 %v13404_v33  ;;  %v13311_v33 = vld [vmem:[#allocation8 + $0x1358] ss:$72 sps:$4 sm:$0xff]  }
 0x352   : > { %6439 = vmatprep.subr.bf16.mxu0 %v13409_v34  ;;  %v13319_v34 = vld [vmem:[#allocation8 + $0x13ec] ss:$72 sps:$4 sm:$0xff]  }
 0x353   : > { %6575 = vmatpush1.bf16.msra.mxu1 %v13191_v38  ;;  %v13253_v38 = vld [vmem:[#allocation8 + $0xdbc] ss:$72 sps:$4 sm:$0xff]  }
 0x354   : > { %6576 = vmatprep.subr.bf16.mxu1 %v13199_v40  ;;  %v13407_v40 = vld [vmem:[#allocation8 + $0x4b0] ss:$72 sps:$4 sm:$0xff]  }
 0x355   : > { %6440 = vmatpush1.bf16.msra.mxu0 %v13407_v40  ;;  %v13317_v40 = vld [vmem:[#allocation8 + $0x13e8] ss:$72 sps:$4 sm:$0xff]  }
 0x356   : > { %6441 = vmatprep.subr.bf16.mxu0 %v13412_v42  ;;  %v13325_v42 = vld [vmem:[#allocation8 + $0x147c] ss:$72 sps:$4 sm:$0xff]  }
 0x357   : > { %6577 = vmatpush1.bf16.msra.mxu1 %v13197_v45  ;;  %v13259_v45 = vld [vmem:[#allocation8 + $0xe4c] ss:$72 sps:$4 sm:$0xff]  }
 0x358   : > { %6587 = vmatprep.subr.bf16.mxu1 %v13205_v46  ;;  %v13410_v46 = vld [vmem:[#allocation8 + $0x540] ss:$72 sps:$4 sm:$0xff]  }
 0x359   : > { %6442 = vmatpush1.bf16.msra.mxu0 %v13410_v46  ;;  %v13323_v46 = vld [vmem:[#allocation8 + $0x1478] ss:$72 sps:$4 sm:$0xff]  }
 0x35a   : > { %6579 = vmatmul.mubr.bf16.vlgmr.msra.gmra.mrb[12].mxu1 %v14810_v39  ;;  %6443 = vmatprep.subr.bf16.mxu0 %v13415_v48  ;;  %v13331_v48 = vld [vmem:[#allocation8 + $0x150c] ss:$72 sps:$4 sm:$0xff]  }
 0x35b   : > { %6588 = vmatpush1.bf16.msra.mxu1 %v13203_v51  ;;  %6619 = vmatprep.mubr.bf16.mxu1 %v14814_v41  ;;  %v13265_v51 = vld [vmem:[#allocation8 + $0xedc] ss:$72 sps:$4 sm:$0xff]  }
 0x35c   : > { %6589 = vmatprep.subr.bf16.mxu1 %v13211_v52  ;;  %v13413_v52 = vld [vmem:[#allocation8 + $0x5d0] ss:$72 sps:$4 sm:$0xff]  }
 0x35d   : > { %6444 = vmatpush1.bf16.msra.mxu0 %v13413_v52  ;;  %v13329_v52 = vld [vmem:[#allocation8 + $0x1508] ss:$72 sps:$4 sm:$0xff]  }
 0x35e   : > { %6445 = vmatprep.subr.bf16.mxu0 %v13418_v35  ;;  %v13337_v35 = vld [vmem:[#allocation8 + $0x159c] ss:$72 sps:$4 sm:$0xff]  }
 0x35f   : > { %6590 = vmatpush1.bf16.msra.mxu1 %v13209_v57  ;;  %v13271_v57 = vld [vmem:[#allocation8 + $0xf6c] ss:$72 sps:$4 sm:$0xff]  }
 0x360   : > { %6591 = vmatprep.subr.bf16.mxu1 %v13217_v58  ;;  %v13416_v58 = vld [vmem:[#allocation8 + $0x660] ss:$72 sps:$4 sm:$0xff]  }
 0x361   : > { %6446 = vmatpush1.bf16.msra.mxu0 %v13416_v58  ;;  %v13335_v58 = vld [vmem:[#allocation8 + $0x1598] ss:$72 sps:$4 sm:$0xff]  }
 0x362   : > { %6447 = vmatprep.subr.bf16.mxu0 %v13421_v59  ;;  %v13343_v59 = vld [vmem:[#allocation8 + $0x162c] ss:$72 sps:$4 sm:$0xff]  }
 0x363   : > { %6592 = vmatpush1.bf16.msra.mxu1 %v13215_v60  ;;  %v13277_v60 = vld [vmem:[#allocation8 + $0xffc] ss:$72 sps:$4 sm:$0xff]  }
 0x364   : > { %6593 = vmatprep.subr.bf16.mxu1 %v13223_v61  ;;  %v13419_v61 = vld [vmem:[#allocation8 + $0x6f0] ss:$72 sps:$4 sm:$0xff]  }
 0x365   : > { %6448 = vmatpush1.bf16.msra.mxu0 %v13419_v61  ;;  %v13341_v61 = vld [vmem:[#allocation8 + $0x1628] ss:$72 sps:$4 sm:$0xff]  }
 0x366   : > { %6449 = vmatprep.subr.bf16.mxu0 %v13424_v62  ;;  %v13349_v62 = vld [vmem:[#allocation8 + $0x16bc] ss:$72 sps:$4 sm:$0xff]  }
 0x367   : > { %6594 = vmatpush1.bf16.msra.mxu1 %v13221_v0  ;;  %v13283_v0 = vld [vmem:[#allocation8 + $0x108c] ss:$72 sps:$4 sm:$0xff]  }
 0x368   : > { %6595 = vmatprep.subr.bf16.mxu1 %v13229_v2  ;;  %v13422_v2 = vld [vmem:[#allocation8 + $0x780] ss:$72 sps:$4 sm:$0xff]  }
 0x369   : > { %6450 = vmatpush1.bf16.msra.mxu0 %v13422_v2  ;;  %v13347_v2 = vld [vmem:[#allocation8 + $0x16b8] ss:$72 sps:$4 sm:$0xff]  }
 0x36a   : > { %6451 = vmatprep.subr.bf16.mxu0 %v13427_v3  ;;  %v13355_v3 = vld [vmem:[#allocation8 + $0x174c] ss:$72 sps:$4 sm:$0xff]  }
 0x36b   : > { %6596 = vmatpush1.bf16.msra.mxu1 %v13227_v7  ;;  %v13289_v7 = vld [vmem:[#allocation8 + $0x111c] ss:$72 sps:$4 sm:$0xff]  }
 0x36c   : > { %6597 = vmatprep.subr.bf16.mxu1 %v13235_v10  ;;  %v13430_v10 = vld [vmem:[#allocation8 + $0x8a4] ss:$72 sps:$4 sm:$0xff]  }
 0x36d   : > { %6452 = vmatpush1.bf16.msra.mxu0 %v13425_v9  ;;  %v13353_v9 = vld [vmem:[#allocation8 + $0x1748] ss:$72 sps:$4 sm:$0xff]  }
 0x36e   : > { %6453 = vmatprep.subr.bf16.mxu0 %v13430_v10  ;;  %v13361_v10 = vld [vmem:[#allocation8 + $0x17dc] ss:$72 sps:$4 sm:$0xff]  }
 0x36f   : > { %6598 = vmatpush1.bf16.msra.mxu1 %v13233_v15  ;;  %v13293_v15 = vld [vmem:[#allocation8 + $0x11a8] ss:$72 sps:$4 sm:$0xff]  }
 0x370   : > { %6599 = vmatprep.subr.bf16.mxu1 %v13241_v19  ;;  %v13436_v19 = vld [vmem:[#allocation8 + $0x9c4] ss:$72 sps:$4 sm:$0xff]  }
 0x371   : > { %6454 = vmatpush1.bf16.msra.mxu0 %v13428_v12  ;;  %v13359_v12 = vld [vmem:[#allocation8 + $0x17d8] ss:$72 sps:$4 sm:$0xff]  }
 0x372   : > { %6464 = vmatprep.subr.bf16.mxu0 %v13433_v13  ;;  %v13367_v13 = vld [vmem:[#allocation8 + $0x186c] ss:$72 sps:$4 sm:$0xff]  }
 0x373   : > { %6600 = vmatpush1.bf16.msra.mxu1 %v13239_v37  ;;  %v13437_v37 = vld [vmem:[#allocation8 + $0xa50] ss:$72 sps:$4 sm:$0xff]  }
 0x374   : > { %6601 = vmatprep.subr.bf16.mxu1 %v13247_v30  ;;  %6456 = vmatmul.mubr.bf16.vlgmr.msra.gmra.mrb[12].mxu0 %v14810_v39  ;;  %v13442_v30 = vld [vmem:[#allocation8 + $0xae4] ss:$72 sps:$4 sm:$0xff]  }
 0x375   : > { %6465 = vmatpush1.bf16.msra.mxu0 %v13431_v18  ;;  %6496 = vmatprep.mubr.bf16.mxu0 %v14814_v41  ;;  %v13365_v18 = vld [vmem:[#allocation8 + $0x1868] ss:$72 sps:$4 sm:$0xff]  }
 0x376   : > { %6466 = vmatprep.subr.bf16.mxu0 %v13436_v19  ;;  %v13373_v19 = vld [vmem:[#allocation8 + $0x18fc] ss:$72 sps:$4 sm:$0xff]  }
 0x377   : > { %6602 = vmatpush1.bf16.msra.mxu1 %v13245_v36  ;;  %v13440_v36 = vld [vmem:[#allocation8 + $0xae0] ss:$72 sps:$4 sm:$0xff]  }
 0x378   : > { %6603 = vmatprep.subr.bf16.mxu1 %v13253_v38  ;;  %v13445_v38 = vld [vmem:[#allocation8 + $0xb74] ss:$72 sps:$4 sm:$0xff]  }
 0x379   : > { %6467 = vmatpush1.bf16.msra.mxu0 %v13434_v23  ;;  %v13371_v23 = vld [vmem:[#allocation8 + $0x18f8] ss:$72 sps:$4 sm:$0xff]  }
 0x37a   : > { %6468 = vmatprep.subr.bf16.mxu0 %v13439_v24  ;;  %v13379_v24 = vld [vmem:[#allocation8 + $0x198c] ss:$72 sps:$4 sm:$0xff]  }
 0x37b   : > { %6604 = vmatpush1.bf16.msra.mxu1 %v13251_v44  ;;  %v13443_v44 = vld [vmem:[#allocation8 + $0xb70] ss:$72 sps:$4 sm:$0xff]  }
 0x37c   : > { %6605 = vmatprep.subr.bf16.mxu1 %v13259_v45  ;;  %v13448_v45 = vld [vmem:[#allocation8 + $0xc04] ss:$72 sps:$4 sm:$0xff]  }
 0x37d   : > { %6469 = vmatpush1.bf16.msra.mxu0 %v13437_v37  ;;  %v13377_v37 = vld [vmem:[#allocation8 + $0x1988] ss:$72 sps:$4 sm:$0xff]  }
 0x37e   : > { %6470 = vmatprep.subr.bf16.mxu0 %v13442_v30  ;;  %v13385_v30 = vld [vmem:[#allocation8 + $0x1a1c] ss:$72 sps:$4 sm:$0xff]  }
 0x37f   : > { %6606 = vmatpush1.bf16.msra.mxu1 %v13257_v50  ;;  %v13446_v50 = vld [vmem:[#allocation8 + $0xc00] ss:$72 sps:$4 sm:$0xff]  }
 0x380   : > { %6607 = vmatprep.subr.bf16.mxu1 %v13265_v51  ;;  %v13451_v51 = vld [vmem:[#allocation8 + $0xc94] ss:$72 sps:$4 sm:$0xff]  }
 0x381   : > { %6471 = vmatpush1.bf16.msra.mxu0 %v13440_v36  ;;  %v13383_v36 = vld [vmem:[#allocation8 + $0x1a18] ss:$72 sps:$4 sm:$0xff]  }
 0x382   : > { %6472 = vmatprep.subr.bf16.mxu0 %v13445_v38  ;;  %v13391_v38 = vld [vmem:[#allocation8 + $0x1aac] ss:$72 sps:$4 sm:$0xff]  }
 0x383   : > { %6608 = vmatpush1.bf16.msra.mxu1 %v13263_v55  ;;  %v13449_v55 = vld [vmem:[#allocation8 + $0xc90] ss:$72 sps:$4 sm:$0xff]  }
 0x384   : > { %6609 = vmatprep.subr.bf16.mxu1 %v13271_v57  ;;  %v13454_v57 = vld [vmem:[#allocation8 + $0xd24] ss:$72 sps:$4 sm:$0xff]  }
 0x385   : > { %6473 = vmatpush1.bf16.msra.mxu0 %v13443_v44  ;;  %v13389_v44 = vld [vmem:[#allocation8 + $0x1aa8] ss:$72 sps:$4 sm:$0xff]  }
 0x386   : > { %6474 = vmatprep.subr.bf16.mxu0 %v13448_v45  ;;  %v13479_v45 = vld [vmem:[#allocation8 + $0x1230] ss:$72 sps:$4 sm:$0xff]  }
 0x387   : > { %6610 = vmatpush1.bf16.msra.mxu1 %v13269_v43  ;;  %v13452_v43 = vld [vmem:[#allocation8 + $0xd20] ss:$72 sps:$4 sm:$0xff]  }
 0x388   : > { %6611 = vmatprep.subr.bf16.mxu1 %v13277_v60  ;;  %v13457_v60 = vld [vmem:[#allocation8 + $0xdb4] ss:$72 sps:$4 sm:$0xff]  }
 0x389   : > { %6475 = vmatpush1.bf16.msra.mxu0 %v13446_v50  ;;  %v13482_v50 = vld [vmem:[#allocation8 + $0x12c0] ss:$72 sps:$4 sm:$0xff]  }
 0x38a   : > { %6476 = vmatprep.subr.bf16.mxu0 %v13451_v51  ;;  %v13487_v51 = vld [vmem:[#allocation8 + $0x1354] ss:$72 sps:$4 sm:$0xff]  }
 0x38b   : > { %6612 = vmatpush1.bf16.msra.mxu1 %v13275_v63  ;;  %v13455_v63 = vld [vmem:[#allocation8 + $0xdb0] ss:$72 sps:$4 sm:$0xff]  }
 0x38c   : > { %6613 = vmatprep.subr.bf16.mxu1 %v13283_v0  ;;  %v13460_v0 = vld [vmem:[#allocation8 + $0xe44] ss:$72 sps:$4 sm:$0xff]  }
 0x38d   : > { %6477 = vmatpush1.bf16.msra.mxu0 %v13449_v55  ;;  %v6885_v55 = vsel %vm6880_vm1, %v14900_v5, 0  ;;  %v13499_v5 = vld [vmem:[#allocation8 + $0x1594] ss:$72 sps:$4 sm:$0xff]  }
 0x38e   : > { %6478 = vmatprep.subr.bf16.mxu0 %v13454_v57  ;;  %v13488_v57 = vld [vmem:[#allocation8 + $0x13e0] ss:$72 sps:$4 sm:$0xff]  }
 0x38f   : > { %6614 = vmatpush1.bf16.msra.mxu1 %v13281_v6  ;;  %v13458_v6 = vld [vmem:[#allocation8 + $0xe40] ss:$72 sps:$4 sm:$0xff]  }
 0x390   : > { %6615 = vmatprep.subr.bf16.mxu1 %v13289_v7  ;;  %v13463_v7 = vld [vmem:[#allocation8 + $0xed4] ss:$72 sps:$4 sm:$0xff]  }
 0x391   : > { %6479 = vmatpush1.bf16.msra.mxu0 %v13452_v43  ;;  %v13496_v43 = vld [vmem:[#allocation8 + $0x1504] ss:$72 sps:$4 sm:$0xff]  }
 0x392   : > { %6480 = vmatprep.subr.bf16.mxu0 %v13457_v60  ;;  %v14939_v60 = vld [vmem:[#allocation10 + $0x8] sm:$0xff] }
 0x393   : > { %6616 = vmatpush1.bf16.msra.mxu1 %v13287_v27  ;;  %v13461_v27 = vld [vmem:[#allocation8 + $0xed0] ss:$72 sps:$4 sm:$0xff]  }
 0x394   : > { %6617 = vmatprep.subr.bf16.mxu1 %v13295_v11  ;;  %v13466_v11 = vld [vmem:[#allocation8 + $0xf64] ss:$72 sps:$4 sm:$0xff]  }
 0x395   : > { %6481 = vmatpush1.bf16.msra.mxu0 %v13455_v63  ;;  %v1301_v63 = vrot.slane %v14939_v60, %v14862_v29 }
 0x396   : > { %6482 = vmatprep.subr.bf16.mxu0 %v13460_v0  ;;  %v13497_v0 = vld [vmem:[#allocation8 + $0x1590] ss:$72 sps:$4 sm:$0xff]  }
 0x397   : > { %6618 = vmatpush1.bf16.msra.mxu1 %v13293_v15  ;;  %v13464_v15 = vld [vmem:[#allocation8 + $0xf60] ss:$72 sps:$4 sm:$0xff]  }
 0x398   : > { %6628 = vmatprep.subr.bf16.mxu1 %v13301_v16  ;;  %v13469_v16 = vld [vmem:[#allocation8 + $0xff4] ss:$72 sps:$4 sm:$0xff]  }
 0x399   : > { %6483 = vmatpush1.bf16.msra.mxu0 %v13458_v6 }
 0x39a   : > { %6620 = vmatmul.mubr.bf16.vlgmr.msra.gmra.mrb[12].mxu1 %v14823_v47  ;;  %6484 = vmatprep.subr.bf16.mxu0 %v13463_v7 }
 0x39b   : > { %6629 = vmatpush1.bf16.msra.mxu1 %v13299_v20  ;;  %6660 = vmatprep.mubr.bf16.mxu1 %v14827_v49  ;;  %v13467_v20 = vld [vmem:[#allocation8 + $0xff0] ss:$72 sps:$4 sm:$0xff]  }
 0x39c   : > { %6630 = vmatprep.subr.bf16.mxu1 %v13307_v21  ;;  %v13472_v21 = vld [vmem:[#allocation8 + $0x1084] ss:$72 sps:$4 sm:$0xff]  }
 0x39d   : > { %6485 = vmatpush1.bf16.msra.mxu0 %v13461_v27  ;;  %v13500_v27 = vld [vmem:[#allocation8 + $0x1620] ss:$72 sps:$4 sm:$0xff]  }
 0x39e   : > { %6486 = vmatprep.subr.bf16.mxu0 %v13466_v11 }
 0x39f   : > { %6631 = vmatpush1.bf16.msra.mxu1 %v13305_v25  ;;  %v13470_v25 = vld [vmem:[#allocation8 + $0x1080] ss:$72 sps:$4 sm:$0xff]  }
 0x3a0   : > { %6632 = vmatprep.subr.bf16.mxu1 %v13313_v26  ;;  %v13475_v26 = vld [vmem:[#allocation8 + $0x1114] ss:$72 sps:$4 sm:$0xff]  }
 0x3a1   : > { %6487 = vmatpush1.bf16.msra.mxu0 %v13464_v15  ;;  %v13508_v15 = vld [vmem:[#allocation8 + $0x1744] ss:$72 sps:$4 sm:$0xff]  }
 0x3a2   : > { %6488 = vmatprep.subr.bf16.mxu0 %v13469_v16  ;;  %v13506_v16 = vld [vmem:[#allocation8 + $0x1740] ss:$72 sps:$4 sm:$0xff]  }
 0x3a3   : > { %6633 = vmatpush1.bf16.msra.mxu1 %v13311_v33  ;;  %v13473_v33 = vld [vmem:[#allocation8 + $0x1110] ss:$72 sps:$4 sm:$0xff]  }
 0x3a4   : > { %6634 = vmatprep.subr.bf16.mxu1 %v13319_v34  ;;  %v13478_v34 = vld [vmem:[#allocation8 + $0x11a4] ss:$72 sps:$4 sm:$0xff]  }
 0x3a5   : > { %6489 = vmatpush1.bf16.msra.mxu0 %v13467_v20  ;;  %v13514_v20 = vld [vmem:[#allocation8 + $0x1864] ss:$72 sps:$4 sm:$0xff]  }
 0x3a6   : > { %6490 = vmatprep.subr.bf16.mxu0 %v13472_v21  ;;  %v13512_v21 = vld [vmem:[#allocation8 + $0x1860] ss:$72 sps:$4 sm:$0xff]  }
 0x3a7   : > { %6635 = vmatpush1.bf16.msra.mxu1 %v13317_v40  ;;  %v13476_v40 = vld [vmem:[#allocation8 + $0x11a0] ss:$72 sps:$4 sm:$0xff]  }
 0x3a8   : > { %6636 = vmatprep.subr.bf16.mxu1 %v13325_v42  ;;  %v13481_v42 = vld [vmem:[#allocation8 + $0x1234] ss:$72 sps:$4 sm:$0xff]  }
 0x3a9   : > { %6491 = vmatpush1.bf16.msra.mxu0 %v13470_v25  ;;  %v13520_v25 = vld [vmem:[#allocation8 + $0x1984] ss:$72 sps:$4 sm:$0xff]  }
 0x3aa   : > { %6492 = vmatprep.subr.bf16.mxu0 %v13475_v26  ;;  %v13518_v26 = vld [vmem:[#allocation8 + $0x1980] ss:$72 sps:$4 sm:$0xff]  }
 0x3ab   : > { %6637 = vmatpush1.bf16.msra.mxu1 %v13323_v46  ;;  %v13484_v46 = vld [vmem:[#allocation8 + $0x12c4] ss:$72 sps:$4 sm:$0xff]  }
 0x3ac   : > { %6638 = vmatprep.subr.bf16.mxu1 %v13331_v48  ;;  %v14476_v48 = vmov 0.0  }
 0x3ad   : > { %6493 = vmatpush1.bf16.msra.mxu0 %v13473_v33  ;;  %v13526_v33 = vld [vmem:[#allocation8 + $0x1aa4] ss:$72 sps:$4 sm:$0xff]  }
 0x3ae   : > { %6494 = vmatprep.subr.bf16.mxu0 %v13478_v34  ;;  %v13524_v34 = vld [vmem:[#allocation8 + $0x1aa0] ss:$72 sps:$4 sm:$0xff]  }
 0x3af   : > { %6639 = vmatpush1.bf16.msra.mxu1 %v13329_v52  ;;  %v13485_v52 = vld [vmem:[#allocation8 + $0x1350] ss:$72 sps:$4 sm:$0xff]  }
 0x3b0   : > { %6640 = vmatprep.subr.bf16.mxu1 %v13337_v35  ;;  %v13490_v35 = vld [vmem:[#allocation8 + $0x13e4] ss:$72 sps:$4 sm:$0xff]  }
 0x3b1   : > { %6495 = vmatpush1.bf16.msra.mxu0 %v13476_v40 }
 0x3b2   : > { %6505 = vmatprep.subr.bf16.mxu0 %v13481_v42 }
 0x3b3   : > { %6641 = vmatpush1.bf16.msra.mxu1 %v13335_v58  ;;  %v13493_v58 = vld [vmem:[#allocation8 + $0x1474] ss:$72 sps:$4 sm:$0xff]  }
 0x3b4   : > { %6642 = vmatprep.subr.bf16.mxu1 %v13343_v59  ;;  %6497 = vmatmul.mubr.bf16.vlgmr.msra.gmra.mrb[12].mxu0 %v14823_v47  ;;  %v13491_v59 = vld [vmem:[#allocation8 + $0x1470] ss:$72 sps:$4 sm:$0xff]  }
 0x3b5   : > { %6506 = vmatpush1.bf16.msra.mxu0 %v13479_v45  ;;  %6537 = vmatprep.mubr.bf16.mxu0 %v14827_v49 }
 0x3b6   : > { %6507 = vmatprep.subr.bf16.mxu0 %v13484_v46 }
 0x3b7   : > { %6643 = vmatpush1.bf16.msra.mxu1 %v13341_v61  ;;  %v13494_v61 = vld [vmem:[#allocation8 + $0x1500] ss:$72 sps:$4 sm:$0xff]  }
 0x3b8   : > { %6644 = vmatprep.subr.bf16.mxu1 %v13349_v62  ;;  %v1297_v62 = vrot.slane %v14939_v60, %v14859_v28 }
 0x3b9   : > { %6508 = vmatpush1.bf16.msra.mxu0 %v13482_v50 }
 0x3ba   : > { %6509 = vmatprep.subr.bf16.mxu0 %v13487_v51 }
 0x3bb   : > { %6645 = vmatpush1.bf16.msra.mxu1 %v13347_v2 }
 0x3bc   : > { %6646 = vmatprep.subr.bf16.mxu1 %v13355_v3 }
 0x3bd   : > { %6510 = vmatpush1.bf16.msra.mxu0 %v13485_v52  ;;  %v1313_v52 = vrot.slane %v14939_v60, %v1280_v31 }
 0x3be   : > { %6511 = vmatprep.subr.bf16.mxu0 %v13490_v35 }
 0x3bf   : > { %6647 = vmatpush1.bf16.msra.mxu1 %v13353_v9 }
 0x3c0   : > { %6648 = vmatprep.subr.bf16.mxu1 %v13361_v10 }
 0x3c1   : > { %6512 = vmatpush1.bf16.msra.mxu0 %v13488_v57 }
 0x3c2   : > { %6513 = vmatprep.subr.bf16.mxu0 %v13493_v58 }
 0x3c3   : > { %6649 = vmatpush1.bf16.msra.mxu1 %v13359_v12  ;;  %v13505_v12 = vld [vmem:[#allocation8 + $0x16b4] ss:$72 sps:$4 sm:$0xff]  }
 0x3c4   : > { %6650 = vmatprep.subr.bf16.mxu1 %v13367_v13  ;;  %v13503_v13 = vld [vmem:[#allocation8 + $0x16b0] ss:$72 sps:$4 sm:$0xff]  }
 0x3c5   : > { %6514 = vmatpush1.bf16.msra.mxu0 %v13491_v59 }
 0x3c6   : > { %6515 = vmatprep.subr.bf16.mxu0 %v13496_v43 }
 0x3c7   : > { %6651 = vmatpush1.bf16.msra.mxu1 %v13365_v18  ;;  %v13511_v18 = vld [vmem:[#allocation8 + $0x17d4] ss:$72 sps:$4 sm:$0xff]  }
 0x3c8   : > { %6652 = vmatprep.subr.bf16.mxu1 %v13373_v19  ;;  %v13509_v19 = vld [vmem:[#allocation8 + $0x17d0] ss:$72 sps:$4 sm:$0xff]  }
 0x3c9   : > { %6516 = vmatpush1.bf16.msra.mxu0 %v13494_v61 }
 0x3ca   : > { %6517 = vmatprep.subr.bf16.mxu0 %v13499_v5  ;;  %v6874_v5 = vand.u32 127, %v1254_v17  ;;  %v1309_v17 = vrot.slane %v14939_v60, %v14918_v4 }
 0x3cb   : > { %6653 = vmatpush1.bf16.msra.mxu1 %v13371_v23  ;;  %v13517_v23 = vld [vmem:[#allocation8 + $0x18f4] ss:$72 sps:$4 sm:$0xff]  }
 0x3cc   : > { %6654 = vmatprep.subr.bf16.mxu1 %v13379_v24  ;;  %v13515_v24 = vld [vmem:[#allocation8 + $0x18f0] ss:$72 sps:$4 sm:$0xff]  }
 0x3cd   : > { %6518 = vmatpush1.bf16.msra.mxu0 %v13497_v0 }
 0x3cf   : > { %6655 = vmatpush1.bf16.msra.mxu1 %v13377_v37  ;;  %v13523_v37 = vld [vmem:[#allocation8 + $0x1a14] ss:$72 sps:$4 sm:$0xff]  }
 0x3d0   : > { %6656 = vmatprep.subr.bf16.mxu1 %v13385_v30  ;;  %v13521_v30 = vld [vmem:[#allocation8 + $0x1a10] ss:$72 sps:$4 sm:$0xff]  }
 0x3d3   : > { %6657 = vmatpush1.bf16.msra.mxu1 %v13383_v36  ;;  %v1289_v36 = vrot.slane %v14939_v60, %v14873_v54 }
 0x3d4   : > { %6658 = vmatprep.subr.bf16.mxu1 %v13391_v38  ;;  %v1293_v38 = vrot.slane %v14939_v60, %v14876_v56 }
 0x3d7   : > { %6659 = vmatpush1.bf16.msra.mxu1 %v13389_v44 }
 0x3d8   : > { %11999 = vmatprep.subr.bf16.mxu1 %v14476_v48 }
 0x3da   : > { %6661 = vmatmul.mubr.bf16.vlgmr.msra.gmra.mrb[12].mxu1 %v14835_v53 }
 0x3db   : > { %12001 = vmatprep.mubr.msk.bf16.mxu1 %vm14477_vm0, %v14476_v48 }
 0x3e0   : > { %12000 = vmatpush3.bf16.xpose.msra.mxu1 %v6885_v55 }
 0x3e1   : > { %12005 = vmatprep.subr.bf16.mxu1 %v14476_v48 }
 0x3e7   : > { %12002 = vmatmul.mubr.msk.bf16.vlgmr.msra.gmra.mrb[16].mxu1 %vm6880_vm1, %v14904_v8  ;;  %v13502_v8 = vld [vmem:[#allocation8 + $0x1624] ss:$72 sps:$4 sm:$0xff]  }
 0x3e8   : > { %12007 = vmatprep.mubr.msk.bf16.mxu1 %vm14477_vm0, %v14476_v48  ;;  %6519 = vmatprep.subr.bf16.mxu0 %v13502_v8 }
 0x3e9   : > { %6520 = vmatpush1.bf16.msra.mxu0 %v13500_v27 }
 0x3ea   : > { %6521 = vmatprep.subr.bf16.mxu0 %v13505_v12 }
 0x3ed   : > { %v6416_v2 = vpop.f32.mrb[8].mxu1  ;;  %6522 = vmatpush1.bf16.msra.mxu0 %v13503_v13 }
 0x3ee   : > { %v12153_v3 = vadd.f32 %v6416_v2, %v1297_v62  ;;  %v6418_v6 = vpop.f32.mrb[9].mxu1  ;;  %6523 = vmatprep.subr.bf16.mxu0 %v13508_v15  ;;  %v6875_v62 = vstv %s380_s11 }
 0x3ef   : > { %v12154_v7 = vadd.f32 %v6418_v6, %v1301_v63  ;;  %v6420_v9 = vpop.f32.mrb[10].mxu1  ;;  %vm14961_vm2 = vcmp.lt.s32.totalorder %v6874_v5, %v6875_v62  ;;  %v7109_v62 = vld [vmem:[#allocation2 + $0x1c] sm:$0xf] }
 0x3f0   : > { %v6421_v10 = vpop.f32.mrb[11].mxu1  ;;  %v13692_v63 = vld [vmem:[#allocation11 + $0x34] ss:$24 sps:$4 sm:$0xff]  }
 0x3f1   : > { %v11944_v11 = vpack.c.bf16 %v12154_v7, %v12153_v3  ;;  %6524 = vmatpush1.bf16.msra.mxu0 %v13506_v16  ;;  %v1305_v3 = vrot.slane %v14939_v60, %v14915_v1 }
 0x3f2   : > { %6525 = vmatprep.subr.bf16.mxu0 %v13511_v18 }
 0x3f3   : > { %6869 = vst [vmem:[#allocation2 + $0x28] sm:$0xff] %v11944_v11 }
 0x3f5   : > { %6526 = vmatpush1.bf16.msra.mxu0 %v13509_v19 }
 0x3f6   : > { %6527 = vmatprep.subr.bf16.mxu0 %v13514_v20 }
 0x3f9   : > { %6528 = vmatpush1.bf16.msra.mxu0 %v13512_v21 }
 0x3fa   : > { %6529 = vmatprep.subr.bf16.mxu0 %v13517_v23 }
 0x3fd   : > { %6530 = vmatpush1.bf16.msra.mxu0 %v13515_v24 }
 0x3fe   : > { %6531 = vmatprep.subr.bf16.mxu0 %v13520_v25  ;;  %v6997_v25 = vpop.permute.xlu1 %6996 }
 0x401   : > { %6532 = vmatpush1.bf16.msra.mxu0 %v13518_v26 }
 0x402   : > { %6533 = vmatprep.subr.bf16.mxu0 %v13523_v37  ;;  %v7002_v37 = vsel %vm6880_vm1, %v6997_v25, 0 }
 0x405   : > { %6534 = vmatpush1.bf16.msra.mxu0 %v13521_v30  ;;  %v6992_v30 = vpop.permute.xlu1 %6991 }
 0x406   : > { %6535 = vmatprep.subr.bf16.mxu0 %v13526_v33 }
 0x407   : > { %v6293_v40 = vpop.f32.mrb[8].mxu0 }
 0x408   : > { %v12151_v42 = vadd.f32 %v6293_v40, %v1289_v36  ;;  %v6295_v44 = vpop.f32.mrb[9].mxu0 }
 0x409   : > { %6536 = vmatpush1.bf16.msra.mxu0 %v13524_v34  ;;  %v12152_v45 = vadd.f32 %v6295_v44, %v1293_v38  ;;  %v6297_v46 = vpop.f32.mrb[10].mxu0 }
 0x40a   : > { %v6298_v50 = vpop.f32.mrb[11].mxu0 }
 0x40b   : > { %v11943_v51 = vpack.c.bf16 %v12152_v45, %v12151_v42 }
 0x40c   : > { %6538 = vmatmul.mubr.bf16.vlgmr.msra.gmra.mrb[12].mxu0 %v14835_v53 }
 0x40d   : > { %6701 = vmatprep.mubr.bf16.mxu0 %v14803_v14  ;;  %6868 = vst [vmem:[#allocation2 + $0x20] sm:$0xff] %v11943_v51  ;;  %v1317_v14 = vrot.slane %v14939_v60, %v1284_v32 }
 0x4ad   : > { %v6662_v35 = vpop.f32.mrb[12].mxu1 }
 0x4ae   : > { %v12157_v55 = vadd.f32 %v6662_v35, %v1313_v52  ;;  %v6664_v57 = vpop.f32.mrb[13].mxu1 }
 0x4af   : > { %v12158_v58 = vadd.f32 %v6664_v57, %v1317_v14  ;;  %v6666_v59 = vpop.f32.mrb[14].mxu1 }
 0x4b0   : > { %v6667_v43 = vpop.f32.mrb[15].mxu1 }
 0x4b1   : > { %v11946_v61 = vpack.c.bf16 %v12158_v58, %v12157_v55 }
 0x4b3   : > { %6871 = vst [vmem:[#allocation2 + $0x38] sm:$0xff] %v11946_v61 }
 0x4ba   : > { %v6921_v22 = vpop.f32.mrb[16].mxu1 }
 0x4bb   : > { %v6927_v31 = vsel %vm14961_vm2, %v6921_v22, -1000000.0  ;;  %v12003_v32 = vpop.f32.mrb[17].mxu1 }
 0x4bc   : > { %v6924_v0 = vpop.f32.mrb[18].mxu1  ;;  %v6929_v2 = vsel %vm6928_vm3, %v6927_v31, -inf }
 0x4bd   : > { %v12004_v8 = vpop.f32.mrb[19].mxu1  ;;  %6930 = vmax.xlane.f32.xlu0 %v6929_v2  ;;  %v7108_v0 = vld [vmem:[#allocation2 + $0x4] sm:$0xf] }
 0x4df   : > { %v6539_v6 = vpop.f32.mrb[12].mxu0 }
 0x4e0   : > { %v12155_v7 = vadd.f32 %v6539_v6, %v1305_v3  ;;  %v6541_v9 = vpop.f32.mrb[13].mxu0 }
 0x4e1   : > { %v12156_v10 = vadd.f32 %v6541_v9, %v1309_v17  ;;  %v6543_v27 = vpop.f32.mrb[14].mxu0 }
 0x4e2   : > { %v6544_v11 = vpop.f32.mrb[15].mxu0 }
 0x4e3   : > { %v11945_v12 = vpack.c.bf16 %v12156_v10, %v12155_v7 }
 0x4e5   : > { %6870 = vst [vmem:[#allocation2 + $0x30] sm:$0xff] %v11945_v12 }
 0x4ec   : > { %v6879_v13 = vld [vmem:[#allocation2 + $0x30] sm:$0xf]  ;;  %v7110_v32 = vld [vmem:[#allocation2 + $0x34] sm:$0xf] }
 0x4ed   : > { %v6946_v15 = vsel %vm6944_vm4, %v6879_v13, 0  ;;  %v11608_v51 = vcombine.low %v6879_v13, %v6879_v13  ;;  %v7174_v2 = vsel %vm6944_vm4, %v7110_v32, 0  ;;  %v11612_v13 = vcombine.low %v7108_v0, %v7108_v0 }
 0x4ee   : > { %12006 = vmatpush3.bf16.msra.mxu1 %v6946_v15 }
 0x4ef   : > { %12011 = vmatprep.subr.bf16.mxu1 %v14476_v48 }
 0x54a   : > { %v6931_v16 = vpop.xlane.xlu0 %6930 }
 0x54b   : > { %v6932_v18 = vsub.f32 %v6927_v31, %v6931_v16  ;;  %v7115_v31 = vsel %vm6880_vm1, %v7109_v62, 0 }
 0x54d   : > { %v6933_v19 = vmul.f32 1.442695, %v6932_v18 }
 0x54f   : > { %14119 = vpow2.f32 %v6933_v19 }
 0x559   : > { %v14120_v60 = vpop.eup %14119 }
 0x55a   : > { %v6935_v20 = vsel %vm6928_vm3, %v14120_v60, 0.0 }
 0x55b   : > { %6936 = vadd.xlane.f32.xlu0 %v6935_v20  ;;  %v11613_v20 = vcombine.low %v7109_v62, %v7109_v62 }
 0x5e8   : > { %v6937_v21 = vpop.xlane.xlu0 %6936 }
 0x5e9   : > { %14121 = vrcp.f32 %v6937_v21 }
 0x5f3   : > { %v14122_v23 = vpop.eup %14121 }
 0x5f4   : > { %v6939_v24 = vmul.f32 %v14122_v23, %v14120_v60 }
 0x5f6   : > { %v6940_v26 = vpack.c.bf16 %v6939_v24, %v6939_v24 }
 0x5f8   : > { %12008 = vmatmul.mubr.msk.bf16.vlgmr.msra.gmra.mrb[20].mxu1 %vm6928_vm3, %v6940_v26 }
 0x5f9   : > { %12012 = vmatpush3.bf16.xpose.msra.mxu1 %v7002_v37  ;;  %12013 = vmatprep.mubr.msk.bf16.mxu1 %vm14477_vm0, %v14476_v48 }
 0x5fa   : > { %12017 = vmatprep.subr.bf16.mxu1 %v14476_v48 }
 0x600   : > { %12014 = vmatmul.mubr.msk.bf16.vlgmr.msra.gmra.mrb[24].mxu1 %vm6880_vm1, %v6992_v30 }
 0x601   : > { %12019 = vmatprep.mubr.msk.bf16.mxu1 %vm14477_vm0, %v14476_v48 }
 0x6cb   : > { %v14983_v33 = vpop.f32.mrb[20].mxu1 }
 0x6cc   : > { %v12009_v34 = vpop.f32.mrb[21].mxu1 }
 0x6cd   : > { %v6985_v36 = vpop.f32.mrb[22].mxu1 }
 0x6ce   : > { %v12010_v38 = vpop.f32.mrb[23].mxu1 }
 0x6d3   : > { %v7038_v40 = vpop.f32.mrb[24].mxu1 }
 0x6d4   : > { %v7044_v42 = vsel %vm14961_vm2, %v7038_v40, -1000000.0  ;;  %v12015_v44 = vpop.f32.mrb[25].mxu1 }
 0x6d5   : > { %v7041_v45 = vpop.f32.mrb[26].mxu1  ;;  %v7045_v46 = vsel %vm6928_vm3, %v7044_v42, -inf }
 0x6d6   : > { %7046 = vmax.xlane.f32.xlu0 %v7045_v46  ;;  %v12016_v50 = vpop.f32.mrb[27].mxu1 }
 0x6ec   : > { %7060 = vrot.lane.b32.xlu0 %v11608_v51, %s14475_s21 }
 0x763   : > { %v7047_v52 = vpop.xlane.xlu0 %7046 }
 0x764   : > { %v7048_v14 = vsub.f32 %v7044_v42, %v7047_v52  ;;  %v11615_v52 = vcombine.low %v7110_v32, %v7110_v32 }
 0x766   : > { %v7049_v35 = vmul.f32 1.442695, %v7048_v14 }
 0x767   : > { %v7061_v55 = vpop.permute.xlu0 %7060 }
 0x768   : > { %14123 = vpow2.f32 %v7049_v35  ;;  %v7066_v57 = vsel %vm6944_vm4, %v7061_v55, 0 }
 0x769   : > { %12018 = vmatpush3.bf16.msra.mxu1 %v7066_v57 }
 0x76a   : > { %12023 = vmatprep.subr.bf16.mxu1 %v14476_v48 }
 0x772   : > { %v14124_v58 = vpop.eup %14123 }
 0x773   : > { %v7051_v59 = vsel %vm6928_vm3, %v14124_v58, 0.0 }
 0x774   : > { %7052 = vadd.xlane.f32.xlu1 %v7051_v59 }
 0x801   : > { %v7053_v43 = vpop.xlane.xlu1 %7052 }
 0x802   : > { %14125 = vrcp.f32 %v7053_v43 }
 0x80c   : > { %v14126_v61 = vpop.eup %14125 }
 0x80d   : > { %v7055_v5 = vmul.f32 %v14126_v61, %v14124_v58 }
 0x80f   : > { %v7056_v22 = vpack.c.bf16 %v7055_v5, %v7055_v5 }
 0x811   : > { %12020 = vmatmul.mubr.msk.bf16.vlgmr.msra.gmra.mrb[28].mxu1 %vm6928_vm3, %v7056_v22  ;;  %v7337_v22 = vld [vmem:[#allocation2 + $0x20] sm:$0xf] }
 0x812   : > { %12024 = vmatpush3.bf16.xpose.msra.mxu1 %v7115_v31  ;;  %12025 = vmatprep.mubr.msk.bf16.mxu1 %vm14477_vm0, %v14476_v48  ;;  %v7343_v32 = vsel %vm6880_vm1, %v7337_v22, 0 }
 0x813   : > { %12029 = vmatprep.subr.bf16.mxu1 %v14476_v48 }
 0x819   : > { %12026 = vmatmul.mubr.msk.bf16.vlgmr.msra.gmra.mrb[32].mxu1 %vm6880_vm1, %v7108_v0  ;;  %v15032_v0 = vld [vmem:[#allocation2 + $0x38] sm:$0xf] }
 0x81a   : > { %12030 = vmatpush3.bf16.msra.mxu1 %v7174_v2  ;;  %12031 = vmatprep.mubr.msk.bf16.mxu1 %vm14477_vm0, %v14476_v48  ;;  %v7336_v2 = vld [vmem:[#allocation2 + $0x8] sm:$0xf] }
 0x81b   : > { %12035 = vmatprep.subr.bf16.mxu1 %v14476_v48 }
 0x8e4   : > { %v15002_v8 = vpop.f32.mrb[28].mxu1 }
 0x8e5   : > { %v12021_v3 = vpop.f32.mrb[29].mxu1 }
 0x8e6   : > { %v7105_v17 = vpop.f32.mrb[30].mxu1  ;;  %v7402_v3 = vsel %vm6944_vm4, %v15032_v0, 0 }
 0x8e7   : > { %v12022_v6 = vpop.f32.mrb[31].mxu1 }
 0x8ec   : > { %v7151_v7 = vpop.f32.mrb[32].mxu1 }
 0x8ed   : > { %v7157_v9 = vsel %vm14961_vm2, %v7151_v7, -1000000.0  ;;  %v12027_v10 = vpop.f32.mrb[33].mxu1 }
 0x8ee   : > { %v7154_v27 = vpop.f32.mrb[34].mxu1  ;;  %v7158_v11 = vsel %vm6928_vm3, %v7157_v9, -inf }
 0x8ef   : > { %7159 = vmax.xlane.f32.xlu0 %v7158_v11  ;;  %v12028_v12 = vpop.f32.mrb[35].mxu1 }
 0x905   : > { %7219 = vrot.lane.b32.xlu0 %v11612_v13, %s14475_s21 }
 0x97c   : > { %v7160_v15 = vpop.xlane.xlu0 %7159 }
 0x97d   : > { %v7161_v16 = vsub.f32 %v7157_v9, %v7160_v15 }
 0x97f   : > { %v7162_v18 = vmul.f32 1.442695, %v7161_v16 }
 0x980   : > { %v7220_v30 = vpop.permute.xlu0 %7219 }
 0x981   : > { %14127 = vpow2.f32 %v7162_v18  ;;  %v11620_v18 = vcombine.low %v7337_v22, %v7337_v22 }
 0x98b   : > { %v14128_v19 = vpop.eup %14127 }
 0x98c   : > { %v7164_v60 = vsel %vm6928_vm3, %v14128_v19, 0.0 }
 0x98d   : > { %7165 = vadd.xlane.f32.xlu1 %v7164_v60 }
 0x99e   : > { %7224 = vrot.lane.b32.xlu1 %v11613_v20, %s14475_s21 }
 0xa1a   : > { %v7166_v21 = vpop.xlane.xlu1 %7165 }
 0xa1b   : > { %14129 = vrcp.f32 %v7166_v21 }
 0xa1e   : > { %v7225_v25 = vpop.permute.xlu1 %7224 }
 0xa1f   : > { %v7230_v37 = vsel %vm6880_vm1, %v7225_v25, 0 }
 0xa25   : > { %v14130_v23 = vpop.eup %14129 }
 0xa26   : > { %v7168_v24 = vmul.f32 %v14130_v23, %v14128_v19  ;;  %v11619_v19 = vcombine.low %v7336_v2, %v7336_v2 }
 0xa28   : > { %v7169_v26 = vpack.c.bf16 %v7168_v24, %v7168_v24 }
 0xa2a   : > { %12032 = vmatmul.mubr.msk.bf16.vlgmr.msra.gmra.mrb[36].mxu1 %vm6928_vm3, %v7169_v26 }
 0xa2b   : > { %12036 = vmatpush3.bf16.xpose.msra.mxu1 %v7230_v37  ;;  %12037 = vmatprep.mubr.msk.bf16.mxu1 %vm14477_vm0, %v14476_v48 }
 0xa2c   : > { %12041 = vmatprep.subr.bf16.mxu1 %v14476_v48 }
 0xa32   : > { %12038 = vmatmul.mubr.msk.bf16.vlgmr.msra.gmra.mrb[40].mxu1 %vm6880_vm1, %v7220_v30 }
 0xa33   : > { %12043 = vmatprep.mubr.msk.bf16.mxu1 %vm14477_vm0, %v14476_v48 }
 0xafd   : > { %v15018_v34 = vpop.f32.mrb[36].mxu1 }
 0xafe   : > { %v12033_v36 = vpop.f32.mrb[37].mxu1 }
 0xaff   : > { %v7213_v38 = vpop.f32.mrb[38].mxu1 }
 0xb00   : > { %v12034_v40 = vpop.f32.mrb[39].mxu1 }
 0xb05   : > { %v7266_v42 = vpop.f32.mrb[40].mxu1 }
 0xb06   : > { %v7272_v44 = vsel %vm14961_vm2, %v7266_v42, -1000000.0  ;;  %v12039_v45 = vpop.f32.mrb[41].mxu1 }
 0xb07   : > { %v7269_v46 = vpop.f32.mrb[42].mxu1  ;;  %v7273_v50 = vsel %vm6928_vm3, %v7272_v44, -inf }
 0xb08   : > { %7274 = vmax.xlane.f32.xlu1 %v7273_v50  ;;  %v12040_v51 = vpop.f32.mrb[43].mxu1 }
 0xb19   : > { %7288 = vrot.lane.b32.xlu1 %v11615_v52, %s14475_s21 }
 0xb95   : > { %v7275_v14 = vpop.xlane.xlu1 %7274 }
 0xb96   : > { %v7276_v35 = vsub.f32 %v7272_v44, %v7275_v14 }
 0xb98   : > { %v7277_v55 = vmul.f32 1.442695, %v7276_v35 }
 0xb99   : > { %v7289_v57 = vpop.permute.xlu1 %7288 }
 0xb9a   : > { %14131 = vpow2.f32 %v7277_v55  ;;  %v7294_v58 = vsel %vm6944_vm4, %v7289_v57, 0 }
 0xb9b   : > { %12042 = vmatpush3.bf16.msra.mxu1 %v7294_v58 }
 0xb9c   : > { %12047 = vmatprep.subr.bf16.mxu1 %v14476_v48 }
 0xba4   : > { %v14132_v59 = vpop.eup %14131 }
 0xba5   : > { %v7279_v43 = vsel %vm6928_vm3, %v14132_v59, 0.0 }
 0xba6   : > { %7280 = vadd.xlane.f32.xlu0 %v7279_v43 }
 0xc33   : > { %v7281_v61 = vpop.xlane.xlu0 %7280 }
 0xc34   : > { %14133 = vrcp.f32 %v7281_v61 }
 0xc3e   : > { %v14134_v5 = vpop.eup %14133 }
 0xc3f   : > { %v7283_v62 = vmul.f32 %v14134_v5, %v14132_v59  ;;  %v11622_v5 = vcombine.low %v15032_v0, %v15032_v0  ;;  %v15074_v0 = vld [vmem:[#allocation2 + $0x3c] sm:$0xf] }
 0xc41   : > { %v7284_v31 = vpack.c.bf16 %v7283_v62, %v7283_v62 }
 0xc43   : > { %12044 = vmatmul.mubr.msk.bf16.vlgmr.msra.gmra.mrb[44].mxu1 %vm6928_vm3, %v7284_v31 }
 0xc44   : > { %12048 = vmatpush3.bf16.xpose.msra.mxu1 %v7343_v32  ;;  %12049 = vmatprep.mubr.msk.bf16.mxu1 %vm14477_vm0, %v14476_v48 }
 0xc45   : > { %12053 = vmatprep.subr.bf16.mxu1 %v14476_v48 }
 0xc4b   : > { %12050 = vmatmul.mubr.msk.bf16.vlgmr.msra.gmra.mrb[48].mxu1 %vm6880_vm1, %v7336_v2 }
 0xc4c   : > { %12054 = vmatpush3.bf16.msra.mxu1 %v7402_v3  ;;  %12055 = vmatprep.mubr.msk.bf16.mxu1 %vm14477_vm0, %v14476_v48  ;;  %v7565_v3 = vld [vmem:[#allocation2 + $0x24] sm:$0xf] }
 0xc4d   : > { %12059 = vmatprep.subr.bf16.mxu1 %v14476_v48 }
 0xd16   : > { %v15040_v17 = vpop.f32.mrb[44].mxu1 }
 0xd17   : > { %v12352_v6 = vpack.i.bf16 %v15002_v8, %v15040_v17  ;;  %v12045_v7 = vpop.f32.mrb[45].mxu1 }
 0xd18   : > { %v7333_v9 = vpop.f32.mrb[46].mxu1 }
 0xd19   : > { %v12046_v10 = vpop.f32.mrb[47].mxu1  ;;  %v7571_v9 = vsel %vm6880_vm1, %v7565_v3, 0 }
 0xd1a   : > { %v7564_v10 = vld [vmem:[#allocation2 + $0xc] sm:$0xf] }
 0xd1e   : > { %v7379_v27 = vpop.f32.mrb[48].mxu1 }
 0xd1f   : > { %v7385_v11 = vsel %vm14961_vm2, %v7379_v27, -1000000.0  ;;  %v12051_v12 = vpop.f32.mrb[49].mxu1  ;;  %v7630_v27 = vsel %vm6944_vm4, %v15074_v0, 0 }
 0xd20   : > { %v7382_v13 = vpop.f32.mrb[50].mxu1  ;;  %v7386_v15 = vsel %vm6928_vm3, %v7385_v11, -inf }
 0xd21   : > { %7387 = vmax.xlane.f32.xlu0 %v7386_v15  ;;  %v12052_v16 = vpop.f32.mrb[51].mxu1 }
 0xd37   : > { %7452 = vrot.lane.b32.xlu0 %v11620_v18, %s14475_s21 }
 0xd3b   : > { %7447 = vrot.lane.b32.xlu0 %v11619_v19, %s14475_s21 }
 0xdae   : > { %v7388_v60 = vpop.xlane.xlu0 %7387 }
 0xdaf   : > { %v7389_v20 = vsub.f32 %v7385_v11, %v7388_v60 }
 0xdb1   : > { %v7390_v21 = vmul.f32 1.442695, %v7389_v20 }
 0xdb2   : > { %v7453_v30 = vpop.permute.xlu0 %7452 }
 0xdb3   : > { %14135 = vpow2.f32 %v7390_v21  ;;  %v7458_v38 = vsel %vm6880_vm1, %v7453_v30, 0  ;;  %v11627_v30 = vcombine.low %v7565_v3, %v7565_v3 }
 0xdb6   : > { %v7448_v40 = vpop.permute.xlu0 %7447 }
 0xdbd   : > { %v14136_v23 = vpop.eup %14135 }
 0xdbe   : > { %v7392_v24 = vsel %vm6928_vm3, %v14136_v23, 0.0 }
 0xdbf   : > { %7393 = vadd.xlane.f32.xlu1 %v7392_v24 }
 0xe4c   : > { %v7394_v25 = vpop.xlane.xlu1 %7393 }
 0xe4d   : > { %14137 = vrcp.f32 %v7394_v25 }
 0xe57   : > { %v14138_v26 = vpop.eup %14137 }
 0xe58   : > { %v7396_v37 = vmul.f32 %v14138_v26, %v14136_v23 }
 0xe5a   : > { %v7397_v36 = vpack.c.bf16 %v7396_v37, %v7396_v37 }
 0xe5c   : > { %12056 = vmatmul.mubr.msk.bf16.vlgmr.msra.gmra.mrb[52].mxu1 %vm6928_vm3, %v7397_v36  ;;  %v11626_v36 = vcombine.low %v7564_v10, %v7564_v10 }
 0xe5d   : > { %12060 = vmatpush3.bf16.xpose.msra.mxu1 %v7458_v38  ;;  %12061 = vmatprep.mubr.msk.bf16.mxu1 %vm14477_vm0, %v14476_v48 }
 0xe5e   : > { %12065 = vmatprep.subr.bf16.mxu1 %v14476_v48 }
 0xe64   : > { %12062 = vmatmul.mubr.msk.bf16.vlgmr.msra.gmra.mrb[56].mxu1 %vm6880_vm1, %v7448_v40 }
 0xe65   : > { %12067 = vmatprep.mubr.msk.bf16.mxu1 %vm14477_vm0, %v14476_v48 }
 0xf2f   : > { %v15058_v42 = vpop.f32.mrb[52].mxu1 }
 0xf30   : > { %v12057_v44 = vpop.f32.mrb[53].mxu1 }
 0xf31   : > { %v7441_v45 = vpop.f32.mrb[54].mxu1 }
 0xf32   : > { %v12058_v46 = vpop.f32.mrb[55].mxu1 }
 0xf37   : > { %v7494_v50 = vpop.f32.mrb[56].mxu1 }
 0xf38   : > { %v7500_v51 = vsel %vm14961_vm2, %v7494_v50, -1000000.0  ;;  %v12063_v52 = vpop.f32.mrb[57].mxu1 }
 0xf39   : > { %v7497_v14 = vpop.f32.mrb[58].mxu1  ;;  %v7501_v35 = vsel %vm6928_vm3, %v7500_v51, -inf }
 0xf3a   : > { %7502 = vmax.xlane.f32.xlu0 %v7501_v35  ;;  %v12064_v55 = vpop.f32.mrb[59].mxu1 }
 0xfc7   : > { %v7503_v57 = vpop.xlane.xlu0 %7502 }
 0xfc8   : > { %v7504_v58 = vsub.f32 %v7500_v51, %v7503_v57 }
 0xfca   : > { %v7505_v59 = vmul.f32 1.442695, %v7504_v58 }
 0xfcc   : > { %14139 = vpow2.f32 %v7505_v59 }
 0xfd6   : > { %v14140_v43 = vpop.eup %14139 }
 0xfd7   : > { %v7507_v61 = vsel %vm6928_vm3, %v14140_v43, 0.0 }
 0xfd8   : > { %7508 = vadd.xlane.f32.xlu1 %v7507_v61 }
 0xfe9   : > { %7516 = vrot.lane.b32.xlu1 %v11622_v5, %s14475_s21 }
0x1065   : > { %v7509_v62 = vpop.xlane.xlu1 %7508 }
0x1066   : > { %14141 = vrcp.f32 %v7509_v62  ;;  %v13537_v62 = vld [vmem:[#allocation8 + $0x40] ss:$72 sps:$4 sm:$0xff]  }
0x1069   : > { %v7517_v22 = vpop.permute.xlu1 %7516 }
0x106a   : > { %v7522_v31 = vsel %vm6944_vm4, %v7517_v22, 0  ;;  %v13539_v22 = vld [vmem:[#allocation8 + $0x44] ss:$72 sps:$4 sm:$0xff]  }
0x106b   : > { %12066 = vmatpush3.bf16.msra.mxu1 %v7522_v31  ;;  %6669 = vmatprep.subr.bf16.mxu0 %v13539_v22  ;;  %v13596_v22 = vld [vmem:[#allocation8 + $0xaf4] ss:$72 sps:$4 sm:$0xff]  }
0x106c   : > { %12071 = vmatprep.subr.bf16.mxu1 %v14476_v48  ;;  %6670 = vmatpush1.bf16.msra.mxu0 %v13537_v62  ;;  %v13591_v62 = vld [vmem:[#allocation8 + $0xa60] ss:$72 sps:$4 sm:$0xff]  }
0x1070   : > { %v14142_v32 = vpop.eup %14141 }
0x1071   : > { %v7511_v2 = vmul.f32 %v14142_v32, %v14140_v43 }
0x1073   : > { %v7512_v7 = vpack.c.bf16 %v7511_v2, %v7511_v2 }
0x1075   : > { %12068 = vmatmul.mubr.msk.bf16.vlgmr.msra.gmra.mrb[60].mxu1 %vm6928_vm3, %v7512_v7 }
0x1076   : > { %12072 = vmatpush3.bf16.xpose.msra.mxu1 %v7571_v9  ;;  %12073 = vmatprep.mubr.msk.bf16.mxu1 %vm14477_vm0, %v14476_v48  ;;  %v13542_v9 = vld [vmem:[#allocation8 + $0xd4] ss:$72 sps:$4 sm:$0xff]  }
0x1077   : > { %12077 = vmatprep.subr.bf16.mxu1 %v14476_v48  ;;  %6671 = vmatprep.subr.bf16.mxu0 %v13542_v9  ;;  %v13605_v9 = vld [vmem:[#allocation8 + $0xca4] ss:$72 sps:$4 sm:$0xff]  }
0x107d   : > { %12074 = vmatmul.mubr.msk.bf16.vlgmr.msra.gmra.mrb[64].mxu1 %vm6880_vm1, %v7564_v10  ;;  %v13540_v10 = vld [vmem:[#allocation8 + $0xd0] ss:$72 sps:$4 sm:$0xff]  }
0x107e   : > { %12078 = vmatpush3.bf16.msra.mxu1 %v7630_v27  ;;  %12079 = vmatprep.mubr.msk.bf16.mxu1 %vm14477_vm0, %v14476_v48  ;;  %v11629_v27 = vcombine.low %v15074_v0, %v15074_v0  ;;  %v13555_v0 = vld [vmem:[#allocation8 + $0x3a0] ss:$72 sps:$4 sm:$0xff]  }
0x107f   : > { %12083 = vmatprep.subr.bf16.mxu1 %v14476_v48  ;;  %6672 = vmatpush1.bf16.msra.mxu0 %v13540_v10  ;;  %v13608_v10 = vld [vmem:[#allocation8 + $0xd34] ss:$72 sps:$4 sm:$0xff]  }
0x1148   : > { %v15082_v11 = vpop.f32.mrb[60].mxu1 }
0x1149   : > { %v12069_v12 = vpop.f32.mrb[61].mxu1 }
0x114a   : > { %v7561_v13 = vpop.f32.mrb[62].mxu1  ;;  %v13545_v12 = vld [vmem:[#allocation8 + $0x164] ss:$72 sps:$4 sm:$0xff]  }
0x114b   : > { %v12070_v15 = vpop.f32.mrb[63].mxu1  ;;  %v13543_v13 = vld [vmem:[#allocation8 + $0x160] ss:$72 sps:$4 sm:$0xff]   ;;  %6673 = vmatprep.subr.bf16.mxu0 %v13545_v12  ;;  %v13611_v12 = vld [vmem:[#allocation8 + $0xdc4] ss:$72 sps:$4 sm:$0xff]  }
0x114c   : > { %6674 = vmatpush1.bf16.msra.mxu0 %v13543_v13  ;;  %v13548_v15 = vld [vmem:[#allocation8 + $0x1f4] ss:$72 sps:$4 sm:$0xff]   ;;  %v13609_v13 = vld [vmem:[#allocation8 + $0xdc0] ss:$72 sps:$4 sm:$0xff]  }
0x114d   : > { %6675 = vmatprep.subr.bf16.mxu0 %v13548_v15  ;;  %v13614_v15 = vld [vmem:[#allocation8 + $0xe54] ss:$72 sps:$4 sm:$0xff]  }
0x1150   : > { %v7607_v16 = vpop.f32.mrb[64].mxu1 }
0x1151   : > { %v7613_v18 = vsel %vm14961_vm2, %v7607_v16, -1000000.0  ;;  %v12075_v19 = vpop.f32.mrb[65].mxu1  ;;  %v13546_v16 = vld [vmem:[#allocation8 + $0x1f0] ss:$72 sps:$4 sm:$0xff]  }
0x1152   : > { %v7610_v60 = vpop.f32.mrb[66].mxu1  ;;  %v7614_v20 = vsel %vm6928_vm3, %v7613_v18, -inf  ;;  %6676 = vmatpush1.bf16.msra.mxu0 %v13546_v16  ;;  %v13551_v19 = vld [vmem:[#allocation8 + $0x284] ss:$72 sps:$4 sm:$0xff]   ;;  %v13612_v16 = vld [vmem:[#allocation8 + $0xe50] ss:$72 sps:$4 sm:$0xff]  }
0x1153   : > { %7615 = vmax.xlane.f32.xlu1 %v7614_v20  ;;  %v12076_v21 = vpop.f32.mrb[67].mxu1  ;;  %6677 = vmatprep.subr.bf16.mxu0 %v13551_v19  ;;  %v13554_v60 = vld [vmem:[#allocation8 + $0x314] ss:$72 sps:$4 sm:$0xff]   ;;  %v13552_v20 = vld [vmem:[#allocation8 + $0x310] ss:$72 sps:$4 sm:$0xff]  }
0x1154   : > { %v13557_v21 = vld [vmem:[#allocation8 + $0x3a4] ss:$72 sps:$4 sm:$0xff]   ;;  %v13615_v19 = vld [vmem:[#allocation8 + $0xee0] ss:$72 sps:$4 sm:$0xff]  }
0x11e0   : > { %v7616_v23 = vpop.xlane.xlu1 %7615 }
0x11e1   : > { %v7617_v24 = vsub.f32 %v7613_v18, %v7616_v23  ;;  %v13549_v18 = vld [vmem:[#allocation8 + $0x280] ss:$72 sps:$4 sm:$0xff]   ;;  %v13558_v23 = vld [vmem:[#allocation8 + $0x430] ss:$72 sps:$4 sm:$0xff]  }
0x11e2   : > { %6678 = vmatpush1.bf16.msra.mxu0 %v13549_v18  ;;  %v13617_v18 = vld [vmem:[#allocation8 + $0xee4] ss:$72 sps:$4 sm:$0xff]  }
0x11e3   : > { %v7618_v25 = vmul.f32 1.442695, %v7617_v24  ;;  %6679 = vmatprep.subr.bf16.mxu0 %v13554_v60  ;;  %v13560_v24 = vld [vmem:[#allocation8 + $0x434] ss:$72 sps:$4 sm:$0xff]  }
0x11e4   : > { %v13620_v60 = vld [vmem:[#allocation8 + $0xf74] ss:$72 sps:$4 sm:$0xff]  }
0x11e5   : > { %14143 = vpow2.f32 %v7618_v25  ;;  %v13563_v25 = vld [vmem:[#allocation8 + $0x4c4] ss:$72 sps:$4 sm:$0xff]  }
0x11e6   : > { %6680 = vmatpush1.bf16.msra.mxu0 %v13552_v20  ;;  %v13618_v20 = vld [vmem:[#allocation8 + $0xf70] ss:$72 sps:$4 sm:$0xff]  }
0x11e7   : > { %6681 = vmatprep.subr.bf16.mxu0 %v13557_v21  ;;  %v13623_v21 = vld [vmem:[#allocation8 + $0x1004] ss:$72 sps:$4 sm:$0xff]  }
0x11ea   : > { %6682 = vmatpush1.bf16.msra.mxu0 %v13555_v0  ;;  %v13621_v0 = vld [vmem:[#allocation8 + $0x1000] ss:$72 sps:$4 sm:$0xff]  }
0x11eb   : > { %6683 = vmatprep.subr.bf16.mxu0 %v13560_v24  ;;  %v13624_v24 = vld [vmem:[#allocation8 + $0x1090] ss:$72 sps:$4 sm:$0xff]  }
0x11ee   : > { %6684 = vmatpush1.bf16.msra.mxu0 %v13558_v23  ;;  %v13626_v23 = vld [vmem:[#allocation8 + $0x1094] ss:$72 sps:$4 sm:$0xff]  }
0x11ef   : > { %v14144_v26 = vpop.eup %14143  ;;  %6685 = vmatprep.subr.bf16.mxu0 %v13563_v25  ;;  %v13629_v25 = vld [vmem:[#allocation8 + $0x1124] ss:$72 sps:$4 sm:$0xff]  }
0x11f0   : > { %v7620_v37 = vsel %vm6928_vm3, %v14144_v26, 0.0 }
0x11f1   : > { %7621 = vadd.xlane.f32.xlu0 %v7620_v37  ;;  %v13566_v37 = vld [vmem:[#allocation8 + $0x554] ss:$72 sps:$4 sm:$0xff]  }
0x1207   : > { %7680 = vrot.lane.b32.xlu0 %v11627_v30, %s14475_s21  ;;  %v13564_v30 = vld [vmem:[#allocation8 + $0x550] ss:$72 sps:$4 sm:$0xff]  }
0x120b   : > { %7675 = vrot.lane.b32.xlu0 %v11626_v36, %s14475_s21  ;;  %v13569_v36 = vld [vmem:[#allocation8 + $0x5e4] ss:$72 sps:$4 sm:$0xff]  }
0x127e   : > { %v7622_v38 = vpop.xlane.xlu0 %7621 }
0x127f   : > { %14145 = vrcp.f32 %v7622_v38  ;;  %v13567_v38 = vld [vmem:[#allocation8 + $0x5e0] ss:$72 sps:$4 sm:$0xff]  }
0x1282   : > { %v7681_v45 = vpop.permute.xlu0 %7680 }
0x1283   : > { %v7686_v50 = vsel %vm6880_vm1, %v7681_v45, 0  ;;  %v13575_v45 = vld [vmem:[#allocation8 + $0x704] ss:$72 sps:$4 sm:$0xff]  }
0x1286   : > { %v7676_v51 = vpop.permute.xlu0 %7675 }
0x1289   : > { %v14146_v40 = vpop.eup %14145 }
0x128a   : > { %v7624_v44 = vmul.f32 %v14146_v40, %v14144_v26  ;;  %v13561_v26 = vld [vmem:[#allocation8 + $0x4c0] ss:$72 sps:$4 sm:$0xff]   ;;  %v13572_v40 = vld [vmem:[#allocation8 + $0x674] ss:$72 sps:$4 sm:$0xff]  }
0x128b   : > { %6686 = vmatpush1.bf16.msra.mxu0 %v13561_v26  ;;  %v13627_v26 = vld [vmem:[#allocation8 + $0x1120] ss:$72 sps:$4 sm:$0xff]  }
0x128c   : > { %v7625_v46 = vpack.c.bf16 %v7624_v44, %v7624_v44  ;;  %6687 = vmatprep.subr.bf16.mxu0 %v13566_v37  ;;  %v13570_v44 = vld [vmem:[#allocation8 + $0x670] ss:$72 sps:$4 sm:$0xff]   ;;  %v13632_v37 = vld [vmem:[#allocation8 + $0x11b4] ss:$72 sps:$4 sm:$0xff]  }
0x128e   : > { %12080 = vmatmul.mubr.msk.bf16.vlgmr.msra.gmra.mrb[68].mxu1 %vm6928_vm3, %v7625_v46  ;;  %v13573_v46 = vld [vmem:[#allocation8 + $0x700] ss:$72 sps:$4 sm:$0xff]  }
0x128f   : > { %12084 = vmatpush3.bf16.xpose.msra.mxu1 %v7686_v50  ;;  %12085 = vmatprep.mubr.msk.bf16.mxu1 %vm14477_vm0, %v14476_v48  ;;  %v13578_v50 = vld [vmem:[#allocation8 + $0x794] ss:$72 sps:$4 sm:$0xff]  }
0x1290   : > { %12089 = vmatprep.subr.bf16.mxu1 %v14476_v48  ;;  %6688 = vmatpush1.bf16.msra.mxu0 %v13564_v30  ;;  %v13630_v30 = vld [vmem:[#allocation8 + $0x11b0] ss:$72 sps:$4 sm:$0xff]  }
0x1291   : > { %6689 = vmatprep.subr.bf16.mxu0 %v13569_v36  ;;  %v13635_v36 = vld [vmem:[#allocation8 + $0x1244] ss:$72 sps:$4 sm:$0xff]  }
0x1294   : > { %6690 = vmatpush1.bf16.msra.mxu0 %v13567_v38  ;;  %v13633_v38 = vld [vmem:[#allocation8 + $0x1240] ss:$72 sps:$4 sm:$0xff]  }
0x1295   : > { %6691 = vmatprep.subr.bf16.mxu0 %v13572_v40  ;;  %v13638_v40 = vld [vmem:[#allocation8 + $0x12d4] ss:$72 sps:$4 sm:$0xff]  }
0x1296   : > { %12086 = vmatmul.mubr.msk.bf16.vlgmr.msra.gmra.mrb[72].mxu1 %vm6880_vm1, %v7676_v51  ;;  %v13576_v51 = vld [vmem:[#allocation8 + $0x790] ss:$72 sps:$4 sm:$0xff]  }
0x1297   : > { %12091 = vmatprep.mubr.msk.bf16.mxu1 %vm14477_vm0, %v14476_v48 }
0x1298   : > { %6692 = vmatpush1.bf16.msra.mxu0 %v13570_v44  ;;  %v13636_v44 = vld [vmem:[#allocation8 + $0x12d0] ss:$72 sps:$4 sm:$0xff]  }
0x1299   : > { %6693 = vmatprep.subr.bf16.mxu0 %v13575_v45 }
0x129c   : > { %6694 = vmatpush1.bf16.msra.mxu0 %v13573_v46  ;;  %v13641_v46 = vld [vmem:[#allocation8 + $0x1364] ss:$72 sps:$4 sm:$0xff]  }
0x129d   : > { %6695 = vmatprep.subr.bf16.mxu0 %v13578_v50  ;;  %v13639_v50 = vld [vmem:[#allocation8 + $0x1360] ss:$72 sps:$4 sm:$0xff]  }
0x12a0   : > { %6696 = vmatpush1.bf16.msra.mxu0 %v13576_v51 }
0x1361   : > { %v15098_v52 = vpop.f32.mrb[68].mxu1 }
0x1362   : > { %v12081_v14 = vpop.f32.mrb[69].mxu1 }
0x1363   : > { %v7669_v35 = vpop.f32.mrb[70].mxu1  ;;  %v13581_v14 = vld [vmem:[#allocation8 + $0x824] ss:$72 sps:$4 sm:$0xff]  }
0x1364   : > { %v12082_v55 = vpop.f32.mrb[71].mxu1  ;;  %v13579_v35 = vld [vmem:[#allocation8 + $0x820] ss:$72 sps:$4 sm:$0xff]   ;;  %6697 = vmatprep.subr.bf16.mxu0 %v13581_v14  ;;  %v13644_v14 = vld [vmem:[#allocation8 + $0x13f4] ss:$72 sps:$4 sm:$0xff]  }
0x1365   : > { %v13584_v55 = vld [vmem:[#allocation8 + $0x8b4] ss:$72 sps:$4 sm:$0xff]   ;;  %6698 = vmatpush1.bf16.msra.mxu0 %v13579_v35 }
0x1366   : > { %6699 = vmatprep.subr.bf16.mxu0 %v13584_v55  ;;  %v13647_v55 = vld [vmem:[#allocation8 + $0x1484] ss:$72 sps:$4 sm:$0xff]  }
0x1369   : > { %v7722_v57 = vpop.f32.mrb[72].mxu1 }
0x136a   : > { %v7728_v58 = vsel %vm14961_vm2, %v7722_v57, -1000000.0  ;;  %v12087_v59 = vpop.f32.mrb[73].mxu1  ;;  %v13582_v57 = vld [vmem:[#allocation8 + $0x8b0] ss:$72 sps:$4 sm:$0xff]  }
0x136b   : > { %v7725_v43 = vpop.f32.mrb[74].mxu1  ;;  %v7729_v61 = vsel %vm6928_vm3, %v7728_v58, -inf  ;;  %6700 = vmatpush1.bf16.msra.mxu0 %v13582_v57  ;;  %v13585_v59 = vld [vmem:[#allocation8 + $0x940] ss:$72 sps:$4 sm:$0xff]  }
0x136c   : > { %7730 = vmax.xlane.f32.xlu0 %v7729_v61  ;;  %v12088_v5 = vpop.f32.mrb[75].mxu1  ;;  %v13590_v43 = vld [vmem:[#allocation8 + $0x9d4] ss:$72 sps:$4 sm:$0xff]   ;;  %v13588_v61 = vld [vmem:[#allocation8 + $0x9d0] ss:$72 sps:$4 sm:$0xff]  }
0x136d   : > { %v13593_v5 = vld [vmem:[#allocation8 + $0xa64] ss:$72 sps:$4 sm:$0xff]  }
0x136e   : > { %6702 = vmatmul.mubr.bf16.vlgmr.msra.gmra.mrb[16].mxu0 %v14810_v39  ;;  %v13600_v39 = vld [vmem:[#allocation8 + $0xc10] ss:$72 sps:$4 sm:$0xff]  }
0x136f   : > { %6742 = vmatprep.mubr.bf16.mxu0 %v14814_v41  ;;  %v13603_v41 = vld [vmem:[#allocation8 + $0xca0] ss:$72 sps:$4 sm:$0xff]  }
0x13f9   : > { %v7731_v31 = vpop.xlane.xlu0 %7730 }
0x13fa   : > { %v7732_v32 = vsub.f32 %v7728_v58, %v7731_v31  ;;  %v13587_v58 = vld [vmem:[#allocation8 + $0x944] ss:$72 sps:$4 sm:$0xff]   ;;  %v13594_v31 = vld [vmem:[#allocation8 + $0xaf0] ss:$72 sps:$4 sm:$0xff]  }
0x13fb   : > { %6710 = vmatprep.subr.bf16.mxu0 %v13587_v58 }
0x13fc   : > { %v7733_v2 = vmul.f32 1.442695, %v7732_v32  ;;  %6711 = vmatpush1.bf16.msra.mxu0 %v13585_v59  ;;  %v13599_v32 = vld [vmem:[#allocation8 + $0xb84] ss:$72 sps:$4 sm:$0xff]   ;;  %v13650_v59 = vld [vmem:[#allocation8 + $0x1514] ss:$72 sps:$4 sm:$0xff]  }
0x13fd   : > { %6712 = vmatprep.subr.bf16.mxu0 %v13590_v43  ;;  %v15117_v43 = vld [vmem:[#allocation2 + $0x28] sm:$0xf] }
0x13fe   : > { %14147 = vpow2.f32 %v7733_v2  ;;  %v13597_v2 = vld [vmem:[#allocation8 + $0xb80] ss:$72 sps:$4 sm:$0xff]  }
0x1400   : > { %6713 = vmatpush1.bf16.msra.mxu0 %v13588_v61 }
0x1401   : > { %6714 = vmatprep.subr.bf16.mxu0 %v13593_v5  ;;  %v13648_v5 = vld [vmem:[#allocation8 + $0x1510] ss:$72 sps:$4 sm:$0xff]  }
0x1404   : > { %6715 = vmatpush1.bf16.msra.mxu0 %v13591_v62  ;;  %v7799_v62 = vsel %vm6880_vm1, %v15117_v43, 0 }
0x1405   : > { %6716 = vmatprep.subr.bf16.mxu0 %v13596_v22  ;;  %v13653_v22 = vld [vmem:[#allocation8 + $0x15a4] ss:$72 sps:$4 sm:$0xff]  }
0x1408   : > { %v15103_v3 = vpop.eup %14147  ;;  %6717 = vmatpush1.bf16.msra.mxu0 %v13594_v31  ;;  %v13656_v31 = vld [vmem:[#allocation8 + $0x1634] ss:$72 sps:$4 sm:$0xff]  }
0x1409   : > { %v7735_v7 = vsel %vm6928_vm3, %v15103_v3, 0.0  ;;  %6718 = vmatprep.subr.bf16.mxu0 %v13599_v32  ;;  %v15125_v32 = vld [vmem:[#allocation2 + $0x10] sm:$0xf] }
0x140a   : > { %7736 = vadd.xlane.f32.xlu1 %v7735_v7  ;;  %v13602_v7 = vld [vmem:[#allocation8 + $0xc14] ss:$72 sps:$4 sm:$0xff]  }
0x140c   : > { %6719 = vmatpush1.bf16.msra.mxu0 %v13597_v2  ;;  %v13654_v2 = vld [vmem:[#allocation8 + $0x1630] ss:$72 sps:$4 sm:$0xff]  }
0x140d   : > { %6720 = vmatprep.subr.bf16.mxu0 %v13602_v7  ;;  %v13659_v7 = vld [vmem:[#allocation8 + $0x16c4] ss:$72 sps:$4 sm:$0xff]  }
0x1410   : > { %6721 = vmatpush1.bf16.msra.mxu0 %v13600_v39  ;;  %v13657_v39 = vld [vmem:[#allocation8 + $0x16c0] ss:$72 sps:$4 sm:$0xff]  }
0x1411   : > { %6722 = vmatprep.subr.bf16.mxu0 %v13605_v9  ;;  %v13662_v9 = vld [vmem:[#allocation8 + $0x1754] ss:$72 sps:$4 sm:$0xff]  }
0x1414   : > { %6723 = vmatpush1.bf16.msra.mxu0 %v13603_v41  ;;  %v13660_v41 = vld [vmem:[#allocation8 + $0x1750] ss:$72 sps:$4 sm:$0xff]  }
0x1415   : > { %6724 = vmatprep.subr.bf16.mxu0 %v13608_v10  ;;  %v13665_v10 = vld [vmem:[#allocation8 + $0x17e4] ss:$72 sps:$4 sm:$0xff]  }
0x141b   : > { %7744 = vrot.lane.b32.xlu1 %v11629_v27, %s14475_s21  ;;  %v13606_v27 = vld [vmem:[#allocation8 + $0xd30] ss:$72 sps:$4 sm:$0xff]  }
0x141c   : > { %6725 = vmatpush1.bf16.msra.mxu0 %v13606_v27  ;;  %v13663_v27 = vld [vmem:[#allocation8 + $0x17e0] ss:$72 sps:$4 sm:$0xff]  }
0x141d   : > { %6726 = vmatprep.subr.bf16.mxu0 %v13611_v12  ;;  %v13668_v12 = vld [vmem:[#allocation8 + $0x1874] ss:$72 sps:$4 sm:$0xff]  }
0x1420   : > { %6727 = vmatpush1.bf16.msra.mxu0 %v13609_v13  ;;  %v13666_v13 = vld [vmem:[#allocation8 + $0x1870] ss:$72 sps:$4 sm:$0xff]  }
0x1421   : > { %6728 = vmatprep.subr.bf16.mxu0 %v13614_v15  ;;  %v13671_v15 = vld [vmem:[#allocation8 + $0x1904] ss:$72 sps:$4 sm:$0xff]  }
0x1424   : > { %6729 = vmatpush1.bf16.msra.mxu0 %v13612_v16  ;;  %v13669_v16 = vld [vmem:[#allocation8 + $0x1900] ss:$72 sps:$4 sm:$0xff]  }
0x1425   : > { %6730 = vmatprep.subr.bf16.mxu0 %v13617_v18  ;;  %v13674_v18 = vld [vmem:[#allocation8 + $0x1994] ss:$72 sps:$4 sm:$0xff]  }
0x1428   : > { %6731 = vmatpush1.bf16.msra.mxu0 %v13615_v19  ;;  %v13672_v19 = vld [vmem:[#allocation8 + $0x1990] ss:$72 sps:$4 sm:$0xff]  }
0x1429   : > { %6732 = vmatprep.subr.bf16.mxu0 %v13620_v60  ;;  %v13677_v60 = vld [vmem:[#allocation8 + $0x1a24] ss:$72 sps:$4 sm:$0xff]  }
0x142c   : > { %6733 = vmatpush1.bf16.msra.mxu0 %v13618_v20  ;;  %v13675_v20 = vld [vmem:[#allocation8 + $0x1a20] ss:$72 sps:$4 sm:$0xff]  }
0x142d   : > { %6734 = vmatprep.subr.bf16.mxu0 %v13623_v21  ;;  %v13680_v21 = vld [vmem:[#allocation8 + $0x1ab4] ss:$72 sps:$4 sm:$0xff]  }
0x1430   : > { %6735 = vmatpush1.bf16.msra.mxu0 %v13621_v0  ;;  %v13678_v0 = vld [vmem:[#allocation8 + $0x1ab0] ss:$72 sps:$4 sm:$0xff]  }
0x1431   : > { %6736 = vmatprep.subr.bf16.mxu0 %v13626_v23 }
0x1434   : > { %6737 = vmatpush1.bf16.msra.mxu0 %v13624_v24 }
0x1435   : > { %6738 = vmatprep.subr.bf16.mxu0 %v13629_v25 }
0x1438   : > { %6739 = vmatpush1.bf16.msra.mxu0 %v13627_v26 }
0x1439   : > { %6740 = vmatprep.subr.bf16.mxu0 %v13632_v37 }
0x143c   : > { %6741 = vmatpush1.bf16.msra.mxu0 %v13630_v30 }
0x143d   : > { %6751 = vmatprep.subr.bf16.mxu0 %v13635_v36 }
0x143f   : > { %6743 = vmatmul.mubr.bf16.vlgmr.msra.gmra.mrb[16].mxu0 %v14823_v47  ;;  %v13642_v47 = vld [vmem:[#allocation8 + $0x13f0] ss:$72 sps:$4 sm:$0xff]  }
0x1440   : > { %6752 = vmatpush1.bf16.msra.mxu0 %v13633_v38  ;;  %6783 = vmatprep.mubr.bf16.mxu0 %v14827_v49  ;;  %v13645_v49 = vld [vmem:[#allocation8 + $0x1480] ss:$72 sps:$4 sm:$0xff]  }
0x1441   : > { %6753 = vmatprep.subr.bf16.mxu0 %v13638_v40 }
0x1444   : > { %6754 = vmatpush1.bf16.msra.mxu0 %v13636_v44 }
0x1445   : > { %6755 = vmatprep.subr.bf16.mxu0 %v13641_v46  ;;  %v1250_v46 = vld [vmem:[#allocation10 + $0x10] sm:$0x3] }
0x1448   : > { %6756 = vmatpush1.bf16.msra.mxu0 %v13639_v50  ;;  %v1325_v50 = vrot.slane %v1250_v46, %v14876_v56 }
0x1449   : > { %6757 = vmatprep.subr.bf16.mxu0 %v13644_v14 }
0x144c   : > { %6758 = vmatpush1.bf16.msra.mxu0 %v13642_v47 }
0x144d   : > { %6759 = vmatprep.subr.bf16.mxu0 %v13647_v55 }
0x1450   : > { %6760 = vmatpush1.bf16.msra.mxu0 %v13645_v49 }
0x1451   : > { %6761 = vmatprep.subr.bf16.mxu0 %v13650_v59 }
0x1454   : > { %6762 = vmatpush1.bf16.msra.mxu0 %v13648_v5 }
0x1455   : > { %6763 = vmatprep.subr.bf16.mxu0 %v13653_v22 }
0x1497   : > { %v7737_v45 = vpop.xlane.xlu1 %7736 }
0x1498   : > { %14149 = vrcp.f32 %v7737_v45 }
0x149b   : > { %v7745_v51 = vpop.permute.xlu1 %7744 }
0x149c   : > { %v7750_v35 = vsel %vm6944_vm4, %v7745_v51, 0 }
0x149d   : > { %12090 = vmatpush3.bf16.msra.mxu1 %v7750_v35 }
0x149e   : > { %12095 = vmatprep.subr.bf16.mxu1 %v14476_v48 }
0x14a2   : > { %v14150_v57 = vpop.eup %14149 }
0x14a3   : > { %v7739_v58 = vmul.f32 %v14150_v57, %v15103_v3  ;;  %v13651_v3 = vld [vmem:[#allocation8 + $0x15a0] ss:$72 sps:$4 sm:$0xff]  }
0x14a4   : > { %6764 = vmatpush1.bf16.msra.mxu0 %v13651_v3 }
0x14a5   : > { %v7740_v61 = vpack.c.bf16 %v7739_v58, %v7739_v58  ;;  %6765 = vmatprep.subr.bf16.mxu0 %v13656_v31  ;;  %v11634_v31 = vcombine.low %v15117_v43, %v15117_v43 }
0x14a7   : > { %12092 = vmatmul.mubr.msk.bf16.vlgmr.msra.gmra.mrb[76].mxu1 %vm6928_vm3, %v7740_v61 }
0x14a8   : > { %12096 = vmatpush3.bf16.xpose.msra.mxu1 %v7799_v62  ;;  %12097 = vmatprep.mubr.msk.bf16.mxu1 %vm14477_vm0, %v14476_v48 }
0x14a9   : > { %12101 = vmatprep.subr.bf16.mxu1 %v14476_v48  ;;  %6766 = vmatpush1.bf16.msra.mxu0 %v13654_v2  ;;  %v11633_v2 = vcombine.low %v15125_v32, %v15125_v32 }
0x14aa   : > { %6767 = vmatprep.subr.bf16.mxu0 %v13659_v7 }
0x14ad   : > { %6768 = vmatpush1.bf16.msra.mxu0 %v13657_v39 }
0x14ae   : > { %6769 = vmatprep.subr.bf16.mxu0 %v13662_v9 }
0x14af   : > { %12098 = vmatmul.mubr.msk.bf16.vlgmr.msra.gmra.mrb[80].mxu1 %vm6880_vm1, %v15125_v32 }
0x14b0   : > { %12103 = vmatprep.mubr.msk.bf16.mxu1 %vm14477_vm0, %v14476_v48 }
0x14b1   : > { %6770 = vmatpush1.bf16.msra.mxu0 %v13660_v41 }
0x14b2   : > { %6771 = vmatprep.subr.bf16.mxu0 %v13665_v10 }
0x14b5   : > { %6772 = vmatpush1.bf16.msra.mxu0 %v13663_v27 }
0x14b6   : > { %6773 = vmatprep.subr.bf16.mxu0 %v13668_v12 }
0x14b9   : > { %6774 = vmatpush1.bf16.msra.mxu0 %v13666_v13 }
0x14ba   : > { %6775 = vmatprep.subr.bf16.mxu0 %v13671_v15 }
0x14bd   : > { %6776 = vmatpush1.bf16.msra.mxu0 %v13669_v16 }
0x14be   : > { %6777 = vmatprep.subr.bf16.mxu0 %v13674_v18 }
0x14c1   : > { %6778 = vmatpush1.bf16.msra.mxu0 %v13672_v19 }
0x14c2   : > { %6779 = vmatprep.subr.bf16.mxu0 %v13677_v60 }
0x14c5   : > { %6780 = vmatpush1.bf16.msra.mxu0 %v13675_v20 }
0x14c6   : > { %6781 = vmatprep.subr.bf16.mxu0 %v13680_v21 }
0x14c9   : > { %6782 = vmatpush1.bf16.msra.mxu0 %v13678_v0 }
0x14cc   : > { %6784 = vmatmul.mubr.bf16.vlgmr.msra.gmra.mrb[16].mxu0 %v14835_v53  ;;  %v1321_v53 = vrot.slane %v1250_v46, %v14873_v54 }
0x157a   : > { %v15132_v23 = vpop.f32.mrb[76].mxu1 }
0x157b   : > { %v12357_v24 = vpack.i.bf16 %v15082_v11, %v15132_v23  ;;  %v12093_v25 = vpop.f32.mrb[77].mxu1  ;;  %v13704_v11 = vld [vmem:[#allocation11 + $0xf4] ss:$24 sps:$4 sm:$0xff]   ;;  %v13702_v23 = vld [vmem:[#allocation11 + $0xf0] ss:$24 sps:$4 sm:$0xff]  }
0x157c   : > { %v7789_v26 = vpop.f32.mrb[78].mxu1 }
0x157d   : > { %v12094_v37 = vpop.f32.mrb[79].mxu1 }
0x1582   : > { %v7835_v30 = vpop.f32.mrb[80].mxu1 }
0x1583   : > { %v7841_v36 = vsel %vm14961_vm2, %v7835_v30, -1000000.0  ;;  %v12099_v38 = vpop.f32.mrb[81].mxu1 }
0x1584   : > { %v7838_v40 = vpop.f32.mrb[82].mxu1  ;;  %v7842_v44 = vsel %vm6928_vm3, %v7841_v36, -inf }
0x1585   : > { %7843 = vmax.xlane.f32.xlu1 %v7842_v44  ;;  %v12100_v45 = vpop.f32.mrb[83].mxu1 }
0x159f   : > { %v6785_v51 = vpop.f32.mrb[16].mxu0 }
0x15a0   : > { %v12159_v14 = vadd.f32 %v6785_v51, %v1321_v53  ;;  %v6787_v35 = vpop.f32.mrb[17].mxu0  ;;  %v8021_v53 = vld [vmem:[#allocation2 + $0x2c] sm:$0xf] }
0x15a1   : > { %v12160_v47 = vadd.f32 %v6787_v35, %v1325_v50  ;;  %v6789_v55 = vpop.f32.mrb[18].mxu0  ;;  %v8027_v51 = vsel %vm6880_vm1, %v8021_v53, 0  ;;  %v8020_v35 = vld [vmem:[#allocation2 + $0x14] sm:$0xf] }
0x15a2   : > { %v6790_v57 = vpop.f32.mrb[19].mxu0 }
0x15a3   : > { %v11947_v49 = vpack.c.bf16 %v12160_v47, %v12159_v14 }
0x15a5   : > { %6872 = vst [vmem:[#allocation2 + $0x40] sm:$0xff] %v11947_v49 }
0x15ac   : > { %v7794_v58 = vld [vmem:[#allocation2 + $0x40] sm:$0xf]  ;;  %v8022_v14 = vld [vmem:[#allocation2 + $0x44] sm:$0xf] }
0x15ad   : > { %v7858_v59 = vsel %vm6944_vm4, %v7794_v58, 0  ;;  %v11636_v0 = vcombine.low %v7794_v58, %v7794_v58  ;;  %v8086_v47 = vsel %vm6944_vm4, %v8022_v14, 0 }
0x15ae   : > { %12102 = vmatpush3.bf16.msra.mxu1 %v7858_v59 }
0x15af   : > { %12107 = vmatprep.subr.bf16.mxu1 %v14476_v48 }
0x1612   : > { %v7844_v61 = vpop.xlane.xlu1 %7843 }
0x1613   : > { %v7845_v5 = vsub.f32 %v7841_v36, %v7844_v61 }
0x1615   : > { %v7846_v62 = vmul.f32 1.442695, %v7845_v5 }
0x1617   : > { %14151 = vpow2.f32 %v7846_v62 }
0x1621   : > { %v14152_v22 = vpop.eup %14151 }
0x1622   : > { %v7848_v3 = vsel %vm6928_vm3, %v14152_v22, 0.0 }
0x1623   : > { %7849 = vadd.xlane.f32.xlu0 %v7848_v3 }
0x1639   : > { %7908 = vrot.lane.b32.xlu0 %v11634_v31, %s14475_s21  ;;  %v11640_v31 = vcombine.low %v8020_v35, %v8020_v35 }
0x163d   : > { %7903 = vrot.lane.b32.xlu0 %v11633_v2, %s14475_s21 }
0x16b0   : > { %v7850_v7 = vpop.xlane.xlu0 %7849 }
0x16b1   : > { %14153 = vrcp.f32 %v7850_v7 }
0x16b4   : > { %v7909_v41 = vpop.permute.xlu0 %7908 }
0x16b5   : > { %v7914_v27 = vsel %vm6880_vm1, %v7909_v41, 0 }
0x16b8   : > { %v7904_v43 = vpop.permute.xlu0 %7903 }
0x16bb   : > { %v14154_v39 = vpop.eup %14153 }
0x16bc   : > { %v7852_v9 = vmul.f32 %v14154_v39, %v14152_v22 }
0x16be   : > { %v7853_v10 = vpack.c.bf16 %v7852_v9, %v7852_v9 }
0x16c0   : > { %12104 = vmatmul.mubr.msk.bf16.vlgmr.msra.gmra.mrb[84].mxu1 %vm6928_vm3, %v7853_v10  ;;  %v11641_v10 = vcombine.low %v8021_v53, %v8021_v53  ;;  %v13698_v53 = vld [vmem:[#allocation11 + $0x94] ss:$24 sps:$4 sm:$0xff]  }
0x16c1   : > { %12108 = vmatpush3.bf16.xpose.msra.mxu1 %v7914_v27  ;;  %12109 = vmatprep.mubr.msk.bf16.mxu1 %vm14477_vm0, %v14476_v48 }
0x16c2   : > { %12113 = vmatprep.subr.bf16.mxu1 %v14476_v48 }
0x16c8   : > { %12110 = vmatmul.mubr.msk.bf16.vlgmr.msra.gmra.mrb[88].mxu1 %vm6880_vm1, %v7904_v43 }
0x16c9   : > { %12115 = vmatprep.mubr.msk.bf16.mxu1 %vm14477_vm0, %v14476_v48 }
0x1793   : > { %v15158_v32 = vpop.f32.mrb[84].mxu1 }
0x1794   : > { %v12105_v12 = vpop.f32.mrb[85].mxu1 }
0x1795   : > { %v7897_v13 = vpop.f32.mrb[86].mxu1 }
0x1796   : > { %v12106_v15 = vpop.f32.mrb[87].mxu1 }
0x179b   : > { %v7950_v16 = vpop.f32.mrb[88].mxu1 }
0x179c   : > { %v7956_v18 = vsel %vm14961_vm2, %v7950_v16, -1000000.0  ;;  %v12111_v19 = vpop.f32.mrb[89].mxu1 }
0x179d   : > { %v7953_v60 = vpop.f32.mrb[90].mxu1  ;;  %v7957_v20 = vsel %vm6928_vm3, %v7956_v18, -inf }
0x179e   : > { %7958 = vmax.xlane.f32.xlu1 %v7957_v20  ;;  %v12112_v21 = vpop.f32.mrb[91].mxu1 }
0x17af   : > { %7972 = vrot.lane.b32.xlu1 %v11636_v0, %s14475_s21 }
0x182b   : > { %v7959_v25 = vpop.xlane.xlu1 %7958 }
0x182c   : > { %v7960_v26 = vsub.f32 %v7956_v18, %v7959_v25 }
0x182e   : > { %v7961_v37 = vmul.f32 1.442695, %v7960_v26 }
0x182f   : > { %v7973_v30 = vpop.permute.xlu1 %7972 }
0x1830   : > { %14155 = vpow2.f32 %v7961_v37  ;;  %v7978_v36 = vsel %vm6944_vm4, %v7973_v30, 0 }
0x1831   : > { %12114 = vmatpush3.bf16.msra.mxu1 %v7978_v36 }
0x1832   : > { %12119 = vmatprep.subr.bf16.mxu1 %v14476_v48 }
0x183a   : > { %v14156_v38 = vpop.eup %14155 }
0x183b   : > { %v7963_v40 = vsel %vm6928_vm3, %v14156_v38, 0.0 }
0x183c   : > { %7964 = vadd.xlane.f32.xlu0 %v7963_v40  ;;  %v13689_v40 = vld [vmem:[#allocation11 + $0x4] ss:$24 sps:$4 sm:$0xff]  }
0x183d   : > { %10044 = vmatprep.subr.bf16.mxu0 %v13689_v40 }
0x18c9   : > { %v7965_v44 = vpop.xlane.xlu0 %7964 }
0x18ca   : > { %14157 = vrcp.f32 %v7965_v44  ;;  %v13690_v44 = vld [vmem:[#allocation11 + $0x30] ss:$24 sps:$4 sm:$0xff]  }
0x18d4   : > { %v14158_v45 = vpop.eup %14157 }
0x18d5   : > { %v7967_v46 = vmul.f32 %v14158_v45, %v14156_v38  ;;  %v11643_v38 = vcombine.low %v8022_v14, %v8022_v14  ;;  %v13695_v45 = vld [vmem:[#allocation11 + $0x64] ss:$24 sps:$4 sm:$0xff]   ;;  %v13699_v14 = vld [vmem:[#allocation11 + $0xc0] ss:$24 sps:$4 sm:$0xff]  }
0x18d7   : > { %v7968_v50 = vpack.c.bf16 %v7967_v46, %v7967_v46  ;;  %v13693_v46 = vld [vmem:[#allocation11 + $0x60] ss:$24 sps:$4 sm:$0xff]  }
0x18d9   : > { %12116 = vmatmul.mubr.msk.bf16.vlgmr.msra.gmra.mrb[92].mxu1 %vm6928_vm3, %v7968_v50  ;;  %v13696_v50 = vld [vmem:[#allocation11 + $0x90] ss:$24 sps:$4 sm:$0xff]  }
0x18da   : > { %12120 = vmatpush3.bf16.xpose.msra.mxu1 %v8027_v51  ;;  %12121 = vmatprep.mubr.msk.bf16.mxu1 %vm14477_vm0, %v14476_v48  ;;  %v13701_v51 = vld [vmem:[#allocation11 + $0xc4] ss:$24 sps:$4 sm:$0xff]  }
0x18db   : > { %12125 = vmatprep.subr.bf16.mxu1 %v14476_v48 }
0x18e1   : > { %12122 = vmatmul.mubr.msk.bf16.vlgmr.msra.gmra.mrb[96].mxu1 %vm6880_vm1, %v8020_v35  ;;  %v13705_v35 = vld [vmem:[#allocation11 + $0x120] ss:$24 sps:$4 sm:$0xff]  }
0x18e2   : > { %12126 = vmatpush3.bf16.msra.mxu1 %v8086_v47  ;;  %12127 = vmatprep.mubr.msk.bf16.mxu1 %vm14477_vm0, %v14476_v48  ;;  %v13710_v47 = vld [vmem:[#allocation11 + $0x154] ss:$24 sps:$4 sm:$0xff]  }
0x18e3   : > { %12131 = vmatprep.subr.bf16.mxu1 %v14476_v48 }
0x19ac   : > { %v15177_v55 = vpop.f32.mrb[92].mxu1 }
0x19ad   : > { %v12117_v57 = vpop.f32.mrb[93].mxu1 }
0x19ae   : > { %v8017_v49 = vpop.f32.mrb[94].mxu1  ;;  %v13708_v57 = vld [vmem:[#allocation11 + $0x150] ss:$24 sps:$4 sm:$0xff]  }
0x19af   : > { %v12118_v58 = vpop.f32.mrb[95].mxu1  ;;  %v13713_v49 = vld [vmem:[#allocation11 + $0x184] ss:$24 sps:$4 sm:$0xff]  }
0x19b0   : > { %v13711_v58 = vld [vmem:[#allocation11 + $0x180] ss:$24 sps:$4 sm:$0xff]  }
0x19b4   : > { %v8063_v59 = vpop.f32.mrb[96].mxu1 }
0x19b5   : > { %v8069_v61 = vsel %vm14961_vm2, %v8063_v59, -1000000.0  ;;  %v12123_v5 = vpop.f32.mrb[97].mxu1  ;;  %v13716_v59 = vld [vmem:[#allocation11 + $0x1b4] ss:$24 sps:$4 sm:$0xff]  }
0x19b6   : > { %v8066_v62 = vpop.f32.mrb[98].mxu1  ;;  %v8070_v22 = vsel %vm6928_vm3, %v8069_v61, -inf  ;;  %v13719_v5 = vld [vmem:[#allocation11 + $0x1e4] ss:$24 sps:$4 sm:$0xff]  }
0x19b7   : > { %8071 = vmax.xlane.f32.xlu1 %v8070_v22  ;;  %v12124_v3 = vpop.f32.mrb[99].mxu1  ;;  %v13717_v62 = vld [vmem:[#allocation11 + $0x1e0] ss:$24 sps:$4 sm:$0xff]   ;;  %v13722_v22 = vld [vmem:[#allocation11 + $0x214] ss:$24 sps:$4 sm:$0xff]  }
0x19b8   : > { %v13720_v3 = vld [vmem:[#allocation11 + $0x210] ss:$24 sps:$4 sm:$0xff]  }
0x19c8   : > { %8131 = vrot.lane.b32.xlu1 %v11640_v31, %s14475_s21  ;;  %v13725_v31 = vld [vmem:[#allocation11 + $0x244] ss:$24 sps:$4 sm:$0xff]  }
0x1a44   : > { %v8072_v2 = vpop.xlane.xlu1 %8071 }
0x1a45   : > { %v8073_v7 = vsub.f32 %v8069_v61, %v8072_v2  ;;  %v13714_v61 = vld [vmem:[#allocation11 + $0x1b0] ss:$24 sps:$4 sm:$0xff]   ;;  %v13723_v2 = vld [vmem:[#allocation11 + $0x240] ss:$24 sps:$4 sm:$0xff]  }
0x1a47   : > { %v8074_v39 = vmul.f32 1.442695, %v8073_v7  ;;  %v13728_v7 = vld [vmem:[#allocation11 + $0x274] ss:$24 sps:$4 sm:$0xff]  }
0x1a48   : > { %v8132_v18 = vpop.permute.xlu1 %8131 }
0x1a49   : > { %14159 = vpow2.f32 %v8074_v39  ;;  %v13726_v39 = vld [vmem:[#allocation11 + $0x270] ss:$24 sps:$4 sm:$0xff]  }
0x1a53   : > { %v14160_v9 = vpop.eup %14159 }
0x1a54   : > { %v8076_v41 = vsel %vm6928_vm3, %v14160_v9, 0.0 }
0x1a55   : > { %8077 = vadd.xlane.f32.xlu0 %v8076_v41 }
0x1a6b   : > { %8136 = vrot.lane.b32.xlu0 %v11641_v10, %s14475_s21 }
0x1ae2   : > { %v8078_v27 = vpop.xlane.xlu0 %8077 }
0x1ae3   : > { %14161 = vrcp.f32 %v8078_v27 }
0x1ae6   : > { %v8137_v13 = vpop.permute.xlu0 %8136 }
0x1ae7   : > { %v8142_v16 = vsel %vm6880_vm1, %v8137_v13, 0 }
0x1aed   : > { %v14162_v43 = vpop.eup %14161 }
0x1aee   : > { %v8080_v12 = vmul.f32 %v14162_v43, %v14160_v9 }
0x1af0   : > { %v8081_v15 = vpack.c.bf16 %v8080_v12, %v8080_v12 }
0x1af2   : > { %12128 = vmatmul.mubr.msk.bf16.vlgmr.msra.gmra.mrb[100].mxu1 %vm6928_vm3, %v8081_v15  ;;  %v13731_v15 = vld [vmem:[#allocation11 + $0x2a4] ss:$24 sps:$4 sm:$0xff]  }
0x1af3   : > { %12132 = vmatpush3.bf16.xpose.msra.mxu1 %v8142_v16  ;;  %12133 = vmatprep.mubr.msk.bf16.mxu1 %vm14477_vm0, %v14476_v48  ;;  %v13729_v16 = vld [vmem:[#allocation11 + $0x2a0] ss:$24 sps:$4 sm:$0xff]  }
0x1af4   : > { %12137 = vmatprep.subr.bf16.mxu1 %v14476_v48 }
0x1afa   : > { %12134 = vmatmul.mubr.msk.bf16.vlgmr.msra.gmra.mrb[104].mxu1 %vm6880_vm1, %v8132_v18  ;;  %v13734_v18 = vld [vmem:[#allocation11 + $0x2d4] ss:$24 sps:$4 sm:$0xff]  }
0x1afb   : > { %12139 = vmatprep.mubr.msk.bf16.mxu1 %vm14477_vm0, %v14476_v48  ;;  %v13687_v48 = vld [vmem:[#allocation11] ss:$24 sps:$4 sm:$0xff]  }
0x1afc   : > { %10045 = vmatpush1.bf16.msra.mxu0 %v13687_v48 }
0x1afd   : > { %10046 = vmatprep.subr.bf16.mxu0 %v13692_v63  ;;  %v13735_v63 = vld [vmem:[#allocation11 + $0x300] ss:$24 sps:$4 sm:$0xff]  }
0x1b00   : > { %10047 = vmatpush1.bf16.msra.mxu0 %v13690_v44  ;;  %v13740_v44 = vld [vmem:[#allocation11 + $0x334] ss:$24 sps:$4 sm:$0xff]  }
0x1b01   : > { %10048 = vmatprep.subr.bf16.mxu0 %v13695_v45 }
0x1b04   : > { %10049 = vmatpush1.bf16.msra.mxu0 %v13693_v46  ;;  %v13743_v46 = vld [vmem:[#allocation11 + $0x364] ss:$24 sps:$4 sm:$0xff]  }
0x1b05   : > { %10050 = vmatprep.subr.bf16.mxu0 %v13698_v53  ;;  %v13741_v53 = vld [vmem:[#allocation11 + $0x360] ss:$24 sps:$4 sm:$0xff]  }
0x1b08   : > { %10051 = vmatpush1.bf16.msra.mxu0 %v13696_v50  ;;  %v13746_v50 = vld [vmem:[#allocation11 + $0x394] ss:$24 sps:$4 sm:$0xff]  }
0x1b09   : > { %10052 = vmatprep.subr.bf16.mxu0 %v13701_v51  ;;  %v13744_v51 = vld [vmem:[#allocation11 + $0x390] ss:$24 sps:$4 sm:$0xff]  }
0x1b0c   : > { %10053 = vmatpush1.bf16.msra.mxu0 %v13699_v14  ;;  %v13747_v14 = vld [vmem:[#allocation11 + $0x3c0] ss:$24 sps:$4 sm:$0xff]  }
0x1b0d   : > { %10054 = vmatprep.subr.bf16.mxu0 %v13704_v11  ;;  %v13752_v11 = vld [vmem:[#allocation11 + $0x3f4] ss:$24 sps:$4 sm:$0xff]  }
0x1b10   : > { %10055 = vmatpush1.bf16.msra.mxu0 %v13702_v23  ;;  %v13750_v23 = vld [vmem:[#allocation11 + $0x3f0] ss:$24 sps:$4 sm:$0xff]  }
0x1bc5   : > { %v15193_v19 = vpop.f32.mrb[100].mxu1 }
0x1bc6   : > { %v12129_v60 = vpop.f32.mrb[101].mxu1 }
0x1bc7   : > { %v8125_v20 = vpop.f32.mrb[102].mxu1  ;;  %v13732_v60 = vld [vmem:[#allocation11 + $0x2d0] ss:$24 sps:$4 sm:$0xff]  }
0x1bc8   : > { %v12130_v21 = vpop.f32.mrb[103].mxu1  ;;  %v13737_v20 = vld [vmem:[#allocation11 + $0x304] ss:$24 sps:$4 sm:$0xff]  }
0x1bcd   : > { %v8178_v0 = vpop.f32.mrb[104].mxu1 }
0x1bce   : > { %v15197_v25 = vsel %vm14961_vm2, %v8178_v0, -1000000.0  ;;  %v12135_v26 = vpop.f32.mrb[105].mxu1 }
0x1bcf   : > { %v8181_v37 = vpop.f32.mrb[106].mxu1  ;;  %v8185_v30 = vsel %vm6928_vm3, %v15197_v25, -inf }
0x1bd0   : > { %8186 = vmax.xlane.f32.xlu0 %v8185_v30  ;;  %v12136_v36 = vpop.f32.mrb[107].mxu1 }
0x1be6   : > { %8200 = vrot.lane.b32.xlu0 %v11643_v38, %s14475_s21 }
0x1bea   : > { %12358 = vrot.lane.b32.xlu0 %v12357_v24, %s14475_s21  ;;  %v13707_v24 = vld [vmem:[#allocation11 + $0x124] ss:$24 sps:$4 sm:$0xff]  }
0x1beb   : > { %10056 = vmatprep.subr.bf16.mxu0 %v13707_v24  ;;  %v13755_v24 = vld [vmem:[#allocation11 + $0x424] ss:$24 sps:$4 sm:$0xff]  }
0x1bec   : > { %10057 = vmatpush1.bf16.msra.mxu0 %v13705_v35  ;;  %v13753_v35 = vld [vmem:[#allocation11 + $0x420] ss:$24 sps:$4 sm:$0xff]  }
0x1bed   : > { %10058 = vmatprep.subr.bf16.mxu0 %v13710_v47  ;;  %v13758_v47 = vld [vmem:[#allocation11 + $0x454] ss:$24 sps:$4 sm:$0xff]  }
0x1bf0   : > { %10059 = vmatpush1.bf16.msra.mxu0 %v13708_v57  ;;  %v13756_v57 = vld [vmem:[#allocation11 + $0x450] ss:$24 sps:$4 sm:$0xff]  }
0x1bf1   : > { %10060 = vmatprep.subr.bf16.mxu0 %v13713_v49  ;;  %v13761_v49 = vld [vmem:[#allocation11 + $0x484] ss:$24 sps:$4 sm:$0xff]  }
0x1bf4   : > { %10061 = vmatpush1.bf16.msra.mxu0 %v13711_v58  ;;  %v13759_v58 = vld [vmem:[#allocation11 + $0x480] ss:$24 sps:$4 sm:$0xff]  }
0x1bf5   : > { %10062 = vmatprep.subr.bf16.mxu0 %v13716_v59  ;;  %v13764_v59 = vld [vmem:[#allocation11 + $0x4b4] ss:$24 sps:$4 sm:$0xff]  }
0x1bf8   : > { %10063 = vmatpush1.bf16.msra.mxu0 %v13714_v61  ;;  %v13762_v61 = vld [vmem:[#allocation11 + $0x4b0] ss:$24 sps:$4 sm:$0xff]  }
0x1bf9   : > { %10064 = vmatprep.subr.bf16.mxu0 %v13719_v5  ;;  %v13767_v5 = vld [vmem:[#allocation11 + $0x4e4] ss:$24 sps:$4 sm:$0xff]  }
0x1bfc   : > { %10065 = vmatpush1.bf16.msra.mxu0 %v13717_v62  ;;  %v13765_v62 = vld [vmem:[#allocation11 + $0x4e0] ss:$24 sps:$4 sm:$0xff]  }
0x1bfd   : > { %10066 = vmatprep.subr.bf16.mxu0 %v13722_v22  ;;  %v13770_v22 = vld [vmem:[#allocation11 + $0x514] ss:$24 sps:$4 sm:$0xff]  }
0x1c00   : > { %10067 = vmatpush1.bf16.msra.mxu0 %v13720_v3  ;;  %v13768_v3 = vld [vmem:[#allocation11 + $0x510] ss:$24 sps:$4 sm:$0xff]  }
0x1c01   : > { %10068 = vmatprep.subr.bf16.mxu0 %v13725_v31  ;;  %v13773_v31 = vld [vmem:[#allocation11 + $0x544] ss:$24 sps:$4 sm:$0xff]  }
0x1c04   : > { %10069 = vmatpush1.bf16.msra.mxu0 %v13723_v2  ;;  %v13771_v2 = vld [vmem:[#allocation11 + $0x540] ss:$24 sps:$4 sm:$0xff]  }
0x1c05   : > { %10070 = vmatprep.subr.bf16.mxu0 %v13728_v7  ;;  %v13776_v7 = vld [vmem:[#allocation11 + $0x574] ss:$24 sps:$4 sm:$0xff]  }
0x1c08   : > { %10071 = vmatpush1.bf16.msra.mxu0 %v13726_v39  ;;  %v13774_v39 = vld [vmem:[#allocation11 + $0x570] ss:$24 sps:$4 sm:$0xff]  }
0x1c09   : > { %10072 = vmatprep.subr.bf16.mxu0 %v13731_v15  ;;  %v13783_v15 = vld [vmem:[#allocation11 + $0x8] ss:$24 sps:$4 sm:$0xff]  }
0x1c0c   : > { %10073 = vmatpush1.bf16.msra.mxu0 %v13729_v16 }
0x1c0d   : > { %10074 = vmatprep.subr.bf16.mxu0 %v13734_v18  ;;  %v13788_v18 = vld [vmem:[#allocation11 + $0x3c] ss:$24 sps:$4 sm:$0xff]  }
0x1c10   : > { %10075 = vmatpush1.bf16.msra.mxu0 %v13732_v60  ;;  %v13786_v60 = vld [vmem:[#allocation11 + $0x38] ss:$24 sps:$4 sm:$0xff]  }
0x1c5d   : > { %v8187_v9 = vpop.xlane.xlu0 %8186 }
0x1c5e   : > { %v8188_v41 = vsub.f32 %v15197_v25, %v8187_v9  ;;  %v13779_v9 = vld [vmem:[#allocation11 + $0x5a4] ss:$24 sps:$4 sm:$0xff]  }
0x1c60   : > { %v8189_v10 = vmul.f32 1.442695, %v8188_v41  ;;  %v13777_v41 = vld [vmem:[#allocation11 + $0x5a0] ss:$24 sps:$4 sm:$0xff]  }
0x1c61   : > { %v8201_v27 = vpop.permute.xlu0 %8200 }
0x1c62   : > { %14163 = vpow2.f32 %v8189_v10  ;;  %v8206_v43 = vsel %vm6944_vm4, %v8201_v27, 0  ;;  %v13782_v10 = vld [vmem:[#allocation11 + $0x5d4] ss:$24 sps:$4 sm:$0xff]  }
0x1c63   : > { %12138 = vmatpush3.bf16.msra.mxu1 %v8206_v43  ;;  %v13780_v43 = vld [vmem:[#allocation11 + $0x5d0] ss:$24 sps:$4 sm:$0xff]  }
0x1c64   : > { %10085 = vmatprep.subr.bf16.mxu1 %v13737_v20  ;;  %v13791_v20 = vld [vmem:[#allocation11 + $0x6c] ss:$24 sps:$4 sm:$0xff]  }
0x1c65   : > { %v15213_v25 = vpop.permute.xlu0 %12358 }
0x1c66   : > { %v12360_v17 = vunpack.i.l.bf16 %v15213_v25  ;;  %v12361_v27 = vunpack.i.h.bf16 %v15213_v25  ;;  %v13797_v25 = vld [vmem:[#allocation11 + $0xcc] ss:$24 sps:$4 sm:$0xff]  }
0x1c68   : > { %v8275_v40 = vsel %vm6880_vm1, %v15098_v52, %v12360_v17  ;;  %v13749_v52 = vld [vmem:[#allocation11 + $0x3c4] ss:$24 sps:$4 sm:$0xff]   ;;  %v13801_v17 = vld [vmem:[#allocation11 + $0x128] ss:$24 sps:$4 sm:$0xff]  }
0x1c69   : > { %v15228_v45 = vpack.c.bf16 %v8275_v40, %v8275_v40  ;;  %v13833_v40 = vld [vmem:[#allocation11 + $0x604] ss:$24 sps:$4 sm:$0xff]  }
0x1c6a   : > { %10126 = vmatprep.subr.bf16.mxu0 %v13833_v40  ;;  %v13882_v40 = vld [vmem:[#allocation11 + $0x788] ss:$24 sps:$4 sm:$0xff]  }
0x1c6c   : > { %v14164_v12 = vpop.eup %14163 }
0x1c6d   : > { %v8191_v13 = vsel %vm6928_vm3, %v14164_v12, 0.0 }
0x1c6e   : > { %8192 = vadd.xlane.f32.xlu1 %v8191_v13  ;;  %v8274_v13 = vsel %vm6880_vm1, %v15058_v42, %v12361_v27  ;;  %v13792_v42 = vld [vmem:[#allocation11 + $0x98] ss:$24 sps:$4 sm:$0xff]   ;;  %v13857_v27 = vld [vmem:[#allocation11 + $0x6c4] ss:$24 sps:$4 sm:$0xff]  }
0x1c6f   : > { %v15235_v16 = vpack.c.bf16 %v8274_v13, %v8274_v13  ;;  %v13858_v13 = vld [vmem:[#allocation11 + $0x6c8] ss:$24 sps:$4 sm:$0xff]  }
0x1c7f   : > { %12353 = vrot.lane.b32.xlu1 %v12352_v6, %s14475_s21 }
0x1cfb   : > { %v8193_v21 = vpop.xlane.xlu1 %8192 }
0x1cfc   : > { %14165 = vrcp.f32 %v8193_v21  ;;  %v13789_v21 = vld [vmem:[#allocation11 + $0x68] ss:$24 sps:$4 sm:$0xff]  }
0x1cff   : > { %v12354_v0 = vpop.permute.xlu1 %12353 }
0x1d00   : > { %v12356_v26 = vunpack.i.h.bf16 %v12354_v0  ;;  %v12355_v37 = vunpack.i.l.bf16 %v12354_v0  ;;  %v13794_v0 = vld [vmem:[#allocation11 + $0x9c] ss:$24 sps:$4 sm:$0xff]  }
0x1d02   : > { %v8272_v30 = vsel %vm6880_vm1, %v14983_v33, %v12356_v26  ;;  %v8273_v8 = vsel %vm6880_vm1, %v15018_v34, %v12355_v37  ;;  %v13738_v34 = vld [vmem:[#allocation11 + $0x330] ss:$24 sps:$4 sm:$0xff]   ;;  %v13800_v37 = vld [vmem:[#allocation11 + $0xfc] ss:$24 sps:$4 sm:$0xff]  }
0x1d03   : > { %v15220_v6 = vpack.c.bf16 %v8272_v30, %v8272_v30  ;;  %v15222_v36 = vpack.c.bf16 %v8273_v8, %v8273_v8  ;;  %v13795_v26 = vld [vmem:[#allocation11 + $0xc8] ss:$24 sps:$4 sm:$0xff]   ;;  %v13798_v30 = vld [vmem:[#allocation11 + $0xf8] ss:$24 sps:$4 sm:$0xff]   ;;  %v13803_v8 = vld [vmem:[#allocation11 + $0x12c] ss:$24 sps:$4 sm:$0xff]  }
0x1d05   : > { %10076 = vmatprep.mubr.bf16.mxu0 %v15222_v36 }
0x1d06   : > { %v14166_v38 = vpop.eup %14165  ;;  %10077 = vmatmul.mubr.bf16.vlgmr.msra.gmra.mrb[20].mxu0 %v15220_v6 }
0x1d07   : > { %v8195_v48 = vmul.f32 %v14166_v38, %v14164_v12  ;;  %v13785_v12 = vld [vmem:[#allocation11 + $0xc] ss:$24 sps:$4 sm:$0xff]   ;;  %v13806_v38 = vld [vmem:[#allocation11 + $0x15c] ss:$24 sps:$4 sm:$0xff]  }
0x1d09   : > { %v8196_v33 = vpack.c.bf16 %v8195_v48, %v8195_v48  ;;  %v13831_v48 = vld [vmem:[#allocation11 + $0x600] ss:$24 sps:$4 sm:$0xff]  }
0x1d0a   : > { %10127 = vmatpush1.bf16.msra.mxu0 %v13831_v48  ;;  %v13879_v48 = vld [vmem:[#allocation11 + $0x780] ss:$24 sps:$4 sm:$0xff]  }
0x1d0b   : > { %12140 = vmatmul.mubr.msk.bf16.vlgmr.msra.gmra.mrb[108].mxu1 %vm6928_vm3, %v8196_v33  ;;  %v13809_v33 = vld [vmem:[#allocation11 + $0x18c] ss:$24 sps:$4 sm:$0xff]  }
0x1d0c   : > { %10086 = vmatpush1.bf16.msra.mxu1 %v13735_v63  ;;  %10117 = vmatprep.mubr.bf16.mxu1 %v15228_v45  ;;  %v13804_v63 = vld [vmem:[#allocation11 + $0x158] ss:$24 sps:$4 sm:$0xff]  }
0x1d0d   : > { %10087 = vmatprep.subr.bf16.mxu1 %v13740_v44  ;;  %v13807_v44 = vld [vmem:[#allocation11 + $0x188] ss:$24 sps:$4 sm:$0xff]  }
0x1d10   : > { %10088 = vmatpush1.bf16.msra.mxu1 %v13738_v34  ;;  %v13812_v34 = vld [vmem:[#allocation11 + $0x1bc] ss:$24 sps:$4 sm:$0xff]  }
0x1d11   : > { %10089 = vmatprep.subr.bf16.mxu1 %v13743_v46  ;;  %v13810_v46 = vld [vmem:[#allocation11 + $0x1b8] ss:$24 sps:$4 sm:$0xff]  }
0x1d14   : > { %10090 = vmatpush1.bf16.msra.mxu1 %v13741_v53  ;;  %v13815_v53 = vld [vmem:[#allocation11 + $0x1ec] ss:$24 sps:$4 sm:$0xff]  }
0x1d15   : > { %10091 = vmatprep.subr.bf16.mxu1 %v13746_v50  ;;  %v13813_v50 = vld [vmem:[#allocation11 + $0x1e8] ss:$24 sps:$4 sm:$0xff]  }
0x1d18   : > { %10092 = vmatpush1.bf16.msra.mxu1 %v13744_v51  ;;  %v13818_v51 = vld [vmem:[#allocation11 + $0x21c] ss:$24 sps:$4 sm:$0xff]  }
0x1d19   : > { %10093 = vmatprep.subr.bf16.mxu1 %v13749_v52  ;;  %v13816_v52 = vld [vmem:[#allocation11 + $0x218] ss:$24 sps:$4 sm:$0xff]  }
0x1d1c   : > { %10094 = vmatpush1.bf16.msra.mxu1 %v13747_v14  ;;  %v13821_v14 = vld [vmem:[#allocation11 + $0x24c] ss:$24 sps:$4 sm:$0xff]  }
0x1d1d   : > { %10095 = vmatprep.subr.bf16.mxu1 %v13752_v11  ;;  %v13819_v11 = vld [vmem:[#allocation11 + $0x248] ss:$24 sps:$4 sm:$0xff]  }
0x1d20   : > { %10096 = vmatpush1.bf16.msra.mxu1 %v13750_v23  ;;  %v13824_v23 = vld [vmem:[#allocation11 + $0x27c] ss:$24 sps:$4 sm:$0xff]  }
0x1d21   : > { %10097 = vmatprep.subr.bf16.mxu1 %v13755_v24  ;;  %v13822_v24 = vld [vmem:[#allocation11 + $0x278] ss:$24 sps:$4 sm:$0xff]  }
0x1d24   : > { %10098 = vmatpush1.bf16.msra.mxu1 %v13753_v35  ;;  %v13827_v35 = vld [vmem:[#allocation11 + $0x2ac] ss:$24 sps:$4 sm:$0xff]  }
0x1d25   : > { %10099 = vmatprep.subr.bf16.mxu1 %v13758_v47  ;;  %v13825_v47 = vld [vmem:[#allocation11 + $0x2a8] ss:$24 sps:$4 sm:$0xff]  }
0x1d28   : > { %10100 = vmatpush1.bf16.msra.mxu1 %v13756_v57  ;;  %v13830_v57 = vld [vmem:[#allocation11 + $0x2dc] ss:$24 sps:$4 sm:$0xff]  }
0x1d29   : > { %10101 = vmatprep.subr.bf16.mxu1 %v13761_v49  ;;  %v13828_v49 = vld [vmem:[#allocation11 + $0x2d8] ss:$24 sps:$4 sm:$0xff]  }
0x1d2c   : > { %10102 = vmatpush1.bf16.msra.mxu1 %v13759_v58  ;;  %v13836_v58 = vld [vmem:[#allocation11 + $0x60c] ss:$24 sps:$4 sm:$0xff]  }
0x1d2d   : > { %10103 = vmatprep.subr.bf16.mxu1 %v13764_v59  ;;  %v13834_v59 = vld [vmem:[#allocation11 + $0x608] ss:$24 sps:$4 sm:$0xff]  }
0x1d30   : > { %10104 = vmatpush1.bf16.msra.mxu1 %v13762_v61  ;;  %v13839_v61 = vld [vmem:[#allocation11 + $0x634] ss:$24 sps:$4 sm:$0xff]  }
0x1d31   : > { %10105 = vmatprep.subr.bf16.mxu1 %v13767_v5  ;;  %v13842_v5 = vld [vmem:[#allocation11 + $0x63c] ss:$24 sps:$4 sm:$0xff]   ;;  %10128 = vmatprep.subr.bf16.mxu0 %v13839_v61  ;;  %v13912_v61 = vld [vmem:[#allocation11 + $0x878] ss:$24 sps:$4 sm:$0xff]  }
0x1d34   : > { %10106 = vmatpush1.bf16.msra.mxu1 %v13765_v62  ;;  %v13837_v62 = vld [vmem:[#allocation11 + $0x630] ss:$24 sps:$4 sm:$0xff]  }
0x1d35   : > { %10107 = vmatprep.subr.bf16.mxu1 %v13770_v22  ;;  %v13840_v22 = vld [vmem:[#allocation11 + $0x638] ss:$24 sps:$4 sm:$0xff]   ;;  %10129 = vmatpush1.bf16.msra.mxu0 %v13837_v62  ;;  %v13920_v62 = vld [vmem:[#allocation11 + $0x8ac] ss:$24 sps:$4 sm:$0xff]  }
0x1d38   : > { %10108 = vmatpush1.bf16.msra.mxu1 %v13768_v3  ;;  %v13845_v3 = vld [vmem:[#allocation11 + $0x664] ss:$24 sps:$4 sm:$0xff]  }
0x1d39   : > { %10109 = vmatprep.subr.bf16.mxu1 %v13773_v31  ;;  %v13848_v31 = vld [vmem:[#allocation11 + $0x66c] ss:$24 sps:$4 sm:$0xff]   ;;  %10130 = vmatprep.subr.bf16.mxu0 %v13845_v3  ;;  %v13918_v3 = vld [vmem:[#allocation11 + $0x8a8] ss:$24 sps:$4 sm:$0xff]  }
0x1d3c   : > { %10110 = vmatpush1.bf16.msra.mxu1 %v13771_v2  ;;  %v13843_v2 = vld [vmem:[#allocation11 + $0x660] ss:$24 sps:$4 sm:$0xff]  }
0x1d3d   : > { %10111 = vmatprep.subr.bf16.mxu1 %v13776_v7  ;;  %v13846_v7 = vld [vmem:[#allocation11 + $0x668] ss:$24 sps:$4 sm:$0xff]   ;;  %10131 = vmatpush1.bf16.msra.mxu0 %v13843_v2  ;;  %v13926_v2 = vld [vmem:[#allocation11 + $0x8dc] ss:$24 sps:$4 sm:$0xff]  }
0x1d40   : > { %10112 = vmatpush1.bf16.msra.mxu1 %v13774_v39  ;;  %v13851_v39 = vld [vmem:[#allocation11 + $0x694] ss:$24 sps:$4 sm:$0xff]  }
0x1d41   : > { %10113 = vmatprep.subr.bf16.mxu1 %v13779_v9  ;;  %v13854_v9 = vld [vmem:[#allocation11 + $0x69c] ss:$24 sps:$4 sm:$0xff]   ;;  %10132 = vmatprep.subr.bf16.mxu0 %v13851_v39  ;;  %v13924_v39 = vld [vmem:[#allocation11 + $0x8d8] ss:$24 sps:$4 sm:$0xff]  }
0x1d44   : > { %10114 = vmatpush1.bf16.msra.mxu1 %v13777_v41  ;;  %v13849_v41 = vld [vmem:[#allocation11 + $0x690] ss:$24 sps:$4 sm:$0xff]  }
0x1d45   : > { %10115 = vmatprep.subr.bf16.mxu1 %v13782_v10  ;;  %v13852_v10 = vld [vmem:[#allocation11 + $0x698] ss:$24 sps:$4 sm:$0xff]   ;;  %10133 = vmatpush1.bf16.msra.mxu0 %v13849_v41  ;;  %v13932_v41 = vld [vmem:[#allocation11 + $0x314] ss:$24 sps:$4 sm:$0xff]  }
0x1d46   : > { %10134 = vmatprep.subr.bf16.mxu0 %v13857_v27 }
0x1d48   : > { %10116 = vmatpush1.bf16.msra.mxu1 %v13780_v43  ;;  %v13860_v43 = vld [vmem:[#allocation11 + $0x6cc] ss:$24 sps:$4 sm:$0xff]  }
0x1d49   : > { %10167 = vmatprep.subr.bf16.mxu1 %v13785_v12  ;;  %v13855_v12 = vld [vmem:[#allocation11 + $0x6c0] ss:$24 sps:$4 sm:$0xff]  }
0x1d4a   : > { %10135 = vmatpush1.bf16.msra.mxu0 %v13855_v12 }
0x1d4b   : > { %10118 = vmatmul.mubr.bf16.vlgmr.msra.gmra.mrb[112].mxu1 %v15235_v16 }
0x1d4c   : > { %10168 = vmatpush1.bf16.msra.mxu1 %v13783_v15  ;;  %10199 = vmatprep.mubr.bf16.mxu1 %v15222_v36  ;;  %v13863_v15 = vld [vmem:[#allocation11 + $0x6f4] ss:$24 sps:$4 sm:$0xff]  }
0x1d4d   : > { %10169 = vmatprep.subr.bf16.mxu1 %v13788_v18  ;;  %v13866_v18 = vld [vmem:[#allocation11 + $0x6fc] ss:$24 sps:$4 sm:$0xff]   ;;  %10136 = vmatprep.subr.bf16.mxu0 %v13863_v15 }
0x1d50   : > { %10170 = vmatpush1.bf16.msra.mxu1 %v13786_v60  ;;  %v13861_v60 = vld [vmem:[#allocation11 + $0x6f0] ss:$24 sps:$4 sm:$0xff]  }
0x1d51   : > { %10171 = vmatprep.subr.bf16.mxu1 %v13791_v20  ;;  %v13864_v20 = vld [vmem:[#allocation11 + $0x6f8] ss:$24 sps:$4 sm:$0xff]   ;;  %10137 = vmatpush1.bf16.msra.mxu0 %v13861_v60 }
0x1d54   : > { %10172 = vmatpush1.bf16.msra.mxu1 %v13789_v21  ;;  %v13869_v21 = vld [vmem:[#allocation11 + $0x724] ss:$24 sps:$4 sm:$0xff]  }
0x1d55   : > { %10173 = vmatprep.subr.bf16.mxu1 %v13794_v0  ;;  %v13872_v0 = vld [vmem:[#allocation11 + $0x72c] ss:$24 sps:$4 sm:$0xff]   ;;  %10138 = vmatprep.subr.bf16.mxu0 %v13869_v21 }
0x1d56   : > { %v15242_v21 = vld [vmem:[#allocation13] sm:$0x3f] }
0x1d58   : > { %10174 = vmatpush1.bf16.msra.mxu1 %v13792_v42  ;;  %v13867_v42 = vld [vmem:[#allocation11 + $0x720] ss:$24 sps:$4 sm:$0xff]  }
0x1d59   : > { %10175 = vmatprep.subr.bf16.mxu1 %v13797_v25  ;;  %v13870_v25 = vld [vmem:[#allocation11 + $0x728] ss:$24 sps:$4 sm:$0xff]   ;;  %10139 = vmatpush1.bf16.msra.mxu0 %v13867_v42  ;;  %v8581_v42 = vrot.slane %v15242_v21, %v14876_v56 }
0x1d5c   : > { %10176 = vmatpush1.bf16.msra.mxu1 %v13795_v26  ;;  %v13875_v26 = vld [vmem:[#allocation11 + $0x754] ss:$24 sps:$4 sm:$0xff]  }
0x1d5d   : > { %10177 = vmatprep.subr.bf16.mxu1 %v13800_v37  ;;  %v13878_v37 = vld [vmem:[#allocation11 + $0x75c] ss:$24 sps:$4 sm:$0xff]   ;;  %10140 = vmatprep.subr.bf16.mxu0 %v13875_v26 }
0x1d60   : > { %10178 = vmatpush1.bf16.msra.mxu1 %v13798_v30  ;;  %v13873_v30 = vld [vmem:[#allocation11 + $0x750] ss:$24 sps:$4 sm:$0xff]  }
0x1d61   : > { %10179 = vmatprep.subr.bf16.mxu1 %v13803_v8  ;;  %v13876_v8 = vld [vmem:[#allocation11 + $0x758] ss:$24 sps:$4 sm:$0xff]   ;;  %10141 = vmatpush1.bf16.msra.mxu0 %v13873_v30 }
0x1d64   : > { %10180 = vmatpush1.bf16.msra.mxu1 %v13801_v17  ;;  %v13881_v17 = vld [vmem:[#allocation11 + $0x784] ss:$24 sps:$4 sm:$0xff]  }
0x1d65   : > { %10181 = vmatprep.subr.bf16.mxu1 %v13806_v38  ;;  %v13884_v38 = vld [vmem:[#allocation11 + $0x78c] ss:$24 sps:$4 sm:$0xff]   ;;  %10142 = vmatprep.subr.bf16.mxu0 %v13881_v17 }
0x1d66   : > { %10143 = vmatpush1.bf16.msra.mxu0 %v13879_v48 }
0x1d68   : > { %10182 = vmatpush1.bf16.msra.mxu1 %v13804_v63  ;;  %v13887_v63 = vld [vmem:[#allocation11 + $0x7b4] ss:$24 sps:$4 sm:$0xff]  }
0x1d69   : > { %10183 = vmatprep.subr.bf16.mxu1 %v13809_v33  ;;  %v13890_v33 = vld [vmem:[#allocation11 + $0x7bc] ss:$24 sps:$4 sm:$0xff]   ;;  %10144 = vmatprep.subr.bf16.mxu0 %v13887_v63 }
0x1d6c   : > { %10184 = vmatpush1.bf16.msra.mxu1 %v13807_v44  ;;  %v13885_v44 = vld [vmem:[#allocation11 + $0x7b0] ss:$24 sps:$4 sm:$0xff]  }
0x1d6d   : > { %10185 = vmatprep.subr.bf16.mxu1 %v13812_v34  ;;  %v13888_v34 = vld [vmem:[#allocation11 + $0x7b8] ss:$24 sps:$4 sm:$0xff]   ;;  %10145 = vmatpush1.bf16.msra.mxu0 %v13885_v44 }
0x1d70   : > { %10186 = vmatpush1.bf16.msra.mxu1 %v13810_v46  ;;  %v13893_v46 = vld [vmem:[#allocation11 + $0x7e4] ss:$24 sps:$4 sm:$0xff]  }
0x1d71   : > { %10187 = vmatprep.subr.bf16.mxu1 %v13815_v53  ;;  %v13896_v53 = vld [vmem:[#allocation11 + $0x7ec] ss:$24 sps:$4 sm:$0xff]   ;;  %10146 = vmatprep.subr.bf16.mxu0 %v13893_v46 }
0x1d74   : > { %10188 = vmatpush1.bf16.msra.mxu1 %v13813_v50  ;;  %v13891_v50 = vld [vmem:[#allocation11 + $0x7e0] ss:$24 sps:$4 sm:$0xff]  }
0x1d75   : > { %10189 = vmatprep.subr.bf16.mxu1 %v13818_v51  ;;  %v13894_v51 = vld [vmem:[#allocation11 + $0x7e8] ss:$24 sps:$4 sm:$0xff]   ;;  %10147 = vmatpush1.bf16.msra.mxu0 %v13891_v50 }
0x1d76   : > { %v13930_v50 = vld [vmem:[#allocation11 + $0x310] ss:$24 sps:$4 sm:$0xff]  }
0x1d78   : > { %10190 = vmatpush1.bf16.msra.mxu1 %v13816_v52  ;;  %v13899_v52 = vld [vmem:[#allocation11 + $0x814] ss:$24 sps:$4 sm:$0xff]  }
0x1d79   : > { %10191 = vmatprep.subr.bf16.mxu1 %v13821_v14  ;;  %v13902_v14 = vld [vmem:[#allocation11 + $0x81c] ss:$24 sps:$4 sm:$0xff]   ;;  %10148 = vmatprep.subr.bf16.mxu0 %v13899_v52 }
0x1d7a   : > { %v13938_v52 = vld [vmem:[#allocation11 + $0x344] ss:$24 sps:$4 sm:$0xff]  }
0x1d7c   : > { %10192 = vmatpush1.bf16.msra.mxu1 %v13819_v11  ;;  %v13897_v11 = vld [vmem:[#allocation11 + $0x810] ss:$24 sps:$4 sm:$0xff]  }
0x1d7d   : > { %10193 = vmatprep.subr.bf16.mxu1 %v13824_v23  ;;  %v13900_v23 = vld [vmem:[#allocation11 + $0x818] ss:$24 sps:$4 sm:$0xff]   ;;  %10149 = vmatpush1.bf16.msra.mxu0 %v13897_v11  ;;  %v13944_v11 = vld [vmem:[#allocation11 + $0x374] ss:$24 sps:$4 sm:$0xff]  }
0x1d80   : > { %10194 = vmatpush1.bf16.msra.mxu1 %v13822_v24  ;;  %v13905_v24 = vld [vmem:[#allocation11 + $0x844] ss:$24 sps:$4 sm:$0xff]  }
0x1d81   : > { %10195 = vmatprep.subr.bf16.mxu1 %v13827_v35  ;;  %v13908_v35 = vld [vmem:[#allocation11 + $0x84c] ss:$24 sps:$4 sm:$0xff]   ;;  %10150 = vmatprep.subr.bf16.mxu0 %v13905_v24 }
0x1d84   : > { %10196 = vmatpush1.bf16.msra.mxu1 %v13825_v47  ;;  %v13903_v47 = vld [vmem:[#allocation11 + $0x840] ss:$24 sps:$4 sm:$0xff]  }
0x1d85   : > { %10197 = vmatprep.subr.bf16.mxu1 %v13830_v57  ;;  %v13906_v57 = vld [vmem:[#allocation11 + $0x848] ss:$24 sps:$4 sm:$0xff]   ;;  %10151 = vmatpush1.bf16.msra.mxu0 %v13903_v47 }
0x1d86   : > { %v13942_v47 = vld [vmem:[#allocation11 + $0x370] ss:$24 sps:$4 sm:$0xff]  }
0x1d88   : > { %10198 = vmatpush1.bf16.msra.mxu1 %v13828_v49  ;;  %v13911_v49 = vld [vmem:[#allocation11 + $0x874] ss:$24 sps:$4 sm:$0xff]  }
0x1d89   : > { %10249 = vmatprep.subr.bf16.mxu1 %v13836_v58  ;;  %v13914_v58 = vld [vmem:[#allocation11 + $0x87c] ss:$24 sps:$4 sm:$0xff]   ;;  %10152 = vmatprep.subr.bf16.mxu0 %v13911_v49 }
0x1d8a   : > { %v13947_v49 = vld [vmem:[#allocation11 + $0x39c] ss:$24 sps:$4 sm:$0xff]  }
0x1d8b   : > { %10200 = vmatmul.mubr.bf16.vlgmr.msra.gmra.mrb[116].mxu1 %v15220_v6 }
0x1d8c   : > { %10250 = vmatpush1.bf16.msra.mxu1 %v13834_v59  ;;  %v13909_v59 = vld [vmem:[#allocation11 + $0x870] ss:$24 sps:$4 sm:$0xff]  }
0x1d8d   : > { %10251 = vmatprep.subr.bf16.mxu1 %v13842_v5  ;;  %v13917_v5 = vld [vmem:[#allocation11 + $0x8a4] ss:$24 sps:$4 sm:$0xff]   ;;  %10153 = vmatpush1.bf16.msra.mxu0 %v13909_v59 }
0x1d8e   : > { %10154 = vmatprep.subr.bf16.mxu0 %v13917_v5  ;;  %v13953_v5 = vld [vmem:[#allocation11 + $0x3cc] ss:$24 sps:$4 sm:$0xff]  }
0x1d90   : > { %10252 = vmatpush1.bf16.msra.mxu1 %v13840_v22  ;;  %v13915_v22 = vld [vmem:[#allocation11 + $0x8a0] ss:$24 sps:$4 sm:$0xff]  }
0x1d91   : > { %10253 = vmatprep.subr.bf16.mxu1 %v13848_v31  ;;  %10155 = vmatpush1.bf16.msra.mxu0 %v13915_v22  ;;  %v13923_v31 = vld [vmem:[#allocation11 + $0x8d4] ss:$24 sps:$4 sm:$0xff]   ;;  %v13951_v22 = vld [vmem:[#allocation11 + $0x3c8] ss:$24 sps:$4 sm:$0xff]  }
0x1d92   : > { %10156 = vmatprep.subr.bf16.mxu0 %v13923_v31  ;;  %v13959_v31 = vld [vmem:[#allocation11 + $0x3fc] ss:$24 sps:$4 sm:$0xff]  }
0x1d94   : > { %10254 = vmatpush1.bf16.msra.mxu1 %v13846_v7  ;;  %v13921_v7 = vld [vmem:[#allocation11 + $0x8d0] ss:$24 sps:$4 sm:$0xff]  }
0x1d95   : > { %10255 = vmatprep.subr.bf16.mxu1 %v13854_v9  ;;  %10157 = vmatpush1.bf16.msra.mxu0 %v13921_v7  ;;  %v13929_v9 = vld [vmem:[#allocation11 + $0x30c] ss:$24 sps:$4 sm:$0xff]   ;;  %v13957_v7 = vld [vmem:[#allocation11 + $0x3f8] ss:$24 sps:$4 sm:$0xff]  }
0x1d96   : > { %10208 = vmatprep.subr.bf16.mxu0 %v13929_v9  ;;  %v13965_v9 = vld [vmem:[#allocation11 + $0x42c] ss:$24 sps:$4 sm:$0xff]  }
0x1d98   : > { %10256 = vmatpush1.bf16.msra.mxu1 %v13852_v10 }
0x1d99   : > { %10257 = vmatprep.subr.bf16.mxu1 %v13860_v43 }
0x1d9c   : > { %10258 = vmatpush1.bf16.msra.mxu1 %v13858_v13 }
0x1d9d   : > { %10259 = vmatprep.subr.bf16.mxu1 %v13866_v18 }
0x1da0   : > { %10260 = vmatpush1.bf16.msra.mxu1 %v13864_v20 }
0x1da1   : > { %10261 = vmatprep.subr.bf16.mxu1 %v13872_v0  ;;  %v8577_v0 = vrot.slane %v15242_v21, %v14873_v54 }
0x1da4   : > { %10262 = vmatpush1.bf16.msra.mxu1 %v13870_v25 }
0x1da5   : > { %10263 = vmatprep.subr.bf16.mxu1 %v13878_v37 }
0x1da8   : > { %10264 = vmatpush1.bf16.msra.mxu1 %v13876_v8 }
0x1da9   : > { %10265 = vmatprep.subr.bf16.mxu1 %v13884_v38 }
0x1dac   : > { %10266 = vmatpush1.bf16.msra.mxu1 %v13882_v40 }
0x1dad   : > { %10267 = vmatprep.subr.bf16.mxu1 %v13890_v33 }
0x1db0   : > { %10268 = vmatpush1.bf16.msra.mxu1 %v13888_v34 }
0x1db1   : > { %10269 = vmatprep.subr.bf16.mxu1 %v13896_v53  ;;  %v13927_v53 = vld [vmem:[#allocation11 + $0x308] ss:$24 sps:$4 sm:$0xff]  }
0x1db4   : > { %10270 = vmatpush1.bf16.msra.mxu1 %v13894_v51  ;;  %v13935_v51 = vld [vmem:[#allocation11 + $0x33c] ss:$24 sps:$4 sm:$0xff]  }
0x1db5   : > { %10271 = vmatprep.subr.bf16.mxu1 %v13902_v14  ;;  %v13941_v14 = vld [vmem:[#allocation11 + $0x36c] ss:$24 sps:$4 sm:$0xff]  }
0x1db8   : > { %10272 = vmatpush1.bf16.msra.mxu1 %v13900_v23 }
0x1db9   : > { %10273 = vmatprep.subr.bf16.mxu1 %v13908_v35  ;;  %v13939_v35 = vld [vmem:[#allocation11 + $0x368] ss:$24 sps:$4 sm:$0xff]  }
0x1dbc   : > { %10274 = vmatpush1.bf16.msra.mxu1 %v13906_v57 }
0x1dbd   : > { %10275 = vmatprep.subr.bf16.mxu1 %v13914_v58  ;;  %v13950_v58 = vld [vmem:[#allocation11 + $0x3a4] ss:$24 sps:$4 sm:$0xff]  }
0x1dc0   : > { %10276 = vmatpush1.bf16.msra.mxu1 %v13912_v61  ;;  %v13948_v61 = vld [vmem:[#allocation11 + $0x3a0] ss:$24 sps:$4 sm:$0xff]  }
0x1dc1   : > { %10277 = vmatprep.subr.bf16.mxu1 %v13920_v62  ;;  %v13956_v62 = vld [vmem:[#allocation11 + $0x3d4] ss:$24 sps:$4 sm:$0xff]  }
0x1dc4   : > { %10278 = vmatpush1.bf16.msra.mxu1 %v13918_v3  ;;  %v13954_v3 = vld [vmem:[#allocation11 + $0x3d0] ss:$24 sps:$4 sm:$0xff]  }
0x1dc5   : > { %10279 = vmatprep.subr.bf16.mxu1 %v13926_v2  ;;  %v13962_v2 = vld [vmem:[#allocation11 + $0x404] ss:$24 sps:$4 sm:$0xff]  }
0x1dc8   : > { %10280 = vmatpush1.bf16.msra.mxu1 %v13924_v39  ;;  %v13960_v39 = vld [vmem:[#allocation11 + $0x400] ss:$24 sps:$4 sm:$0xff]  }
0x1dc9   : > { %10331 = vmatprep.subr.bf16.mxu1 %v13932_v41  ;;  %v13968_v41 = vld [vmem:[#allocation11 + $0x434] ss:$24 sps:$4 sm:$0xff]  }
0x1dd9   : > { %v10078_v10 = vpop.f32.mrb[20].mxu0 }
0x1dda   : > { %v10080_v27 = vpop.f32.mrb[21].mxu0  ;;  %v10079_v25 = vadd.f32 %v10078_v10, %v8577_v0  ;;  %v13963_v10 = vld [vmem:[#allocation11 + $0x428] ss:$24 sps:$4 sm:$0xff]  }
0x1ddb   : > { %v10082_v43 = vpop.f32.mrb[22].mxu0  ;;  %v10081_v26 = vadd.f32 %v10080_v27, %v8581_v42  ;;  %v13966_v27 = vld [vmem:[#allocation11 + $0x430] ss:$24 sps:$4 sm:$0xff]   ;;  %v13983_v42 = vld [vmem:[#allocation11 + $0x4bc] ss:$24 sps:$4 sm:$0xff]  }
0x1ddc   : > { %v10083_v12 = vpop.f32.mrb[23].mxu0  ;;  %v13971_v43 = vld [vmem:[#allocation11 + $0x45c] ss:$24 sps:$4 sm:$0xff]   ;;  %v13978_v0 = vld [vmem:[#allocation11 + $0x490] ss:$24 sps:$4 sm:$0xff]  }
0x1ddd   : > { %v13974_v12 = vld [vmem:[#allocation11 + $0x464] ss:$24 sps:$4 sm:$0xff]  }
0x1dde   : > { %v8242_v13 = vpop.f32.mrb[108].mxu1 }
0x1ddf   : > { %v12362_v15 = vpack.i.bf16 %v15177_v55, %v8242_v13  ;;  %v12141_v18 = vpop.f32.mrb[109].mxu1  ;;  %v13969_v13 = vld [vmem:[#allocation11 + $0x458] ss:$24 sps:$4 sm:$0xff]  }
0x1de0   : > { %v8245_v60 = vpop.f32.mrb[110].mxu1  ;;  %v13977_v18 = vld [vmem:[#allocation11 + $0x48c] ss:$24 sps:$4 sm:$0xff]  }
0x1de1   : > { %12363 = vrot.lane.b32.xlu0 %v12362_v15, %s14475_s21  ;;  %v12142_v20 = vpop.f32.mrb[111].mxu1  ;;  %v13972_v15 = vld [vmem:[#allocation11 + $0x460] ss:$24 sps:$4 sm:$0xff]   ;;  %v13980_v60 = vld [vmem:[#allocation11 + $0x494] ss:$24 sps:$4 sm:$0xff]  }
0x1de2   : > { %v13975_v20 = vld [vmem:[#allocation11 + $0x488] ss:$24 sps:$4 sm:$0xff]  }
0x1e1e   : > { %v10119_v37 = vpop.f32.mrb[112].mxu1 }
0x1e1f   : > { %v15248_v30 = vadd.f32 %v10119_v37, %v10079_v25  ;;  %v10121_v8 = vpop.f32.mrb[113].mxu1  ;;  %v13986_v25 = vld [vmem:[#allocation11 + $0x4c4] ss:$24 sps:$4 sm:$0xff]   ;;  %v13984_v37 = vld [vmem:[#allocation11 + $0x4c0] ss:$24 sps:$4 sm:$0xff]  }
0x1e20   : > { %v15250_v55 = vadd.f32 %v10121_v8, %v10081_v26  ;;  %v10123_v17 = vpop.f32.mrb[114].mxu1  ;;  %v13981_v26 = vld [vmem:[#allocation11 + $0x4b8] ss:$24 sps:$4 sm:$0xff]   ;;  %v13989_v8 = vld [vmem:[#allocation11 + $0x4ec] ss:$24 sps:$4 sm:$0xff]  }
0x1e21   : > { %v10124_v38 = vpop.f32.mrb[115].mxu1  ;;  %v13992_v17 = vld [vmem:[#allocation11 + $0x4f4] ss:$24 sps:$4 sm:$0xff]  }
0x1e22   : > { %v13987_v38 = vld [vmem:[#allocation11 + $0x4e8] ss:$24 sps:$4 sm:$0xff]  }
0x1e53   : > { %v12364_v48 = vpop.permute.xlu0 %12363 }
0x1e54   : > { %v12366_v40 = vunpack.i.h.bf16 %v12364_v48  ;;  %v12365_v63 = vunpack.i.l.bf16 %v12364_v48  ;;  %v13990_v48 = vld [vmem:[#allocation11 + $0x4f0] ss:$24 sps:$4 sm:$0xff]  }
0x1e56   : > { %v8276_v33 = vsel %vm6880_vm1, %v15158_v32, %v12366_v40  ;;  %v8277_v44 = vsel %vm6880_vm1, %v15193_v19, %v12365_v63  ;;  %v13933_v32 = vld [vmem:[#allocation11 + $0x338] ss:$24 sps:$4 sm:$0xff]   ;;  %v13995_v40 = vld [vmem:[#allocation11 + $0x51c] ss:$24 sps:$4 sm:$0xff]  }
0x1e57   : > { %v15256_v34 = vpack.c.bf16 %v8276_v33, %v8276_v33  ;;  %v15258_v46 = vpack.c.bf16 %v8277_v44, %v8277_v44  ;;  %v13936_v19 = vld [vmem:[#allocation11 + $0x340] ss:$24 sps:$4 sm:$0xff]   ;;  %v13998_v63 = vld [vmem:[#allocation11 + $0x524] ss:$24 sps:$4 sm:$0xff]  }
0x1e58   : > { %v13993_v33 = vld [vmem:[#allocation11 + $0x518] ss:$24 sps:$4 sm:$0xff]  }
0x1e59   : > { %10158 = vmatprep.mubr.bf16.mxu0 %v15258_v46  ;;  %10281 = vmatprep.mubr.bf16.mxu1 %v15258_v46  ;;  %v13996_v44 = vld [vmem:[#allocation11 + $0x520] ss:$24 sps:$4 sm:$0xff]  }
0x1e5a   : > { %10159 = vmatmul.mubr.bf16.vlgmr.msra.gmra.mrb[24].mxu0 %v15256_v34  ;;  %10282 = vmatmul.mubr.bf16.vlgmr.msra.gmra.mrb[120].mxu1 %v15256_v34 }
0x1e5b   : > { %10209 = vmatpush1.bf16.msra.mxu0 %v13927_v53  ;;  %10332 = vmatpush1.bf16.msra.mxu1 %v13930_v50  ;;  %v14001_v53 = vld [vmem:[#allocation11 + $0x54c] ss:$24 sps:$4 sm:$0xff]  }
0x1e5c   : > { %10240 = vmatprep.mubr.bf16.mxu0 %v15228_v45  ;;  %10363 = vmatprep.mubr.bf16.mxu1 %v15228_v45  ;;  %v13945_v45 = vld [vmem:[#allocation11 + $0x398] ss:$24 sps:$4 sm:$0xff]   ;;  %v14004_v50 = vld [vmem:[#allocation11 + $0x554] ss:$24 sps:$4 sm:$0xff]  }
0x1e5d   : > { %10210 = vmatprep.subr.bf16.mxu0 %v13935_v51  ;;  %10333 = vmatprep.subr.bf16.mxu1 %v13938_v52  ;;  %v13999_v51 = vld [vmem:[#allocation11 + $0x548] ss:$24 sps:$4 sm:$0xff]  }
0x1e5e   : > { %v15266_v23 = vpop.f32.mrb[116].mxu1  ;;  %v14002_v52 = vld [vmem:[#allocation11 + $0x550] ss:$24 sps:$4 sm:$0xff]  }
0x1e5f   : > { %v15268_v24 = vpop.f32.mrb[117].mxu1  ;;  %10211 = vmatpush1.bf16.msra.mxu0 %v13933_v32  ;;  %10334 = vmatpush1.bf16.msra.mxu1 %v13936_v19  ;;  %v14007_v32 = vld [vmem:[#allocation11 + $0x57c] ss:$24 sps:$4 sm:$0xff]  }
0x1e60   : > { %v10205_v57 = vpop.f32.mrb[118].mxu1  ;;  %10212 = vmatprep.subr.bf16.mxu0 %v13941_v14  ;;  %10335 = vmatprep.subr.bf16.mxu1 %v13944_v11  ;;  %v14010_v19 = vld [vmem:[#allocation11 + $0x584] ss:$24 sps:$4 sm:$0xff]   ;;  %v14005_v14 = vld [vmem:[#allocation11 + $0x578] ss:$24 sps:$4 sm:$0xff]  }
0x1e61   : > { %v10206_v59 = vpop.f32.mrb[119].mxu1  ;;  %v14008_v11 = vld [vmem:[#allocation11 + $0x580] ss:$24 sps:$4 sm:$0xff]  }
0x1e62   : > { %v14011_v57 = vld [vmem:[#allocation11 + $0x5a8] ss:$24 sps:$4 sm:$0xff]   ;;  %v14022_v59 = vld [vmem:[#allocation11 + $0x5e4] ss:$24 sps:$4 sm:$0xff]  }
0x1e63   : > { %10213 = vmatpush1.bf16.msra.mxu0 %v13939_v35  ;;  %10336 = vmatpush1.bf16.msra.mxu1 %v13942_v47  ;;  %v14013_v35 = vld [vmem:[#allocation11 + $0x5ac] ss:$24 sps:$4 sm:$0xff]  }
0x1e64   : > { %10214 = vmatprep.subr.bf16.mxu0 %v13947_v49  ;;  %10337 = vmatprep.subr.bf16.mxu1 %v13950_v58  ;;  %v14016_v47 = vld [vmem:[#allocation11 + $0x5b4] ss:$24 sps:$4 sm:$0xff]   ;;  %v14014_v49 = vld [vmem:[#allocation11 + $0x5b0] ss:$24 sps:$4 sm:$0xff]  }
0x1e65   : > { %v14019_v58 = vld [vmem:[#allocation11 + $0x5dc] ss:$24 sps:$4 sm:$0xff]  }
0x1e67   : > { %10215 = vmatpush1.bf16.msra.mxu0 %v13945_v45  ;;  %10338 = vmatpush1.bf16.msra.mxu1 %v13948_v61  ;;  %v14017_v45 = vld [vmem:[#allocation11 + $0x5d8] ss:$24 sps:$4 sm:$0xff]  }
0x1e68   : > { %10216 = vmatprep.subr.bf16.mxu0 %v13953_v5  ;;  %10339 = vmatprep.subr.bf16.mxu1 %v13956_v62  ;;  %v14020_v61 = vld [vmem:[#allocation11 + $0x5e0] ss:$24 sps:$4 sm:$0xff]   ;;  %v14025_v5 = vld [vmem:[#allocation11 + $0x14] ss:$24 sps:$4 sm:$0xff]   ;;  %v14023_v62 = vld [vmem:[#allocation11 + $0x10] ss:$24 sps:$4 sm:$0xff]  }
0x1e6b   : > { %10217 = vmatpush1.bf16.msra.mxu0 %v13951_v22  ;;  %10340 = vmatpush1.bf16.msra.mxu1 %v13954_v3  ;;  %v14028_v22 = vld [vmem:[#allocation11 + $0x44] ss:$24 sps:$4 sm:$0xff]   ;;  %v14026_v3 = vld [vmem:[#allocation11 + $0x40] ss:$24 sps:$4 sm:$0xff]  }
0x1e6c   : > { %10218 = vmatprep.subr.bf16.mxu0 %v13959_v31  ;;  %10341 = vmatprep.subr.bf16.mxu1 %v13962_v2  ;;  %v14031_v31 = vld [vmem:[#allocation11 + $0x74] ss:$24 sps:$4 sm:$0xff]   ;;  %v14029_v2 = vld [vmem:[#allocation11 + $0x70] ss:$24 sps:$4 sm:$0xff]  }
0x1e6f   : > { %10219 = vmatpush1.bf16.msra.mxu0 %v13957_v7  ;;  %10342 = vmatpush1.bf16.msra.mxu1 %v13960_v39  ;;  %v14034_v7 = vld [vmem:[#allocation11 + $0xa4] ss:$24 sps:$4 sm:$0xff]   ;;  %v14032_v39 = vld [vmem:[#allocation11 + $0xa0] ss:$24 sps:$4 sm:$0xff]  }
0x1e70   : > { %10220 = vmatprep.subr.bf16.mxu0 %v13965_v9  ;;  %10343 = vmatprep.subr.bf16.mxu1 %v13968_v41  ;;  %v14037_v9 = vld [vmem:[#allocation11 + $0xd4] ss:$24 sps:$4 sm:$0xff]   ;;  %v14035_v41 = vld [vmem:[#allocation11 + $0xd0] ss:$24 sps:$4 sm:$0xff]  }
0x1e73   : > { %10221 = vmatpush1.bf16.msra.mxu0 %v13963_v10  ;;  %10344 = vmatpush1.bf16.msra.mxu1 %v13966_v27  ;;  %v14040_v10 = vld [vmem:[#allocation11 + $0x104] ss:$24 sps:$4 sm:$0xff]   ;;  %v14043_v27 = vld [vmem:[#allocation11 + $0x134] ss:$24 sps:$4 sm:$0xff]  }
0x1e74   : > { %10222 = vmatprep.subr.bf16.mxu0 %v13971_v43  ;;  %10345 = vmatprep.subr.bf16.mxu1 %v13974_v12  ;;  %v14046_v43 = vld [vmem:[#allocation11 + $0x164] ss:$24 sps:$4 sm:$0xff]   ;;  %v14044_v12 = vld [vmem:[#allocation11 + $0x160] ss:$24 sps:$4 sm:$0xff]  }
0x1e77   : > { %10223 = vmatpush1.bf16.msra.mxu0 %v13969_v13  ;;  %10346 = vmatpush1.bf16.msra.mxu1 %v13972_v15  ;;  %v14049_v13 = vld [vmem:[#allocation11 + $0x194] ss:$24 sps:$4 sm:$0xff]   ;;  %v14047_v15 = vld [vmem:[#allocation11 + $0x190] ss:$24 sps:$4 sm:$0xff]  }
0x1e78   : > { %10224 = vmatprep.subr.bf16.mxu0 %v13977_v18  ;;  %10347 = vmatprep.subr.bf16.mxu1 %v13980_v60  ;;  %v14052_v18 = vld [vmem:[#allocation11 + $0x1c4] ss:$24 sps:$4 sm:$0xff]   ;;  %v14050_v60 = vld [vmem:[#allocation11 + $0x1c0] ss:$24 sps:$4 sm:$0xff]  }
0x1e7b   : > { %10225 = vmatpush1.bf16.msra.mxu0 %v13975_v20  ;;  %10348 = vmatpush1.bf16.msra.mxu1 %v13978_v0  ;;  %v14055_v20 = vld [vmem:[#allocation11 + $0x1f4] ss:$24 sps:$4 sm:$0xff]   ;;  %v14053_v0 = vld [vmem:[#allocation11 + $0x1f0] ss:$24 sps:$4 sm:$0xff]  }
0x1e7c   : > { %10226 = vmatprep.subr.bf16.mxu0 %v13983_v42  ;;  %10349 = vmatprep.subr.bf16.mxu1 %v13986_v25  ;;  %v14058_v42 = vld [vmem:[#allocation11 + $0x224] ss:$24 sps:$4 sm:$0xff]   ;;  %v14056_v25 = vld [vmem:[#allocation11 + $0x220] ss:$24 sps:$4 sm:$0xff]  }
0x1e7f   : > { %10227 = vmatpush1.bf16.msra.mxu0 %v13981_v26  ;;  %10350 = vmatpush1.bf16.msra.mxu1 %v13984_v37  ;;  %v14061_v26 = vld [vmem:[#allocation11 + $0x254] ss:$24 sps:$4 sm:$0xff]   ;;  %v14059_v37 = vld [vmem:[#allocation11 + $0x250] ss:$24 sps:$4 sm:$0xff]  }
0x1e80   : > { %10228 = vmatprep.subr.bf16.mxu0 %v13989_v8  ;;  %10351 = vmatprep.subr.bf16.mxu1 %v13992_v17  ;;  %v14064_v8 = vld [vmem:[#allocation11 + $0x284] ss:$24 sps:$4 sm:$0xff]   ;;  %v14062_v17 = vld [vmem:[#allocation11 + $0x280] ss:$24 sps:$4 sm:$0xff]  }
0x1e83   : > { %10229 = vmatpush1.bf16.msra.mxu0 %v13987_v38  ;;  %10352 = vmatpush1.bf16.msra.mxu1 %v13990_v48  ;;  %v14067_v38 = vld [vmem:[#allocation11 + $0x2b4] ss:$24 sps:$4 sm:$0xff]   ;;  %v14065_v48 = vld [vmem:[#allocation11 + $0x2b0] ss:$24 sps:$4 sm:$0xff]  }
0x1e84   : > { %10230 = vmatprep.subr.bf16.mxu0 %v13995_v40  ;;  %10353 = vmatprep.subr.bf16.mxu1 %v13998_v63  ;;  %v14070_v40 = vld [vmem:[#allocation11 + $0x2e4] ss:$24 sps:$4 sm:$0xff]   ;;  %v14068_v63 = vld [vmem:[#allocation11 + $0x2e0] ss:$24 sps:$4 sm:$0xff]  }
0x1e87   : > { %10231 = vmatpush1.bf16.msra.mxu0 %v13993_v33  ;;  %10354 = vmatpush1.bf16.msra.mxu1 %v13996_v44  ;;  %v14073_v33 = vld [vmem:[#allocation11 + $0x614] ss:$24 sps:$4 sm:$0xff]   ;;  %v14071_v44 = vld [vmem:[#allocation11 + $0x610] ss:$24 sps:$4 sm:$0xff]  }
0x1e88   : > { %10232 = vmatprep.subr.bf16.mxu0 %v14001_v53  ;;  %10355 = vmatprep.subr.bf16.mxu1 %v14004_v50  ;;  %v14076_v53 = vld [vmem:[#allocation11 + $0x644] ss:$24 sps:$4 sm:$0xff]   ;;  %v14074_v50 = vld [vmem:[#allocation11 + $0x640] ss:$24 sps:$4 sm:$0xff]  }
0x1e8b   : > { %10233 = vmatpush1.bf16.msra.mxu0 %v13999_v51  ;;  %10356 = vmatpush1.bf16.msra.mxu1 %v14002_v52  ;;  %v14079_v51 = vld [vmem:[#allocation11 + $0x674] ss:$24 sps:$4 sm:$0xff]   ;;  %v14077_v52 = vld [vmem:[#allocation11 + $0x670] ss:$24 sps:$4 sm:$0xff]  }
0x1e8c   : > { %10234 = vmatprep.subr.bf16.mxu0 %v14007_v32  ;;  %10357 = vmatprep.subr.bf16.mxu1 %v14010_v19  ;;  %v14082_v32 = vld [vmem:[#allocation11 + $0x6a4] ss:$24 sps:$4 sm:$0xff]   ;;  %v14080_v19 = vld [vmem:[#allocation11 + $0x6a0] ss:$24 sps:$4 sm:$0xff]  }
0x1e8f   : > { %10235 = vmatpush1.bf16.msra.mxu0 %v14005_v14  ;;  %10358 = vmatpush1.bf16.msra.mxu1 %v14008_v11  ;;  %v14085_v14 = vld [vmem:[#allocation11 + $0x6d4] ss:$24 sps:$4 sm:$0xff]   ;;  %v14083_v11 = vld [vmem:[#allocation11 + $0x6d0] ss:$24 sps:$4 sm:$0xff]  }
0x1e90   : > { %10236 = vmatprep.subr.bf16.mxu0 %v14013_v35  ;;  %10359 = vmatprep.subr.bf16.mxu1 %v14016_v47  ;;  %v14088_v35 = vld [vmem:[#allocation11 + $0x704] ss:$24 sps:$4 sm:$0xff]   ;;  %v14091_v47 = vld [vmem:[#allocation11 + $0x734] ss:$24 sps:$4 sm:$0xff]  }
0x1e93   : > { %10237 = vmatpush1.bf16.msra.mxu0 %v14011_v57  ;;  %10360 = vmatpush1.bf16.msra.mxu1 %v14014_v49  ;;  %v14094_v57 = vld [vmem:[#allocation11 + $0x764] ss:$24 sps:$4 sm:$0xff]   ;;  %v14092_v49 = vld [vmem:[#allocation11 + $0x760] ss:$24 sps:$4 sm:$0xff]  }
0x1e94   : > { %10238 = vmatprep.subr.bf16.mxu0 %v14019_v58  ;;  %10361 = vmatprep.subr.bf16.mxu1 %v14022_v59  ;;  %v14097_v58 = vld [vmem:[#allocation11 + $0x794] ss:$24 sps:$4 sm:$0xff]   ;;  %v14095_v59 = vld [vmem:[#allocation11 + $0x790] ss:$24 sps:$4 sm:$0xff]  }
0x1e97   : > { %10239 = vmatpush1.bf16.msra.mxu0 %v14017_v45  ;;  %10362 = vmatpush1.bf16.msra.mxu1 %v14020_v61  ;;  %v14100_v45 = vld [vmem:[#allocation11 + $0x7c4] ss:$24 sps:$4 sm:$0xff]   ;;  %v14098_v61 = vld [vmem:[#allocation11 + $0x7c0] ss:$24 sps:$4 sm:$0xff]  }
0x1e98   : > { %10290 = vmatprep.subr.bf16.mxu0 %v14025_v5  ;;  %v14103_v5 = vld [vmem:[#allocation11 + $0x7f4] ss:$24 sps:$4 sm:$0xff]  }
0x1e9a   : > { %10241 = vmatmul.mubr.bf16.vlgmr.msra.gmra.mrb[28].mxu0 %v15235_v16  ;;  %10364 = vmatmul.mubr.bf16.vlgmr.msra.gmra.mrb[124].mxu1 %v15235_v16  ;;  %v14038_v16 = vld [vmem:[#allocation11 + $0x100] ss:$24 sps:$4 sm:$0xff]  }
0x1e9b   : > { %10291 = vmatpush1.bf16.msra.mxu0 %v14023_v62  ;;  %10322 = vmatprep.mubr.bf16.mxu0 %v15222_v36  ;;  %v14041_v36 = vld [vmem:[#allocation11 + $0x130] ss:$24 sps:$4 sm:$0xff]  }
0x1e9c   : > { %10292 = vmatprep.subr.bf16.mxu0 %v14028_v22  ;;  %v14101_v62 = vld [vmem:[#allocation11 + $0x7f0] ss:$24 sps:$4 sm:$0xff]   ;;  %v14106_v22 = vld [vmem:[#allocation11 + $0x824] ss:$24 sps:$4 sm:$0xff]  }
0x1e9f   : > { %10293 = vmatpush1.bf16.msra.mxu0 %v14026_v3  ;;  %v14104_v3 = vld [vmem:[#allocation11 + $0x820] ss:$24 sps:$4 sm:$0xff]  }
0x1ea0   : > { %10294 = vmatprep.subr.bf16.mxu0 %v14031_v31  ;;  %v14109_v31 = vld [vmem:[#allocation11 + $0x854] ss:$24 sps:$4 sm:$0xff]  }
0x1ea3   : > { %10295 = vmatpush1.bf16.msra.mxu0 %v14029_v2  ;;  %v14107_v2 = vld [vmem:[#allocation11 + $0x850] ss:$24 sps:$4 sm:$0xff]  }
0x1ea4   : > { %10296 = vmatprep.subr.bf16.mxu0 %v14034_v7  ;;  %v14112_v7 = vld [vmem:[#allocation11 + $0x884] ss:$24 sps:$4 sm:$0xff]  }
0x1ea7   : > { %10297 = vmatpush1.bf16.msra.mxu0 %v14032_v39  ;;  %v14110_v39 = vld [vmem:[#allocation11 + $0x880] ss:$24 sps:$4 sm:$0xff]  }
0x1ea8   : > { %10298 = vmatprep.subr.bf16.mxu0 %v14037_v9  ;;  %v14115_v9 = vld [vmem:[#allocation11 + $0x8b4] ss:$24 sps:$4 sm:$0xff]  }
0x1eab   : > { %10299 = vmatpush1.bf16.msra.mxu0 %v14035_v41  ;;  %v14113_v41 = vld [vmem:[#allocation11 + $0x8b0] ss:$24 sps:$4 sm:$0xff]  }
0x1eac   : > { %10300 = vmatprep.subr.bf16.mxu0 %v14040_v10  ;;  %v14118_v10 = vld [vmem:[#allocation11 + $0x8e4] ss:$24 sps:$4 sm:$0xff]  }
0x1eaf   : > { %10301 = vmatpush1.bf16.msra.mxu0 %v14038_v16  ;;  %v14116_v16 = vld [vmem:[#allocation11 + $0x8e0] ss:$24 sps:$4 sm:$0xff]  }
0x1eb0   : > { %10302 = vmatprep.subr.bf16.mxu0 %v14043_v27 }
0x1eb3   : > { %10303 = vmatpush1.bf16.msra.mxu0 %v14041_v36 }
0x1eb4   : > { %10304 = vmatprep.subr.bf16.mxu0 %v14046_v43 }
0x1eb7   : > { %10305 = vmatpush1.bf16.msra.mxu0 %v14044_v12 }
0x1eb8   : > { %10306 = vmatprep.subr.bf16.mxu0 %v14049_v13 }
0x1ebb   : > { %10307 = vmatpush1.bf16.msra.mxu0 %v14047_v15 }
0x1ebc   : > { %10308 = vmatprep.subr.bf16.mxu0 %v14052_v18 }
0x1ebf   : > { %10309 = vmatpush1.bf16.msra.mxu0 %v14050_v60 }
0x1ec0   : > { %10310 = vmatprep.subr.bf16.mxu0 %v14055_v20 }
0x1ec3   : > { %10311 = vmatpush1.bf16.msra.mxu0 %v14053_v0 }
0x1ec4   : > { %10312 = vmatprep.subr.bf16.mxu0 %v14058_v42  ;;  %v8585_v42 = vrot.slane %v15242_v21, %v14859_v28 }
0x1ec7   : > { %10313 = vmatpush1.bf16.msra.mxu0 %v14056_v25  ;;  %v8589_v25 = vrot.slane %v15242_v21, %v14862_v29 }
0x1ec8   : > { %10314 = vmatprep.subr.bf16.mxu0 %v14061_v26 }
0x1ec9   : > { %v10204_v26 = vadd.f32 %v15268_v24, %v8589_v25 }
0x1ecb   : > { %10315 = vmatpush1.bf16.msra.mxu0 %v14059_v37 }
0x1ecc   : > { %10316 = vmatprep.subr.bf16.mxu0 %v14064_v8 }
0x1ecf   : > { %10317 = vmatpush1.bf16.msra.mxu0 %v14062_v17 }
0x1ed0   : > { %10318 = vmatprep.subr.bf16.mxu0 %v14067_v38 }
0x1ed3   : > { %10319 = vmatpush1.bf16.msra.mxu0 %v14065_v48 }
0x1ed4   : > { %10320 = vmatprep.subr.bf16.mxu0 %v14070_v40 }
0x1ed7   : > { %10321 = vmatpush1.bf16.msra.mxu0 %v14068_v63 }
0x1ed8   : > { %10372 = vmatprep.subr.bf16.mxu0 %v14073_v33 }
0x1eda   : > { %10323 = vmatmul.mubr.bf16.vlgmr.msra.gmra.mrb[32].mxu0 %v15220_v6  ;;  %v14086_v6 = vld [vmem:[#allocation11 + $0x700] ss:$24 sps:$4 sm:$0xff]  }
0x1edb   : > { %10373 = vmatpush1.bf16.msra.mxu0 %v14071_v44  ;;  %10404 = vmatprep.mubr.bf16.mxu0 %v15258_v46  ;;  %v14089_v46 = vld [vmem:[#allocation11 + $0x730] ss:$24 sps:$4 sm:$0xff]  }
0x1edc   : > { %10374 = vmatprep.subr.bf16.mxu0 %v14076_v53 }
0x1edf   : > { %10375 = vmatpush1.bf16.msra.mxu0 %v14074_v50  ;;  %v8593_v50 = vrot.slane %v15242_v21, %v14915_v1 }
0x1ee0   : > { %10376 = vmatprep.subr.bf16.mxu0 %v14079_v51 }
0x1ee3   : > { %10377 = vmatpush1.bf16.msra.mxu0 %v14077_v52 }
0x1ee4   : > { %10378 = vmatprep.subr.bf16.mxu0 %v14082_v32 }
0x1ee7   : > { %10379 = vmatpush1.bf16.msra.mxu0 %v14080_v19 }
0x1ee8   : > { %10380 = vmatprep.subr.bf16.mxu0 %v14085_v14 }
0x1eeb   : > { %10381 = vmatpush1.bf16.msra.mxu0 %v14083_v11 }
0x1eec   : > { %10382 = vmatprep.subr.bf16.mxu0 %v14088_v35 }
0x1eef   : > { %10383 = vmatpush1.bf16.msra.mxu0 %v14086_v6  ;;  %v14170_v6 = vld [vmem:[%s14784_s25] sm:$0xff] }
0x1ef0   : > { %10384 = vmatprep.subr.bf16.mxu0 %v14091_v47  ;;  %v10413_v47 = vunpack.c.l.bf16 %v14170_v6 }
0x1ef3   : > { %10385 = vmatpush1.bf16.msra.mxu0 %v14089_v46  ;;  %v10414_v46 = vunpack.c.h.bf16 %v14170_v6 }
0x1ef4   : > { %10386 = vmatprep.subr.bf16.mxu0 %v14094_v57  ;;  %v14171_v57 = vld [vmem:[%s14784_s25 + $0x8] sm:$0xff] }
0x1ef7   : > { %10387 = vmatpush1.bf16.msra.mxu0 %v14092_v49  ;;  %v10415_v49 = vunpack.c.l.bf16 %v14171_v57 }
0x1ef8   : > { %10388 = vmatprep.subr.bf16.mxu0 %v14097_v58 }
0x1efb   : > { %10389 = vmatpush1.bf16.msra.mxu0 %v14095_v59 }
0x1efc   : > { %10390 = vmatprep.subr.bf16.mxu0 %v14100_v45 }
0x1eff   : > { %10391 = vmatpush1.bf16.msra.mxu0 %v14098_v61  ;;  %v10416_v61 = vunpack.c.h.bf16 %v14171_v57 }
0x1f00   : > { %10392 = vmatprep.subr.bf16.mxu0 %v14103_v5 }
0x1f03   : > { %10393 = vmatpush1.bf16.msra.mxu0 %v14101_v62 }
0x1f04   : > { %10394 = vmatprep.subr.bf16.mxu0 %v14106_v22  ;;  %v14172_v22 = vld [vmem:[%s14784_s25 + $0x10] sm:$0xff] }
0x1f07   : > { %10395 = vmatpush1.bf16.msra.mxu0 %v14104_v3  ;;  %v10417_v3 = vunpack.c.l.bf16 %v14172_v22 }
0x1f08   : > { %10396 = vmatprep.subr.bf16.mxu0 %v14109_v31 }
0x1f0b   : > { %10397 = vmatpush1.bf16.msra.mxu0 %v14107_v2  ;;  %v10418_v2 = vunpack.c.h.bf16 %v14172_v22 }
0x1f0c   : > { %10398 = vmatprep.subr.bf16.mxu0 %v14112_v7 }
0x1f0f   : > { %10399 = vmatpush1.bf16.msra.mxu0 %v14110_v39 }
0x1f10   : > { %10400 = vmatprep.subr.bf16.mxu0 %v14115_v9 }
0x1f13   : > { %10401 = vmatpush1.bf16.msra.mxu0 %v14113_v41 }
0x1f14   : > { %10402 = vmatprep.subr.bf16.mxu0 %v14118_v10 }
0x1f17   : > { %10403 = vmatpush1.bf16.msra.mxu0 %v14116_v16 }
0x1f1a   : > { %10405 = vmatmul.mubr.bf16.vlgmr.msra.gmra.mrb[36].mxu0 %v15256_v34  ;;  %v10202_v34 = vadd.f32 %v15266_v23, %v8585_v42  ;;  %v8597_v23 = vrot.slane %v15242_v21, %v14918_v4 }
0x1f2d   : > { %v10160_v27 = vpop.f32.mrb[24].mxu0  ;;  %v10283_v36 = vpop.f32.mrb[120].mxu1 }
0x1f2e   : > { %v10161_v43 = vadd.f32 %v10160_v27, %v15248_v30  ;;  %v10162_v12 = vpop.f32.mrb[25].mxu0  ;;  %v10285_v13 = vpop.f32.mrb[121].mxu1 }
0x1f2f   : > { %v10163_v15 = vadd.f32 %v10162_v12, %v15250_v55  ;;  %v10164_v18 = vpop.f32.mrb[26].mxu0  ;;  %v10287_v60 = vpop.f32.mrb[122].mxu1 }
0x1f30   : > { %v10165_v20 = vpop.f32.mrb[27].mxu0  ;;  %v10288_v0 = vpop.f32.mrb[123].mxu1  ;;  %v10419_v58 = vadd.f32 %v10413_v47, %v10161_v43 }
0x1f31   : > { %v10420_v59 = vadd.f32 %v10414_v46, %v10163_v15 }
0x1f33   : > { %v10427_v5 = vadd.f32 %v10420_v59, %v10419_v58 }
0x1f6d   : > { %v10242_v37 = vpop.f32.mrb[28].mxu0  ;;  %v10365_v30 = vpop.f32.mrb[124].mxu1 }
0x1f6e   : > { %v10243_v8 = vadd.f32 %v10242_v37, %v10202_v34  ;;  %v10244_v17 = vpop.f32.mrb[29].mxu0  ;;  %v10367_v38 = vpop.f32.mrb[125].mxu1 }
0x1f6f   : > { %v10245_v55 = vadd.f32 %v10244_v17, %v10204_v26  ;;  %v10246_v48 = vpop.f32.mrb[30].mxu0  ;;  %v10369_v40 = vpop.f32.mrb[126].mxu1 }
0x1f70   : > { %v10284_v63 = vadd.f32 %v10283_v36, %v10243_v8  ;;  %v10247_v33 = vpop.f32.mrb[31].mxu0  ;;  %v10370_v44 = vpop.f32.mrb[127].mxu1 }
0x1f71   : > { %v10286_v53 = vadd.f32 %v10285_v13, %v10245_v55 }
0x1f72   : > { %v10421_v45 = vadd.f32 %v10415_v49, %v10284_v63 }
0x1f73   : > { %v10422_v62 = vadd.f32 %v10416_v61, %v10286_v53 }
0x1f74   : > { %v10428_v21 = vadd.f32 %v10427_v5, %v10421_v45 }
0x1f76   : > { %v10429_v27 = vadd.f32 %v10428_v21, %v10422_v62 }
0x1fad   : > { %v10324_v24 = vpop.f32.mrb[32].mxu0 }
0x1fae   : > { %v10325_v51 = vadd.f32 %v10324_v24, %v8593_v50  ;;  %v10326_v52 = vpop.f32.mrb[33].mxu0  ;;  %v10425_v50 = vld [vmem:[#allocation14] sm:$0x3f] }
0x1faf   : > { %v10327_v32 = vadd.f32 %v10326_v52, %v8597_v23  ;;  %v10328_v19 = vpop.f32.mrb[34].mxu0  ;;  %v10426_v23 = vld [vmem:[#allocation16] sm:$0x3f]  ;;  %v10468_v24 = vrot.slane %v10425_v50, %v14873_v54  ;;  %v10476_v52 = vrot.slane %v10425_v50, %v14859_v28 }
0x1fb0   : > { %v10329_v14 = vpop.f32.mrb[35].mxu0  ;;  %v10366_v11 = vadd.f32 %v10365_v30, %v10325_v51  ;;  %v10472_v51 = vrot.slane %v10425_v50, %v14876_v56  ;;  %v10484_v19 = vrot.slane %v10425_v50, %v14915_v1  ;;  %v10509_v6 = vrot.slane %v10426_v23, %v14876_v56 }
0x1fb1   : > { %v10368_v35 = vadd.f32 %v10367_v38, %v10327_v32  ;;  %v10480_v32 = vrot.slane %v10425_v50, %v14862_v29  ;;  %v10488_v14 = vrot.slane %v10425_v50, %v14918_v4  ;;  %v10513_v47 = vrot.slane %v10426_v23, %v14859_v28 }
0x1fb2   : > { %v10517_v46 = vrot.slane %v10426_v23, %v14862_v29  ;;  %v10521_v5 = vrot.slane %v10426_v23, %v14915_v1  ;;  %v10525_v21 = vrot.slane %v10426_v23, %v14918_v4 }
0x1fed   : > { %v10406_v31 = vpop.f32.mrb[36].mxu0 }
0x1fee   : > { %v10407_v7 = vadd.f32 %v10406_v31, %v10366_v11  ;;  %v10408_v39 = vpop.f32.mrb[37].mxu0 }
0x1fef   : > { %v10409_v9 = vadd.f32 %v10408_v39, %v10368_v35  ;;  %v10410_v41 = vpop.f32.mrb[38].mxu0  ;;  %v10505_v35 = vrot.slane %v10426_v23, %v14873_v54 }
0x1ff0   : > { %v10423_v10 = vadd.f32 %v10417_v3, %v10407_v7  ;;  %v10411_v16 = vpop.f32.mrb[39].mxu0 }
0x1ff1   : > { %v10424_v36 = vadd.f32 %v10418_v2, %v10409_v9 }
0x1ff2   : > { %v10430_v12 = vadd.f32 %v10429_v27, %v10423_v10 }
0x1ff4   : > { %v10431_v43 = vadd.f32 %v10430_v12, %v10424_v36 }
0x1ff6   : > { %10432 = vadd.xlane.f32.xlu0 %v10431_v43 }
0x2083   : > { %v10433_v13 = vpop.xlane.xlu0 %10432 }
0x2084   : > { %v10435_v15 = vmul.f32 0.0013020834, %v10433_v13 }
0x2086   : > { %v10436_v18 = vsub.f32 %v10419_v58, %v10435_v15  ;;  %v10437_v60 = vsub.f32 %v10420_v59, %v10435_v15  ;;  %v10438_v20 = vsub.f32 %v10421_v45, %v10435_v15  ;;  %v10439_v0 = vsub.f32 %v10422_v62, %v10435_v15 }
0x2087   : > { %v10440_v34 = vsub.f32 %v10423_v10, %v10435_v15  ;;  %v10441_v30 = vsub.f32 %v10424_v36, %v10435_v15 }
0x2088   : > { %v10442_v42 = vmul.f32 %v10436_v18, %v10436_v18  ;;  %v10443_v25 = vmul.f32 %v10437_v60, %v10437_v60  ;;  %v10444_v26 = vmul.f32 %v10438_v20, %v10438_v20  ;;  %v10445_v8 = vmul.f32 %v10439_v0, %v10439_v0 }
0x2089   : > { %v10446_v38 = vmul.f32 %v10440_v34, %v10440_v34  ;;  %v10447_v48 = vmul.f32 %v10441_v30, %v10441_v30 }
0x208a   : > { %v10448_v37 = vadd.f32 %v10443_v25, %v10442_v42 }
0x208c   : > { %v10449_v17 = vadd.f32 %v10448_v37, %v10444_v26 }
0x208e   : > { %v10450_v55 = vadd.f32 %v10449_v17, %v10445_v8 }
0x2090   : > { %v10451_v40 = vadd.f32 %v10450_v55, %v10446_v38 }
0x2092   : > { %v10452_v63 = vadd.f32 %v10451_v40, %v10447_v48 }
0x2094   : > { %10453 = vadd.xlane.f32.xlu1 %v10452_v63 }
0x2121   : > { %v10454_v33 = vpop.xlane.xlu1 %10453 }
0x2122   : > { %v10455_v44 = vmul.f32 0.0013020834, %v10454_v33 }
0x2124   : > { %v10456_v53 = vadd.f32 1e-05, %v10455_v44 }
0x2126   : > { %14167 = vrsqrt.f32 %v10456_v53 }
0x2130   : > { %v14168_v11 = vpop.eup %14167 }
0x2131   : > { %v10458_v57 = vmul.f32 %v14168_v11, %v10436_v18  ;;  %v10459_v49 = vmul.f32 %v14168_v11, %v10437_v60  ;;  %v10460_v58 = vmul.f32 %v14168_v11, %v10438_v20  ;;  %v10461_v59 = vmul.f32 %v14168_v11, %v10439_v0 }
0x2132   : > { %v10462_v45 = vmul.f32 %v14168_v11, %v10440_v34  ;;  %v10463_v61 = vmul.f32 %v14168_v11, %v10441_v30 }
0x2133   : > { %v10495_v62 = vmul.f32 %v10468_v24, %v10458_v57  ;;  %v10496_v54 = vmul.f32 %v10472_v51, %v10459_v49  ;;  %v10497_v22 = vmul.f32 %v10476_v52, %v10460_v58  ;;  %v10498_v56 = vmul.f32 %v10480_v32, %v10461_v59 }
0x2134   : > { %v10499_v3 = vmul.f32 %v10484_v19, %v10462_v45  ;;  %v10500_v28 = vmul.f32 %v10488_v14, %v10463_v61 }
0x2135   : > { %v10532_v31 = vadd.f32 %v10505_v35, %v10495_v62  ;;  %v10533_v29 = vadd.f32 %v10509_v6, %v10496_v54  ;;  %v10534_v2 = vadd.f32 %v10513_v47, %v10497_v22  ;;  %v10535_v7 = vadd.f32 %v10517_v46, %v10498_v56 }
0x2136   : > { %v10536_v39 = vadd.f32 %v10521_v5, %v10499_v3  ;;  %v10537_v1 = vadd.f32 %v10525_v21, %v10500_v28 }
0x2137   : > { %v11948_v9 = vpack.c.bf16 %v10533_v29, %v10532_v31  ;;  %v11949_v4 = vpack.c.bf16 %v10535_v7, %v10534_v2 }
0x2138   : > { %v11950_v41 = vpack.c.bf16 %v10537_v1, %v10536_v39 }
0x2139   : > { %10562 = vst [vmem:[%s378_s22] sm:$0xff] %v11948_v9  ;;  %10563 = vst [vmem:[%s378_s22 + $0x8] sm:$0xff] %v11949_v4 }
0x213a   : > { %10564 = vst [vmem:[%s378_s22 + $0x10] sm:$0xff] %v11950_v41 }
0x213b   : > { %14394 = shalt.err (!%p14391_p6)
}
0x213c   : > { %s14395_s30 = scalar_lea.hbm %s15309_s26, 384  ;;  %s14399_s21 = scalar_lea.hbm %s15361_s8, 768 }
0x213d   : > { %p14396_p10 = scmp.ne.s32.totalorder %s15309_s26, %s14395_s30  ;;  %p14400_p11 = scmp.lt.u32.totalorder %s15309_s26, %s15361_s8 }
0x213e   : > { %p14401_p9 = scmp.lt.u32.totalorder %s14399_s21, %s14395_s30  ;;  %p14403_p3 = scmp.lt.u32.totalorder %s14395_s30, %s15309_s26 }
0x213f   : > { %p14397_p12 = pnand %p14396_p10, %p15384_p8 }
0x2140   : > { %p14402_p5 = por %p14401_p9, %p14400_p11 }
0x2141   : > { %p14398_p7 = pneg %p14397_p12 }
0x2142   : > { %p14404_p13 = por %p14403_p3, %p14402_p5 }
0x2144   : > { %p14405_p4 = pnand %p14404_p13, %p14398_p7 }
0x2146   : > { %14408 = shalt.err (!%p14405_p4)
}
0x2147   : > { %12263 = dma.vmem_to_hbm [thread:$0]  (%p15384_p8), %s15311_s29, 384, %s15309_s26, %s10566_s20  }
0x2148 PF: > { %s10592_s22 = sand.u32 1, %s14449_s15   ;;  %p15385_p0 = scmp.ne.s32.totalorder %s15373_s23, 0 }
0x2149   : > { %p15386_p1 = scmp.ge.s32.totalorder %s14461_s18, 2  ;;  %s10593_s10 = scalar_lea.sflag [#allocation7], %s10592_s22 }
0x214b   : > { %p12289_p2 = pnand %p15386_p1, %p15385_p0 }
0x214d   : > { %14444 = dma.done.wait (!%p12289_p2), %s10593_s10, 384  }
0x214e   : > { %14446 = vsyncadd (!%p12289_p2), %s10593_s10, 4294966912  ;;  %p28_p6 = scmp.ge.s32.totalorder %s14708_s24, 4   ;;  %s15387_s15 = smov %s14453_s16 }
0x214f   : > { %s15388_s16 = smov %s14457_s17  ;;  %s15389_s17 = smov %s14719_s9 }
0x2150   : > { %s15390_s18 = smov %s14708_s24  ;;  %30 = sbr.rel (!%p28_p6) target bundleno = 20 (0x14), region = 117 }
0x2157   :  { %10598 = vsyncpa [#allocation6], 1 }
0x2158   :  { %10600 = vsyncpa [#allocation6 + $0x1], 1 }
0x2159   :  { %10601 = vsyncpa [#allocation9], 1 }
0x215a   :  { %10602 = vsyncpa [#allocation12], 1 }
0x215b   :  { %10603 = vsyncpa [#allocation15], 1 }
0x215c   :  { %10604 = vsyncpa [#allocation7], 1 }
0x215d   :  { %10606 = vsyncpa [#allocation7 + $0x1], 1 }

</bundles_post_ra>
